<compile_context>
chip_gen: v7x
topology: tpu7x:2x2x1
jax: 0.10.0
libtpu: 0.0.40
codegen_flags: <defaults>
</compile_context>

<pallas_src>
import functools

import numpy as np
import jax
import jax.numpy as jnp
from jax.experimental import pallas as pl
from jax.experimental.pallas import tpu as pltpu


# ----------------------------- host-side prep --------------------------------

def _gather_conv(H, W, k, stride, pad):
    """Per-tap 0/1 gather matrices (tap, S_out, S_in) for a k x k Conv2d."""
    Ho = (H + 2 * pad - k) // stride + 1
    Wo = (W + 2 * pad - k) // stride + 1
    G = np.zeros((k * k, Ho * Wo, H * W), np.float32)
    for ki in range(k):
        for kj in range(k):
            tap = ki * k + kj
            for ho in range(Ho):
                hi = ho * stride + ki - pad
                if hi < 0 or hi >= H:
                    continue
                for wo in range(Wo):
                    wi = wo * stride + kj - pad
                    if wi < 0 or wi >= W:
                        continue
                    G[tap, ho * Wo + wo, hi * W + wi] = 1.0
    return G


def _gather_convT(H, W, k, stride, pad, out_pad):
    """Per-tap scatter matrices (tap, S_out, S_in) for ConvTranspose2d."""
    Ho = (H - 1) * stride - 2 * pad + k + out_pad
    Wo = (W - 1) * stride - 2 * pad + k + out_pad
    G = np.zeros((k * k, Ho * Wo, H * W), np.float32)
    for ki in range(k):
        for kj in range(k):
            tap = ki * k + kj
            for hi in range(H):
                ho = hi * stride - pad + ki
                if ho < 0 or ho >= Ho:
                    continue
                for wi in range(W):
                    wo = wi * stride - pad + kj
                    if wo < 0 or wo >= Wo:
                        continue
                    G[tap, ho * Wo + wo, hi * W + wi] = 1.0
    return G


def _gT(G):
    # (tap, S_out, S_in) -> (tap, S_in, S_out): right-multiply form for (C, S) activations.
    return jnp.asarray(np.transpose(G, (0, 2, 1)))


def _stack_conv_w(w):
    # torch Conv2d weight (Cout, Cin, kh, kw) -> (kh*kw*Cout, Cin); row = tap*Cout + cout.
    Cout, Cin, kh, kw = w.shape
    return jnp.transpose(w, (2, 3, 0, 1)).reshape(kh * kw * Cout, Cin)


def _stack_convT_w(w):
    # torch ConvTranspose2d weight (Cin, Cout, kh, kw) -> (kh*kw*Cout, Cin).
    Cin, Cout, kh, kw = w.shape
    return jnp.transpose(w, (2, 3, 1, 0)).reshape(kh * kw * Cout, Cin)


# ------------------------------ fused kernel ---------------------------------

def _rollout_kernel(frames_ref,
                    g_e2, w_e2, b_e2,
                    g_e3, w_e3, b_e3,
                    g_cl, w_cx, w_ch, b_cl,
                    w_e1, b_e1,
                    w_pr, b_pr,
                    g_d1, w_d1, b_d1,
                    g_d2, w_d2, b_d2,
                    w_d3, b_d3,
                    out_ref,
                    *, n_layers, hid, cin, s4, T):
    f32 = jnp.float32

    def leaky(v):
        return jnp.where(v >= 0, v, 0.1 * v)

    def conv3x3(act, g_ref, w_ref, b_ref):
        # act: (Cin, S_in); w_ref: (9*Cout, Cin); g_ref: (9, S_in, S_out); b_ref: (Cout, 1)
        c_out = w_ref.shape[0] // 9
        s_out = g_ref.shape[2]
        y = jnp.dot(w_ref[...], act, preferred_element_type=f32)        # (9*Cout, S_in)
        acc = jnp.zeros((c_out, s_out), f32)
        for tap in range(9):                                            # sublane-aligned slices
            acc = acc + jnp.dot(y[tap * c_out:(tap + 1) * c_out, :], g_ref[tap],
                                preferred_element_type=f32)
        return leaky(acc + b_ref[...])

    def step(t, carry):
        hs, cs = carry
        x = frames_ref[t]                                               # (cin, HW), lane-dense
        # ---- img_encode -------------------------------------------------------
        e = jnp.zeros((hid, x.shape[-1]), f32)
        for ci in range(cin):                                           # 1x1 conv as VPU broadcast
            e = e + w_e1[:, ci:ci + 1] * x[ci:ci + 1, :]
        e = leaky(e + b_e1[...])                                        # (hid, HW)
        e = conv3x3(e, g_e2, w_e2, b_e2)                                # 3x3 s2 p1 -> (hid, S2)
        e = conv3x3(e, g_e3, w_e3, b_e3)                                # 3x3 s2 p1 -> (hid, S4)
        # ---- ConvLSTM stack ---------------------------------------------------
        g4 = 4 * hid
        new_h, new_c = [], []
        for l in range(n_layers):
            h_cur, c_cur = hs[l], cs[l]
            y = (jnp.dot(w_cx[l], e, preferred_element_type=f32)
                 + jnp.dot(w_ch[l], h_cur, preferred_element_type=f32))  # (9*4hid, S4)
            gates = jnp.zeros((g4, s4), f32)
            for tap in range(9):
                gates = gates + jnp.dot(y[tap * g4:(tap + 1) * g4, :], g_cl[tap],
                                        preferred_element_type=f32)
            gates = gates + b_cl[l]                                     # (4hid, S4)
            i_g = jax.nn.sigmoid(gates[0:hid, :])                       # sublane slices
            f_g = jax.nn.sigmoid(gates[hid:2 * hid, :])
            o_g = jax.nn.sigmoid(gates[2 * hid:3 * hid, :])
            g_g = jnp.tanh(gates[3 * hid:4 * hid, :])
            c_new = f_g * c_cur + i_g * g_g
            h_new = o_g * jnp.tanh(c_new)
            new_h.append(h_new)
            new_c.append(c_new)
        # ---- decoder_predict (1x1, last layer's hidden state is the one kept) --
        lat = jnp.dot(w_pr[...], new_h[-1], preferred_element_type=f32) + b_pr[...]
        # ---- img_decode ---------------------------------------------------------
        d = conv3x3(lat, g_d1, w_d1, b_d1)                              # convT 3x3 s2 -> (hid, S2)
        d = conv3x3(d, g_d2, w_d2, b_d2)                                # convT 3x3 s2 -> (hid, HW)
        y_out = jnp.dot(w_d3[...], d, preferred_element_type=f32) + b_d3[...]
        out_ref[t] = y_out.astype(out_ref.dtype)                        # lane-dense (cin, HW) store
        return tuple(new_h), tuple(new_c)

    h0 = tuple(jnp.zeros((hid, s4), f32) for _ in range(n_layers))
    c0 = tuple(jnp.zeros((hid, s4), f32) for _ in range(n_layers))
    jax.lax.fori_loop(0, T, step, (h0, c0))


# ------------------------------ model wrapper --------------------------------

def make_runner(params, B, img_size, T=19):
    hid = params["enc1_w"].shape[0]
    cin = params["enc1_w"].shape[1]
    n_layers = len(params["cell_w"])
    H = img_size
    H2, H4 = H // 2, H // 4
    HW, S4 = H * H, H4 * H4

    consts = [
        _gT(_gather_conv(H, H, 3, 2, 1)),
        _stack_conv_w(params["enc2_w"]), params["enc2_b"].reshape(hid, 1),
        _gT(_gather_conv(H2, H2, 3, 2, 1)),
        _stack_conv_w(params["enc3_w"]), params["enc3_b"].reshape(hid, 1),
        _gT(_gather_conv(H4, H4, 3, 1, 1)),
        jnp.stack([_stack_conv_w(w[:, :hid]) for w in params["cell_w"]]),   # x-part weights
        jnp.stack([_stack_conv_w(w[:, hid:]) for w in params["cell_w"]]),   # h-part weights
        jnp.stack([b.reshape(4 * hid, 1) for b in params["cell_b"]]),
        params["enc1_w"][:, :, 0, 0], params["enc1_b"].reshape(hid, 1),
        params["pred_w"][:, :, 0, 0], params["pred_b"].reshape(hid, 1),
        _gT(_gather_convT(H4, H4, 3, 2, 1, 1)),
        _stack_convT_w(params["dec1_w"]), params["dec1_b"].reshape(hid, 1),
        _gT(_gather_convT(H2, H2, 3, 2, 1, 1)),
        _stack_convT_w(params["dec2_w"]), params["dec2_b"].reshape(hid, 1),
        params["dec3_w"][:, :, 0, 0], params["dec3_b"].reshape(cin, 1),
    ]

    frame_spec = pl.BlockSpec((None, T, cin, HW), lambda b: (b, 0, 0, 0))
    const_specs = [pl.BlockSpec(a.shape, lambda b, nd=a.ndim: (0,) * nd) for a in consts]
    out_spec = pl.BlockSpec((None, T, cin, HW), lambda b: (b, 0, 0, 0))

    grid_spec = pltpu.PrefetchScalarGridSpec(
        num_scalar_prefetch=0,
        grid=(B,),
        in_specs=[frame_spec] + const_specs,
        out_specs=out_spec,
    )

    call = pl.pallas_call(
        functools.partial(_rollout_kernel, n_layers=n_layers, hid=hid,
                          cin=cin, s4=S4, T=T),
        out_shape=jax.ShapeDtypeStruct((B, T, cin, HW), jnp.float32),
        grid_spec=grid_spec,
        compiler_params=pltpu.CompilerParams(
            dimension_semantics=("parallel",),
            vmem_limit_bytes=64 * 1024 * 1024,
        ),
    )
    run = jax.jit(lambda frames_k, *cs: call(frames_k, *cs))
    return run, consts


def forward(params, x, y, input_window_size=10, teacher_forcing_rate=1.0):
    """Mirrors EncoderDecoderConvLSTM.forward (19 steps, return last 10 frames)."""
    # TODO(synk): teacher forcing pinned to 1.0 (always ground truth) — the torch
    #   reference uses python random.random() per step, which is non-deterministic.
    del input_window_size, teacher_forcing_rate
    B, _, C, H, W = x.shape
    T = 19
    frames = jnp.concatenate([x, y], axis=1)[:, :T]            # (B, 19, C, H, W)
    frames_k = frames.reshape(B, T, C, H * W)                  # lane-dense (C, HW) per step
    run, consts = make_runner(params, B, H, T)
    out = run(frames_k, *consts)                               # (B, 19, C, HW)
    return out.reshape(B, T, C, H, W)[:, 9:]                   # (B, 10, C, H, W)


# ------------------------------ params & reference ---------------------------

def init_params(key, input_dim, hidden_dim, n_layers):
    keys = jax.random.split(key, 16)
    s = 0.05
    w = lambda k, shape: jax.random.normal(k, shape, jnp.float32) * s
    p = {}
    # img_encode
    p["enc1_w"] = w(keys[0], (hidden_dim, input_dim, 1, 1)); p["enc1_b"] = w(keys[1], (hidden_dim,))
    p["enc2_w"] = w(keys[2], (hidden_dim, hidden_dim, 3, 3)); p["enc2_b"] = w(keys[3], (hidden_dim,))
    p["enc3_w"] = w(keys[4], (hidden_dim, hidden_dim, 3, 3)); p["enc3_b"] = w(keys[5], (hidden_dim,))
    # decoder_predict (1x1)
    p["pred_w"] = w(keys[6], (hidden_dim, hidden_dim, 1, 1)); p["pred_b"] = w(keys[7], (hidden_dim,))
    # img_decode (ConvTranspose weights are (Cin, Cout, k, k))
    p["dec1_w"] = w(keys[8], (hidden_dim, hidden_dim, 3, 3)); p["dec1_b"] = w(keys[9], (hidden_dim,))
    p["dec2_w"] = w(keys[10], (hidden_dim, hidden_dim, 3, 3)); p["dec2_b"] = w(keys[11], (hidden_dim,))
    p["dec3_w"] = w(keys[12], (input_dim, hidden_dim, 1, 1)); p["dec3_b"] = w(keys[13], (input_dim,))
    # ConvLSTM cells: conv(cat([x, h])) -> 4*hidden channels, 3x3, bias
    ck = jax.random.split(keys[14], 2 * n_layers)
    p["cell_w"] = [w(ck[2 * i], (4 * hidden_dim, 2 * hidden_dim, 3, 3)) for i in range(n_layers)]
    p["cell_b"] = [w(ck[2 * i + 1], (4 * hidden_dim,)) for i in range(n_layers)]
    return p


def _ref_forward(params, x, y):
    """Pure-JAX (lax.conv) NCHW reference with identical semantics, for validation."""
    dn = ("NCHW", "OIHW", "NCHW")

    def conv(z, w, b, stride, pad):
        o = jax.lax.conv_general_dilated(z, w, (stride, stride),
                                         [(pad, pad), (pad, pad)],
                                         dimension_numbers=dn)
        return o + b[None, :, None, None]

    def convT(z, w, b):  # kernel 3, stride 2, padding 1, output_padding 1
        w_eq = jnp.transpose(jnp.flip(w, axis=(2, 3)), (1, 0, 2, 3))
        o = jax.lax.conv_general_dilated(z, w_eq, (1, 1), [(1, 2), (1, 2)],
                                         lhs_dilation=(2, 2),
                                         dimension_numbers=dn)
        return o + b[None, :, None, None]

    leaky = lambda v: jnp.where(v >= 0, v, 0.1 * v)
    n_layers = len(params["cell_w"])
    B, _, _, H, _ = x.shape
    hid = params["enc1_w"].shape[0]
    hs = H // 4
    h = [jnp.zeros((B, hid, hs, hs), jnp.float32) for _ in range(n_layers)]
    c = [jnp.zeros((B, hid, hs, hs), jnp.float32) for _ in range(n_layers)]
    frames = jnp.concatenate([x, y], axis=1)
    preds = []
    for t in range(19):
        e = leaky(conv(frames[:, t], params["enc1_w"], params["enc1_b"], 1, 0))
        e = leaky(conv(e, params["enc2_w"], params["enc2_b"], 2, 1))
        e = leaky(conv(e, params["enc3_w"], params["enc3_b"], 2, 1))
        lat = None
        for l in range(n_layers):
            comb = jnp.concatenate([e, h[l]], axis=1)
            gates = conv(comb, params["cell_w"][l], params["cell_b"][l], 1, 1)
            ig, fg, og, gg = jnp.split(gates, 4, axis=1)
            c[l] = jax.nn.sigmoid(fg) * c[l] + jax.nn.sigmoid(ig) * jnp.tanh(gg)
            h[l] = jax.nn.sigmoid(og) * jnp.tanh(c[l])
            lat = conv(h[l], params["pred_w"], params["pred_b"], 1, 0)
        d = leaky(convT(lat, params["dec1_w"], params["dec1_b"]))
        d = leaky(convT(d, params["dec2_w"], params["dec2_b"]))
        d = conv(d, params["dec3_w"], params["dec3_b"], 1, 0)
        preds.append(d)
    return jnp.stack(preds, axis=1)[:, 9:]


# ------------------------------ main ------------------------------------------

if __name__ == "__main__":
    B = 2
    T_in, T_out = 10, 10
    input_dim = 1
    hidden_dim = 32
    img_size = 16
    n_layers = 2

    key = jax.random.PRNGKey(0)
    kx, ky, kp = jax.random.split(key, 3)
    x = jax.random.normal(kx, (B, T_in, input_dim, img_size, img_size), jnp.float32)
    y = jax.random.normal(ky, (B, T_out, input_dim, img_size, img_size), jnp.float32)
    params = init_params(kp, input_dim, hidden_dim, n_layers)

    out = jax.block_until_ready(forward(params, x, y))
    assert out.shape == (B, 10, input_dim, img_size, img_size), out.shape
    assert bool(jnp.all(jnp.isfinite(out)))

    # Validate the fused Pallas rollout against a pure-JAX reference.
    ref = jax.block_until_ready(jax.jit(_ref_forward)(params, x, y))
    err = float(jnp.max(jnp.abs(out - ref)))
    assert err < 3e-3, f"mismatch vs pure-JAX reference: {err}"

    print("KERNEL_OK")
</pallas_src>

<mosaic_0001>
module attributes {stable_mosaic.version = 11 : i64} {
  func.func @_rollout_kernel(%arg0: i32, %arg1: memref<1x19x1x256xf32, #tpu.memory_space<vmem>>, %arg2: memref<9x256x64xf32, #tpu.memory_space<vmem>>, %arg3: memref<288x32xf32, #tpu.memory_space<vmem>>, %arg4: memref<32x1xf32, #tpu.memory_space<vmem>>, %arg5: memref<9x64x16xf32, #tpu.memory_space<vmem>>, %arg6: memref<288x32xf32, #tpu.memory_space<vmem>>, %arg7: memref<32x1xf32, #tpu.memory_space<vmem>>, %arg8: memref<9x16x16xf32, #tpu.memory_space<vmem>>, %arg9: memref<2x1152x32xf32, #tpu.memory_space<vmem>>, %arg10: memref<2x1152x32xf32, #tpu.memory_space<vmem>>, %arg11: memref<2x128x1xf32, #tpu.memory_space<vmem>>, %arg12: memref<32x1xf32, #tpu.memory_space<vmem>>, %arg13: memref<32x1xf32, #tpu.memory_space<vmem>>, %arg14: memref<32x32xf32, #tpu.memory_space<vmem>>, %arg15: memref<32x1xf32, #tpu.memory_space<vmem>>, %arg16: memref<9x16x64xf32, #tpu.memory_space<vmem>>, %arg17: memref<288x32xf32, #tpu.memory_space<vmem>>, %arg18: memref<32x1xf32, #tpu.memory_space<vmem>>, %arg19: memref<9x64x256xf32, #tpu.memory_space<vmem>>, %arg20: memref<288x32xf32, #tpu.memory_space<vmem>>, %arg21: memref<32x1xf32, #tpu.memory_space<vmem>>, %arg22: memref<1x32xf32, #tpu.memory_space<vmem>>, %arg23: memref<1x1xf32, #tpu.memory_space<vmem>>, %arg24: memref<1x19x1x256xf32, #tpu.memory_space<vmem>>) attributes {dimension_semantics = [#tpu.dimension_semantics<parallel>], iteration_bounds = array<i64: 2>, scalar_prefetch = 0 : i64, scratch_operands = 0 : i64, tpu.core_type = #tpu.core_type<tc>, window_params = [{transform_indices = @transform_0, window_bounds = array<i64: 1, 19, 1, 256>}, {pipeline_mode = #tpu.pipeline_mode<synchronous>, transform_indices = @transform_1, window_bounds = array<i64: 9, 256, 64>}, {pipeline_mode = #tpu.pipeline_mode<synchronous>, transform_indices = @transform_2, window_bounds = array<i64: 288, 32>}, {pipeline_mode = #tpu.pipeline_mode<synchronous>, transform_indices = @transform_3, window_bounds = array<i64: 32, 1>}, {pipeline_mode = #tpu.pipeline_mode<synchronous>, transform_indices = @transform_4, window_bounds = array<i64: 9, 64, 16>}, {pipeline_mode = #tpu.pipeline_mode<synchronous>, transform_indices = @transform_5, window_bounds = array<i64: 288, 32>}, {pipeline_mode = #tpu.pipeline_mode<synchronous>, transform_indices = @transform_6, window_bounds = array<i64: 32, 1>}, {pipeline_mode = #tpu.pipeline_mode<synchronous>, transform_indices = @transform_7, window_bounds = array<i64: 9, 16, 16>}, {pipeline_mode = #tpu.pipeline_mode<synchronous>, transform_indices = @transform_8, window_bounds = array<i64: 2, 1152, 32>}, {pipeline_mode = #tpu.pipeline_mode<synchronous>, transform_indices = @transform_9, window_bounds = array<i64: 2, 1152, 32>}, {pipeline_mode = #tpu.pipeline_mode<synchronous>, transform_indices = @transform_10, window_bounds = array<i64: 2, 128, 1>}, {pipeline_mode = #tpu.pipeline_mode<synchronous>, transform_indices = @transform_11, window_bounds = array<i64: 32, 1>}, {pipeline_mode = #tpu.pipeline_mode<synchronous>, transform_indices = @transform_12, window_bounds = array<i64: 32, 1>}, {pipeline_mode = #tpu.pipeline_mode<synchronous>, transform_indices = @transform_13, window_bounds = array<i64: 32, 32>}, {pipeline_mode = #tpu.pipeline_mode<synchronous>, transform_indices = @transform_14, window_bounds = array<i64: 32, 1>}, {pipeline_mode = #tpu.pipeline_mode<synchronous>, transform_indices = @transform_15, window_bounds = array<i64: 9, 16, 64>}, {pipeline_mode = #tpu.pipeline_mode<synchronous>, transform_indices = @transform_16, window_bounds = array<i64: 288, 32>}, {pipeline_mode = #tpu.pipeline_mode<synchronous>, transform_indices = @transform_17, window_bounds = array<i64: 32, 1>}, {pipeline_mode = #tpu.pipeline_mode<synchronous>, transform_indices = @transform_18, window_bounds = array<i64: 9, 64, 256>}, {pipeline_mode = #tpu.pipeline_mode<synchronous>, transform_indices = @transform_19, window_bounds = array<i64: 288, 32>}, {pipeline_mode = #tpu.pipeline_mode<synchronous>, transform_indices = @transform_20, window_bounds = array<i64: 32, 1>}, {pipeline_mode = #tpu.pipeline_mode<synchronous>, transform_indices = @transform_21, window_bounds = array<i64: 1, 32>}, {pipeline_mode = #tpu.pipeline_mode<synchronous>, transform_indices = @transform_22, window_bounds = array<i64: 1, 1>}, {transform_indices = @transform_23, window_bounds = array<i64: 1, 19, 1, 256>}]} {
    %cst = arith.constant 0.000000e+00 : f32
    %0 = vector.broadcast %cst : f32 to vector<32x16xf32>
    %cst_0 = arith.constant 0.000000e+00 : f32
    %1 = vector.broadcast %cst_0 : f32 to vector<32x16xf32>
    %c0_i32 = arith.constant 0 : i32
    %c19_i32 = arith.constant 19 : i32
    %2 = arith.addi %c0_i32, %c19_i32 : i32
    %c1_i32 = arith.constant 1 : i32
    %3:2 = scf.for %arg25 = %c0_i32 to %2 step %c1_i32 iter_args(%arg26 = %0, %arg27 = %1) -> (vector<32x16xf32>, vector<32x16xf32>)  : i32 {
      %c0 = arith.constant 0 : index
      %4 = arith.index_cast %arg25 : i32 to index
      %c0_2 = arith.constant 0 : index
      %c0_3 = arith.constant 0 : index
      %5 = vector.load %arg1[%c0, %4, %c0_2, %c0_3] : memref<1x19x1x256xf32, #tpu.memory_space<vmem>>, vector<1x1x1x256xf32>
      %6 = vector.shape_cast %5 : vector<1x1x1x256xf32> to vector<1x256xf32>
      %cst_4 = arith.constant 0.000000e+00 : f32
      %7 = vector.broadcast %cst_4 : f32 to vector<32x256xf32>
      %c0_5 = arith.constant 0 : index
      %c0_6 = arith.constant 0 : index
      %8 = vector.load %arg12[%c0_5, %c0_6] : memref<32x1xf32, #tpu.memory_space<vmem>>, vector<32x1xf32>
      %9 = vector.broadcast %8 : vector<32x1xf32> to vector<32x256xf32>
      %10 = vector.broadcast %6 : vector<1x256xf32> to vector<32x256xf32>
      %11 = arith.mulf %9, %10 : vector<32x256xf32>
      %12 = arith.addf %7, %11 : vector<32x256xf32>
      %c0_7 = arith.constant 0 : index
      %c0_8 = arith.constant 0 : index
      %13 = vector.load %arg13[%c0_7, %c0_8] : memref<32x1xf32, #tpu.memory_space<vmem>>, vector<32x1xf32>
      %14 = vector.broadcast %13 : vector<32x1xf32> to vector<32x256xf32>
      %15 = arith.addf %12, %14 : vector<32x256xf32>
      %cst_9 = arith.constant 0.000000e+00 : f32
      %16 = vector.broadcast %cst_9 : f32 to vector<32x256xf32>
      %17 = arith.cmpf oge, %15, %16 : vector<32x256xf32>
      %cst_10 = arith.constant 1.000000e-01 : f32
      %18 = vector.broadcast %cst_10 : f32 to vector<32x256xf32>
      %19 = arith.mulf %18, %15 : vector<32x256xf32>
      %20 = arith.select %17, %15, %19 : vector<32x256xi1>, vector<32x256xf32>
      %c0_11 = arith.constant 0 : index
      %c0_12 = arith.constant 0 : index
      %21 = vector.load %arg3[%c0_11, %c0_12] : memref<288x32xf32, #tpu.memory_space<vmem>>, vector<288x32xf32>
      %cst_13 = arith.constant dense<0.000000e+00> : vector<288x256xf32>
      %22 = tpu.matmul %21, %20, %cst_13 {dimension_numbers = #tpu.dot_dimension_numbers<[1], [0], [0], [1], [0, 0, 1, 1], [], []>} : vector<288x32xf32>, vector<32x256xf32>, vector<288x256xf32> -> vector<288x256xf32>
      %cst_14 = arith.constant 0.000000e+00 : f32
      %23 = vector.broadcast %cst_14 : f32 to vector<32x64xf32>
      %24 = vector.extract_strided_slice %22 {offsets = [0, 0], sizes = [32, 256], strides = [1, 1]} : vector<288x256xf32> to vector<32x256xf32>
      %c0_15 = arith.constant 0 : index
      %c0_16 = arith.constant 0 : index
      %c0_17 = arith.constant 0 : index
      %25 = vector.load %arg2[%c0_15, %c0_16, %c0_17] : memref<9x256x64xf32, #tpu.memory_space<vmem>>, vector<1x256x64xf32>
      %26 = vector.shape_cast %25 : vector<1x256x64xf32> to vector<256x64xf32>
      %cst_18 = arith.constant dense<0.000000e+00> : vector<32x64xf32>
      %27 = tpu.matmul %24, %26, %cst_18 {dimension_numbers = #tpu.dot_dimension_numbers<[1], [0], [0], [1], [0, 0, 1, 1], [], []>} : vector<32x256xf32>, vector<256x64xf32>, vector<32x64xf32> -> vector<32x64xf32>
      %28 = arith.addf %23, %27 : vector<32x64xf32>
      %29 = vector.extract_strided_slice %22 {offsets = [32, 0], sizes = [32, 256], strides = [1, 1]} : vector<288x256xf32> to vector<32x256xf32>
      %c1 = arith.constant 1 : index
      %c0_19 = arith.constant 0 : index
      %c0_20 = arith.constant 0 : index
      %30 = vector.load %arg2[%c1, %c0_19, %c0_20] : memref<9x256x64xf32, #tpu.memory_space<vmem>>, vector<1x256x64xf32>
      %31 = vector.shape_cast %30 : vector<1x256x64xf32> to vector<256x64xf32>
      %cst_21 = arith.constant dense<0.000000e+00> : vector<32x64xf32>
      %32 = tpu.matmul %29, %31, %cst_21 {dimension_numbers = #tpu.dot_dimension_numbers<[1], [0], [0], [1], [0, 0, 1, 1], [], []>} : vector<32x256xf32>, vector<256x64xf32>, vector<32x64xf32> -> vector<32x64xf32>
      %33 = arith.addf %28, %32 : vector<32x64xf32>
      %34 = vector.extract_strided_slice %22 {offsets = [64, 0], sizes = [32, 256], strides = [1, 1]} : vector<288x256xf32> to vector<32x256xf32>
      %c2 = arith.constant 2 : index
      %c0_22 = arith.constant 0 : index
      %c0_23 = arith.constant 0 : index
      %35 = vector.load %arg2[%c2, %c0_22, %c0_23] : memref<9x256x64xf32, #tpu.memory_space<vmem>>, vector<1x256x64xf32>
      %36 = vector.shape_cast %35 : vector<1x256x64xf32> to vector<256x64xf32>
      %cst_24 = arith.constant dense<0.000000e+00> : vector<32x64xf32>
      %37 = tpu.matmul %34, %36, %cst_24 {dimension_numbers = #tpu.dot_dimension_numbers<[1], [0], [0], [1], [0, 0, 1, 1], [], []>} : vector<32x256xf32>, vector<256x64xf32>, vector<32x64xf32> -> vector<32x64xf32>
      %38 = arith.addf %33, %37 : vector<32x64xf32>
      %39 = vector.extract_strided_slice %22 {offsets = [96, 0], sizes = [32, 256], strides = [1, 1]} : vector<288x256xf32> to vector<32x256xf32>
      %c3 = arith.constant 3 : index
      %c0_25 = arith.constant 0 : index
      %c0_26 = arith.constant 0 : index
      %40 = vector.load %arg2[%c3, %c0_25, %c0_26] : memref<9x256x64xf32, #tpu.memory_space<vmem>>, vector<1x256x64xf32>
      %41 = vector.shape_cast %40 : vector<1x256x64xf32> to vector<256x64xf32>
      %cst_27 = arith.constant dense<0.000000e+00> : vector<32x64xf32>
      %42 = tpu.matmul %39, %41, %cst_27 {dimension_numbers = #tpu.dot_dimension_numbers<[1], [0], [0], [1], [0, 0, 1, 1], [], []>} : vector<32x256xf32>, vector<256x64xf32>, vector<32x64xf32> -> vector<32x64xf32>
      %43 = arith.addf %38, %42 : vector<32x64xf32>
      %44 = vector.extract_strided_slice %22 {offsets = [128, 0], sizes = [32, 256], strides = [1, 1]} : vector<288x256xf32> to vector<32x256xf32>
      %c4 = arith.constant 4 : index
      %c0_28 = arith.constant 0 : index
      %c0_29 = arith.constant 0 : index
      %45 = vector.load %arg2[%c4, %c0_28, %c0_29] : memref<9x256x64xf32, #tpu.memory_space<vmem>>, vector<1x256x64xf32>
      %46 = vector.shape_cast %45 : vector<1x256x64xf32> to vector<256x64xf32>
      %cst_30 = arith.constant dense<0.000000e+00> : vector<32x64xf32>
      %47 = tpu.matmul %44, %46, %cst_30 {dimension_numbers = #tpu.dot_dimension_numbers<[1], [0], [0], [1], [0, 0, 1, 1], [], []>} : vector<32x256xf32>, vector<256x64xf32>, vector<32x64xf32> -> vector<32x64xf32>
      %48 = arith.addf %43, %47 : vector<32x64xf32>
      %49 = vector.extract_strided_slice %22 {offsets = [160, 0], sizes = [32, 256], strides = [1, 1]} : vector<288x256xf32> to vector<32x256xf32>
      %c5 = arith.constant 5 : index
      %c0_31 = arith.constant 0 : index
      %c0_32 = arith.constant 0 : index
      %50 = vector.load %arg2[%c5, %c0_31, %c0_32] : memref<9x256x64xf32, #tpu.memory_space<vmem>>, vector<1x256x64xf32>
      %51 = vector.shape_cast %50 : vector<1x256x64xf32> to vector<256x64xf32>
      %cst_33 = arith.constant dense<0.000000e+00> : vector<32x64xf32>
      %52 = tpu.matmul %49, %51, %cst_33 {dimension_numbers = #tpu.dot_dimension_numbers<[1], [0], [0], [1], [0, 0, 1, 1], [], []>} : vector<32x256xf32>, vector<256x64xf32>, vector<32x64xf32> -> vector<32x64xf32>
      %53 = arith.addf %48, %52 : vector<32x64xf32>
      %54 = vector.extract_strided_slice %22 {offsets = [192, 0], sizes = [32, 256], strides = [1, 1]} : vector<288x256xf32> to vector<32x256xf32>
      %c6 = arith.constant 6 : index
      %c0_34 = arith.constant 0 : index
      %c0_35 = arith.constant 0 : index
      %55 = vector.load %arg2[%c6, %c0_34, %c0_35] : memref<9x256x64xf32, #tpu.memory_space<vmem>>, vector<1x256x64xf32>
      %56 = vector.shape_cast %55 : vector<1x256x64xf32> to vector<256x64xf32>
      %cst_36 = arith.constant dense<0.000000e+00> : vector<32x64xf32>
      %57 = tpu.matmul %54, %56, %cst_36 {dimension_numbers = #tpu.dot_dimension_numbers<[1], [0], [0], [1], [0, 0, 1, 1], [], []>} : vector<32x256xf32>, vector<256x64xf32>, vector<32x64xf32> -> vector<32x64xf32>
      %58 = arith.addf %53, %57 : vector<32x64xf32>
      %59 = vector.extract_strided_slice %22 {offsets = [224, 0], sizes = [32, 256], strides = [1, 1]} : vector<288x256xf32> to vector<32x256xf32>
      %c7 = arith.constant 7 : index
      %c0_37 = arith.constant 0 : index
      %c0_38 = arith.constant 0 : index
      %60 = vector.load %arg2[%c7, %c0_37, %c0_38] : memref<9x256x64xf32, #tpu.memory_space<vmem>>, vector<1x256x64xf32>
      %61 = vector.shape_cast %60 : vector<1x256x64xf32> to vector<256x64xf32>
      %cst_39 = arith.constant dense<0.000000e+00> : vector<32x64xf32>
      %62 = tpu.matmul %59, %61, %cst_39 {dimension_numbers = #tpu.dot_dimension_numbers<[1], [0], [0], [1], [0, 0, 1, 1], [], []>} : vector<32x256xf32>, vector<256x64xf32>, vector<32x64xf32> -> vector<32x64xf32>
      %63 = arith.addf %58, %62 : vector<32x64xf32>
      %64 = vector.extract_strided_slice %22 {offsets = [256, 0], sizes = [32, 256], strides = [1, 1]} : vector<288x256xf32> to vector<32x256xf32>
      %c8 = arith.constant 8 : index
      %c0_40 = arith.constant 0 : index
      %c0_41 = arith.constant 0 : index
      %65 = vector.load %arg2[%c8, %c0_40, %c0_41] : memref<9x256x64xf32, #tpu.memory_space<vmem>>, vector<1x256x64xf32>
      %66 = vector.shape_cast %65 : vector<1x256x64xf32> to vector<256x64xf32>
      %cst_42 = arith.constant dense<0.000000e+00> : vector<32x64xf32>
      %67 = tpu.matmul %64, %66, %cst_42 {dimension_numbers = #tpu.dot_dimension_numbers<[1], [0], [0], [1], [0, 0, 1, 1], [], []>} : vector<32x256xf32>, vector<256x64xf32>, vector<32x64xf32> -> vector<32x64xf32>
      %68 = arith.addf %63, %67 : vector<32x64xf32>
      %c0_43 = arith.constant 0 : index
      %c0_44 = arith.constant 0 : index
      %69 = vector.load %arg4[%c0_43, %c0_44] : memref<32x1xf32, #tpu.memory_space<vmem>>, vector<32x1xf32>
      %70 = vector.broadcast %69 : vector<32x1xf32> to vector<32x64xf32>
      %71 = arith.addf %68, %70 : vector<32x64xf32>
      %cst_45 = arith.constant 0.000000e+00 : f32
      %72 = vector.broadcast %cst_45 : f32 to vector<32x64xf32>
      %73 = arith.cmpf oge, %71, %72 : vector<32x64xf32>
      %cst_46 = arith.constant 1.000000e-01 : f32
      %74 = vector.broadcast %cst_46 : f32 to vector<32x64xf32>
      %75 = arith.mulf %74, %71 : vector<32x64xf32>
      %76 = arith.select %73, %71, %75 : vector<32x64xi1>, vector<32x64xf32>
      %c0_47 = arith.constant 0 : index
      %c0_48 = arith.constant 0 : index
      %77 = vector.load %arg6[%c0_47, %c0_48] : memref<288x32xf32, #tpu.memory_space<vmem>>, vector<288x32xf32>
      %cst_49 = arith.constant dense<0.000000e+00> : vector<288x64xf32>
      %78 = tpu.matmul %77, %76, %cst_49 {dimension_numbers = #tpu.dot_dimension_numbers<[1], [0], [0], [1], [0, 0, 1, 1], [], []>} : vector<288x32xf32>, vector<32x64xf32>, vector<288x64xf32> -> vector<288x64xf32>
      %cst_50 = arith.constant 0.000000e+00 : f32
      %79 = vector.broadcast %cst_50 : f32 to vector<32x16xf32>
      %80 = vector.extract_strided_slice %78 {offsets = [0, 0], sizes = [32, 64], strides = [1, 1]} : vector<288x64xf32> to vector<32x64xf32>
      %c0_51 = arith.constant 0 : index
      %c0_52 = arith.constant 0 : index
      %c0_53 = arith.constant 0 : index
      %81 = vector.load %arg5[%c0_51, %c0_52, %c0_53] : memref<9x64x16xf32, #tpu.memory_space<vmem>>, vector<1x64x16xf32>
      %82 = vector.shape_cast %81 : vector<1x64x16xf32> to vector<64x16xf32>
      %cst_54 = arith.constant dense<0.000000e+00> : vector<32x16xf32>
      %83 = tpu.matmul %80, %82, %cst_54 {dimension_numbers = #tpu.dot_dimension_numbers<[1], [0], [0], [1], [0, 0, 1, 1], [], []>} : vector<32x64xf32>, vector<64x16xf32>, vector<32x16xf32> -> vector<32x16xf32>
      %84 = arith.addf %79, %83 : vector<32x16xf32>
      %85 = vector.extract_strided_slice %78 {offsets = [32, 0], sizes = [32, 64], strides = [1, 1]} : vector<288x64xf32> to vector<32x64xf32>
      %c1_55 = arith.constant 1 : index
      %c0_56 = arith.constant 0 : index
      %c0_57 = arith.constant 0 : index
      %86 = vector.load %arg5[%c1_55, %c0_56, %c0_57] : memref<9x64x16xf32, #tpu.memory_space<vmem>>, vector<1x64x16xf32>
      %87 = vector.shape_cast %86 : vector<1x64x16xf32> to vector<64x16xf32>
      %cst_58 = arith.constant dense<0.000000e+00> : vector<32x16xf32>
      %88 = tpu.matmul %85, %87, %cst_58 {dimension_numbers = #tpu.dot_dimension_numbers<[1], [0], [0], [1], [0, 0, 1, 1], [], []>} : vector<32x64xf32>, vector<64x16xf32>, vector<32x16xf32> -> vector<32x16xf32>
      %89 = arith.addf %84, %88 : vector<32x16xf32>
      %90 = vector.extract_strided_slice %78 {offsets = [64, 0], sizes = [32, 64], strides = [1, 1]} : vector<288x64xf32> to vector<32x64xf32>
      %c2_59 = arith.constant 2 : index
      %c0_60 = arith.constant 0 : index
      %c0_61 = arith.constant 0 : index
      %91 = vector.load %arg5[%c2_59, %c0_60, %c0_61] : memref<9x64x16xf32, #tpu.memory_space<vmem>>, vector<1x64x16xf32>
      %92 = vector.shape_cast %91 : vector<1x64x16xf32> to vector<64x16xf32>
      %cst_62 = arith.constant dense<0.000000e+00> : vector<32x16xf32>
      %93 = tpu.matmul %90, %92, %cst_62 {dimension_numbers = #tpu.dot_dimension_numbers<[1], [0], [0], [1], [0, 0, 1, 1], [], []>} : vector<32x64xf32>, vector<64x16xf32>, vector<32x16xf32> -> vector<32x16xf32>
      %94 = arith.addf %89, %93 : vector<32x16xf32>
      %95 = vector.extract_strided_slice %78 {offsets = [96, 0], sizes = [32, 64], strides = [1, 1]} : vector<288x64xf32> to vector<32x64xf32>
      %c3_63 = arith.constant 3 : index
      %c0_64 = arith.constant 0 : index
      %c0_65 = arith.constant 0 : index
      %96 = vector.load %arg5[%c3_63, %c0_64, %c0_65] : memref<9x64x16xf32, #tpu.memory_space<vmem>>, vector<1x64x16xf32>
      %97 = vector.shape_cast %96 : vector<1x64x16xf32> to vector<64x16xf32>
      %cst_66 = arith.constant dense<0.000000e+00> : vector<32x16xf32>
      %98 = tpu.matmul %95, %97, %cst_66 {dimension_numbers = #tpu.dot_dimension_numbers<[1], [0], [0], [1], [0, 0, 1, 1], [], []>} : vector<32x64xf32>, vector<64x16xf32>, vector<32x16xf32> -> vector<32x16xf32>
      %99 = arith.addf %94, %98 : vector<32x16xf32>
      %100 = vector.extract_strided_slice %78 {offsets = [128, 0], sizes = [32, 64], strides = [1, 1]} : vector<288x64xf32> to vector<32x64xf32>
      %c4_67 = arith.constant 4 : index
      %c0_68 = arith.constant 0 : index
      %c0_69 = arith.constant 0 : index
      %101 = vector.load %arg5[%c4_67, %c0_68, %c0_69] : memref<9x64x16xf32, #tpu.memory_space<vmem>>, vector<1x64x16xf32>
      %102 = vector.shape_cast %101 : vector<1x64x16xf32> to vector<64x16xf32>
      %cst_70 = arith.constant dense<0.000000e+00> : vector<32x16xf32>
      %103 = tpu.matmul %100, %102, %cst_70 {dimension_numbers = #tpu.dot_dimension_numbers<[1], [0], [0], [1], [0, 0, 1, 1], [], []>} : vector<32x64xf32>, vector<64x16xf32>, vector<32x16xf32> -> vector<32x16xf32>
      %104 = arith.addf %99, %103 : vector<32x16xf32>
      %105 = vector.extract_strided_slice %78 {offsets = [160, 0], sizes = [32, 64], strides = [1, 1]} : vector<288x64xf32> to vector<32x64xf32>
      %c5_71 = arith.constant 5 : index
      %c0_72 = arith.constant 0 : index
      %c0_73 = arith.constant 0 : index
      %106 = vector.load %arg5[%c5_71, %c0_72, %c0_73] : memref<9x64x16xf32, #tpu.memory_space<vmem>>, vector<1x64x16xf32>
      %107 = vector.shape_cast %106 : vector<1x64x16xf32> to vector<64x16xf32>
      %cst_74 = arith.constant dense<0.000000e+00> : vector<32x16xf32>
      %108 = tpu.matmul %105, %107, %cst_74 {dimension_numbers = #tpu.dot_dimension_numbers<[1], [0], [0], [1], [0, 0, 1, 1], [], []>} : vector<32x64xf32>, vector<64x16xf32>, vector<32x16xf32> -> vector<32x16xf32>
      %109 = arith.addf %104, %108 : vector<32x16xf32>
      %110 = vector.extract_strided_slice %78 {offsets = [192, 0], sizes = [32, 64], strides = [1, 1]} : vector<288x64xf32> to vector<32x64xf32>
      %c6_75 = arith.constant 6 : index
      %c0_76 = arith.constant 0 : index
      %c0_77 = arith.constant 0 : index
      %111 = vector.load %arg5[%c6_75, %c0_76, %c0_77] : memref<9x64x16xf32, #tpu.memory_space<vmem>>, vector<1x64x16xf32>
      %112 = vector.shape_cast %111 : vector<1x64x16xf32> to vector<64x16xf32>
      %cst_78 = arith.constant dense<0.000000e+00> : vector<32x16xf32>
      %113 = tpu.matmul %110, %112, %cst_78 {dimension_numbers = #tpu.dot_dimension_numbers<[1], [0], [0], [1], [0, 0, 1, 1], [], []>} : vector<32x64xf32>, vector<64x16xf32>, vector<32x16xf32> -> vector<32x16xf32>
      %114 = arith.addf %109, %113 : vector<32x16xf32>
      %115 = vector.extract_strided_slice %78 {offsets = [224, 0], sizes = [32, 64], strides = [1, 1]} : vector<288x64xf32> to vector<32x64xf32>
      %c7_79 = arith.constant 7 : index
      %c0_80 = arith.constant 0 : index
      %c0_81 = arith.constant 0 : index
      %116 = vector.load %arg5[%c7_79, %c0_80, %c0_81] : memref<9x64x16xf32, #tpu.memory_space<vmem>>, vector<1x64x16xf32>
      %117 = vector.shape_cast %116 : vector<1x64x16xf32> to vector<64x16xf32>
      %cst_82 = arith.constant dense<0.000000e+00> : vector<32x16xf32>
      %118 = tpu.matmul %115, %117, %cst_82 {dimension_numbers = #tpu.dot_dimension_numbers<[1], [0], [0], [1], [0, 0, 1, 1], [], []>} : vector<32x64xf32>, vector<64x16xf32>, vector<32x16xf32> -> vector<32x16xf32>
      %119 = arith.addf %114, %118 : vector<32x16xf32>
      %120 = vector.extract_strided_slice %78 {offsets = [256, 0], sizes = [32, 64], strides = [1, 1]} : vector<288x64xf32> to vector<32x64xf32>
      %c8_83 = arith.constant 8 : index
      %c0_84 = arith.constant 0 : index
      %c0_85 = arith.constant 0 : index
      %121 = vector.load %arg5[%c8_83, %c0_84, %c0_85] : memref<9x64x16xf32, #tpu.memory_space<vmem>>, vector<1x64x16xf32>
      %122 = vector.shape_cast %121 : vector<1x64x16xf32> to vector<64x16xf32>
      %cst_86 = arith.constant dense<0.000000e+00> : vector<32x16xf32>
      %123 = tpu.matmul %120, %122, %cst_86 {dimension_numbers = #tpu.dot_dimension_numbers<[1], [0], [0], [1], [0, 0, 1, 1], [], []>} : vector<32x64xf32>, vector<64x16xf32>, vector<32x16xf32> -> vector<32x16xf32>
      %124 = arith.addf %119, %123 : vector<32x16xf32>
      %c0_87 = arith.constant 0 : index
      %c0_88 = arith.constant 0 : index
      %125 = vector.load %arg7[%c0_87, %c0_88] : memref<32x1xf32, #tpu.memory_space<vmem>>, vector<32x1xf32>
      %126 = vector.broadcast %125 : vector<32x1xf32> to vector<32x16xf32>
      %127 = arith.addf %124, %126 : vector<32x16xf32>
      %cst_89 = arith.constant 0.000000e+00 : f32
      %128 = vector.broadcast %cst_89 : f32 to vector<32x16xf32>
      %129 = arith.cmpf oge, %127, %128 : vector<32x16xf32>
      %cst_90 = arith.constant 1.000000e-01 : f32
      %130 = vector.broadcast %cst_90 : f32 to vector<32x16xf32>
      %131 = arith.mulf %130, %127 : vector<32x16xf32>
      %132 = arith.select %129, %127, %131 : vector<32x16xi1>, vector<32x16xf32>
      %c1_91 = arith.constant 1 : index
      %c0_92 = arith.constant 0 : index
      %c0_93 = arith.constant 0 : index
      %133 = vector.load %arg9[%c1_91, %c0_92, %c0_93] : memref<2x1152x32xf32, #tpu.memory_space<vmem>>, vector<1x1152x32xf32>
      %134 = vector.shape_cast %133 : vector<1x1152x32xf32> to vector<1152x32xf32>
      %cst_94 = arith.constant dense<0.000000e+00> : vector<1152x16xf32>
      %135 = tpu.matmul %134, %132, %cst_94 {dimension_numbers = #tpu.dot_dimension_numbers<[1], [0], [0], [1], [0, 0, 1, 1], [], []>} : vector<1152x32xf32>, vector<32x16xf32>, vector<1152x16xf32> -> vector<1152x16xf32>
      %c1_95 = arith.constant 1 : index
      %c0_96 = arith.constant 0 : index
      %c0_97 = arith.constant 0 : index
      %136 = vector.load %arg10[%c1_95, %c0_96, %c0_97] : memref<2x1152x32xf32, #tpu.memory_space<vmem>>, vector<1x1152x32xf32>
      %137 = vector.shape_cast %136 : vector<1x1152x32xf32> to vector<1152x32xf32>
      %cst_98 = arith.constant dense<0.000000e+00> : vector<1152x16xf32>
      %138 = tpu.matmul %137, %arg26, %cst_98 {dimension_numbers = #tpu.dot_dimension_numbers<[1], [0], [0], [1], [0, 0, 1, 1], [], []>} : vector<1152x32xf32>, vector<32x16xf32>, vector<1152x16xf32> -> vector<1152x16xf32>
      %139 = arith.addf %135, %138 : vector<1152x16xf32>
      %cst_99 = arith.constant 0.000000e+00 : f32
      %140 = vector.broadcast %cst_99 : f32 to vector<128x16xf32>
      %141 = vector.extract_strided_slice %139 {offsets = [0, 0], sizes = [128, 16], strides = [1, 1]} : vector<1152x16xf32> to vector<128x16xf32>
      %c0_100 = arith.constant 0 : index
      %c0_101 = arith.constant 0 : index
      %c0_102 = arith.constant 0 : index
      %142 = vector.load %arg8[%c0_100, %c0_101, %c0_102] : memref<9x16x16xf32, #tpu.memory_space<vmem>>, vector<1x16x16xf32>
      %143 = vector.shape_cast %142 : vector<1x16x16xf32> to vector<16x16xf32>
      %cst_103 = arith.constant dense<0.000000e+00> : vector<128x16xf32>
      %144 = tpu.matmul %141, %143, %cst_103 {dimension_numbers = #tpu.dot_dimension_numbers<[1], [0], [0], [1], [0, 0, 1, 1], [], []>} : vector<128x16xf32>, vector<16x16xf32>, vector<128x16xf32> -> vector<128x16xf32>
      %145 = arith.addf %140, %144 : vector<128x16xf32>
      %146 = vector.extract_strided_slice %139 {offsets = [128, 0], sizes = [128, 16], strides = [1, 1]} : vector<1152x16xf32> to vector<128x16xf32>
      %c1_104 = arith.constant 1 : index
      %c0_105 = arith.constant 0 : index
      %c0_106 = arith.constant 0 : index
      %147 = vector.load %arg8[%c1_104, %c0_105, %c0_106] : memref<9x16x16xf32, #tpu.memory_space<vmem>>, vector<1x16x16xf32>
      %148 = vector.shape_cast %147 : vector<1x16x16xf32> to vector<16x16xf32>
      %cst_107 = arith.constant dense<0.000000e+00> : vector<128x16xf32>
      %149 = tpu.matmul %146, %148, %cst_107 {dimension_numbers = #tpu.dot_dimension_numbers<[1], [0], [0], [1], [0, 0, 1, 1], [], []>} : vector<128x16xf32>, vector<16x16xf32>, vector<128x16xf32> -> vector<128x16xf32>
      %150 = arith.addf %145, %149 : vector<128x16xf32>
      %151 = vector.extract_strided_slice %139 {offsets = [256, 0], sizes = [128, 16], strides = [1, 1]} : vector<1152x16xf32> to vector<128x16xf32>
      %c2_108 = arith.constant 2 : index
      %c0_109 = arith.constant 0 : index
      %c0_110 = arith.constant 0 : index
      %152 = vector.load %arg8[%c2_108, %c0_109, %c0_110] : memref<9x16x16xf32, #tpu.memory_space<vmem>>, vector<1x16x16xf32>
      %153 = vector.shape_cast %152 : vector<1x16x16xf32> to vector<16x16xf32>
      %cst_111 = arith.constant dense<0.000000e+00> : vector<128x16xf32>
      %154 = tpu.matmul %151, %153, %cst_111 {dimension_numbers = #tpu.dot_dimension_numbers<[1], [0], [0], [1], [0, 0, 1, 1], [], []>} : vector<128x16xf32>, vector<16x16xf32>, vector<128x16xf32> -> vector<128x16xf32>
      %155 = arith.addf %150, %154 : vector<128x16xf32>
      %156 = vector.extract_strided_slice %139 {offsets = [384, 0], sizes = [128, 16], strides = [1, 1]} : vector<1152x16xf32> to vector<128x16xf32>
      %c3_112 = arith.constant 3 : index
      %c0_113 = arith.constant 0 : index
      %c0_114 = arith.constant 0 : index
      %157 = vector.load %arg8[%c3_112, %c0_113, %c0_114] : memref<9x16x16xf32, #tpu.memory_space<vmem>>, vector<1x16x16xf32>
      %158 = vector.shape_cast %157 : vector<1x16x16xf32> to vector<16x16xf32>
      %cst_115 = arith.constant dense<0.000000e+00> : vector<128x16xf32>
      %159 = tpu.matmul %156, %158, %cst_115 {dimension_numbers = #tpu.dot_dimension_numbers<[1], [0], [0], [1], [0, 0, 1, 1], [], []>} : vector<128x16xf32>, vector<16x16xf32>, vector<128x16xf32> -> vector<128x16xf32>
      %160 = arith.addf %155, %159 : vector<128x16xf32>
      %161 = vector.extract_strided_slice %139 {offsets = [512, 0], sizes = [128, 16], strides = [1, 1]} : vector<1152x16xf32> to vector<128x16xf32>
      %c4_116 = arith.constant 4 : index
      %c0_117 = arith.constant 0 : index
      %c0_118 = arith.constant 0 : index
      %162 = vector.load %arg8[%c4_116, %c0_117, %c0_118] : memref<9x16x16xf32, #tpu.memory_space<vmem>>, vector<1x16x16xf32>
      %163 = vector.shape_cast %162 : vector<1x16x16xf32> to vector<16x16xf32>
      %cst_119 = arith.constant dense<0.000000e+00> : vector<128x16xf32>
      %164 = tpu.matmul %161, %163, %cst_119 {dimension_numbers = #tpu.dot_dimension_numbers<[1], [0], [0], [1], [0, 0, 1, 1], [], []>} : vector<128x16xf32>, vector<16x16xf32>, vector<128x16xf32> -> vector<128x16xf32>
      %165 = arith.addf %160, %164 : vector<128x16xf32>
      %166 = vector.extract_strided_slice %139 {offsets = [640, 0], sizes = [128, 16], strides = [1, 1]} : vector<1152x16xf32> to vector<128x16xf32>
      %c5_120 = arith.constant 5 : index
      %c0_121 = arith.constant 0 : index
      %c0_122 = arith.constant 0 : index
      %167 = vector.load %arg8[%c5_120, %c0_121, %c0_122] : memref<9x16x16xf32, #tpu.memory_space<vmem>>, vector<1x16x16xf32>
      %168 = vector.shape_cast %167 : vector<1x16x16xf32> to vector<16x16xf32>
      %cst_123 = arith.constant dense<0.000000e+00> : vector<128x16xf32>
      %169 = tpu.matmul %166, %168, %cst_123 {dimension_numbers = #tpu.dot_dimension_numbers<[1], [0], [0], [1], [0, 0, 1, 1], [], []>} : vector<128x16xf32>, vector<16x16xf32>, vector<128x16xf32> -> vector<128x16xf32>
      %170 = arith.addf %165, %169 : vector<128x16xf32>
      %171 = vector.extract_strided_slice %139 {offsets = [768, 0], sizes = [128, 16], strides = [1, 1]} : vector<1152x16xf32> to vector<128x16xf32>
      %c6_124 = arith.constant 6 : index
      %c0_125 = arith.constant 0 : index
      %c0_126 = arith.constant 0 : index
      %172 = vector.load %arg8[%c6_124, %c0_125, %c0_126] : memref<9x16x16xf32, #tpu.memory_space<vmem>>, vector<1x16x16xf32>
      %173 = vector.shape_cast %172 : vector<1x16x16xf32> to vector<16x16xf32>
      %cst_127 = arith.constant dense<0.000000e+00> : vector<128x16xf32>
      %174 = tpu.matmul %171, %173, %cst_127 {dimension_numbers = #tpu.dot_dimension_numbers<[1], [0], [0], [1], [0, 0, 1, 1], [], []>} : vector<128x16xf32>, vector<16x16xf32>, vector<128x16xf32> -> vector<128x16xf32>
      %175 = arith.addf %170, %174 : vector<128x16xf32>
      %176 = vector.extract_strided_slice %139 {offsets = [896, 0], sizes = [128, 16], strides = [1, 1]} : vector<1152x16xf32> to vector<128x16xf32>
      %c7_128 = arith.constant 7 : index
      %c0_129 = arith.constant 0 : index
      %c0_130 = arith.constant 0 : index
      %177 = vector.load %arg8[%c7_128, %c0_129, %c0_130] : memref<9x16x16xf32, #tpu.memory_space<vmem>>, vector<1x16x16xf32>
      %178 = vector.shape_cast %177 : vector<1x16x16xf32> to vector<16x16xf32>
      %cst_131 = arith.constant dense<0.000000e+00> : vector<128x16xf32>
      %179 = tpu.matmul %176, %178, %cst_131 {dimension_numbers = #tpu.dot_dimension_numbers<[1], [0], [0], [1], [0, 0, 1, 1], [], []>} : vector<128x16xf32>, vector<16x16xf32>, vector<128x16xf32> -> vector<128x16xf32>
      %180 = arith.addf %175, %179 : vector<128x16xf32>
      %181 = vector.extract_strided_slice %139 {offsets = [1024, 0], sizes = [128, 16], strides = [1, 1]} : vector<1152x16xf32> to vector<128x16xf32>
      %c8_132 = arith.constant 8 : index
      %c0_133 = arith.constant 0 : index
      %c0_134 = arith.constant 0 : index
      %182 = vector.load %arg8[%c8_132, %c0_133, %c0_134] : memref<9x16x16xf32, #tpu.memory_space<vmem>>, vector<1x16x16xf32>
      %183 = vector.shape_cast %182 : vector<1x16x16xf32> to vector<16x16xf32>
      %cst_135 = arith.constant dense<0.000000e+00> : vector<128x16xf32>
      %184 = tpu.matmul %181, %183, %cst_135 {dimension_numbers = #tpu.dot_dimension_numbers<[1], [0], [0], [1], [0, 0, 1, 1], [], []>} : vector<128x16xf32>, vector<16x16xf32>, vector<128x16xf32> -> vector<128x16xf32>
      %185 = arith.addf %180, %184 : vector<128x16xf32>
      %c1_136 = arith.constant 1 : index
      %c0_137 = arith.constant 0 : index
      %c0_138 = arith.constant 0 : index
      %186 = vector.load %arg11[%c1_136, %c0_137, %c0_138] : memref<2x128x1xf32, #tpu.memory_space<vmem>>, vector<1x128x1xf32>
      %187 = vector.shape_cast %186 : vector<1x128x1xf32> to vector<128x1xf32>
      %188 = vector.broadcast %187 : vector<128x1xf32> to vector<128x16xf32>
      %189 = arith.addf %185, %188 : vector<128x16xf32>
      %190 = vector.extract_strided_slice %189 {offsets = [0, 0], sizes = [32, 16], strides = [1, 1]} : vector<128x16xf32> to vector<32x16xf32>
      %191 = arith.negf %190 : vector<32x16xf32>
      %192 = math.exp %191 : vector<32x16xf32>
      %cst_139 = arith.constant 1.000000e+00 : f32
      %193 = vector.broadcast %cst_139 : f32 to vector<32x16xf32>
      %194 = arith.addf %193, %192 : vector<32x16xf32>
      %195 = arith.divf %193, %194 : vector<32x16xf32>
      %196 = vector.extract_strided_slice %189 {offsets = [32, 0], sizes = [32, 16], strides = [1, 1]} : vector<128x16xf32> to vector<32x16xf32>
      %197 = arith.negf %196 : vector<32x16xf32>
      %198 = math.exp %197 : vector<32x16xf32>
      %cst_140 = arith.constant 1.000000e+00 : f32
      %199 = vector.broadcast %cst_140 : f32 to vector<32x16xf32>
      %200 = arith.addf %199, %198 : vector<32x16xf32>
      %201 = arith.divf %199, %200 : vector<32x16xf32>
      %202 = vector.extract_strided_slice %189 {offsets = [64, 0], sizes = [32, 16], strides = [1, 1]} : vector<128x16xf32> to vector<32x16xf32>
      %203 = arith.negf %202 : vector<32x16xf32>
      %204 = math.exp %203 : vector<32x16xf32>
      %cst_141 = arith.constant 1.000000e+00 : f32
      %205 = vector.broadcast %cst_141 : f32 to vector<32x16xf32>
      %206 = arith.addf %205, %204 : vector<32x16xf32>
      %207 = arith.divf %205, %206 : vector<32x16xf32>
      %208 = vector.extract_strided_slice %189 {offsets = [96, 0], sizes = [32, 16], strides = [1, 1]} : vector<128x16xf32> to vector<32x16xf32>
      %209 = math.tanh %208 : vector<32x16xf32>
      %210 = arith.mulf %201, %arg27 : vector<32x16xf32>
      %211 = arith.mulf %195, %209 : vector<32x16xf32>
      %212 = arith.addf %210, %211 : vector<32x16xf32>
      %213 = math.tanh %212 : vector<32x16xf32>
      %214 = arith.mulf %207, %213 : vector<32x16xf32>
      %c0_142 = arith.constant 0 : index
      %c0_143 = arith.constant 0 : index
      %215 = vector.load %arg14[%c0_142, %c0_143] : memref<32x32xf32, #tpu.memory_space<vmem>>, vector<32x32xf32>
      %cst_144 = arith.constant dense<0.000000e+00> : vector<32x16xf32>
      %216 = tpu.matmul %215, %214, %cst_144 {dimension_numbers = #tpu.dot_dimension_numbers<[1], [0], [0], [1], [0, 0, 1, 1], [], []>} : vector<32x32xf32>, vector<32x16xf32>, vector<32x16xf32> -> vector<32x16xf32>
      %c0_145 = arith.constant 0 : index
      %c0_146 = arith.constant 0 : index
      %217 = vector.load %arg15[%c0_145, %c0_146] : memref<32x1xf32, #tpu.memory_space<vmem>>, vector<32x1xf32>
      %218 = vector.broadcast %217 : vector<32x1xf32> to vector<32x16xf32>
      %219 = arith.addf %216, %218 : vector<32x16xf32>
      %c0_147 = arith.constant 0 : index
      %c0_148 = arith.constant 0 : index
      %220 = vector.load %arg17[%c0_147, %c0_148] : memref<288x32xf32, #tpu.memory_space<vmem>>, vector<288x32xf32>
      %cst_149 = arith.constant dense<0.000000e+00> : vector<288x16xf32>
      %221 = tpu.matmul %220, %219, %cst_149 {dimension_numbers = #tpu.dot_dimension_numbers<[1], [0], [0], [1], [0, 0, 1, 1], [], []>} : vector<288x32xf32>, vector<32x16xf32>, vector<288x16xf32> -> vector<288x16xf32>
      %cst_150 = arith.constant 0.000000e+00 : f32
      %222 = vector.broadcast %cst_150 : f32 to vector<32x64xf32>
      %223 = vector.extract_strided_slice %221 {offsets = [0, 0], sizes = [32, 16], strides = [1, 1]} : vector<288x16xf32> to vector<32x16xf32>
      %c0_151 = arith.constant 0 : index
      %c0_152 = arith.constant 0 : index
      %c0_153 = arith.constant 0 : index
      %224 = vector.load %arg16[%c0_151, %c0_152, %c0_153] : memref<9x16x64xf32, #tpu.memory_space<vmem>>, vector<1x16x64xf32>
      %225 = vector.shape_cast %224 : vector<1x16x64xf32> to vector<16x64xf32>
      %cst_154 = arith.constant dense<0.000000e+00> : vector<32x64xf32>
      %226 = tpu.matmul %223, %225, %cst_154 {dimension_numbers = #tpu.dot_dimension_numbers<[1], [0], [0], [1], [0, 0, 1, 1], [], []>} : vector<32x16xf32>, vector<16x64xf32>, vector<32x64xf32> -> vector<32x64xf32>
      %227 = arith.addf %222, %226 : vector<32x64xf32>
      %228 = vector.extract_strided_slice %221 {offsets = [32, 0], sizes = [32, 16], strides = [1, 1]} : vector<288x16xf32> to vector<32x16xf32>
      %c1_155 = arith.constant 1 : index
      %c0_156 = arith.constant 0 : index
      %c0_157 = arith.constant 0 : index
      %229 = vector.load %arg16[%c1_155, %c0_156, %c0_157] : memref<9x16x64xf32, #tpu.memory_space<vmem>>, vector<1x16x64xf32>
      %230 = vector.shape_cast %229 : vector<1x16x64xf32> to vector<16x64xf32>
      %cst_158 = arith.constant dense<0.000000e+00> : vector<32x64xf32>
      %231 = tpu.matmul %228, %230, %cst_158 {dimension_numbers = #tpu.dot_dimension_numbers<[1], [0], [0], [1], [0, 0, 1, 1], [], []>} : vector<32x16xf32>, vector<16x64xf32>, vector<32x64xf32> -> vector<32x64xf32>
      %232 = arith.addf %227, %231 : vector<32x64xf32>
      %233 = vector.extract_strided_slice %221 {offsets = [64, 0], sizes = [32, 16], strides = [1, 1]} : vector<288x16xf32> to vector<32x16xf32>
      %c2_159 = arith.constant 2 : index
      %c0_160 = arith.constant 0 : index
      %c0_161 = arith.constant 0 : index
      %234 = vector.load %arg16[%c2_159, %c0_160, %c0_161] : memref<9x16x64xf32, #tpu.memory_space<vmem>>, vector<1x16x64xf32>
      %235 = vector.shape_cast %234 : vector<1x16x64xf32> to vector<16x64xf32>
      %cst_162 = arith.constant dense<0.000000e+00> : vector<32x64xf32>
      %236 = tpu.matmul %233, %235, %cst_162 {dimension_numbers = #tpu.dot_dimension_numbers<[1], [0], [0], [1], [0, 0, 1, 1], [], []>} : vector<32x16xf32>, vector<16x64xf32>, vector<32x64xf32> -> vector<32x64xf32>
      %237 = arith.addf %232, %236 : vector<32x64xf32>
      %238 = vector.extract_strided_slice %221 {offsets = [96, 0], sizes = [32, 16], strides = [1, 1]} : vector<288x16xf32> to vector<32x16xf32>
      %c3_163 = arith.constant 3 : index
      %c0_164 = arith.constant 0 : index
      %c0_165 = arith.constant 0 : index
      %239 = vector.load %arg16[%c3_163, %c0_164, %c0_165] : memref<9x16x64xf32, #tpu.memory_space<vmem>>, vector<1x16x64xf32>
      %240 = vector.shape_cast %239 : vector<1x16x64xf32> to vector<16x64xf32>
      %cst_166 = arith.constant dense<0.000000e+00> : vector<32x64xf32>
      %241 = tpu.matmul %238, %240, %cst_166 {dimension_numbers = #tpu.dot_dimension_numbers<[1], [0], [0], [1], [0, 0, 1, 1], [], []>} : vector<32x16xf32>, vector<16x64xf32>, vector<32x64xf32> -> vector<32x64xf32>
      %242 = arith.addf %237, %241 : vector<32x64xf32>
      %243 = vector.extract_strided_slice %221 {offsets = [128, 0], sizes = [32, 16], strides = [1, 1]} : vector<288x16xf32> to vector<32x16xf32>
      %c4_167 = arith.constant 4 : index
      %c0_168 = arith.constant 0 : index
      %c0_169 = arith.constant 0 : index
      %244 = vector.load %arg16[%c4_167, %c0_168, %c0_169] : memref<9x16x64xf32, #tpu.memory_space<vmem>>, vector<1x16x64xf32>
      %245 = vector.shape_cast %244 : vector<1x16x64xf32> to vector<16x64xf32>
      %cst_170 = arith.constant dense<0.000000e+00> : vector<32x64xf32>
      %246 = tpu.matmul %243, %245, %cst_170 {dimension_numbers = #tpu.dot_dimension_numbers<[1], [0], [0], [1], [0, 0, 1, 1], [], []>} : vector<32x16xf32>, vector<16x64xf32>, vector<32x64xf32> -> vector<32x64xf32>
      %247 = arith.addf %242, %246 : vector<32x64xf32>
      %248 = vector.extract_strided_slice %221 {offsets = [160, 0], sizes = [32, 16], strides = [1, 1]} : vector<288x16xf32> to vector<32x16xf32>
      %c5_171 = arith.constant 5 : index
      %c0_172 = arith.constant 0 : index
      %c0_173 = arith.constant 0 : index
      %249 = vector.load %arg16[%c5_171, %c0_172, %c0_173] : memref<9x16x64xf32, #tpu.memory_space<vmem>>, vector<1x16x64xf32>
      %250 = vector.shape_cast %249 : vector<1x16x64xf32> to vector<16x64xf32>
      %cst_174 = arith.constant dense<0.000000e+00> : vector<32x64xf32>
      %251 = tpu.matmul %248, %250, %cst_174 {dimension_numbers = #tpu.dot_dimension_numbers<[1], [0], [0], [1], [0, 0, 1, 1], [], []>} : vector<32x16xf32>, vector<16x64xf32>, vector<32x64xf32> -> vector<32x64xf32>
      %252 = arith.addf %247, %251 : vector<32x64xf32>
      %253 = vector.extract_strided_slice %221 {offsets = [192, 0], sizes = [32, 16], strides = [1, 1]} : vector<288x16xf32> to vector<32x16xf32>
      %c6_175 = arith.constant 6 : index
      %c0_176 = arith.constant 0 : index
      %c0_177 = arith.constant 0 : index
      %254 = vector.load %arg16[%c6_175, %c0_176, %c0_177] : memref<9x16x64xf32, #tpu.memory_space<vmem>>, vector<1x16x64xf32>
      %255 = vector.shape_cast %254 : vector<1x16x64xf32> to vector<16x64xf32>
      %cst_178 = arith.constant dense<0.000000e+00> : vector<32x64xf32>
      %256 = tpu.matmul %253, %255, %cst_178 {dimension_numbers = #tpu.dot_dimension_numbers<[1], [0], [0], [1], [0, 0, 1, 1], [], []>} : vector<32x16xf32>, vector<16x64xf32>, vector<32x64xf32> -> vector<32x64xf32>
      %257 = arith.addf %252, %256 : vector<32x64xf32>
      %258 = vector.extract_strided_slice %221 {offsets = [224, 0], sizes = [32, 16], strides = [1, 1]} : vector<288x16xf32> to vector<32x16xf32>
      %c7_179 = arith.constant 7 : index
      %c0_180 = arith.constant 0 : index
      %c0_181 = arith.constant 0 : index
      %259 = vector.load %arg16[%c7_179, %c0_180, %c0_181] : memref<9x16x64xf32, #tpu.memory_space<vmem>>, vector<1x16x64xf32>
      %260 = vector.shape_cast %259 : vector<1x16x64xf32> to vector<16x64xf32>
      %cst_182 = arith.constant dense<0.000000e+00> : vector<32x64xf32>
      %261 = tpu.matmul %258, %260, %cst_182 {dimension_numbers = #tpu.dot_dimension_numbers<[1], [0], [0], [1], [0, 0, 1, 1], [], []>} : vector<32x16xf32>, vector<16x64xf32>, vector<32x64xf32> -> vector<32x64xf32>
      %262 = arith.addf %257, %261 : vector<32x64xf32>
      %263 = vector.extract_strided_slice %221 {offsets = [256, 0], sizes = [32, 16], strides = [1, 1]} : vector<288x16xf32> to vector<32x16xf32>
      %c8_183 = arith.constant 8 : index
      %c0_184 = arith.constant 0 : index
      %c0_185 = arith.constant 0 : index
      %264 = vector.load %arg16[%c8_183, %c0_184, %c0_185] : memref<9x16x64xf32, #tpu.memory_space<vmem>>, vector<1x16x64xf32>
      %265 = vector.shape_cast %264 : vector<1x16x64xf32> to vector<16x64xf32>
      %cst_186 = arith.constant dense<0.000000e+00> : vector<32x64xf32>
      %266 = tpu.matmul %263, %265, %cst_186 {dimension_numbers = #tpu.dot_dimension_numbers<[1], [0], [0], [1], [0, 0, 1, 1], [], []>} : vector<32x16xf32>, vector<16x64xf32>, vector<32x64xf32> -> vector<32x64xf32>
      %267 = arith.addf %262, %266 : vector<32x64xf32>
      %c0_187 = arith.constant 0 : index
      %c0_188 = arith.constant 0 : index
      %268 = vector.load %arg18[%c0_187, %c0_188] : memref<32x1xf32, #tpu.memory_space<vmem>>, vector<32x1xf32>
      %269 = vector.broadcast %268 : vector<32x1xf32> to vector<32x64xf32>
      %270 = arith.addf %267, %269 : vector<32x64xf32>
      %cst_189 = arith.constant 0.000000e+00 : f32
      %271 = vector.broadcast %cst_189 : f32 to vector<32x64xf32>
      %272 = arith.cmpf oge, %270, %271 : vector<32x64xf32>
      %cst_190 = arith.constant 1.000000e-01 : f32
      %273 = vector.broadcast %cst_190 : f32 to vector<32x64xf32>
      %274 = arith.mulf %273, %270 : vector<32x64xf32>
      %275 = arith.select %272, %270, %274 : vector<32x64xi1>, vector<32x64xf32>
      %c0_191 = arith.constant 0 : index
      %c0_192 = arith.constant 0 : index
      %276 = vector.load %arg20[%c0_191, %c0_192] : memref<288x32xf32, #tpu.memory_space<vmem>>, vector<288x32xf32>
      %cst_193 = arith.constant dense<0.000000e+00> : vector<288x64xf32>
      %277 = tpu.matmul %276, %275, %cst_193 {dimension_numbers = #tpu.dot_dimension_numbers<[1], [0], [0], [1], [0, 0, 1, 1], [], []>} : vector<288x32xf32>, vector<32x64xf32>, vector<288x64xf32> -> vector<288x64xf32>
      %cst_194 = arith.constant 0.000000e+00 : f32
      %278 = vector.broadcast %cst_194 : f32 to vector<32x256xf32>
      %279 = vector.extract_strided_slice %277 {offsets = [0, 0], sizes = [32, 64], strides = [1, 1]} : vector<288x64xf32> to vector<32x64xf32>
      %c0_195 = arith.constant 0 : index
      %c0_196 = arith.constant 0 : index
      %c0_197 = arith.constant 0 : index
      %280 = vector.load %arg19[%c0_195, %c0_196, %c0_197] : memref<9x64x256xf32, #tpu.memory_space<vmem>>, vector<1x64x256xf32>
      %281 = vector.shape_cast %280 : vector<1x64x256xf32> to vector<64x256xf32>
      %cst_198 = arith.constant dense<0.000000e+00> : vector<32x256xf32>
      %282 = tpu.matmul %279, %281, %cst_198 {dimension_numbers = #tpu.dot_dimension_numbers<[1], [0], [0], [1], [0, 0, 1, 1], [], []>} : vector<32x64xf32>, vector<64x256xf32>, vector<32x256xf32> -> vector<32x256xf32>
      %283 = arith.addf %278, %282 : vector<32x256xf32>
      %284 = vector.extract_strided_slice %277 {offsets = [32, 0], sizes = [32, 64], strides = [1, 1]} : vector<288x64xf32> to vector<32x64xf32>
      %c1_199 = arith.constant 1 : index
      %c0_200 = arith.constant 0 : index
      %c0_201 = arith.constant 0 : index
      %285 = vector.load %arg19[%c1_199, %c0_200, %c0_201] : memref<9x64x256xf32, #tpu.memory_space<vmem>>, vector<1x64x256xf32>
      %286 = vector.shape_cast %285 : vector<1x64x256xf32> to vector<64x256xf32>
      %cst_202 = arith.constant dense<0.000000e+00> : vector<32x256xf32>
      %287 = tpu.matmul %284, %286, %cst_202 {dimension_numbers = #tpu.dot_dimension_numbers<[1], [0], [0], [1], [0, 0, 1, 1], [], []>} : vector<32x64xf32>, vector<64x256xf32>, vector<32x256xf32> -> vector<32x256xf32>
      %288 = arith.addf %283, %287 : vector<32x256xf32>
      %289 = vector.extract_strided_slice %277 {offsets = [64, 0], sizes = [32, 64], strides = [1, 1]} : vector<288x64xf32> to vector<32x64xf32>
      %c2_203 = arith.constant 2 : index
      %c0_204 = arith.constant 0 : index
      %c0_205 = arith.constant 0 : index
      %290 = vector.load %arg19[%c2_203, %c0_204, %c0_205] : memref<9x64x256xf32, #tpu.memory_space<vmem>>, vector<1x64x256xf32>
      %291 = vector.shape_cast %290 : vector<1x64x256xf32> to vector<64x256xf32>
      %cst_206 = arith.constant dense<0.000000e+00> : vector<32x256xf32>
      %292 = tpu.matmul %289, %291, %cst_206 {dimension_numbers = #tpu.dot_dimension_numbers<[1], [0], [0], [1], [0, 0, 1, 1], [], []>} : vector<32x64xf32>, vector<64x256xf32>, vector<32x256xf32> -> vector<32x256xf32>
      %293 = arith.addf %288, %292 : vector<32x256xf32>
      %294 = vector.extract_strided_slice %277 {offsets = [96, 0], sizes = [32, 64], strides = [1, 1]} : vector<288x64xf32> to vector<32x64xf32>
      %c3_207 = arith.constant 3 : index
      %c0_208 = arith.constant 0 : index
      %c0_209 = arith.constant 0 : index
      %295 = vector.load %arg19[%c3_207, %c0_208, %c0_209] : memref<9x64x256xf32, #tpu.memory_space<vmem>>, vector<1x64x256xf32>
      %296 = vector.shape_cast %295 : vector<1x64x256xf32> to vector<64x256xf32>
      %cst_210 = arith.constant dense<0.000000e+00> : vector<32x256xf32>
      %297 = tpu.matmul %294, %296, %cst_210 {dimension_numbers = #tpu.dot_dimension_numbers<[1], [0], [0], [1], [0, 0, 1, 1], [], []>} : vector<32x64xf32>, vector<64x256xf32>, vector<32x256xf32> -> vector<32x256xf32>
      %298 = arith.addf %293, %297 : vector<32x256xf32>
      %299 = vector.extract_strided_slice %277 {offsets = [128, 0], sizes = [32, 64], strides = [1, 1]} : vector<288x64xf32> to vector<32x64xf32>
      %c4_211 = arith.constant 4 : index
      %c0_212 = arith.constant 0 : index
      %c0_213 = arith.constant 0 : index
      %300 = vector.load %arg19[%c4_211, %c0_212, %c0_213] : memref<9x64x256xf32, #tpu.memory_space<vmem>>, vector<1x64x256xf32>
      %301 = vector.shape_cast %300 : vector<1x64x256xf32> to vector<64x256xf32>
      %cst_214 = arith.constant dense<0.000000e+00> : vector<32x256xf32>
      %302 = tpu.matmul %299, %301, %cst_214 {dimension_numbers = #tpu.dot_dimension_numbers<[1], [0], [0], [1], [0, 0, 1, 1], [], []>} : vector<32x64xf32>, vector<64x256xf32>, vector<32x256xf32> -> vector<32x256xf32>
      %303 = arith.addf %298, %302 : vector<32x256xf32>
      %304 = vector.extract_strided_slice %277 {offsets = [160, 0], sizes = [32, 64], strides = [1, 1]} : vector<288x64xf32> to vector<32x64xf32>
      %c5_215 = arith.constant 5 : index
      %c0_216 = arith.constant 0 : index
      %c0_217 = arith.constant 0 : index
      %305 = vector.load %arg19[%c5_215, %c0_216, %c0_217] : memref<9x64x256xf32, #tpu.memory_space<vmem>>, vector<1x64x256xf32>
      %306 = vector.shape_cast %305 : vector<1x64x256xf32> to vector<64x256xf32>
      %cst_218 = arith.constant dense<0.000000e+00> : vector<32x256xf32>
      %307 = tpu.matmul %304, %306, %cst_218 {dimension_numbers = #tpu.dot_dimension_numbers<[1], [0], [0], [1], [0, 0, 1, 1], [], []>} : vector<32x64xf32>, vector<64x256xf32>, vector<32x256xf32> -> vector<32x256xf32>
      %308 = arith.addf %303, %307 : vector<32x256xf32>
      %309 = vector.extract_strided_slice %277 {offsets = [192, 0], sizes = [32, 64], strides = [1, 1]} : vector<288x64xf32> to vector<32x64xf32>
      %c6_219 = arith.constant 6 : index
      %c0_220 = arith.constant 0 : index
      %c0_221 = arith.constant 0 : index
      %310 = vector.load %arg19[%c6_219, %c0_220, %c0_221] : memref<9x64x256xf32, #tpu.memory_space<vmem>>, vector<1x64x256xf32>
      %311 = vector.shape_cast %310 : vector<1x64x256xf32> to vector<64x256xf32>
      %cst_222 = arith.constant dense<0.000000e+00> : vector<32x256xf32>
      %312 = tpu.matmul %309, %311, %cst_222 {dimension_numbers = #tpu.dot_dimension_numbers<[1], [0], [0], [1], [0, 0, 1, 1], [], []>} : vector<32x64xf32>, vector<64x256xf32>, vector<32x256xf32> -> vector<32x256xf32>
      %313 = arith.addf %308, %312 : vector<32x256xf32>
      %314 = vector.extract_strided_slice %277 {offsets = [224, 0], sizes = [32, 64], strides = [1, 1]} : vector<288x64xf32> to vector<32x64xf32>
      %c7_223 = arith.constant 7 : index
      %c0_224 = arith.constant 0 : index
      %c0_225 = arith.constant 0 : index
      %315 = vector.load %arg19[%c7_223, %c0_224, %c0_225] : memref<9x64x256xf32, #tpu.memory_space<vmem>>, vector<1x64x256xf32>
      %316 = vector.shape_cast %315 : vector<1x64x256xf32> to vector<64x256xf32>
      %cst_226 = arith.constant dense<0.000000e+00> : vector<32x256xf32>
      %317 = tpu.matmul %314, %316, %cst_226 {dimension_numbers = #tpu.dot_dimension_numbers<[1], [0], [0], [1], [0, 0, 1, 1], [], []>} : vector<32x64xf32>, vector<64x256xf32>, vector<32x256xf32> -> vector<32x256xf32>
      %318 = arith.addf %313, %317 : vector<32x256xf32>
      %319 = vector.extract_strided_slice %277 {offsets = [256, 0], sizes = [32, 64], strides = [1, 1]} : vector<288x64xf32> to vector<32x64xf32>
      %c8_227 = arith.constant 8 : index
      %c0_228 = arith.constant 0 : index
      %c0_229 = arith.constant 0 : index
      %320 = vector.load %arg19[%c8_227, %c0_228, %c0_229] : memref<9x64x256xf32, #tpu.memory_space<vmem>>, vector<1x64x256xf32>
      %321 = vector.shape_cast %320 : vector<1x64x256xf32> to vector<64x256xf32>
      %cst_230 = arith.constant dense<0.000000e+00> : vector<32x256xf32>
      %322 = tpu.matmul %319, %321, %cst_230 {dimension_numbers = #tpu.dot_dimension_numbers<[1], [0], [0], [1], [0, 0, 1, 1], [], []>} : vector<32x64xf32>, vector<64x256xf32>, vector<32x256xf32> -> vector<32x256xf32>
      %323 = arith.addf %318, %322 : vector<32x256xf32>
      %c0_231 = arith.constant 0 : index
      %c0_232 = arith.constant 0 : index
      %324 = vector.load %arg21[%c0_231, %c0_232] : memref<32x1xf32, #tpu.memory_space<vmem>>, vector<32x1xf32>
      %325 = vector.broadcast %324 : vector<32x1xf32> to vector<32x256xf32>
      %326 = arith.addf %323, %325 : vector<32x256xf32>
      %cst_233 = arith.constant 0.000000e+00 : f32
      %327 = vector.broadcast %cst_233 : f32 to vector<32x256xf32>
      %328 = arith.cmpf oge, %326, %327 : vector<32x256xf32>
      %cst_234 = arith.constant 1.000000e-01 : f32
      %329 = vector.broadcast %cst_234 : f32 to vector<32x256xf32>
      %330 = arith.mulf %329, %326 : vector<32x256xf32>
      %331 = arith.select %328, %326, %330 : vector<32x256xi1>, vector<32x256xf32>
      %c0_235 = arith.constant 0 : index
      %c0_236 = arith.constant 0 : index
      %332 = vector.load %arg22[%c0_235, %c0_236] : memref<1x32xf32, #tpu.memory_space<vmem>>, vector<1x32xf32>
      %cst_237 = arith.constant dense<0.000000e+00> : vector<1x256xf32>
      %333 = tpu.matmul %332, %331, %cst_237 {dimension_numbers = #tpu.dot_dimension_numbers<[1], [0], [0], [1], [0, 0, 1, 1], [], []>} : vector<1x32xf32>, vector<32x256xf32>, vector<1x256xf32> -> vector<1x256xf32>
      %c0_238 = arith.constant 0 : index
      %c0_239 = arith.constant 0 : index
      %334 = vector.load %arg23[%c0_238, %c0_239] : memref<1x1xf32, #tpu.memory_space<vmem>>, vector<1x1xf32>
      %335 = vector.broadcast %334 : vector<1x1xf32> to vector<1x256xf32>
      %336 = arith.addf %333, %335 : vector<1x256xf32>
      %c0_240 = arith.constant 0 : index
      %337 = arith.index_cast %arg25 : i32 to index
      %c0_241 = arith.constant 0 : index
      %c0_242 = arith.constant 0 : index
      %338 = vector.load %arg24[%c0_240, %337, %c0_241, %c0_242] : memref<1x19x1x256xf32, #tpu.memory_space<vmem>>, vector<1x1x1x256xf32>
      %339 = vector.shape_cast %338 : vector<1x1x1x256xf32> to vector<1x256xf32>
      %340 = vector.shape_cast %336 : vector<1x256xf32> to vector<1x1x1x256xf32>
      tpu.vector_store %arg24[%c0_240, %337, %c0_241, %c0_242], %340 {strides = array<i32>} : memref<1x19x1x256xf32, #tpu.memory_space<vmem>>, vector<1x1x1x256xf32>,
      scf.yield %214, %212 : vector<32x16xf32>, vector<32x16xf32>
    }
    %c19_i32_1 = arith.constant 19 : i32
    return
  }
  func.func @transform_0(%arg0: i32) -> (i32, i32, i32, i32) {
    %c0_i32 = arith.constant 0 : i32
    %c0_i32_0 = arith.constant 0 : i32
    %c0_i32_1 = arith.constant 0 : i32
    %c0_i32_2 = arith.constant 0 : i32
    return %arg0, %c0_i32, %c0_i32_0, %c0_i32_1 : i32, i32, i32, i32
  }
  func.func @transform_1(%arg0: i32) -> (i32, i32, i32) {
    %c0_i32 = arith.constant 0 : i32
    %c0_i32_0 = arith.constant 0 : i32
    %c0_i32_1 = arith.constant 0 : i32
    %c0_i32_2 = arith.constant 0 : i32
    return %c0_i32, %c0_i32_0, %c0_i32_1 : i32, i32, i32
  }
  func.func @transform_2(%arg0: i32) -> (i32, i32) {
    %c0_i32 = arith.constant 0 : i32
    %c0_i32_0 = arith.constant 0 : i32
    %c0_i32_1 = arith.constant 0 : i32
    return %c0_i32, %c0_i32_0 : i32, i32
  }
  func.func @transform_3(%arg0: i32) -> (i32, i32) {
    %c0_i32 = arith.constant 0 : i32
    %c0_i32_0 = arith.constant 0 : i32
    %c0_i32_1 = arith.constant 0 : i32
    return %c0_i32, %c0_i32_0 : i32, i32
  }
  func.func @transform_4(%arg0: i32) -> (i32, i32, i32) {
    %c0_i32 = arith.constant 0 : i32
    %c0_i32_0 = arith.constant 0 : i32
    %c0_i32_1 = arith.constant 0 : i32
    %c0_i32_2 = arith.constant 0 : i32
    return %c0_i32, %c0_i32_0, %c0_i32_1 : i32, i32, i32
  }
  func.func @transform_5(%arg0: i32) -> (i32, i32) {
    %c0_i32 = arith.constant 0 : i32
    %c0_i32_0 = arith.constant 0 : i32
    %c0_i32_1 = arith.constant 0 : i32
    return %c0_i32, %c0_i32_0 : i32, i32
  }
  func.func @transform_6(%arg0: i32) -> (i32, i32) {
    %c0_i32 = arith.constant 0 : i32
    %c0_i32_0 = arith.constant 0 : i32
    %c0_i32_1 = arith.constant 0 : i32
    return %c0_i32, %c0_i32_0 : i32, i32
  }
  func.func @transform_7(%arg0: i32) -> (i32, i32, i32) {
    %c0_i32 = arith.constant 0 : i32
    %c0_i32_0 = arith.constant 0 : i32
    %c0_i32_1 = arith.constant 0 : i32
    %c0_i32_2 = arith.constant 0 : i32
    return %c0_i32, %c0_i32_0, %c0_i32_1 : i32, i32, i32
  }
  func.func @transform_8(%arg0: i32) -> (i32, i32, i32) {
    %c0_i32 = arith.constant 0 : i32
    %c0_i32_0 = arith.constant 0 : i32
    %c0_i32_1 = arith.constant 0 : i32
    %c0_i32_2 = arith.constant 0 : i32
    return %c0_i32, %c0_i32_0, %c0_i32_1 : i32, i32, i32
  }
  func.func @transform_9(%arg0: i32) -> (i32, i32, i32) {
    %c0_i32 = arith.constant 0 : i32
    %c0_i32_0 = arith.constant 0 : i32
    %c0_i32_1 = arith.constant 0 : i32
    %c0_i32_2 = arith.constant 0 : i32
    return %c0_i32, %c0_i32_0, %c0_i32_1 : i32, i32, i32
  }
  func.func @transform_10(%arg0: i32) -> (i32, i32, i32) {
    %c0_i32 = arith.constant 0 : i32
    %c0_i32_0 = arith.constant 0 : i32
    %c0_i32_1 = arith.constant 0 : i32
    %c0_i32_2 = arith.constant 0 : i32
    return %c0_i32, %c0_i32_0, %c0_i32_1 : i32, i32, i32
  }
  func.func @transform_11(%arg0: i32) -> (i32, i32) {
    %c0_i32 = arith.constant 0 : i32
    %c0_i32_0 = arith.constant 0 : i32
    %c0_i32_1 = arith.constant 0 : i32
    return %c0_i32, %c0_i32_0 : i32, i32
  }
  func.func @transform_12(%arg0: i32) -> (i32, i32) {
    %c0_i32 = arith.constant 0 : i32
    %c0_i32_0 = arith.constant 0 : i32
    %c0_i32_1 = arith.constant 0 : i32
    return %c0_i32, %c0_i32_0 : i32, i32
  }
  func.func @transform_13(%arg0: i32) -> (i32, i32) {
    %c0_i32 = arith.constant 0 : i32
    %c0_i32_0 = arith.constant 0 : i32
    %c0_i32_1 = arith.constant 0 : i32
    return %c0_i32, %c0_i32_0 : i32, i32
  }
  func.func @transform_14(%arg0: i32) -> (i32, i32) {
    %c0_i32 = arith.constant 0 : i32
    %c0_i32_0 = arith.constant 0 : i32
    %c0_i32_1 = arith.constant 0 : i32
    return %c0_i32, %c0_i32_0 : i32, i32
  }
  func.func @transform_15(%arg0: i32) -> (i32, i32, i32) {
    %c0_i32 = arith.constant 0 : i32
    %c0_i32_0 = arith.constant 0 : i32
    %c0_i32_1 = arith.constant 0 : i32
    %c0_i32_2 = arith.constant 0 : i32
    return %c0_i32, %c0_i32_0, %c0_i32_1 : i32, i32, i32
  }
  func.func @transform_16(%arg0: i32) -> (i32, i32) {
    %c0_i32 = arith.constant 0 : i32
    %c0_i32_0 = arith.constant 0 : i32
    %c0_i32_1 = arith.constant 0 : i32
    return %c0_i32, %c0_i32_0 : i32, i32
  }
  func.func @transform_17(%arg0: i32) -> (i32, i32) {
    %c0_i32 = arith.constant 0 : i32
    %c0_i32_0 = arith.constant 0 : i32
    %c0_i32_1 = arith.constant 0 : i32
    return %c0_i32, %c0_i32_0 : i32, i32
  }
  func.func @transform_18(%arg0: i32) -> (i32, i32, i32) {
    %c0_i32 = arith.constant 0 : i32
    %c0_i32_0 = arith.constant 0 : i32
    %c0_i32_1 = arith.constant 0 : i32
    %c0_i32_2 = arith.constant 0 : i32
    return %c0_i32, %c0_i32_0, %c0_i32_1 : i32, i32, i32
  }
  func.func @transform_19(%arg0: i32) -> (i32, i32) {
    %c0_i32 = arith.constant 0 : i32
    %c0_i32_0 = arith.constant 0 : i32
    %c0_i32_1 = arith.constant 0 : i32
    return %c0_i32, %c0_i32_0 : i32, i32
  }
  func.func @transform_20(%arg0: i32) -> (i32, i32) {
    %c0_i32 = arith.constant 0 : i32
    %c0_i32_0 = arith.constant 0 : i32
    %c0_i32_1 = arith.constant 0 : i32
    return %c0_i32, %c0_i32_0 : i32, i32
  }
  func.func @transform_21(%arg0: i32) -> (i32, i32) {
    %c0_i32 = arith.constant 0 : i32
    %c0_i32_0 = arith.constant 0 : i32
    %c0_i32_1 = arith.constant 0 : i32
    return %c0_i32, %c0_i32_0 : i32, i32
  }
  func.func @transform_22(%arg0: i32) -> (i32, i32) {
    %c0_i32 = arith.constant 0 : i32
    %c0_i32_0 = arith.constant 0 : i32
    %c0_i32_1 = arith.constant 0 : i32
    return %c0_i32, %c0_i32_0 : i32, i32
  }
  func.func @transform_23(%arg0: i32) -> (i32, i32, i32, i32) {
    %c0_i32 = arith.constant 0 : i32
    %c0_i32_0 = arith.constant 0 : i32
    %c0_i32_1 = arith.constant 0 : i32
    %c0_i32_2 = arith.constant 0 : i32
    return %arg0, %c0_i32, %c0_i32_0, %c0_i32_1 : i32, i32, i32, i32
  }
}

</mosaic_0001>

<bundles_post_ra>
// kernel: _lambda_.1
= control target key start
LH: loop header
LB: loop body
LE: loop exit
PB: predicated region body
PF: predicated region fallthrough
CT: control target
= control target key end

     0   :  { %s19904_s0 = inlined_call_operand.hbm [shape: f32[2,19,1,256], index: 0, kind: input, shape index: {}]   ;;  %s19905_s1 = inlined_call_operand.hbm [shape: f32[9,256,64], index: 1, kind: input, shape index: {}]   ;;  %s19906_s2 = inlined_call_operand.hbm [shape: f32[288,32], index: 2, kind: input, shape index: {}]   ;;  %s19907_s3 = inlined_call_operand.hbm [shape: f32[32,1], index: 3, kind: input, shape index: {}]   ;;  %s19908_s4 = inlined_call_operand.hbm [shape: f32[9,64,16], index: 4, kind: input, shape index: {}]   ;;  %s19909_s5 = inlined_call_operand.hbm [shape: f32[288,32], index: 5, kind: input, shape index: {}]   ;;  %s19910_s6 = inlined_call_operand.hbm [shape: f32[32,1], index: 6, kind: input, shape index: {}]   ;;  %s19911_s7 = inlined_call_operand.hbm [shape: f32[9,16,16], index: 7, kind: input, shape index: {}]   ;;  %s19912_s8 = inlined_call_operand.hbm [shape: f32[2,1152,32], index: 8, kind: input, shape index: {}]   ;;  %s19913_s9 = inlined_call_operand.hbm [shape: f32[2,1152,32], index: 9, kind: input, shape index: {}]   ;;  %s19914_s10 = inlined_call_operand.hbm [shape: f32[2,128,1], index: 10, kind: input, shape index: {}]   ;;  %s19915_s11 = inlined_call_operand.hbm [shape: f32[32,1], index: 11, kind: input, shape index: {}]   ;;  %s19916_s12 = inlined_call_operand.hbm [shape: f32[32,1], index: 12, kind: input, shape index: {}]   ;;  %s19917_s13 = inlined_call_operand.hbm [shape: f32[32,32], index: 13, kind: input, shape index: {}]   ;;  %s19918_s14 = inlined_call_operand.hbm [shape: f32[32,1], index: 14, kind: input, shape index: {}]   ;;  %s19919_s15 = inlined_call_operand.hbm [shape: f32[9,16,64], index: 15, kind: input, shape index: {}]   ;;  %s19920_s16 = inlined_call_operand.hbm [shape: f32[288,32], index: 16, kind: input, shape index: {}]   ;;  %s19921_s17 = inlined_call_operand.hbm [shape: f32[32,1], index: 17, kind: input, shape index: {}]   ;;  %s19922_s18 = inlined_call_operand.hbm [shape: f32[9,64,256], index: 18, kind: input, shape index: {}]   ;;  %s19923_s19 = inlined_call_operand.hbm [shape: f32[288,32], index: 19, kind: input, shape index: {}]   ;;  %s19924_s20 = inlined_call_operand.hbm [shape: f32[32,1], index: 20, kind: input, shape index: {}]   ;;  %s19925_s21 = inlined_call_operand.hbm [shape: f32[1,32], index: 21, kind: input, shape index: {}]   ;;  %s19926_s22 = inlined_call_operand.<no memory space> [shape: f32[1,1], index: 22, kind: input, shape index: {}]   ;;  %s19927_s23 = inlined_call_operand.hbm [shape: f32[2,19,1,256], index: 23, kind: output, shape index: {}]  }
   0x1   :  { %19956 = sst [smem:[#allocation58_spill]] %s19904_s0  ;;  %v28_v0 = vstv %s19926_s22 }
   0x2   :  { %19957 = sst [smem:[#allocation59_spill]] %s19905_s1  ;;  %29 = vst [vmem:[#allocation2] sm:$0x1] %v28_v0 }
   0x3   :  { %19958 = sst [smem:[#allocation60_spill]] %s19906_s2 }
   0x4   :  { %19959 = sst [smem:[#allocation61_spill]] %s19907_s3 }
   0x5   :  { %19960 = sst [smem:[#allocation62_spill]] %s19908_s4 }
   0x6   :  { %19961 = sst [smem:[#allocation63_spill]] %s19909_s5 }
   0x7   :  { %19962 = sst [smem:[#allocation64_spill]] %s19910_s6 }
   0x8   :  { %19963 = sst [smem:[#allocation65_spill]] %s19911_s7 }
   0x9   :  { %19964 = sst [smem:[#allocation66_spill]] %s19912_s8 }
   0xa   :  { %19965 = sst [smem:[#allocation67_spill]] %s19913_s9 }
   0xb   :  { %19966 = sst [smem:[#allocation68_spill]] %s19914_s10 }
   0xc   :  { %19967 = sst [smem:[#allocation69_spill]] %s19915_s11 }
   0xd   :  { %19968 = sst [smem:[#allocation70_spill]] %s19916_s12 }
   0xe   :  { %19969 = sst [smem:[#allocation71_spill]] %s19924_s20 }
   0xf   :  { %19970 = sst [smem:[#allocation72_spill]] %s19925_s21 }
  0x10   :  { %19971 = sst [smem:[#allocation73_spill]] %s19927_s23 }
  0x11   :  { %30 = vsyncpa [#allocation4], 0 }
  0x12   :  { %32 = vsyncpa [#allocation4 + $0x1], 0 }
  0x13   :  { %33 = vsyncpa [#allocation7], 0 }
  0x14   :  { %34 = vsyncpa [#allocation10], 0 }
  0x15   :  { %35 = vsyncpa [#allocation13], 0 }
  0x16   :  { %36 = vsyncpa [#allocation16], 0 }
  0x17   :  { %37 = vsyncpa [#allocation19], 0 }
  0x18   :  { %38 = vsyncpa [#allocation22], 0 }
  0x19   :  { %39 = vsyncpa [#allocation25], 0 }
  0x1a   :  { %40 = vsyncpa [#allocation28], 0 }
  0x1b   :  { %41 = vsyncpa [#allocation31], 0 }
  0x1c   :  { %42 = vsyncpa [#allocation34], 0 }
  0x1d   :  { %43 = vsyncpa [#allocation37], 0 }
  0x1e   :  { %44 = vsyncpa [#allocation5], 0 }
  0x1f   :  { %46 = vsyncpa [#allocation5 + $0x1], 0  ;;  %s17974_s24 = smov 0   ;;  %s17976_s25 = smov 0  }
  0x20   :  { %s17978_s22 = smov 0   ;;  %s17980_s5 = smov 0  }
  0x21 LB: > { %19972 = sst [smem:[#allocation52_spill]] %s17767_s24  ;;  %s17817_s1 = smov [#allocation6]   ;;  %s17779_s5 = sphi %s17980_s5, %s18477_s5   ;;  %s17775_s22 = sphi %s17978_s22, %s20048_s22   ;;  %s17771_s25 = sphi %s17976_s25, %s20047_s25   ;;  %s17767_s24 = sphi %s17974_s24, %s20046_s24  }
  0x22   : > { %19973 = sst [smem:[#allocation53_spill]] %s17771_s25  ;;  %s583_s26 = sshll.u32 %s17817_s1, 4  ;;  %s18000_s26 = int_to_ptr.vmem [resolvable:$true] %s583_s26 }
  0x23   : > { %19974 = sst [smem:[#allocation54_spill]] %s17775_s22  ;;  %s17995_s2 = sadd.s32 4294967295, %s17779_s5  }
  0x24   : > { %19975 = sst [smem:[#allocation55_spill]] %s17779_s5  ;;  %p12406_p0 = scmp.ge.s32.totalorder %s17779_s5, 1 }
  0x25   : > { %19976 = sst [smem:[#allocation56_spill]] %s17995_s2  ;;  %p19949_p1 = scmp.eq.s32.totalorder %s17995_s2, 0 }
  0x26   : > { %p571_p2 = scmp.lt.s32.totalorder %s17779_s5, 3  ;;  %s17818_s27 = smov [#allocation9]  }
  0x27   : > { %s609_s7 = sshll.u32 %s17818_s27, 4  ;;  %s17819_s29 = smov [#allocation12]   ;;  %s18015_s7 = int_to_ptr.vmem [resolvable:$true] %s609_s7 }
  0x28   : > { %p18002_p3 = pnand %p12406_p0, %p571_p2  ;;  %s635_s3 = sshll.u32 %s17819_s29, 4  ;;  %s18017_s3 = int_to_ptr.vmem [resolvable:$true] %s635_s3 }
  0x29   : > { %s19980_s30 = sld [smem:[#allocation59_spill]] }
  0x2a   : > { %s19977_s6 = scalar_select %p18002_p3, 1, 0 }
  0x2b   : > { %p16697_p5 = pneg %p18002_p3 }
  0x2c   : > { %19978 = sst [smem:[#allocation57_spill]] %s19977_s6 }
  0x2d   : > { %p18011_p6 = pnand %p16697_p5, %p19949_p1 }
  0x2f   : > { %s17015_s1 = scalar_lea.hbm %s19980_s30, 36864  ;;  %p18027_p8 = pneg %p18011_p6 }
  0x30   : > { %p17016_p7 = scmp.ne.s32.totalorder %s19980_s30, %s17015_s1  ;;  %p17022_p11 = scmp.lt.u32.totalorder %s17015_s1, %s19980_s30 }
  0x32   : > { %p17018_p9 = pnand %p18027_p8, %p17016_p7 }
  0x34   : > { %p17019_p10 = pneg %p17018_p9 }
  0x36   : > { %p17024_p12 = pnand %p17022_p11, %p17019_p10 }
  0x38   : > { %17027 = shalt.err (!%p17024_p12)
}
  0x39   : > { %s17028_s23 = scalar_lea.vmem %s18000_s26, 36864  ;;  %p17036_p5 = scmp.lt.s32.totalorder %s18000_s26, %s18000_s26 }
  0x3a   : > { %p17029_p13 = scmp.ne.s32.totalorder %s18000_s26, %s17028_s23  ;;  %p17037_p4 = scmp.lt.s32.totalorder %s17028_s23, %s17028_s23 }
  0x3c   : > { %p17031_p0 = pnand %p17029_p13, %p18027_p8  ;;  %p17038_p7 = por %p17037_p4, %p17036_p5 }
  0x3e   : > { %p17032_p2 = pneg %p17031_p0 }
  0x40   : > { %p17039_p9 = pnand %p17038_p7, %p17032_p2 }
  0x42   : > { %17042 = shalt.err (!%p17039_p9)
}
  0x43   : > { %s19952_s6 = smov 128   ;;  %s19953_s2 = smov 8  }
  0x44   : > { %16700 = dma.hbm_to_vmem [thread:$0]  (!%p18011_p6), %s19980_s30, 36864, %s18000_s26, [#allocation7], %s19952_s6, %s19952_s6, %s19953_s2  }
  0x45   : > { %s19982_s24 = sld [smem:[#allocation61_spill]] }
  0x4b   : > { %s19983_s21 = smov %s19982_s24  ;;  %s17043_s23 = scalar_lea.hbm %s19982_s24, 512 }
  0x4c   : > { %p17044_p4 = scmp.ne.s32.totalorder %s19983_s21, %s17043_s23  ;;  %p17050_p12 = scmp.lt.u32.totalorder %s17043_s23, %s19983_s21 }
  0x4e   : > { %p17046_p10 = pnand %p17044_p4, %p18027_p8 }
  0x50   : > { %p17047_p11 = pneg %p17046_p10 }
  0x52   : > { %p17052_p13 = pnand %p17050_p12, %p17047_p11 }
  0x54   : > { %17055 = shalt.err (!%p17052_p13)
}
  0x55   : > { %s17056_s26 = scalar_lea.vmem %s18015_s7, 512  ;;  %p17064_p7 = scmp.lt.s32.totalorder %s18015_s7, %s18015_s7 }
  0x56   : > { %p17057_p0 = scmp.ne.s32.totalorder %s18015_s7, %s17056_s26  ;;  %p17065_p9 = scmp.lt.s32.totalorder %s17056_s26, %s17056_s26 }
  0x58   : > { %p17059_p2 = pnand %p17057_p0, %p18027_p8  ;;  %p17066_p4 = por %p17065_p9, %p17064_p7 }
  0x5a   : > { %p17060_p5 = pneg %p17059_p2 }
  0x5c   : > { %p17067_p10 = pnand %p17066_p4, %p17060_p5 }
  0x5e   : > { %17070 = shalt.err (!%p17067_p10)
}
  0x5f   : > { %16706 = dma.hbm_to_vmem [thread:$0]  (!%p18011_p6), %s19983_s21, 512, %s18015_s7, [#allocation10], %s19952_s6, %s19952_s6, %s19953_s2  }
  0x60   : > { %s19984_s5 = sld [smem:[#allocation63_spill]] }
  0x66   : > { %s19985_s0 = smov %s19984_s5  ;;  %s17071_s4 = scalar_lea.hbm %s19984_s5, 4608 }
  0x67   : > { %p17072_p11 = scmp.ne.s32.totalorder %s19985_s0, %s17071_s4  ;;  %p17078_p0 = scmp.lt.u32.totalorder %s17071_s4, %s19985_s0 }
  0x69   : > { %p17074_p12 = pnand %p17072_p11, %p18027_p8 }
  0x6b   : > { %p17075_p13 = pneg %p17074_p12 }
  0x6d   : > { %p17080_p2 = pnand %p17078_p0, %p17075_p13 }
  0x6f   : > { %17083 = shalt.err (!%p17080_p2)
}
  0x70   : > { %s17084_s7 = scalar_lea.vmem %s18017_s3, 4608  ;;  %p17092_p4 = scmp.lt.s32.totalorder %s18017_s3, %s18017_s3 }
  0x71   : > { %p17085_p5 = scmp.ne.s32.totalorder %s18017_s3, %s17084_s7  ;;  %p17093_p10 = scmp.lt.s32.totalorder %s17084_s7, %s17084_s7 }
  0x73   : > { %p17087_p7 = pnand %p17085_p5, %p18027_p8  ;;  %p17094_p11 = por %p17093_p10, %p17092_p4 }
  0x75   : > { %p17088_p9 = pneg %p17087_p7 }
  0x77   : > { %p17095_p12 = pnand %p17094_p11, %p17088_p9 }
  0x79   : > { %17098 = shalt.err (!%p17095_p12)
}
  0x7a   : > { %16712 = dma.hbm_to_vmem [thread:$0]  (!%p18011_p6), %s19985_s0, 4608, %s18017_s3, [#allocation13], %s19952_s6, %s19952_s6, %s19953_s2  }
  0x7b   : > { %s17822_s25 = smov [#allocation15]   ;;  %s17823_s5 = smov [#allocation18]  }
  0x7c   : > { %s661_s22 = sshll.u32 %s17822_s25, 4  ;;  %s687_s4 = sshll.u32 %s17823_s5, 4  ;;  %s662_s22 = int_to_ptr.vmem [resolvable:$true] %s661_s22  ;;  %s688_s4 = int_to_ptr.vmem [resolvable:$true] %s687_s4 }
  0x7d   : > { %s19986_s23 = sld [smem:[#allocation65_spill]] }
  0x83   : > { %s17099_s26 = scalar_lea.hbm %s19986_s23, 2304 }
  0x84   : > { %p17100_p13 = scmp.ne.s32.totalorder %s19986_s23, %s17099_s26  ;;  %p17106_p5 = scmp.lt.u32.totalorder %s17099_s26, %s19986_s23 }
  0x86   : > { %p17102_p0 = pnand %p17100_p13, %p18027_p8 }
  0x88   : > { %p17103_p2 = pneg %p17102_p0 }
  0x8a   : > { %p17108_p7 = pnand %p17106_p5, %p17103_p2 }
  0x8c   : > { %17111 = shalt.err (!%p17108_p7)
}
  0x8d   : > { %s17112_s3 = scalar_lea.vmem %s662_s22, 2304  ;;  %p17120_p11 = scmp.lt.s32.totalorder %s662_s22, %s662_s22 }
  0x8e   : > { %p17113_p9 = scmp.ne.s32.totalorder %s662_s22, %s17112_s3  ;;  %p17121_p12 = scmp.lt.s32.totalorder %s17112_s3, %s17112_s3 }
  0x90   : > { %p17115_p4 = pnand %p17113_p9, %p18027_p8  ;;  %p17122_p1 = por %p17121_p12, %p17120_p11 }
  0x92   : > { %p17116_p10 = pneg %p17115_p4 }
  0x94   : > { %p17123_p3 = pnand %p17122_p1, %p17116_p10 }
  0x96   : > { %17126 = shalt.err (!%p17123_p3)
}
  0x97   : > { %16718 = dma.hbm_to_vmem [thread:$0]  (!%p18011_p6), %s19986_s23, 2304, %s662_s22, [#allocation16], %s19952_s6, %s19952_s6, %s19953_s2  }
  0x98   : > { %s19987_s9 = sld [smem:[#allocation67_spill]] }
  0x9e   : > { %s17127_s5 = scalar_lea.hbm %s19987_s9, 36864 }
  0x9f   : > { %p17128_p1 = scmp.ne.s32.totalorder %s19987_s9, %s17127_s5  ;;  %p17134_p0 = scmp.lt.u32.totalorder %s17127_s5, %s19987_s9 }
  0xa1   : > { %p17130_p3 = pnand %p17128_p1, %p18027_p8 }
  0xa3   : > { %p17131_p13 = pneg %p17130_p3 }
  0xa5   : > { %p17136_p2 = pnand %p17134_p0, %p17131_p13 }
  0xa7   : > { %17139 = shalt.err (!%p17136_p2)
}
  0xa8   : > { %s17140_s20 = scalar_lea.vmem %s688_s4, 36864  ;;  %p17148_p4 = scmp.lt.s32.totalorder %s688_s4, %s688_s4 }
  0xa9   : > { %p17141_p5 = scmp.ne.s32.totalorder %s688_s4, %s17140_s20  ;;  %p17149_p10 = scmp.lt.s32.totalorder %s17140_s20, %s17140_s20 }
  0xab   : > { %p17143_p7 = pnand %p17141_p5, %p18027_p8  ;;  %p17150_p11 = por %p17149_p10, %p17148_p4 }
  0xad   : > { %p17144_p9 = pneg %p17143_p7 }
  0xaf   : > { %p17151_p12 = pnand %p17150_p11, %p17144_p9 }
  0xb1   : > { %17154 = shalt.err (!%p17151_p12)
}
  0xb2   : > { %16724 = dma.hbm_to_vmem [thread:$0]  (!%p18011_p6), %s19987_s9, 36864, %s688_s4, [#allocation19], %s19952_s6, %s19952_s6, %s19953_s2  }
  0xb3   : > { %s17824_s21 = smov [#allocation21]   ;;  %s17825_s24 = smov [#allocation24]  }
  0xb4   : > { %s713_s30 = sshll.u32 %s17824_s21, 4  ;;  %s739_s25 = sshll.u32 %s17825_s24, 4  ;;  %s714_s30 = int_to_ptr.vmem [resolvable:$true] %s713_s30  ;;  %s740_s25 = int_to_ptr.vmem [resolvable:$true] %s739_s25 }
  0xb5   : > { %s19988_s11 = sld [smem:[#allocation69_spill]] }
  0xbb   : > { %s17155_s29 = scalar_lea.hbm %s19988_s11, 512 }
  0xbc   : > { %p17156_p1 = scmp.ne.s32.totalorder %s19988_s11, %s17155_s29  ;;  %p17162_p0 = scmp.lt.u32.totalorder %s17155_s29, %s19988_s11 }
  0xbe   : > { %p17158_p3 = pnand %p17156_p1, %p18027_p8 }
  0xc0   : > { %p17159_p13 = pneg %p17158_p3 }
  0xc2   : > { %p17164_p2 = pnand %p17162_p0, %p17159_p13 }
  0xc4   : > { %17167 = shalt.err (!%p17164_p2)
}
  0xc5   : > { %s17168_s4 = scalar_lea.vmem %s714_s30, 512  ;;  %p17176_p4 = scmp.lt.s32.totalorder %s714_s30, %s714_s30 }
  0xc6   : > { %p17169_p5 = scmp.ne.s32.totalorder %s714_s30, %s17168_s4  ;;  %p17177_p10 = scmp.lt.s32.totalorder %s17168_s4, %s17168_s4 }
  0xc8   : > { %p17171_p7 = pnand %p17169_p5, %p18027_p8  ;;  %p17178_p11 = por %p17177_p10, %p17176_p4 }
  0xca   : > { %p17172_p9 = pneg %p17171_p7 }
  0xcc   : > { %p17179_p12 = pnand %p17178_p11, %p17172_p9 }
  0xce   : > { %17182 = shalt.err (!%p17179_p12)
}
  0xcf   : > { %16730 = dma.hbm_to_vmem [thread:$0]  (!%p18011_p6), %s19988_s11, 512, %s714_s30, [#allocation22], %s19952_s6, %s19952_s6, %s19953_s2  }
  0xd0   : > { %s17183_s1 = scalar_lea.hbm %s19917_s13, 512 }
  0xd1   : > { %p17184_p1 = scmp.ne.s32.totalorder %s19917_s13, %s17183_s1  ;;  %p17190_p0 = scmp.lt.u32.totalorder %s17183_s1, %s19917_s13 }
  0xd3   : > { %p17186_p3 = pnand %p17184_p1, %p18027_p8 }
  0xd5   : > { %p17187_p13 = pneg %p17186_p3 }
  0xd7   : > { %p17192_p2 = pnand %p17190_p0, %p17187_p13 }
  0xd9   : > { %17195 = shalt.err (!%p17192_p2)
}
  0xda   : > { %s17196_s22 = scalar_lea.vmem %s740_s25, 512  ;;  %p17204_p4 = scmp.lt.s32.totalorder %s740_s25, %s740_s25 }
  0xdb   : > { %p17197_p5 = scmp.ne.s32.totalorder %s740_s25, %s17196_s22  ;;  %p17205_p10 = scmp.lt.s32.totalorder %s17196_s22, %s17196_s22 }
  0xdd   : > { %p17199_p7 = pnand %p17197_p5, %p18027_p8  ;;  %p17206_p11 = por %p17205_p10, %p17204_p4 }
  0xdf   : > { %p17200_p9 = pneg %p17199_p7 }
  0xe1   : > { %p17207_p12 = pnand %p17206_p11, %p17200_p9 }
  0xe3   : > { %17210 = shalt.err (!%p17207_p12)
}
  0xe4   : > { %16736 = dma.hbm_to_vmem [thread:$0]  (!%p18011_p6), %s19917_s13, 512, %s740_s25, [#allocation25], %s19952_s6, %s19952_s6, %s19953_s2  }
  0xe5   : > { %s17826_s3 = smov [#allocation27]   ;;  %s17827_s24 = smov [#allocation30]  }
  0xe6   : > { %s765_s21 = sshll.u32 %s17826_s3, 4  ;;  %s791_s5 = sshll.u32 %s17827_s24, 4  ;;  %s766_s21 = int_to_ptr.vmem [resolvable:$true] %s765_s21  ;;  %s792_s5 = int_to_ptr.vmem [resolvable:$true] %s791_s5 }
  0xe7   : > { %s17211_s26 = scalar_lea.hbm %s19919_s15, 2304 }
  0xe8   : > { %p17212_p1 = scmp.ne.s32.totalorder %s19919_s15, %s17211_s26  ;;  %p17218_p0 = scmp.lt.u32.totalorder %s17211_s26, %s19919_s15 }
  0xea   : > { %p17214_p3 = pnand %p17212_p1, %p18027_p8 }
  0xec   : > { %p17215_p13 = pneg %p17214_p3 }
  0xee   : > { %p17220_p2 = pnand %p17218_p0, %p17215_p13 }
  0xf0   : > { %17223 = shalt.err (!%p17220_p2)
}
  0xf1   : > { %s17224_s25 = scalar_lea.vmem %s766_s21, 2304  ;;  %p17232_p4 = scmp.lt.s32.totalorder %s766_s21, %s766_s21 }
  0xf2   : > { %p17225_p5 = scmp.ne.s32.totalorder %s766_s21, %s17224_s25  ;;  %p17233_p10 = scmp.lt.s32.totalorder %s17224_s25, %s17224_s25 }
  0xf4   : > { %p17227_p7 = pnand %p17225_p5, %p18027_p8  ;;  %p17234_p11 = por %p17233_p10, %p17232_p4 }
  0xf6   : > { %p17228_p9 = pneg %p17227_p7 }
  0xf8   : > { %p17235_p12 = pnand %p17234_p11, %p17228_p9 }
  0xfa   : > { %17238 = shalt.err (!%p17235_p12)
}
  0xfb   : > { %16742 = dma.hbm_to_vmem [thread:$0]  (!%p18011_p6), %s19919_s15, 2304, %s766_s21, [#allocation28], %s19952_s6, %s19952_s6, %s19953_s2  }
  0xfc   : > { %s17239_s29 = scalar_lea.hbm %s19921_s17, 512 }
  0xfd   : > { %p17240_p1 = scmp.ne.s32.totalorder %s19921_s17, %s17239_s29  ;;  %p17246_p0 = scmp.lt.u32.totalorder %s17239_s29, %s19921_s17 }
  0xff   : > { %p17242_p3 = pnand %p17240_p1, %p18027_p8 }
 0x101   : > { %p17243_p13 = pneg %p17242_p3 }
 0x103   : > { %p17248_p2 = pnand %p17246_p0, %p17243_p13 }
 0x105   : > { %17251 = shalt.err (!%p17248_p2)
}
 0x106   : > { %s17252_s30 = scalar_lea.vmem %s792_s5, 512  ;;  %p17260_p4 = scmp.lt.s32.totalorder %s792_s5, %s792_s5 }
 0x107   : > { %p17253_p5 = scmp.ne.s32.totalorder %s792_s5, %s17252_s30  ;;  %p17261_p10 = scmp.lt.s32.totalorder %s17252_s30, %s17252_s30 }
 0x109   : > { %p17255_p7 = pnand %p17253_p5, %p18027_p8  ;;  %p17262_p11 = por %p17261_p10, %p17260_p4 }
 0x10b   : > { %p17256_p9 = pneg %p17255_p7 }
 0x10d   : > { %p17263_p12 = pnand %p17262_p11, %p17256_p9 }
 0x10f   : > { %17266 = shalt.err (!%p17263_p12)
}
 0x110   : > { %16748 = dma.hbm_to_vmem [thread:$0]  (!%p18011_p6), %s19921_s17, 512, %s792_s5, [#allocation31], %s19952_s6, %s19952_s6, %s19953_s2  }
 0x111   : > { %s17828_s4 = smov [#allocation33]   ;;  %s17829_s24 = smov [#allocation8]  }
 0x112   : > { %s817_s3 = sshll.u32 %s17828_s4, 4  ;;  %s596_s1 = sshll.u32 %s17829_s24, 4  ;;  %s818_s3 = int_to_ptr.vmem [resolvable:$true] %s817_s3  ;;  %s597_s1 = int_to_ptr.vmem [resolvable:$true] %s596_s1 }
 0x113   : > { %s17267_s7 = scalar_lea.hbm %s19923_s19, 4608 }
 0x114   : > { %p17268_p1 = scmp.ne.s32.totalorder %s19923_s19, %s17267_s7  ;;  %p17274_p0 = scmp.lt.u32.totalorder %s17267_s7, %s19923_s19 }
 0x116   : > { %p17270_p3 = pnand %p17268_p1, %p18027_p8 }
 0x118   : > { %p17271_p13 = pneg %p17270_p3 }
 0x11a   : > { %p17276_p2 = pnand %p17274_p0, %p17271_p13 }
 0x11c   : > { %17279 = shalt.err (!%p17276_p2)
}
 0x11d   : > { %s17280_s5 = scalar_lea.vmem %s818_s3, 4608  ;;  %p17288_p4 = scmp.lt.s32.totalorder %s818_s3, %s818_s3 }
 0x11e   : > { %p17281_p5 = scmp.ne.s32.totalorder %s818_s3, %s17280_s5  ;;  %p17289_p10 = scmp.lt.s32.totalorder %s17280_s5, %s17280_s5 }
 0x120   : > { %p17283_p7 = pnand %p17281_p5, %p18027_p8  ;;  %p17290_p11 = por %p17289_p10, %p17288_p4 }
 0x122   : > { %p17284_p9 = pneg %p17283_p7 }
 0x124   : > { %p17291_p12 = pnand %p17290_p11, %p17284_p9 }
 0x126   : > { %17294 = shalt.err (!%p17291_p12)
}
 0x127   : > { %16754 = dma.hbm_to_vmem [thread:$0]  (!%p18011_p6), %s19923_s19, 4608, %s818_s3, [#allocation34], %s19952_s6, %s19952_s6, %s19953_s2  }
 0x128   : > { %s19989_s26 = sld [smem:[#allocation60_spill]] }
 0x12e   : > { %s17295_s7 = scalar_lea.hbm %s19989_s26, 4608 }
 0x12f   : > { %p17296_p1 = scmp.ne.s32.totalorder %s19989_s26, %s17295_s7  ;;  %p17302_p0 = scmp.lt.u32.totalorder %s17295_s7, %s19989_s26 }
 0x131   : > { %p17298_p3 = pnand %p17296_p1, %p18027_p8 }
 0x133   : > { %p17299_p13 = pneg %p17298_p3 }
 0x135   : > { %p17304_p2 = pnand %p17302_p0, %p17299_p13 }
 0x137   : > { %17307 = shalt.err (!%p17304_p2)
}
 0x138   : > { %s17308_s5 = scalar_lea.vmem %s597_s1, 4608  ;;  %p17316_p4 = scmp.lt.s32.totalorder %s597_s1, %s597_s1 }
 0x139   : > { %p17309_p5 = scmp.ne.s32.totalorder %s597_s1, %s17308_s5  ;;  %p17317_p10 = scmp.lt.s32.totalorder %s17308_s5, %s17308_s5 }
 0x13b   : > { %p17311_p7 = pnand %p17309_p5, %p18027_p8  ;;  %p17318_p11 = por %p17317_p10, %p17316_p4 }
 0x13d   : > { %p17312_p9 = pneg %p17311_p7 }
 0x13f   : > { %p17319_p12 = pnand %p17318_p11, %p17312_p9 }
 0x141   : > { %17322 = shalt.err (!%p17319_p12)
}
 0x142   : > { %16703 = dma.hbm_to_vmem [thread:$0]  (!%p18011_p6), %s19989_s26, 4608, %s597_s1, [#allocation7], %s19952_s6, %s19952_s6, %s19953_s2  }
 0x143   : > { %s17830_s4 = smov [#allocation11]   ;;  %s17831_s29 = smov [#allocation14]  }
 0x144   : > { %s622_s24 = sshll.u32 %s17830_s4, 4  ;;  %s648_s7 = sshll.u32 %s17831_s29, 4  ;;  %s623_s24 = int_to_ptr.vmem [resolvable:$true] %s622_s24  ;;  %s649_s7 = int_to_ptr.vmem [resolvable:$true] %s648_s7 }
 0x145   : > { %s19990_s30 = sld [smem:[#allocation62_spill]] }
 0x14b   : > { %s17323_s21 = scalar_lea.hbm %s19990_s30, 9216 }
 0x14c   : > { %p17324_p1 = scmp.ne.s32.totalorder %s19990_s30, %s17323_s21  ;;  %p17330_p0 = scmp.lt.u32.totalorder %s17323_s21, %s19990_s30 }
 0x14e   : > { %p17326_p3 = pnand %p17324_p1, %p18027_p8 }
 0x150   : > { %p17327_p13 = pneg %p17326_p3 }
 0x152   : > { %p17332_p2 = pnand %p17330_p0, %p17327_p13 }
 0x154   : > { %17335 = shalt.err (!%p17332_p2)
}
 0x155   : > { %s17336_s1 = scalar_lea.vmem %s623_s24, 9216  ;;  %p17344_p4 = scmp.lt.s32.totalorder %s623_s24, %s623_s24 }
 0x156   : > { %p17337_p5 = scmp.ne.s32.totalorder %s623_s24, %s17336_s1  ;;  %p17345_p10 = scmp.lt.s32.totalorder %s17336_s1, %s17336_s1 }
 0x158   : > { %p17339_p7 = pnand %p17337_p5, %p18027_p8  ;;  %p17346_p11 = por %p17345_p10, %p17344_p4 }
 0x15a   : > { %p17340_p9 = pneg %p17339_p7 }
 0x15c   : > { %p17347_p12 = pnand %p17346_p11, %p17340_p9 }
 0x15e   : > { %17350 = shalt.err (!%p17347_p12)
}
 0x15f   : > { %16709 = dma.hbm_to_vmem [thread:$0]  (!%p18011_p6), %s19990_s30, 9216, %s623_s24, [#allocation10], %s19952_s6, %s19952_s6, %s19953_s2  }
 0x160   : > { %s19991_s29 = sld [smem:[#allocation64_spill]] }
 0x166   : > { %s17351_s20 = scalar_lea.hbm %s19991_s29, 512 }
 0x167   : > { %p17352_p1 = scmp.ne.s32.totalorder %s19991_s29, %s17351_s20  ;;  %p17358_p0 = scmp.lt.u32.totalorder %s17351_s20, %s19991_s29 }
 0x169   : > { %p17354_p3 = pnand %p17352_p1, %p18027_p8 }
 0x16b   : > { %p17355_p13 = pneg %p17354_p3 }
 0x16d   : > { %p17360_p2 = pnand %p17358_p0, %p17355_p13 }
 0x16f   : > { %17363 = shalt.err (!%p17360_p2)
}
 0x170   : > { %s17364_s1 = scalar_lea.vmem %s649_s7, 512  ;;  %p17372_p4 = scmp.lt.s32.totalorder %s649_s7, %s649_s7 }
 0x171   : > { %p17365_p5 = scmp.ne.s32.totalorder %s649_s7, %s17364_s1  ;;  %p17373_p10 = scmp.lt.s32.totalorder %s17364_s1, %s17364_s1 }
 0x173   : > { %p17367_p7 = pnand %p17365_p5, %p18027_p8  ;;  %p17374_p11 = por %p17373_p10, %p17372_p4 }
 0x175   : > { %p17368_p9 = pneg %p17367_p7 }
 0x177   : > { %p17375_p12 = pnand %p17374_p11, %p17368_p9 }
 0x179   : > { %17378 = shalt.err (!%p17375_p12)
}
 0x17a   : > { %16715 = dma.hbm_to_vmem [thread:$0]  (!%p18011_p6), %s19991_s29, 512, %s649_s7, [#allocation13], %s19952_s6, %s19952_s6, %s19953_s2  }
 0x17b   : > { %s17832_s0 = smov [#allocation17]   ;;  %s17833_s4 = smov [#allocation20]  }
 0x17c   : > { %s674_s25 = sshll.u32 %s17832_s0, 4  ;;  %s700_s20 = sshll.u32 %s17833_s4, 4  ;;  %s675_s25 = int_to_ptr.vmem [resolvable:$true] %s674_s25  ;;  %s701_s20 = int_to_ptr.vmem [resolvable:$true] %s700_s20 }
 0x17d   : > { %s19992_s8 = sld [smem:[#allocation66_spill]] }
 0x183   : > { %s17379_s5 = scalar_lea.hbm %s19992_s8, 36864 }
 0x184   : > { %p17380_p1 = scmp.ne.s32.totalorder %s19992_s8, %s17379_s5  ;;  %p17386_p0 = scmp.lt.u32.totalorder %s17379_s5, %s19992_s8 }
 0x186   : > { %p17382_p3 = pnand %p17380_p1, %p18027_p8 }
 0x188   : > { %p17383_p13 = pneg %p17382_p3 }
 0x18a   : > { %p17388_p2 = pnand %p17386_p0, %p17383_p13 }
 0x18c   : > { %17391 = shalt.err (!%p17388_p2)
}
 0x18d   : > { %s17392_s7 = scalar_lea.vmem %s675_s25, 36864  ;;  %p17400_p4 = scmp.lt.s32.totalorder %s675_s25, %s675_s25 }
 0x18e   : > { %p17393_p5 = scmp.ne.s32.totalorder %s675_s25, %s17392_s7  ;;  %p17401_p10 = scmp.lt.s32.totalorder %s17392_s7, %s17392_s7 }
 0x190   : > { %p17395_p7 = pnand %p17393_p5, %p18027_p8  ;;  %p17402_p11 = por %p17401_p10, %p17400_p4 }
 0x192   : > { %p17396_p9 = pneg %p17395_p7 }
 0x194   : > { %p17403_p12 = pnand %p17402_p11, %p17396_p9 }
 0x196   : > { %17406 = shalt.err (!%p17403_p12)
}
 0x197   : > { %16721 = dma.hbm_to_vmem [thread:$0]  (!%p18011_p6), %s19992_s8, 36864, %s675_s25, [#allocation16], %s19952_s6, %s19952_s6, %s19953_s2  }
 0x198   : > { %s19993_s10 = sld [smem:[#allocation68_spill]] }
 0x19e   : > { %s17407_s22 = scalar_lea.hbm %s19993_s10, 4096 }
 0x19f   : > { %p17408_p1 = scmp.ne.s32.totalorder %s19993_s10, %s17407_s22  ;;  %p17414_p0 = scmp.lt.u32.totalorder %s17407_s22, %s19993_s10 }
 0x1a1   : > { %p17410_p3 = pnand %p17408_p1, %p18027_p8 }
 0x1a3   : > { %p17411_p13 = pneg %p17410_p3 }
 0x1a5   : > { %p17416_p2 = pnand %p17414_p0, %p17411_p13 }
 0x1a7   : > { %17419 = shalt.err (!%p17416_p2)
}
 0x1a8   : > { %s17420_s24 = scalar_lea.vmem %s701_s20, 4096  ;;  %p17428_p4 = scmp.lt.s32.totalorder %s701_s20, %s701_s20 }
 0x1a9   : > { %p17421_p5 = scmp.ne.s32.totalorder %s701_s20, %s17420_s24  ;;  %p17429_p10 = scmp.lt.s32.totalorder %s17420_s24, %s17420_s24 }
 0x1ab   : > { %p17423_p7 = pnand %p17421_p5, %p18027_p8  ;;  %p17430_p11 = por %p17429_p10, %p17428_p4 }
 0x1ad   : > { %p17424_p9 = pneg %p17423_p7 }
 0x1af   : > { %p17431_p12 = pnand %p17430_p11, %p17424_p9 }
 0x1b1   : > { %17434 = shalt.err (!%p17431_p12)
}
 0x1b2   : > { %16727 = dma.hbm_to_vmem [thread:$0]  (!%p18011_p6), %s19993_s10, 4096, %s701_s20, [#allocation19], %s19952_s6, %s19952_s6, %s19953_s2  }
 0x1b3   : > { %s17834_s11 = smov [#allocation23]   ;;  %s17835_s0 = smov [#allocation26]  }
 0x1b4   : > { %s726_s9 = sshll.u32 %s17834_s11, 4  ;;  %s752_s4 = sshll.u32 %s17835_s0, 4  ;;  %s727_s9 = int_to_ptr.vmem [resolvable:$true] %s726_s9  ;;  %s753_s4 = int_to_ptr.vmem [resolvable:$true] %s752_s4 }
 0x1b5   : > { %s19994_s12 = sld [smem:[#allocation70_spill]] }
 0x1bb   : > { %s17435_s5 = scalar_lea.hbm %s19994_s12, 512 }
 0x1bc   : > { %p17436_p1 = scmp.ne.s32.totalorder %s19994_s12, %s17435_s5  ;;  %p17442_p0 = scmp.lt.u32.totalorder %s17435_s5, %s19994_s12 }
 0x1be   : > { %p17438_p3 = pnand %p17436_p1, %p18027_p8 }
 0x1c0   : > { %p17439_p13 = pneg %p17438_p3 }
 0x1c2   : > { %p17444_p2 = pnand %p17442_p0, %p17439_p13 }
 0x1c4   : > { %17447 = shalt.err (!%p17444_p2)
}
 0x1c5   : > { %s17448_s20 = scalar_lea.vmem %s727_s9, 512  ;;  %p17456_p4 = scmp.lt.s32.totalorder %s727_s9, %s727_s9 }
 0x1c6   : > { %p17449_p5 = scmp.ne.s32.totalorder %s727_s9, %s17448_s20  ;;  %p17457_p10 = scmp.lt.s32.totalorder %s17448_s20, %s17448_s20 }
 0x1c8   : > { %p17451_p7 = pnand %p17449_p5, %p18027_p8  ;;  %p17458_p11 = por %p17457_p10, %p17456_p4 }
 0x1ca   : > { %p17452_p9 = pneg %p17451_p7 }
 0x1cc   : > { %p17459_p12 = pnand %p17458_p11, %p17452_p9 }
 0x1ce   : > { %17462 = shalt.err (!%p17459_p12)
}
 0x1cf   : > { %16733 = dma.hbm_to_vmem [thread:$0]  (!%p18011_p6), %s19994_s12, 512, %s727_s9, [#allocation22], %s19952_s6, %s19952_s6, %s19953_s2  }
 0x1d0   : > { %s17463_s21 = scalar_lea.hbm %s19918_s14, 512 }
 0x1d1   : > { %p17464_p1 = scmp.ne.s32.totalorder %s19918_s14, %s17463_s21  ;;  %p17470_p0 = scmp.lt.u32.totalorder %s17463_s21, %s19918_s14 }
 0x1d3   : > { %p17466_p3 = pnand %p17464_p1, %p18027_p8 }
 0x1d5   : > { %p17467_p13 = pneg %p17466_p3 }
 0x1d7   : > { %p17472_p2 = pnand %p17470_p0, %p17467_p13 }
 0x1d9   : > { %17475 = shalt.err (!%p17472_p2)
}
 0x1da   : > { %s17476_s25 = scalar_lea.vmem %s753_s4, 512  ;;  %p17484_p4 = scmp.lt.s32.totalorder %s753_s4, %s753_s4 }
 0x1db   : > { %p17477_p5 = scmp.ne.s32.totalorder %s753_s4, %s17476_s25  ;;  %p17485_p10 = scmp.lt.s32.totalorder %s17476_s25, %s17476_s25 }
 0x1dd   : > { %p17479_p7 = pnand %p17477_p5, %p18027_p8  ;;  %p17486_p11 = por %p17485_p10, %p17484_p4 }
 0x1df   : > { %p17480_p9 = pneg %p17479_p7 }
 0x1e1   : > { %p17487_p12 = pnand %p17486_p11, %p17480_p9 }
 0x1e3   : > { %17490 = shalt.err (!%p17487_p12)
}
 0x1e4   : > { %16739 = dma.hbm_to_vmem [thread:$0]  (!%p18011_p6), %s19918_s14, 512, %s753_s4, [#allocation25], %s19952_s6, %s19952_s6, %s19953_s2  }
 0x1e5   : > { %s17836_s7 = smov [#allocation29]   ;;  %s17837_s0 = smov [#allocation32]  }
 0x1e6   : > { %s778_s11 = sshll.u32 %s17836_s7, 4  ;;  %s804_s22 = sshll.u32 %s17837_s0, 4  ;;  %s779_s11 = int_to_ptr.vmem [resolvable:$true] %s778_s11  ;;  %s805_s22 = int_to_ptr.vmem [resolvable:$true] %s804_s22 }
 0x1e7   : > { %s17491_s3 = scalar_lea.hbm %s19920_s16, 4608 }
 0x1e8   : > { %p17492_p1 = scmp.ne.s32.totalorder %s19920_s16, %s17491_s3  ;;  %p17498_p0 = scmp.lt.u32.totalorder %s17491_s3, %s19920_s16 }
 0x1ea   : > { %p17494_p3 = pnand %p17492_p1, %p18027_p8 }
 0x1ec   : > { %p17495_p13 = pneg %p17494_p3 }
 0x1ee   : > { %p17500_p2 = pnand %p17498_p0, %p17495_p13 }
 0x1f0   : > { %17503 = shalt.err (!%p17500_p2)
}
 0x1f1   : > { %s17504_s4 = scalar_lea.vmem %s779_s11, 4608  ;;  %p17512_p4 = scmp.lt.s32.totalorder %s779_s11, %s779_s11 }
 0x1f2   : > { %p17505_p5 = scmp.ne.s32.totalorder %s779_s11, %s17504_s4  ;;  %p17513_p10 = scmp.lt.s32.totalorder %s17504_s4, %s17504_s4 }
 0x1f4   : > { %p17507_p7 = pnand %p17505_p5, %p18027_p8  ;;  %p17514_p11 = por %p17513_p10, %p17512_p4 }
 0x1f6   : > { %p17508_p9 = pneg %p17507_p7 }
 0x1f8   : > { %p17515_p12 = pnand %p17514_p11, %p17508_p9 }
 0x1fa   : > { %17518 = shalt.err (!%p17515_p12)
}
 0x1fb   : > { %16745 = dma.hbm_to_vmem [thread:$0]  (!%p18011_p6), %s19920_s16, 4608, %s779_s11, [#allocation28], %s19952_s6, %s19952_s6, %s19953_s2  }
 0x1fc   : > { %s17519_s5 = scalar_lea.hbm %s19922_s18, 18432 }
 0x1fd   : > { %p17520_p1 = scmp.ne.s32.totalorder %s19922_s18, %s17519_s5  ;;  %p17526_p0 = scmp.lt.u32.totalorder %s17519_s5, %s19922_s18 }
 0x1ff   : > { %p17522_p3 = pnand %p17520_p1, %p18027_p8 }
 0x201   : > { %p17523_p13 = pneg %p17522_p3 }
 0x203   : > { %p17528_p2 = pnand %p17526_p0, %p17523_p13 }
 0x205   : > { %17531 = shalt.err (!%p17528_p2)
}
 0x206   : > { %s17532_s9 = scalar_lea.vmem %s805_s22, 18432  ;;  %p17540_p4 = scmp.lt.s32.totalorder %s805_s22, %s805_s22 }
 0x207   : > { %p17533_p5 = scmp.ne.s32.totalorder %s805_s22, %s17532_s9  ;;  %p17541_p10 = scmp.lt.s32.totalorder %s17532_s9, %s17532_s9 }
 0x209   : > { %p17535_p7 = pnand %p17533_p5, %p18027_p8  ;;  %p17542_p11 = por %p17541_p10, %p17540_p4 }
 0x20b   : > { %p17536_p9 = pneg %p17535_p7 }
 0x20d   : > { %p17543_p12 = pnand %p17542_p11, %p17536_p9 }
 0x20f   : > { %17546 = shalt.err (!%p17543_p12)
}
 0x210   : > { %s17838_s11 = smov 256   ;;  %s17839_s4 = smov 16  }
 0x211   : > { %16751 = dma.hbm_to_vmem [thread:$0]  (!%p18011_p6), %s19922_s18, 18432, %s805_s22, [#allocation31], %s17838_s11, %s17838_s11, %s17839_s4  }
 0x212   : > { %s17840_s0 = smov [#allocation35]   ;;  %s17841_s5 = smov [#allocation36]  }
 0x213   : > { %s830_s21 = sshll.u32 %s17840_s0, 4  ;;  %s844_s3 = sshll.u32 %s17841_s5, 4  ;;  %s831_s21 = int_to_ptr.vmem [resolvable:$true] %s830_s21  ;;  %s845_s3 = int_to_ptr.vmem [resolvable:$true] %s844_s3 }
 0x214   : > { %s19995_s25 = sld [smem:[#allocation71_spill]] }
 0x21a   : > { %s19996_s9 = smov %s19995_s25  ;;  %s17547_s6 = scalar_lea.hbm %s19995_s25, 512 }
 0x21b   : > { %p17548_p1 = scmp.ne.s32.totalorder %s19996_s9, %s17547_s6  ;;  %p17554_p0 = scmp.lt.u32.totalorder %s17547_s6, %s19996_s9 }
 0x21d   : > { %p17550_p3 = pnand %p17548_p1, %p18027_p8 }
 0x21f   : > { %p17551_p13 = pneg %p17550_p3 }
 0x221   : > { %p17556_p2 = pnand %p17554_p0, %p17551_p13 }
 0x223   : > { %17559 = shalt.err (!%p17556_p2)
}
 0x224   : > { %s17560_s22 = scalar_lea.vmem %s831_s21, 512  ;;  %p17568_p4 = scmp.lt.s32.totalorder %s831_s21, %s831_s21 }
 0x225   : > { %p17561_p5 = scmp.ne.s32.totalorder %s831_s21, %s17560_s22  ;;  %p17569_p10 = scmp.lt.s32.totalorder %s17560_s22, %s17560_s22 }
 0x227   : > { %p17563_p7 = pnand %p17561_p5, %p18027_p8  ;;  %p17570_p11 = por %p17569_p10, %p17568_p4 }
 0x229   : > { %p17564_p9 = pneg %p17563_p7 }
 0x22b   : > { %p17571_p12 = pnand %p17570_p11, %p17564_p9 }
 0x22d   : > { %17574 = shalt.err (!%p17571_p12)
}
 0x22e   : > { %s19997_s8 = smov 8   ;;  %s19998_s2 = smov 128  }
 0x22f   : > { %16757 = dma.hbm_to_vmem [thread:$0]  (!%p18011_p6), %s19996_s9, 512, %s831_s21, [#allocation34], %s19998_s2, %s19998_s2, %s19997_s8  }
 0x230   : > { %s19999_s4 = sld [smem:[#allocation72_spill]] }
 0x236   : > { %s17575_s20 = scalar_lea.hbm %s19999_s4, 16 }
 0x237   : > { %p17576_p1 = scmp.ne.s32.totalorder %s19999_s4, %s17575_s20  ;;  %p17582_p0 = scmp.lt.u32.totalorder %s17575_s20, %s19999_s4 }
 0x239   : > { %p17578_p3 = pnand %p17576_p1, %p18027_p8 }
 0x23b   : > { %p17579_p13 = pneg %p17578_p3 }
 0x23d   : > { %p17584_p2 = pnand %p17582_p0, %p17579_p13 }
 0x23f   : > { %17587 = shalt.err (!%p17584_p2)
}
 0x240   : > { %s17588_s24 = scalar_lea.vmem %s845_s3, 16  ;;  %s17595_s21 = scalar_lea.vmem %s845_s3, 32 }
 0x241   : > { %p17589_p5 = scmp.ne.s32.totalorder %s845_s3, %s17588_s24  ;;  %p17596_p4 = scmp.lt.s32.totalorder %s845_s3, %s845_s3 }
 0x242   : > { %p17597_p10 = scmp.lt.s32.totalorder %s17595_s21, %s17588_s24 }
 0x243   : > { %p17591_p7 = pnand %p17589_p5, %p18027_p8 }
 0x244   : > { %p17598_p11 = por %p17597_p10, %p17596_p4 }
 0x245   : > { %p17592_p9 = pneg %p17591_p7 }
 0x247   : > { %p17599_p12 = pnand %p17598_p11, %p17592_p9 }
 0x249   : > { %17602 = shalt.err (!%p17599_p12)
}
 0x24a   : > { %s20000_s8 = sld [smem:[#allocation55_spill]]  ;;  %s20001_s2 = sld [smem:[#allocation54_spill]] }
 0x24b   : > { %s20002_s10 = sld [smem:[#allocation53_spill]]  ;;  %s20003_s27 = sld [smem:[#allocation52_spill]] }
 0x24c   : > { %s20004_s12 = sld [smem:[#allocation56_spill]] }
 0x24d   : > { %16760 = dma.hbm_to_vmem [thread:$0]  (!%p18011_p6), %s19999_s4, 16, %s845_s3, [#allocation37]  }
 0x250   : > { %s12405_s6 = sadd.s32 4294967294, %s20000_s8   ;;  %s18477_s5 = sadd.s32 1, %s20000_s8  }
 0x251   : > { %s59_s28 = sadd.s32 1, %s20001_s2  ;;  %s56_s11 = ssub.s32 %s20000_s8, %s18477_s5 }
 0x252   : > { %p66_p8 = scmp.ne.s32.totalorder %s20001_s2, %s20002_s10  ;;  %p57_p1 = scmp.eq.s32.totalorder %s56_s11, 0 }
 0x253   : > { %p67_p3 = scmp.eq.s32.totalorder %s20000_s8, 0  ;;  %p72_p13 = scmp.ne.s32.totalorder %s20002_s10, %s20003_s27 }
 0x254   : > { %p558_p0 = scmp.eq.s32.totalorder %s20004_s12, 1  ;;  %p20005_p5 = scmp.eq.s32.totalorder %s20004_s12, 0 }
 0x255   : > { %s18489_s20 = scalar_select %p57_p1, %s20001_s2, %s59_s28  }
 0x256   : > { %p68_p2 = por %p67_p3, %p66_p8  ;;  %p18493_p7 = por %p20005_p5, %p72_p13 }
 0x257   : > { %p18497_p6 = por %p558_p0, %p66_p8  ;;  %p564_p9 = scmp.eq.s32.totalorder %s12405_s6, 1 }
 0x258   : > { %p16790_p4 = scmp.lt.s32.totalorder %s20000_s8, 2  ;;  %s858_s0 = sand.u32 1, %s20001_s2  }
 0x259   : > { %s20007_s3 = scalar_select %p18497_p6, 1, 0 }
 0x25a   : > { %p18503_p10 = por %p564_p9, %p72_p13  ;;  %s16605_s24 = smul.u32 38, %s858_s0 }
 0x25b   : > { %p18507_p11 = pnand %p16790_p4, %p68_p2  ;;  %s16606_s25 = smul.u32 608, %s20000_s8 }
 0x25c   : > { %s20008_s1 = scalar_select %p18503_p10, 1, 0 }
 0x25d   : > { %s20010_s27 = sld [smem:[#allocation58_spill]]  ;;  %s862_s2 = scalar_lea.vmem [#allocation3], %s16605_s24 }
 0x25e   : > { %s869_s6 = sshll.u32 %s862_s2, 4  ;;  %s18519_s28 = scalar_lea.sflag [#allocation4], %s858_s0  ;;  %s18517_s6 = int_to_ptr.vmem [resolvable:$true] %s869_s6 }
 0x25f   : > { %p17605_p8 = pneg %p18507_p11 }
 0x263   : > { %s18515_s12 = scalar_lea.hbm %s20010_s27, %s16606_s25  ;;  %s17608_s22 = scalar_lea.hbm %s20010_s27, 1216 }
 0x264   : > { %s17603_s11 = scalar_lea.hbm %s18515_s12, 608  ;;  %p17609_p13 = scmp.lt.u32.totalorder %s18515_s12, %s20010_s27 }
 0x265   : > { %p17604_p12 = scmp.ne.s32.totalorder %s18515_s12, %s17603_s11  ;;  %p17610_p0 = scmp.lt.u32.totalorder %s17608_s22, %s17603_s11 }
 0x266   : > { %p17612_p5 = scmp.lt.u32.totalorder %s17603_s11, %s18515_s12 }
 0x267   : > { %p17606_p1 = pnand %p17605_p8, %p17604_p12  ;;  %p17611_p2 = por %p17610_p0, %p17609_p13 }
 0x269   : > { %p17607_p3 = pneg %p17606_p1  ;;  %p17613_p9 = por %p17612_p5, %p17611_p2 }
 0x26b   : > { %p17614_p4 = pnand %p17613_p9, %p17607_p3 }
 0x26d   : > { %17617 = shalt.err (!%p17614_p4)
}
 0x26e   : > { %s17618_s0 = scalar_lea.vmem %s18517_s6, 608  ;;  %s17842_s24 = smov [#allocation3]  }
 0x26f   : > { %p17619_p12 = scmp.ne.s32.totalorder %s18517_s6, %s17618_s0  ;;  %s17623_s2 = sshll.u32 %s17842_s24, 4  ;;  %s17624_s2 = int_to_ptr.vmem [resolvable:$false] %s17623_s2 }
 0x270   : > { %s17625_s4 = scalar_lea.vmem %s17624_s2, 1216  ;;  %p17626_p6 = scmp.lt.s32.totalorder %s18517_s6, %s17624_s2 }
 0x271   : > { %p17621_p1 = pnand %p17619_p12, %p17605_p8  ;;  %p17627_p13 = scmp.lt.s32.totalorder %s17625_s4, %s17618_s0 }
 0x273   : > { %p17622_p10 = pneg %p17621_p1  ;;  %p17628_p0 = por %p17627_p13, %p17626_p6 }
 0x275   : > { %p17629_p2 = pnand %p17628_p0, %p17622_p10 }
 0x277   : > { %17632 = shalt.err (!%p17629_p2)
}
 0x278   : > { %s17843_s11 = smov 32   ;;  %s17844_s8 = smov 2  }
 0x279   : > { %16764 = dma.hbm_to_vmem [thread:$0]  (!%p18507_p11), %s18515_s12, 608, %s18517_s6, %s18519_s28, %s17843_s11, %s17843_s11, %s17844_s8  }
 0x27a   : > { %s20011_s25 = sld [smem:[#allocation57_spill]] }
 0x280   : > { %p20012_p8 = scmp.ne.s32.totalorder %s20011_s25, 0 }
 0x281   : > { %s20013_s22 = sld [smem:[#allocation53_spill]] (!%p20012_p8) }
 0x282   : > { %881 = sbr.rel (%p20012_p8) target bundleno = 4409 (0x1139), region = 112 }
 0x287   : > { %s18550_s10 = sand.u32 (!%p20012_p8), 1, %s20013_s22  }
 0x288   : > { %s16607_s0 = smul.u32 (!%p20012_p8), 38, %s18550_s10  ;;  %s884_s24 = scalar_lea.sflag (!%p20012_p8), [#allocation4], %s18550_s10 }
 0x28a   : > { %s18554_s2 = scalar_lea.vmem [#allocation3], %s16607_s0 }
 0x28b   : > { %17714 = dma.done.wait (%p18493_p7), %s884_s24, 608  }
 0x28c   : > { %17716 = vsyncadd (%p18493_p7), %s884_s24, 4294966688  ;;  %s20014_s21 = sld [smem:[#allocation56_spill]] }
 0x292   : > { %p20015_p6 = scmp.eq.s32.totalorder %s20014_s21, 0 }
 0x294   : > { %17718 = dma.done.wait (%p20015_p6), [#allocation7], 41472   ;;  %p20016_p10 = pmov %p20015_p6 }
 0x295   : > { %p20017_p11 = pmov %p20015_p6 }
 0x296   : > { %17720 = vsyncadd (%p20016_p10), [#allocation7], 4294925824 }
 0x297   : > { %17722 = dma.done.wait (%p20017_p11), [#allocation10], 9728   ;;  %p20018_p3 = pmov %p20015_p6 }
 0x299   : > { %17724 = vsyncadd (%p20018_p3), [#allocation10], 4294957568  ;;  %p20019_p5 = pmov %p20018_p3 }
 0x29a   : > { %p20020_p9 = pmov %p20018_p3 }
 0x29b   : > { %17726 = dma.done.wait (%p20019_p5), [#allocation13], 5120  }
 0x29c   : > { %17728 = vsyncadd (%p20020_p9), [#allocation13], 4294962176  ;;  %p20021_p7 = pmov %p20018_p3 }
 0x29d   : > { %p20022_p4 = pmov %p20018_p3 }
 0x29e   : > { %17730 = dma.done.wait (%p20021_p7), [#allocation16], 39168  }
 0x29f   : > { %17732 = vsyncadd (%p20022_p4), [#allocation16], 4294928128  ;;  %p20023_p12 = pmov %p20018_p3 }
 0x2a0   : > { %p20024_p1 = pmov %p20018_p3 }
 0x2a1   : > { %17734 = dma.done.wait (%p20023_p12), [#allocation19], 40960  }
 0x2a2   : > { %17736 = vsyncadd (%p20024_p1), [#allocation19], 4294926336  ;;  %p20025_p13 = pmov %p20024_p1 }
 0x2a3   : > { %p20026_p0 = pmov %p20024_p1 }
 0x2a4   : > { %17738 = dma.done.wait (%p20025_p13), [#allocation22], 1024  }
 0x2a5   : > { %17740 = vsyncadd (%p20026_p0), [#allocation22], 4294966272  ;;  %p20027_p2 = pmov %p20026_p0 }
 0x2a6   : > { %p20028_p8 = pmov %p20026_p0 }
 0x2a7   : > { %17742 = dma.done.wait (%p20027_p2), [#allocation25], 1024  }
 0x2a8   : > { %17744 = vsyncadd (%p20028_p8), [#allocation25], 4294966272  ;;  %p20029_p6 = pmov %p20026_p0 }
 0x2a9   : > { %p20030_p10 = pmov %p20026_p0 }
 0x2aa   : > { %17746 = dma.done.wait (%p20029_p6), [#allocation28], 6912  }
 0x2ab   : > { %17748 = vsyncadd (%p20030_p10), [#allocation28], 4294960384  ;;  %p20031_p11 = pmov %p20026_p0 }
 0x2ac   : > { %p20032_p3 = pmov %p20026_p0 }
 0x2ad   : > { %17750 = dma.done.wait (%p20031_p11), [#allocation31], 18944  }
 0x2ae   : > { %17752 = vsyncadd (%p20032_p3), [#allocation31], 4294948352  ;;  %p20033_p5 = pmov %p20026_p0 }
 0x2af   : > { %p20034_p9 = pmov %p20026_p0 }
 0x2b0   : > { %17754 = dma.done.wait (%p20033_p5), [#allocation34], 5120  }
 0x2b1   : > { %17756 = vsyncadd (%p20034_p9), [#allocation34], 4294962176  ;;  %p20035_p7 = pmov %p20026_p0 }
 0x2b2   : > { %p20036_p4 = pmov %p20026_p0 }
 0x2b3   : > { %17758 = dma.done.wait (%p20035_p7), [#allocation37], 16  }
 0x2b4   : > { %17760 = vsyncadd (%p20036_p4), [#allocation37], 4294967280  ;;  %s18604_s7 = scalar_lea.vmem [#allocation38], %s16607_s0  ;;  %v18606_v1 = vmov 0.0   ;;  %v18608_v2 = vmov 0.0   ;;  %v18610_v3 = vmov 0.0  }
 0x2b5   : > { %v18612_v4 = vmov 0.0   ;;  %v18614_v5 = vmov 0.0   ;;  %v18616_v6 = vmov 0.0   ;;  %v18618_v7 = vmov 0.0   ;;  %s18622_s12 = smov 0  }
 0x2b6   : > { %v18620_v8 = vmov 0.0  }
 0x2b7 LB: >> { %v1102_v9 = vld [vmem:[#allocation23] sm:$0xff]  ;;  %v17845_v11 = vmov 0   ;;  %v1103_v12 = vld [vmem:[#allocation23 + $0x8] sm:$0xff]  ;;  %v1054_v14 = vld [vmem:[#allocation21 + $0x18] sm:$0xff]  ;;  %v17846_v24 = vmov 0.0   ;;  %v1076_v56 = vlaneseq  ;;  %s12452_s6 = sshll.u32 %s17815_s12, 1  ;;  %s17815_s12 = sphi %s18622_s12, %s1039_s12   ;;  %v17811_v8 = vphi %v18620_v8, %v19529_v8   ;;  %v17807_v7 = vphi %v18618_v7, %v20037_v7   ;;  %v17803_v6 = vphi %v18616_v6, %v19535_v6   ;;  %v17799_v5 = vphi %v18614_v5, %v19531_v5   ;;  %v17795_v4 = vphi %v18612_v4, %v19518_v4   ;;  %v17791_v3 = vphi %v18610_v3, %v19514_v3   ;;  %v17787_v2 = vphi %v18608_v2, %v19524_v2   ;;  %v17783_v1 = vphi %v18606_v1, %v19520_v1  }
 0x2b8   : >> { %v1051_v10 = vld [vmem:[#allocation21] sm:$0xff]  ;;  %16950 = vset.pattern.permute.xlu1 %v17845_v11  ;;  %16949 = vset.pattern.permute.xlu0 %v17845_v11  ;;  %v1052_v13 = vld [vmem:[#allocation21 + $0x8] sm:$0xff]  ;;  %v1053_v15 = vld [vmem:[#allocation21 + $0x10] sm:$0xff]  ;;  %s1049_s28 = scalar_lea.vmem %s18554_s2, %s12452_s6 [#allocation3]  ;;  %vm1194_vm8 = vcmask 261120   ;;  %vm3119_vm13 = vcmask 523264   ;;  %s12079_s4 = scalar_lea.vmem %s18604_s7, %s12452_s6 [#allocation38] }
 0x2b9   : >> { %1108 = vperm.xlu1 %16950, %v1102_v9   ;;  %1057 = vperm.xlu0 %16949, %v1051_v10   ;;  %v1105_v16 = vld [vmem:[#allocation23 + $0x18] sm:$0xff]  ;;  %v1104_v17 = vld [vmem:[#allocation23 + $0x10] sm:$0xff]  ;;  %v2676_v20 = vld [vmem:[#allocation9 + $0x18] sm:$0xff]  ;;  %v18654_v57 = vshrl.u32 %v1076_v56, 7  ;;  %s1039_s12 = sadd.s32 1, %s17815_s12  }
 0x2ba   : >> { %v2674_v18 = vld [vmem:[#allocation9 + $0x8] sm:$0xff]  ;;  %v2673_v19 = vld [vmem:[#allocation9] sm:$0xff]  ;;  %v2675_v21 = vld [vmem:[#allocation9 + $0x10] sm:$0xff]  ;;  %1367 = vmatprep.mubr.f32.mxu0 %v17846_v24  ;;  %p1036_p12 = scmp.ge.s32.totalorder %s1039_s12, 19  }
 0x2bb   : >> { %v4085_v22 = vld [vmem:[#allocation14 + $0x8] sm:$0xff]  ;;  %v4084_v23 = vld [vmem:[#allocation14] sm:$0xff]  ;;  %v4087_v25 = vld [vmem:[#allocation14 + $0x18] sm:$0xff]  ;;  %v1078_v58 = vsub.s32 0, %v18654_v57  ;;  %v1082_v59 = vsub.s32 1, %v18654_v57  ;;  %s20038_s11 = sld [smem:[#allocation56_spill]] (%p1036_p12) }
 0x2bc   : >> { %v4086_v26 = vld [vmem:[#allocation14 + $0x10] sm:$0xff]  ;;  %v8726_v27 = vld [vmem:[#allocation20 + $0x88] sm:$0xff]  ;;  %v8728_v31 = vld [vmem:[#allocation20 + $0x98] sm:$0xff]  ;;  %s12099_s25 = sshll.u32 (%p1036_p12), %s18604_s7, 4  ;;  %s20039_s24 = sld [smem:[#allocation73_spill]] (%p1036_p12)  ;;  %s19860_s25 = int_to_ptr.vmem [resolvable:$true] %s12099_s25 }
 0x2bd   : >> { %1113 = vperm.xlu1 %16950, %v1103_v12   ;;  %1062 = vperm.xlu0 %16949, %v1052_v13   ;;  %v8725_v28 = vld [vmem:[#allocation20 + $0x80] sm:$0xff]  ;;  %v8730_v29 = vld [vmem:[#allocation20 + $0xa8] sm:$0xff]  ;;  %v8727_v32 = vld [vmem:[#allocation20 + $0x90] sm:$0xff]  ;;  %p20041_p13 = scmp.ne.s32.totalorder (%p1036_p12), %s20007_s3, 0  ;;  %s17848_s2 = smov (%p1036_p12), [#allocation38]  }
 0x2be   : >> { %v8729_v30 = vld [vmem:[#allocation20 + $0xa0] sm:$0xff]  ;;  %v8732_v33 = vld [vmem:[#allocation20 + $0xb8] sm:$0xff]  ;;  %v8731_v34 = vld [vmem:[#allocation20 + $0xb0] sm:$0xff]  ;;  %s17637_s12 = sshll.u32 (%p1036_p12), %s17848_s2, 4  ;;  %s17638_s12 = int_to_ptr.vmem [resolvable:$false] %s17637_s12 }
 0x2bf   : >> { %v8734_v35 = vld [vmem:[#allocation20 + $0xc8] sm:$0xff]  ;;  %v8733_v36 = vld [vmem:[#allocation20 + $0xc0] sm:$0xff]  ;;  %v8736_v39 = vld [vmem:[#allocation20 + $0xd8] sm:$0xff]  ;;  %s17639_s7 = scalar_lea.vmem (%p1036_p12), %s17638_s12, 1216  ;;  %p17640_p8 = scmp.lt.s32.totalorder (%p1036_p12), %s19860_s25, %s17638_s12 }
 0x2c0   : >> { %v8738_v37 = vld [vmem:[#allocation20 + $0xe8] sm:$0xff]  ;;  %v8737_v38 = vld [vmem:[#allocation20 + $0xe0] sm:$0xff]  ;;  %v8735_v40 = vld [vmem:[#allocation20 + $0xd0] sm:$0xff] }
 0x2c1   : >> { %1072 = vperm.xlu1 %16950, %v1054_v14   ;;  %1067 = vperm.xlu0 %16949, %v1053_v15   ;;  %v8740_v41 = vld [vmem:[#allocation20 + $0xf8] sm:$0xff]  ;;  %v8739_v42 = vld [vmem:[#allocation20 + $0xf0] sm:$0xff]  ;;  %v8938_v43 = vld [vmem:[#allocation26 + $0x8] sm:$0xff]  ;;  %s16608_s8 = smul.u32 (%p1036_p12), 608, %s20038_s11 }
 0x2c2   : >> { %v8937_v44 = vld [vmem:[#allocation26] sm:$0xff]  ;;  %v8940_v45 = vld [vmem:[#allocation26 + $0x18] sm:$0xff]  ;;  %v8939_v46 = vld [vmem:[#allocation26 + $0x10] sm:$0xff]  ;;  %s20040_s21 = smov (%p1036_p12), %s20039_s24 }
 0x2c3   : >> { %v10375_v47 = vld [vmem:[#allocation30 + $0x8] sm:$0xff]  ;;  %v10374_v48 = vld [vmem:[#allocation30] sm:$0xff]  ;;  %v10377_v49 = vld [vmem:[#allocation30 + $0x18] sm:$0xff]  ;;  %s19858_s6 = scalar_lea.hbm (%p1036_p12), %s20039_s24, %s16608_s8 }
 0x2c4   : >> { %v10376_v50 = vld [vmem:[#allocation30 + $0x10] sm:$0xff]  ;;  %v11921_v51 = vld [vmem:[#allocation35 + $0x8] sm:$0xff]  ;;  %v11920_v52 = vld [vmem:[#allocation35] sm:$0xff] }
 0x2c5   : >> { %1123 = vperm.xlu1 %16950, %v1105_v16   ;;  %1118 = vperm.xlu0 %16949, %v1104_v17   ;;  %v11923_v53 = vld [vmem:[#allocation35 + $0x18] sm:$0xff]  ;;  %v11922_v54 = vld [vmem:[#allocation35 + $0x10] sm:$0xff] }
 0x2c6   : >> { %v11977_v55 = vld [vmem:[#allocation2] sm:$0x1] }
 0x2c7   : >> { %v1050_v60 = vld [vmem:[%s1049_s28] sm:$0x3]  ;;  %s12086_s28 = scalar_lea.sflag (%p1036_p12), [#allocation5], %s18550_s10 }
 0x2c8   : >> { %v1079_v61 = vrot.slane %v1050_v60, %v1078_v58  ;;  %v1083_v62 = vrot.slane %v1050_v60, %v1082_v59  ;;  %v1162_v59 = vld [vmem:[#allocation8 + $0x20] sm:$0xff] }
 0x2c9   : >> { %2684 = vperm.xlu1 %16950, %v2674_v18   ;;  %2679 = vperm.xlu0 %16949, %v2673_v19   ;;  %v1633_v60 = vld [vmem:[#allocation6 + $0x180] sm:$0xff] }
 0x2cd   : >> { %2694 = vperm.xlu1 %16950, %v2676_v20   ;;  %2689 = vperm.xlu0 %16949, %v2675_v21  }
 0x2d1   : >> { %4095 = vperm.xlu1 %16950, %v4085_v22   ;;  %4090 = vperm.xlu0 %16949, %v4084_v23  }
 0x2d5   : >> { %4105 = vperm.xlu1 %16950, %v4087_v25   ;;  %4100 = vperm.xlu0 %16949, %v4086_v26  }
 0x2d9   : >> { %8748 = vperm.xlu1 %16950, %v8726_v27   ;;  %8743 = vperm.xlu0 %16949, %v8725_v28  }
 0x2dd   : >> { %8768 = vperm.xlu1 %16950, %v8730_v29   ;;  %8763 = vperm.xlu0 %16949, %v8729_v30  }
 0x2e1   : >> { %8758 = vperm.xlu1 %16950, %v8728_v31   ;;  %8753 = vperm.xlu0 %16949, %v8727_v32  }
 0x2e5   : >> { %8778 = vperm.xlu1 %16950, %v8732_v33   ;;  %8773 = vperm.xlu0 %16949, %v8731_v34  }
 0x2e9   : >> { %8788 = vperm.xlu1 %16950, %v8734_v35   ;;  %8783 = vperm.xlu0 %16949, %v8733_v36  }
 0x2ed   : >> { %8808 = vperm.xlu1 %16950, %v8738_v37   ;;  %8803 = vperm.xlu0 %16949, %v8737_v38  }
 0x2f1   : >> { %8798 = vperm.xlu1 %16950, %v8736_v39   ;;  %8793 = vperm.xlu0 %16949, %v8735_v40  }
 0x2f5   : >> { %8818 = vperm.xlu1 %16950, %v8740_v41   ;;  %8813 = vperm.xlu0 %16949, %v8739_v42  }
 0x2f9   : >> { %8948 = vperm.xlu1 %16950, %v8938_v43   ;;  %8943 = vperm.xlu0 %16949, %v8937_v44  }
 0x2fd   : >> { %8958 = vperm.xlu1 %16950, %v8940_v45   ;;  %8953 = vperm.xlu0 %16949, %v8939_v46  }
 0x301   : >> { %10385 = vperm.xlu1 %16950, %v10375_v47   ;;  %10380 = vperm.xlu0 %16949, %v10374_v48  }
 0x305   : >> { %10395 = vperm.xlu1 %16950, %v10377_v49   ;;  %10390 = vperm.xlu0 %16949, %v10376_v50  }
 0x309   : >> { %11931 = vperm.xlu1 %16950, %v11921_v51   ;;  %11926 = vperm.xlu0 %16949, %v11920_v52   ;;  %v1158_v52 = vld [vmem:[#allocation8] sm:$0xff] }
 0x30d   : >> { %11941 = vperm.xlu1 %16950, %v11923_v53   ;;  %11936 = vperm.xlu0 %16949, %v11922_v54   ;;  %v1159_v53 = vld [vmem:[#allocation8 + $0x8] sm:$0xff]  ;;  %v1160_v54 = vld [vmem:[#allocation8 + $0x10] sm:$0xff] }
 0x311   : >> { %11980 = vperm.xlu0 %16949, %v11977_v55   ;;  %v1161_v55 = vld [vmem:[#allocation8 + $0x18] sm:$0xff] }
 0x338   : >> { %v1109_v63 = vpop.permute.xlu1 %1108  ;;  %v1058_v0 = vpop.permute.xlu0 %1057 }
 0x339   : >> { %v1086_v9 = vmul.f32 %v1079_v61, %v1058_v0  ;;  %v1087_v10 = vmul.f32 %v1083_v62, %v1058_v0  ;;  %v1618_v0 = vld [vmem:[#allocation6 + $0x108] sm:$0xff] }
 0x33b   : >> { %v1126_v11 = vadd.f32 %v1109_v63, %v1086_v9  ;;  %v1127_v12 = vadd.f32 %v1109_v63, %v1087_v10  ;;  %v1635_v9 = vld [vmem:[#allocation6 + $0x190] sm:$0xff]  ;;  %v1636_v10 = vld [vmem:[#allocation6 + $0x198] sm:$0xff] }
 0x33c   : >> { %v1114_v13 = vpop.permute.xlu1 %1113  ;;  %v1063_v14 = vpop.permute.xlu0 %1062 }
 0x33d   : >> { %v1088_v15 = vmul.f32 %v1079_v61, %v1063_v14  ;;  %v1089_v16 = vmul.f32 %v1083_v62, %v1063_v14  ;;  %v1143_v21 = vmul.f32 0.1, %v1127_v12  ;;  %v1142_v22 = vmul.f32 0.1, %v1126_v11  ;;  %v1620_v14 = vld [vmem:[#allocation6 + $0x118] sm:$0xff] }
 0x33e   : >> { %vm1135_vm0 = vcmp.ge.f32.partialorder %v1127_v12, 0.0  ;;  %vm1134_vm1 = vcmp.ge.f32.partialorder %v1126_v11, 0.0 }
 0x33f   : >> { %v1128_v17 = vadd.f32 %v1114_v13, %v1088_v15  ;;  %v1129_v18 = vadd.f32 %v1114_v13, %v1089_v16  ;;  %v1151_v32 = vsel %vm1135_vm0, %v1127_v12, %v1143_v21  ;;  %v1150_v34 = vsel %vm1134_vm1, %v1126_v11, %v1142_v22  ;;  %v1619_v13 = vld [vmem:[#allocation6 + $0x110] sm:$0xff]  ;;  %v1637_v15 = vld [vmem:[#allocation6 + $0x1a0] sm:$0xff]  ;;  %v1638_v16 = vld [vmem:[#allocation6 + $0x1a8] sm:$0xff] }
 0x340   : >> { %v1073_v19 = vpop.permute.xlu1 %1072  ;;  %v1068_v20 = vpop.permute.xlu0 %1067  ;;  %v15501_v12 = vpack.c.bf16 %v1636_v10, %v1635_v9  ;;  %v1622_v21 = vld [vmem:[#allocation6 + $0x128] sm:$0xff]  ;;  %v1639_v22 = vld [vmem:[#allocation6 + $0x1b0] sm:$0xff]  ;;  %v1629_v10 = vld [vmem:[#allocation6 + $0x160] sm:$0xff] }
 0x341   : >> { %vm1137_vm2 = vcmp.ge.f32.partialorder %v1129_v18, 0.0  ;;  %v1145_v23 = vmul.f32 0.1, %v1129_v18  ;;  %vm1136_vm3 = vcmp.ge.f32.partialorder %v1128_v17, 0.0  ;;  %v1144_v25 = vmul.f32 0.1, %v1128_v17 }
 0x342   : >> { %v1092_v26 = vmul.f32 %v1079_v61, %v1073_v19  ;;  %v1093_v27 = vmul.f32 %v1083_v62, %v1073_v19  ;;  %v1090_v28 = vmul.f32 %v1079_v61, %v1068_v20  ;;  %v1091_v29 = vmul.f32 %v1083_v62, %v1068_v20  ;;  %v1634_v61 = vld [vmem:[#allocation6 + $0x188] sm:$0xff]  ;;  %v1617_v62 = vld [vmem:[#allocation6 + $0x100] sm:$0xff] }
 0x343   : >> { %v1153_v33 = vsel %vm1137_vm2, %v1129_v18, %v1145_v23  ;;  %v1152_v35 = vsel %vm1136_vm3, %v1128_v17, %v1144_v25  ;;  %v15497_v63 = vpack.c.bf16 %v1634_v61, %v1633_v60  ;;  %v15499_v11 = vpack.c.bf16 %v1618_v0, %v1617_v62  ;;  %v1163_v18 = vld [vmem:[#allocation8 + $0x28] sm:$0xff]  ;;  %v1621_v20 = vld [vmem:[#allocation6 + $0x120] sm:$0xff]  ;;  %v1640_v23 = vld [vmem:[#allocation6 + $0x1b8] sm:$0xff] }
 0x344   : >> { %v1124_v30 = vpop.permute.xlu1 %1123  ;;  %v1119_v31 = vpop.permute.xlu0 %1118  ;;  %v15489_v40 = vpack.c.bf16 %v1153_v33, %v1151_v32  ;;  %v15491_v41 = vpack.c.bf16 %v1152_v35, %v1150_v34  ;;  %v15503_v17 = vpack.c.bf16 %v1620_v14, %v1619_v13  ;;  %v15505_v19 = vpack.c.bf16 %v1638_v16, %v1637_v15  ;;  %v1166_v32 = vld [vmem:[#allocation8 + $0x40] sm:$0xff]  ;;  %v1167_v33 = vld [vmem:[#allocation8 + $0x48] sm:$0xff]  ;;  %v1168_v34 = vld [vmem:[#allocation8 + $0x50] sm:$0xff] }
 0x345   : >> { %v1132_v36 = vadd.f32 %v1124_v30, %v1092_v26  ;;  %v1133_v37 = vadd.f32 %v1124_v30, %v1093_v27  ;;  %v1130_v38 = vadd.f32 %v1119_v31, %v1090_v28  ;;  %v1131_v39 = vadd.f32 %v1119_v31, %v1091_v29  ;;  %15498 = vmatprep.subr.bf16.mxu1 %v15497_v63  ;;  %v1164_v26 = vld [vmem:[#allocation8 + $0x30] sm:$0xff]  ;;  %v1624_v29 = vld [vmem:[#allocation6 + $0x138] sm:$0xff]  ;;  %v1645_v63 = vld [vmem:[#allocation6 + $0x1e0] sm:$0xff] }
 0x346   : >> { %15490 = vmatprep.subr.bf16.mxu0 %v15489_v40  ;;  %15500 = vmatpush3.bf16.msra.mxu1 %v15499_v11  ;;  %v15507_v25 = vpack.c.bf16 %v1622_v21, %v1621_v20  ;;  %v15509_v27 = vpack.c.bf16 %v1640_v23, %v1639_v22  ;;  %v1623_v28 = vld [vmem:[#allocation6 + $0x130] sm:$0xff]  ;;  %v1165_v31 = vld [vmem:[#allocation8 + $0x38] sm:$0xff]  ;;  %v1174_v40 = vld [vmem:[#allocation8 + $0x80] sm:$0xff]  ;;  %vm6853_vm2 = vcmask 130048  }
 0x347   : >> { %vm1140_vm4 = vcmp.ge.f32.partialorder %v1132_v36, 0.0  ;;  %vm1141_vm5 = vcmp.ge.f32.partialorder %v1133_v37, 0.0  ;;  %v1148_v42 = vmul.f32 0.1, %v1132_v36  ;;  %v1149_v43 = vmul.f32 0.1, %v1133_v37  ;;  %15492 = vmatpush1.bf16.msra.mxu0 %v15491_v41  ;;  %15502 = vmatprep.subr.bf16.mxu1 %v15501_v12 }
 0x348   : >> { %vm1138_vm6 = vcmp.ge.f32.partialorder %v1130_v38, 0.0  ;;  %vm1139_vm7 = vcmp.ge.f32.partialorder %v1131_v39, 0.0  ;;  %v1146_v44 = vmul.f32 0.1, %v1130_v38  ;;  %v1147_v45 = vmul.f32 0.1, %v1131_v39 }
 0x349   : >> { %v1157_v46 = vsel %vm1141_vm5, %v1133_v37, %v1149_v43  ;;  %v1156_v47 = vsel %vm1140_vm4, %v1132_v36, %v1148_v42  ;;  %v15511_v30 = vpack.c.bf16 %v1624_v29, %v1623_v28  ;;  %v1169_v35 = vld [vmem:[#allocation8 + $0x58] sm:$0xff]  ;;  %v1170_v36 = vld [vmem:[#allocation8 + $0x60] sm:$0xff]  ;;  %v1171_v37 = vld [vmem:[#allocation8 + $0x68] sm:$0xff] }
 0x34a   : >> { %v1155_v48 = vsel %vm1139_vm7, %v1131_v39, %v1147_v45  ;;  %v1154_v49 = vsel %vm1138_vm6, %v1130_v38, %v1146_v44  ;;  %15504 = vmatpush3.bf16.msra.mxu1 %v15503_v17  ;;  %v1172_v38 = vld [vmem:[#allocation8 + $0x70] sm:$0xff]  ;;  %v1173_v39 = vld [vmem:[#allocation8 + $0x78] sm:$0xff]  ;;  %v1175_v41 = vld [vmem:[#allocation8 + $0x88] sm:$0xff] }
 0x34b   : >> { %v15493_v50 = vpack.c.bf16 %v1157_v46, %v1155_v48  ;;  %v15495_v51 = vpack.c.bf16 %v1156_v47, %v1154_v49  ;;  %15506 = vmatprep.subr.bf16.mxu1 %v15505_v19  ;;  %v1176_v42 = vld [vmem:[#allocation8 + $0x90] sm:$0xff]  ;;  %v1177_v43 = vld [vmem:[#allocation8 + $0x98] sm:$0xff]  ;;  %v1178_v44 = vld [vmem:[#allocation8 + $0xa0] sm:$0xff] }
 0x34c   : >> { %v1179_v45 = vld [vmem:[#allocation8 + $0xa8] sm:$0xff]  ;;  %v1641_v46 = vld [vmem:[#allocation6 + $0x1c0] sm:$0xff]  ;;  %v1628_v60 = vld [vmem:[#allocation6 + $0x158] sm:$0xff] }
 0x34d   : >> { %15494 = vmatprep.subr.bf16.mxu0 %v15493_v50  ;;  %v1642_v47 = vld [vmem:[#allocation6 + $0x1c8] sm:$0xff]  ;;  %v1625_v49 = vld [vmem:[#allocation6 + $0x140] sm:$0xff]  ;;  %v1181_v61 = vld [vmem:[#allocation8 + $0xb8] sm:$0xff] }
 0x34e   : >> { %15496 = vmatpush1.bf16.msra.mxu0 %v15495_v51  ;;  %15508 = vmatpush3.bf16.msra.mxu1 %v15507_v25  ;;  %v15513_v48 = vpack.c.bf16 %v1642_v47, %v1641_v46  ;;  %v1626_v50 = vld [vmem:[#allocation6 + $0x148] sm:$0xff]  ;;  %v1180_v51 = vld [vmem:[#allocation8 + $0xb0] sm:$0xff]  ;;  %v1182_v12 = vld [vmem:[#allocation8 + $0xc0] sm:$0xff] }
 0x34f   : >> { %15510 = vmatprep.subr.bf16.mxu1 %v15509_v27  ;;  %v1646_v0 = vld [vmem:[#allocation6 + $0x1e8] sm:$0xff]  ;;  %v1647_v14 = vld [vmem:[#allocation6 + $0x1f0] sm:$0xff]  ;;  %v1648_v15 = vld [vmem:[#allocation6 + $0x1f8] sm:$0xff] }
 0x350   : >> { %v15521_v9 = vpack.c.bf16 %v1646_v0, %v1645_v63  ;;  %v1630_v11 = vld [vmem:[#allocation6 + $0x168] sm:$0xff]  ;;  %v15525_v16 = vpack.c.bf16 %v1648_v15, %v1647_v14  ;;  %v1631_v17 = vld [vmem:[#allocation6 + $0x170] sm:$0xff]  ;;  %v1600_v21 = vld [vmem:[#allocation6 + $0x80] sm:$0xff] }
 0x351   : >> { %12453 = vmatmul.mubr.msk.f32.vlgmr.msra.gmra.mrb[0].mxu0 %vm1194_vm8, %v1158_v52  ;;  %v15515_v52 = vpack.c.bf16 %v1626_v50, %v1625_v49  ;;  %v15523_v13 = vpack.c.bf16 %v1630_v11, %v1629_v10  ;;  %v1183_v19 = vld [vmem:[#allocation8 + $0xc8] sm:$0xff]  ;;  %v1184_v25 = vld [vmem:[#allocation8 + $0xd0] sm:$0xff]  ;;  %v1186_v27 = vld [vmem:[#allocation8 + $0xe0] sm:$0xff] }
 0x352   : >> { %1373 = vmatprep.mubr.f32.mxu0 %v17846_v24  ;;  %15512 = vmatpush3.bf16.msra.mxu1 %v15511_v30  ;;  %v1601_v22 = vld [vmem:[#allocation6 + $0x88] sm:$0xff]  ;;  %v1188_v29 = vld [vmem:[#allocation8 + $0xf0] sm:$0xff]  ;;  %v1189_v30 = vld [vmem:[#allocation8 + $0xf8] sm:$0xff] }
 0x353   : >> { %15514 = vmatprep.subr.bf16.mxu1 %v15513_v48  ;;  %v15529_v23 = vpack.c.bf16 %v1601_v22, %v1600_v21  ;;  %v1187_v28 = vld [vmem:[#allocation8 + $0xe8] sm:$0xff]  ;;  %v2084_v47 = vld [vmem:[#allocation6 + $0x4a0] sm:$0xff]  ;;  %v2074_v15 = vld [vmem:[#allocation6 + $0x450] sm:$0xff] }
 0x354   : >> { %v2085_v48 = vld [vmem:[#allocation6 + $0x4a8] sm:$0xff]  ;;  %v2068_v50 = vld [vmem:[#allocation6 + $0x420] sm:$0xff] }
 0x355   : >> { %12454 = vmatmul.mubr.msk.f32.gmra.mrb[2].mxu0 %vm1194_vm8, %v1159_v53  ;;  %v1643_v53 = vld [vmem:[#allocation6 + $0x1d0] sm:$0xff]  ;;  %v15633_v49 = vpack.c.bf16 %v2085_v48, %v2084_v47  ;;  %v2089_v63 = vld [vmem:[#allocation6 + $0x4c8] sm:$0xff]  ;;  %v2076_v21 = vld [vmem:[#allocation6 + $0x460] sm:$0xff] }
 0x356   : >> { %1379 = vmatprep.mubr.f32.mxu0 %v17846_v24  ;;  %15516 = vmatpush3.bf16.msra.mxu1 %v15515_v52  ;;  %v2073_v10 = vld [vmem:[#allocation6 + $0x448] sm:$0xff] }
 0x357   : >> { %v2077_v22 = vld [vmem:[#allocation6 + $0x468] sm:$0xff] }
 0x359   : >> { %12455 = vmatmul.mubr.msk.f32.gmra.mrb[4].mxu0 %vm1194_vm8, %v1160_v54  ;;  %v1644_v54 = vld [vmem:[#allocation6 + $0x1d8] sm:$0xff] }
 0x35a   : >> { %1385 = vmatprep.mubr.f32.mxu0 %v17846_v24 }
 0x35d   : >> { %12456 = vmatmul.mubr.msk.f32.gmra.mrb[6].mxu0 %vm1194_vm8, %v1161_v55  ;;  %v15517_v55 = vpack.c.bf16 %v1644_v54, %v1643_v53  ;;  %v2086_v53 = vld [vmem:[#allocation6 + $0x4b0] sm:$0xff]  ;;  %v2087_v54 = vld [vmem:[#allocation6 + $0x4b8] sm:$0xff] }
 0x35e   : >> { %1391 = vmatprep.mubr.f32.mxu0 %v17846_v24 }
 0x35f   : >> { %15518 = vmatprep.subr.bf16.mxu1 %v15517_v55  ;;  %v15637_v55 = vpack.c.bf16 %v2087_v54, %v2086_v53  ;;  %v1605_v53 = vld [vmem:[#allocation6 + $0xa8] sm:$0xff] }
 0x361   : >> { %12457 = vmatmul.mubr.msk.f32.gmra.mrb[8].mxu0 %vm1194_vm8, %v1162_v59  ;;  %v1627_v59 = vld [vmem:[#allocation6 + $0x150] sm:$0xff] }
 0x362   : >> { %1397 = vmatprep.mubr.f32.mxu0 %v17846_v24  ;;  %v15519_v62 = vpack.c.bf16 %v1628_v60, %v1627_v59  ;;  %v2070_v59 = vld [vmem:[#allocation6 + $0x430] sm:$0xff]  ;;  %v2071_v60 = vld [vmem:[#allocation6 + $0x438] sm:$0xff] }
 0x364   : >> { %15520 = vmatpush3.bf16.msra.mxu1 %v15519_v62  ;;  %v2088_v62 = vld [vmem:[#allocation6 + $0x4c0] sm:$0xff] }
 0x365   : >> { %12458 = vmatmul.mubr.msk.f32.gmra.mrb[10].mxu0 %vm1194_vm8, %v1163_v18  ;;  %15522 = vmatprep.subr.bf16.mxu1 %v15521_v9  ;;  %v1632_v18 = vld [vmem:[#allocation6 + $0x178] sm:$0xff]  ;;  %v15641_v0 = vpack.c.bf16 %v2089_v63, %v2088_v62  ;;  %v2072_v9 = vld [vmem:[#allocation6 + $0x440] sm:$0xff]  ;;  %v1589_v62 = vld [vmem:[#allocation6 + $0x28] sm:$0xff] }
 0x366   : >> { %1403 = vmatprep.mubr.f32.mxu0 %v17846_v24  ;;  %v15527_v20 = vpack.c.bf16 %v1632_v18, %v1631_v17  ;;  %v15643_v11 = vpack.c.bf16 %v2073_v10, %v2072_v9  ;;  %v2092_v18 = vld [vmem:[#allocation6 + $0x4e0] sm:$0xff]  ;;  %v1606_v63 = vld [vmem:[#allocation6 + $0xb0] sm:$0xff] }
 0x368   : >> { %15524 = vmatpush3.bf16.msra.mxu1 %v15523_v13  ;;  %v2091_v13 = vld [vmem:[#allocation6 + $0x4d8] sm:$0xff] }
 0x369   : >> { %12459 = vmatmul.mubr.msk.f32.gmra.mrb[12].mxu0 %vm1194_vm8, %v1164_v26  ;;  %15526 = vmatprep.subr.bf16.mxu1 %v15525_v16  ;;  %v1185_v26 = vld [vmem:[#allocation8 + $0xd8] sm:$0xff] }
 0x36a   : >> { %1409 = vmatprep.mubr.f32.mxu0 %v17846_v24  ;;  %v2075_v16 = vld [vmem:[#allocation6 + $0x458] sm:$0xff] }
 0x36b   : >> { %v15647_v17 = vpack.c.bf16 %v2075_v16, %v2074_v15  ;;  %v1608_v15 = vld [vmem:[#allocation6 + $0xc0] sm:$0xff]  ;;  %v1609_v16 = vld [vmem:[#allocation6 + $0xc8] sm:$0xff] }
 0x36c   : >> { %15528 = vmatpush3.bf16.msra.mxu1 %v15527_v20 }
 0x36d   : >> { %12460 = vmatmul.mubr.msk.f32.gmra.mrb[14].mxu0 %vm1194_vm8, %v1165_v31  ;;  %15530 = vmatprep.subr.bf16.mxu1 %v15529_v23  ;;  %v1190_v31 = vld [vmem:[#allocation8 + $0x100] sm:$0xff]  ;;  %v15651_v23 = vpack.c.bf16 %v2077_v22, %v2076_v21  ;;  %v1593_v22 = vld [vmem:[#allocation6 + $0x48] sm:$0xff] }
 0x36e   : >> { %1415 = vmatprep.mubr.f32.mxu0 %v17846_v24  ;;  %v1592_v21 = vld [vmem:[#allocation6 + $0x40] sm:$0xff] }
 0x371   : >> { %12461 = vmatmul.mubr.msk.f32.gmra.mrb[16].mxu0 %vm1194_vm8, %v1166_v32  ;;  %v1191_v32 = vld [vmem:[#allocation8 + $0x108] sm:$0xff] }
 0x372   : >> { %1421 = vmatprep.mubr.f32.mxu0 %v17846_v24 }
 0x375   : >> { %12462 = vmatmul.mubr.msk.f32.gmra.mrb[18].mxu0 %vm1194_vm8, %v1167_v33  ;;  %v1192_v33 = vld [vmem:[#allocation8 + $0x110] sm:$0xff] }
 0x376   : >> { %1427 = vmatprep.mubr.f32.mxu0 %v17846_v24 }
 0x379   : >> { %12463 = vmatmul.mubr.msk.f32.gmra.mrb[20].mxu0 %vm1194_vm8, %v1168_v34  ;;  %v1193_v34 = vld [vmem:[#allocation8 + $0x118] sm:$0xff] }
 0x37a   : >> { %1433 = vmatprep.mubr.f32.mxu0 %v17846_v24 }
 0x37d   : >> { %12464 = vmatmul.mubr.msk.f32.gmra.mrb[22].mxu0 %vm1194_vm8, %v1169_v35  ;;  %v2080_v35 = vld [vmem:[#allocation6 + $0x480] sm:$0xff] }
 0x37e   : >> { %1439 = vmatprep.mubr.f32.mxu0 %v17846_v24 }
 0x381   : >> { %12465 = vmatmul.mubr.msk.f32.gmra.mrb[24].mxu0 %vm1194_vm8, %v1170_v36  ;;  %v2081_v36 = vld [vmem:[#allocation6 + $0x488] sm:$0xff] }
 0x382   : >> { %1445 = vmatprep.mubr.f32.mxu0 %v17846_v24 }
 0x385   : >> { %12466 = vmatmul.mubr.msk.f32.gmra.mrb[26].mxu0 %vm1194_vm8, %v1171_v37  ;;  %v15625_v37 = vpack.c.bf16 %v2081_v36, %v2080_v35 }
 0x386   : >> { %1451 = vmatprep.mubr.f32.mxu0 %v17846_v24 }
 0x387   : >> { %15626 = vmatprep.subr.bf16.mxu0 %v15625_v37 }
 0x389   : >> { %12467 = vmatmul.mubr.msk.f32.gmra.mrb[28].mxu0 %vm1194_vm8, %v1172_v38  ;;  %v2064_v38 = vld [vmem:[#allocation6 + $0x400] sm:$0xff] }
 0x38a   : >> { %1457 = vmatprep.mubr.f32.mxu0 %v17846_v24 }
 0x38d   : >> { %12468 = vmatmul.mubr.msk.f32.gmra.mrb[30].mxu0 %vm1194_vm8, %v1173_v39  ;;  %v2065_v39 = vld [vmem:[#allocation6 + $0x408] sm:$0xff] }
 0x38e   : >> { %1463 = vmatprep.mubr.f32.mxu0 %v17846_v24 }
 0x391   : >> { %12469 = vmatmul.mubr.msk.f32.gmra.mrb[32].mxu0 %vm1194_vm8, %v1174_v40  ;;  %v15627_v40 = vpack.c.bf16 %v2065_v39, %v2064_v38 }
 0x392   : >> { %1469 = vmatprep.mubr.f32.mxu0 %v17846_v24 }
 0x393   : >> { %15628 = vmatpush3.bf16.msra.mxu0 %v15627_v40 }
 0x395   : >> { %12470 = vmatmul.mubr.msk.f32.gmra.mrb[34].mxu0 %vm1194_vm8, %v1175_v41  ;;  %v2082_v41 = vld [vmem:[#allocation6 + $0x490] sm:$0xff] }
 0x396   : >> { %1475 = vmatprep.mubr.f32.mxu0 %v17846_v24 }
 0x399   : >> { %12471 = vmatmul.mubr.msk.f32.gmra.mrb[36].mxu0 %vm1194_vm8, %v1176_v42  ;;  %v2083_v42 = vld [vmem:[#allocation6 + $0x498] sm:$0xff] }
 0x39a   : >> { %1481 = vmatprep.mubr.f32.mxu0 %v17846_v24 }
 0x39d   : >> { %12472 = vmatmul.mubr.msk.f32.gmra.mrb[38].mxu0 %vm1194_vm8, %v1177_v43  ;;  %v15629_v43 = vpack.c.bf16 %v2083_v42, %v2082_v41  ;;  %v1584_v42 = vld [vmem:[#allocation6] sm:$0xff] }
 0x39e   : >> { %1487 = vmatprep.mubr.f32.mxu0 %v17846_v24 }
 0x39f   : >> { %15630 = vmatprep.subr.bf16.mxu0 %v15629_v43  ;;  %v1585_v43 = vld [vmem:[#allocation6 + $0x8] sm:$0xff] }
 0x3a0   : >> { %v15531_v47 = vpack.c.bf16 %v1585_v43, %v1584_v42 }
 0x3a1   : >> { %12473 = vmatmul.mubr.msk.f32.gmra.mrb[40].mxu0 %vm1194_vm8, %v1178_v44  ;;  %v2066_v44 = vld [vmem:[#allocation6 + $0x410] sm:$0xff] }
 0x3a2   : >> { %1493 = vmatprep.mubr.f32.mxu0 %v17846_v24 }
 0x3a5   : >> { %12474 = vmatmul.mubr.msk.f32.gmra.mrb[42].mxu0 %vm1194_vm8, %v1179_v45  ;;  %v2067_v45 = vld [vmem:[#allocation6 + $0x418] sm:$0xff] }
 0x3a6   : >> { %1499 = vmatprep.mubr.f32.mxu0 %v17846_v24  ;;  %v15631_v46 = vpack.c.bf16 %v2067_v45, %v2066_v44  ;;  %v1602_v44 = vld [vmem:[#allocation6 + $0x90] sm:$0xff]  ;;  %v1603_v45 = vld [vmem:[#allocation6 + $0x98] sm:$0xff] }
 0x3a8   : >> { %15632 = vmatpush3.bf16.msra.mxu0 %v15631_v46 }
 0x3a9   : >> { %12475 = vmatmul.mubr.msk.f32.gmra.mrb[44].mxu0 %vm1194_vm8, %v1180_v51  ;;  %v2069_v51 = vld [vmem:[#allocation6 + $0x428] sm:$0xff]  ;;  %15634 = vmatprep.subr.bf16.mxu0 %v15633_v49  ;;  %v15533_v49 = vpack.c.bf16 %v1603_v45, %v1602_v44  ;;  %v1596_v45 = vld [vmem:[#allocation6 + $0x60] sm:$0xff] }
 0x3aa   : >> { %1505 = vmatprep.mubr.f32.mxu0 %v17846_v24  ;;  %v15635_v52 = vpack.c.bf16 %v2069_v51, %v2068_v50  ;;  %v1586_v50 = vld [vmem:[#allocation6 + $0x10] sm:$0xff]  ;;  %v1587_v51 = vld [vmem:[#allocation6 + $0x18] sm:$0xff] }
 0x3ac   : >> { %15636 = vmatpush3.bf16.msra.mxu0 %v15635_v52  ;;  %v1604_v52 = vld [vmem:[#allocation6 + $0xa0] sm:$0xff] }
 0x3ad   : >> { %12476 = vmatmul.mubr.msk.f32.gmra.mrb[46].mxu0 %vm1194_vm8, %v1181_v61  ;;  %15638 = vmatprep.subr.bf16.mxu0 %v15637_v55  ;;  %v15639_v61 = vpack.c.bf16 %v2071_v60, %v2070_v59  ;;  %v15535_v55 = vpack.c.bf16 %v1587_v51, %v1586_v50  ;;  %v15537_v60 = vpack.c.bf16 %v1605_v53, %v1604_v52  ;;  %v1598_v52 = vld [vmem:[#allocation6 + $0x70] sm:$0xff]  ;;  %v1599_v53 = vld [vmem:[#allocation6 + $0x78] sm:$0xff] }
 0x3ae   : >> { %1511 = vmatprep.mubr.f32.mxu0 %v17846_v24 }
 0x3b0   : >> { %15640 = vmatpush3.bf16.msra.mxu0 %v15639_v61  ;;  %v1588_v61 = vld [vmem:[#allocation6 + $0x20] sm:$0xff] }
 0x3b1   : >> { %12477 = vmatmul.mubr.msk.f32.gmra.mrb[48].mxu0 %vm1194_vm8, %v1182_v12  ;;  %15642 = vmatprep.subr.bf16.mxu0 %v15641_v0  ;;  %v2090_v12 = vld [vmem:[#allocation6 + $0x4d0] sm:$0xff]  ;;  %v1607_v0 = vld [vmem:[#allocation6 + $0xb8] sm:$0xff]  ;;  %v15539_v10 = vpack.c.bf16 %v1589_v62, %v1588_v61 }
 0x3b2   : >> { %1517 = vmatprep.mubr.f32.mxu0 %v17846_v24  ;;  %v15645_v14 = vpack.c.bf16 %v2091_v13, %v2090_v12  ;;  %v15541_v12 = vpack.c.bf16 %v1607_v0, %v1606_v63  ;;  %v1590_v13 = vld [vmem:[#allocation6 + $0x30] sm:$0xff]  ;;  %v1820_v63 = vld [vmem:[#allocation6 + $0x200] sm:$0xff]  ;;  %v1821_v0 = vld [vmem:[#allocation6 + $0x208] sm:$0xff] }
 0x3b4   : >> { %15644 = vmatpush3.bf16.msra.mxu0 %v15643_v11 }
 0x3b5   : >> { %12478 = vmatmul.mubr.msk.f32.gmra.mrb[50].mxu0 %vm1194_vm8, %v1183_v19  ;;  %15646 = vmatprep.subr.bf16.mxu0 %v15645_v14  ;;  %v2093_v19 = vld [vmem:[#allocation6 + $0x4e8] sm:$0xff]  ;;  %v1591_v14 = vld [vmem:[#allocation6 + $0x38] sm:$0xff] }
 0x3b6   : >> { %1523 = vmatprep.mubr.f32.mxu0 %v17846_v24  ;;  %v15649_v20 = vpack.c.bf16 %v2093_v19, %v2092_v18  ;;  %v15543_v18 = vpack.c.bf16 %v1591_v14, %v1590_v13 }
 0x3b8   : >> { %15648 = vmatpush3.bf16.msra.mxu0 %v15647_v17 }
 0x3b9   : >> { %12479 = vmatmul.mubr.msk.f32.gmra.mrb[52].mxu0 %vm1194_vm8, %v1184_v25  ;;  %15650 = vmatprep.subr.bf16.mxu0 %v15649_v20  ;;  %v2094_v25 = vld [vmem:[#allocation6 + $0x4f0] sm:$0xff]  ;;  %v15545_v20 = vpack.c.bf16 %v1609_v16, %v1608_v15  ;;  %v1823_v16 = vld [vmem:[#allocation6 + $0x218] sm:$0xff] }
 0x3ba   : >> { %1529 = vmatprep.mubr.f32.mxu0 %v17846_v24  ;;  %v1822_v15 = vld [vmem:[#allocation6 + $0x210] sm:$0xff] }
 0x3bc   : >> { %15652 = vmatpush3.bf16.msra.mxu0 %v15651_v23  ;;  %v1610_v23 = vld [vmem:[#allocation6 + $0xd0] sm:$0xff] }
 0x3bd   : >> { %12480 = vmatmul.mubr.msk.f32.gmra.mrb[54].mxu0 %vm1194_vm8, %v1185_v26  ;;  %v2095_v26 = vld [vmem:[#allocation6 + $0x4f8] sm:$0xff] }
 0x3be   : >> { %1535 = vmatprep.mubr.f32.mxu0 %v17846_v24 }
 0x3c1   : >> { %12481 = vmatmul.mubr.msk.f32.gmra.mrb[56].mxu0 %vm1194_vm8, %v1186_v27  ;;  %v15653_v27 = vpack.c.bf16 %v2095_v26, %v2094_v25  ;;  %v1611_v25 = vld [vmem:[#allocation6 + $0xd8] sm:$0xff]  ;;  %v15547_v26 = vpack.c.bf16 %v1593_v22, %v1592_v21 }
 0x3c2   : >> { %1541 = vmatprep.mubr.f32.mxu0 %v17846_v24 }
 0x3c3   : >> { %15654 = vmatprep.subr.bf16.mxu0 %v15653_v27 }
 0x3c5   : >> { %12482 = vmatmul.mubr.msk.f32.gmra.mrb[58].mxu0 %vm1194_vm8, %v1187_v28  ;;  %v2078_v28 = vld [vmem:[#allocation6 + $0x470] sm:$0xff] }
 0x3c6   : >> { %1547 = vmatprep.mubr.f32.mxu0 %v17846_v24 }
 0x3c9   : >> { %12483 = vmatmul.mubr.msk.f32.gmra.mrb[60].mxu0 %vm1194_vm8, %v1188_v29  ;;  %v2079_v29 = vld [vmem:[#allocation6 + $0x478] sm:$0xff] }
 0x3ca   : >> { %1553 = vmatprep.mubr.f32.mxu0 %v17846_v24 }
 0x3cd   : >> { %12484 = vmatmul.mubr.msk.f32.gmra.mrb[62].mxu0 %vm1194_vm8, %v1189_v30  ;;  %v15655_v30 = vpack.c.bf16 %v2079_v29, %v2078_v28  ;;  %v15549_v28 = vpack.c.bf16 %v1611_v25, %v1610_v23  ;;  %v1594_v29 = vld [vmem:[#allocation6 + $0x50] sm:$0xff]  ;;  %v1824_v23 = vld [vmem:[#allocation6 + $0x220] sm:$0xff]  ;;  %v1825_v25 = vld [vmem:[#allocation6 + $0x228] sm:$0xff] }
 0x3ce   : >> { %1559 = vmatprep.mubr.f32.mxu0 %v17846_v24 }
 0x3cf   : >> { %15656 = vmatpush3.bf16.msra.mxu0 %v15655_v30  ;;  %v1595_v30 = vld [vmem:[#allocation6 + $0x58] sm:$0xff] }
 0x3d0   : >> { %v15551_v42 = vpack.c.bf16 %v1595_v30, %v1594_v29  ;;  %v1843_v29 = vld [vmem:[#allocation6 + $0x2b8] sm:$0xff] }
 0x3d1   : >> { %12485 = vmatmul.mubr.msk.f32.gmra.mrb[64].mxu0 %vm1194_vm8, %v1190_v31  ;;  %v2324_v31 = vld [vmem:[#allocation6 + $0x680] sm:$0xff] }
 0x3d2   : >> { %1565 = vmatprep.mubr.f32.mxu0 %v17846_v24 }
 0x3d5   : >> { %12486 = vmatmul.mubr.msk.f32.gmra.mrb[66].mxu0 %vm1194_vm8, %v1191_v32  ;;  %v2325_v32 = vld [vmem:[#allocation6 + $0x688] sm:$0xff] }
 0x3d6   : >> { %1571 = vmatprep.mubr.f32.mxu0 %v17846_v24 }
 0x3d9   : >> { %12487 = vmatmul.mubr.msk.f32.gmra.mrb[68].mxu0 %vm1194_vm8, %v1192_v33  ;;  %v15689_v33 = vpack.c.bf16 %v2325_v32, %v2324_v31  ;;  %v1612_v32 = vld [vmem:[#allocation6 + $0xe0] sm:$0xff] }
 0x3da   : >> { %1577 = vmatprep.mubr.f32.mxu0 %v17846_v24 }
 0x3db   : >> { %15690 = vmatprep.subr.bf16.mxu0 %v15689_v33  ;;  %v1613_v33 = vld [vmem:[#allocation6 + $0xe8] sm:$0xff] }
 0x3dc   : >> { %v15553_v44 = vpack.c.bf16 %v1613_v33, %v1612_v32  ;;  %v1826_v32 = vld [vmem:[#allocation6 + $0x230] sm:$0xff]  ;;  %v1827_v33 = vld [vmem:[#allocation6 + $0x238] sm:$0xff] }
 0x3dd   : >> { %12488 = vmatmul.mubr.msk.f32.gmra.mrb[70].mxu0 %vm1194_vm8, %v1193_v34 }
 0x424   : >> { %v18734_v34 = vpop.f32.mrb[0].mxu0 }
 0x425   : >> { %v1371_v35 = vpop.f32.mrb[1].mxu0 }
 0x428   : >> { %v18736_v36 = vpop.f32.mrb[2].mxu0 }
 0x429   : >> { %v18738_v37 = vpop.f32.mrb[3].mxu0 }
 0x42c   : >> { %v18740_v38 = vpop.f32.mrb[4].mxu0 }
 0x42d   : >> { %v18742_v39 = vpop.f32.mrb[5].mxu0 }
 0x430   : >> { %v18744_v40 = vpop.f32.mrb[6].mxu0 }
 0x431   : >> { %v18746_v41 = vpop.f32.mrb[7].mxu0 }
 0x434   : >> { %v1393_v46 = vpop.f32.mrb[8].mxu0 }
 0x435   : >> { %v1395_v48 = vpop.f32.mrb[9].mxu0 }
 0x436   : >> { %1713 = vmatprep.mubr.f32.mxu1 %v1395_v48  ;;  %v1615_v48 = vld [vmem:[#allocation6 + $0xf8] sm:$0xff] }
 0x437   : >> { %1714 = vmatmul.mubr.f32.vlgmr.msra.gmra.mrb[0].mxu1 %v1393_v46  ;;  %v1597_v46 = vld [vmem:[#allocation6 + $0x68] sm:$0xff] }
 0x438   : >> { %15532 = vmatpush3.bf16.msra.mxu1 %v15531_v47  ;;  %v1399_v54 = vpop.f32.mrb[10].mxu0  ;;  %v1614_v47 = vld [vmem:[#allocation6 + $0xf0] sm:$0xff] }
 0x439   : >> { %v1401_v59 = vpop.f32.mrb[11].mxu0  ;;  %15534 = vmatprep.subr.bf16.mxu1 %v15533_v49  ;;  %v15555_v49 = vpack.c.bf16 %v1597_v46, %v1596_v45  ;;  %v15557_v51 = vpack.c.bf16 %v1615_v48, %v1614_v47  ;;  %v1845_v45 = vld [vmem:[#allocation6 + $0x2c8] sm:$0xff]  ;;  %v1828_v46 = vld [vmem:[#allocation6 + $0x240] sm:$0xff] }
 0x43a   : >> { %1718 = vmatprep.mubr.f32.mxu1 %v1401_v59  ;;  %v1837_v59 = vld [vmem:[#allocation6 + $0x288] sm:$0xff] }
 0x43b   : >> { %1719 = vmatmul.mubr.f32.gmra.mrb[2].mxu1 %v1399_v54 }
 0x43c   : >> { %15536 = vmatpush3.bf16.msra.mxu1 %v15535_v55  ;;  %v1405_v9 = vpop.f32.mrb[12].mxu0  ;;  %v1836_v55 = vld [vmem:[#allocation6 + $0x280] sm:$0xff] }
 0x43d   : >> { %v1407_v11 = vpop.f32.mrb[13].mxu0  ;;  %15538 = vmatprep.subr.bf16.mxu1 %v15537_v60  ;;  %v15559_v60 = vpack.c.bf16 %v1599_v53, %v1598_v52  ;;  %v15561_v62 = vpack.c.bf16 %v1837_v59, %v1836_v55  ;;  %v2308_v52 = vld [vmem:[#allocation6 + $0x600] sm:$0xff]  ;;  %v2309_v53 = vld [vmem:[#allocation6 + $0x608] sm:$0xff]  ;;  %v1847_v55 = vld [vmem:[#allocation6 + $0x2d8] sm:$0xff] }
 0x43e   : >> { %1723 = vmatprep.mubr.f32.mxu1 %v1407_v11  ;;  %v1839_v11 = vld [vmem:[#allocation6 + $0x298] sm:$0xff]  ;;  %v2326_v59 = vld [vmem:[#allocation6 + $0x690] sm:$0xff] }
 0x43f   : >> { %1724 = vmatmul.mubr.f32.gmra.mrb[4].mxu1 %v1405_v9 }
 0x440   : >> { %15540 = vmatpush3.bf16.msra.mxu1 %v15539_v10  ;;  %v1411_v17 = vpop.f32.mrb[14].mxu0  ;;  %v1838_v10 = vld [vmem:[#allocation6 + $0x290] sm:$0xff] }
 0x441   : >> { %v1413_v19 = vpop.f32.mrb[15].mxu0  ;;  %15542 = vmatprep.subr.bf16.mxu1 %v15541_v12  ;;  %v15563_v12 = vpack.c.bf16 %v1821_v0, %v1820_v63  ;;  %v15565_v14 = vpack.c.bf16 %v1839_v11, %v1838_v10  ;;  %v15691_v0 = vpack.c.bf16 %v2309_v53, %v2308_v52  ;;  %v1848_v11 = vld [vmem:[#allocation6 + $0x2e0] sm:$0xff] }
 0x442   : >> { %1728 = vmatprep.mubr.f32.mxu1 %v1413_v19  ;;  %v1841_v19 = vld [vmem:[#allocation6 + $0x2a8] sm:$0xff] }
 0x443   : >> { %1729 = vmatmul.mubr.f32.gmra.mrb[6].mxu1 %v1411_v17 }
 0x444   : >> { %15544 = vmatpush3.bf16.msra.mxu1 %v15543_v18  ;;  %1798 = vmatprep.mubr.f32.mxu1 %v1371_v35  ;;  %v18748_v27 = vpop.f32.mrb[16].mxu0  ;;  %v1840_v18 = vld [vmem:[#allocation6 + $0x2a0] sm:$0xff] }
 0x445   : >> { %15546 = vmatprep.subr.bf16.mxu1 %v15545_v20  ;;  %v18750_v31 = vpop.f32.mrb[17].mxu0  ;;  %v15567_v20 = vpack.c.bf16 %v1823_v16, %v1822_v15  ;;  %v15569_v22 = vpack.c.bf16 %v1841_v19, %v1840_v18  ;;  %v2310_v15 = vld [vmem:[#allocation6 + $0x610] sm:$0xff]  ;;  %v2311_v16 = vld [vmem:[#allocation6 + $0x618] sm:$0xff]  ;;  %v1849_v18 = vld [vmem:[#allocation6 + $0x2e8] sm:$0xff] }
 0x446   : >> { %v2328_v19 = vld [vmem:[#allocation6 + $0x6a0] sm:$0xff] }
 0x448   : >> { %15548 = vmatpush3.bf16.msra.mxu1 %v15547_v26  ;;  %v18752_v43 = vpop.f32.mrb[18].mxu0 }
 0x449   : >> { %15550 = vmatprep.subr.bf16.mxu1 %v15549_v28  ;;  %v18754_v35 = vpop.f32.mrb[19].mxu0  ;;  %v1842_v28 = vld [vmem:[#allocation6 + $0x2b0] sm:$0xff] }
 0x44c   : >> { %15552 = vmatpush3.bf16.msra.mxu1 %v15551_v42  ;;  %v18756_v50 = vpop.f32.mrb[20].mxu0 }
 0x44d   : >> { %15554 = vmatprep.subr.bf16.mxu1 %v15553_v44  ;;  %v18758_v54 = vpop.f32.mrb[21].mxu0  ;;  %v1844_v44 = vld [vmem:[#allocation6 + $0x2c0] sm:$0xff] }
 0x44e   : >> { %v15577_v48 = vpack.c.bf16 %v1845_v45, %v1844_v44  ;;  %v1851_v44 = vld [vmem:[#allocation6 + $0x2f8] sm:$0xff]  ;;  %v2330_v45 = vld [vmem:[#allocation6 + $0x6b0] sm:$0xff] }
 0x450   : >> { %15556 = vmatpush3.bf16.msra.mxu1 %v15555_v49  ;;  %v18760_v61 = vpop.f32.mrb[22].mxu0  ;;  %v1846_v49 = vld [vmem:[#allocation6 + $0x2d0] sm:$0xff] }
 0x451   : >> { %15558 = vmatprep.subr.bf16.mxu1 %v15557_v51  ;;  %v18762_v9 = vpop.f32.mrb[23].mxu0  ;;  %v15581_v10 = vpack.c.bf16 %v1847_v55, %v1846_v49  ;;  %v1958_v55 = vld [vmem:[#allocation6 + $0x380] sm:$0xff] }
 0x454   : >> { %15560 = vmatpush3.bf16.msra.mxu1 %v15559_v60  ;;  %v18764_v13 = vpop.f32.mrb[24].mxu0  ;;  %v2327_v60 = vld [vmem:[#allocation6 + $0x698] sm:$0xff] }
 0x455   : >> { %15562 = vmatprep.subr.bf16.mxu1 %v15561_v62  ;;  %v18766_v17 = vpop.f32.mrb[25].mxu0  ;;  %v1831_v62 = vld [vmem:[#allocation6 + $0x258] sm:$0xff] }
 0x457   : >> { %1799 = vmatmul.mubr.f32.vlgmr.msra.gmra.mrb[8].mxu1 %v18734_v34  ;;  %v15571_v34 = vpack.c.bf16 %v1825_v25, %v1824_v23  ;;  %v1833_v23 = vld [vmem:[#allocation6 + $0x268] sm:$0xff] }
 0x458   : >> { %1803 = vmatprep.mubr.f32.mxu1 %v18738_v37  ;;  %15564 = vmatpush3.bf16.msra.mxu1 %v15563_v12  ;;  %v18770_v21 = vpop.f32.mrb[26].mxu0  ;;  %v15573_v37 = vpack.c.bf16 %v1843_v29, %v1842_v28  ;;  %v15585_v28 = vpack.c.bf16 %v1849_v18, %v1848_v11  ;;  %v1850_v29 = vld [vmem:[#allocation6 + $0x2f0] sm:$0xff] }
 0x459   : >> { %15566 = vmatprep.subr.bf16.mxu1 %v15565_v14  ;;  %v18772_v26 = vpop.f32.mrb[27].mxu0  ;;  %v15693_v14 = vpack.c.bf16 %v2327_v60, %v2326_v59  ;;  %v15589_v53 = vpack.c.bf16 %v1851_v44, %v1850_v29  ;;  %v1960_v18 = vld [vmem:[#allocation6 + $0x390] sm:$0xff] }
 0x45b   : >> { %1804 = vmatmul.mubr.f32.gmra.mrb[10].mxu1 %v18736_v36  ;;  %v15575_v36 = vpack.c.bf16 %v1827_v33, %v1826_v32  ;;  %v2312_v32 = vld [vmem:[#allocation6 + $0x620] sm:$0xff]  ;;  %v2313_v33 = vld [vmem:[#allocation6 + $0x628] sm:$0xff] }
 0x45c   : >> { %1808 = vmatprep.mubr.f32.mxu1 %v18742_v39  ;;  %15568 = vmatpush3.bf16.msra.mxu1 %v15567_v20  ;;  %v18776_v30 = vpop.f32.mrb[28].mxu0  ;;  %v1829_v39 = vld [vmem:[#allocation6 + $0x248] sm:$0xff]  ;;  %v15699_v52 = vpack.c.bf16 %v2313_v33, %v2312_v32  ;;  %v1945_v32 = vld [vmem:[#allocation6 + $0x318] sm:$0xff]  ;;  %v1962_v33 = vld [vmem:[#allocation6 + $0x3a0] sm:$0xff] }
 0x45d   : >> { %15570 = vmatprep.subr.bf16.mxu1 %v15569_v22  ;;  %v18778_v42 = vpop.f32.mrb[29].mxu0  ;;  %v2329_v20 = vld [vmem:[#allocation6 + $0x6a8] sm:$0xff]  ;;  %v1832_v22 = vld [vmem:[#allocation6 + $0x260] sm:$0xff] }
 0x45f   : >> { %1809 = vmatmul.mubr.f32.gmra.mrb[12].mxu1 %v18740_v38  ;;  %v15579_v38 = vpack.c.bf16 %v1829_v39, %v1828_v46  ;;  %v15587_v46 = vpack.c.bf16 %v1833_v23, %v1832_v22  ;;  %v1834_v39 = vld [vmem:[#allocation6 + $0x270] sm:$0xff]  ;;  %v2316_v22 = vld [vmem:[#allocation6 + $0x640] sm:$0xff]  ;;  %v2317_v23 = vld [vmem:[#allocation6 + $0x648] sm:$0xff] }
 0x460   : >> { %1813 = vmatprep.mubr.f32.mxu1 %v18746_v41  ;;  %15572 = vmatpush3.bf16.msra.mxu1 %v15571_v34  ;;  %v18782_v47 = vpop.f32.mrb[30].mxu0  ;;  %v1830_v41 = vld [vmem:[#allocation6 + $0x250] sm:$0xff] }
 0x461   : >> { %15574 = vmatprep.subr.bf16.mxu1 %v15573_v37  ;;  %v18784_v51 = vpop.f32.mrb[31].mxu0  ;;  %v15697_v37 = vpack.c.bf16 %v2329_v20, %v2328_v19 }
 0x463   : >> { %1814 = vmatmul.mubr.f32.gmra.mrb[14].mxu1 %v18744_v40  ;;  %v15583_v40 = vpack.c.bf16 %v1831_v62, %v1830_v41  ;;  %v2315_v41 = vld [vmem:[#allocation6 + $0x638] sm:$0xff]  ;;  %v1959_v62 = vld [vmem:[#allocation6 + $0x388] sm:$0xff] }
 0x464   : >> { %15576 = vmatpush3.bf16.msra.mxu1 %v15575_v36  ;;  %1916 = vmatprep.mubr.f32.mxu1 %v18750_v31  ;;  %v1465_v63 = vpop.f32.mrb[32].mxu0  ;;  %v15695_v31 = vpack.c.bf16 %v2311_v16, %v2310_v15  ;;  %v2331_v36 = vld [vmem:[#allocation6 + $0x6b8] sm:$0xff]  ;;  %v1942_v15 = vld [vmem:[#allocation6 + $0x300] sm:$0xff]  ;;  %v1943_v16 = vld [vmem:[#allocation6 + $0x308] sm:$0xff] }
 0x465   : >> { %15578 = vmatprep.subr.bf16.mxu1 %v15577_v48  ;;  %v1467_v12 = vpop.f32.mrb[33].mxu0  ;;  %v1835_v48 = vld [vmem:[#allocation6 + $0x278] sm:$0xff]  ;;  %v15701_v60 = vpack.c.bf16 %v2331_v36, %v2330_v45  ;;  %v15707_v45 = vpack.c.bf16 %v2317_v23, %v2316_v22  ;;  %v1963_v36 = vld [vmem:[#allocation6 + $0x3a8] sm:$0xff] }
 0x466   : >> { %2160 = vmatprep.mubr.f32.mxu0 %v1467_v12  ;;  %v1967_v23 = vld [vmem:[#allocation6 + $0x3c8] sm:$0xff] }
 0x467   : >> { %2161 = vmatmul.mubr.f32.vlgmr.msra.gmra.mrb[72].mxu0 %v1465_v63  ;;  %v2332_v63 = vld [vmem:[#allocation6 + $0x6c0] sm:$0xff] }
 0x468   : >> { %15580 = vmatpush3.bf16.msra.mxu1 %v15579_v38  ;;  %v1471_v25 = vpop.f32.mrb[34].mxu0  ;;  %15692 = vmatpush3.bf16.msra.mxu0 %v15691_v0  ;;  %v2314_v38 = vld [vmem:[#allocation6 + $0x630] sm:$0xff]  ;;  %v2333_v0 = vld [vmem:[#allocation6 + $0x6c8] sm:$0xff] }
 0x469   : >> { %15582 = vmatprep.subr.bf16.mxu1 %v15581_v10  ;;  %v1473_v34 = vpop.f32.mrb[35].mxu0  ;;  %15694 = vmatprep.subr.bf16.mxu0 %v15693_v14  ;;  %v15591_v10 = vpack.c.bf16 %v1835_v48, %v1834_v39  ;;  %v15703_v12 = vpack.c.bf16 %v2315_v41, %v2314_v38  ;;  %v15593_v14 = vpack.c.bf16 %v1959_v62, %v1958_v55  ;;  %v2318_v39 = vld [vmem:[#allocation6 + $0x650] sm:$0xff]  ;;  %v2319_v48 = vld [vmem:[#allocation6 + $0x658] sm:$0xff]  ;;  %v1947_v38 = vld [vmem:[#allocation6 + $0x328] sm:$0xff] }
 0x46a   : >> { %2165 = vmatprep.mubr.f32.mxu0 %v1473_v34  ;;  %v15705_v20 = vpack.c.bf16 %v2333_v0, %v2332_v63  ;;  %v1964_v41 = vld [vmem:[#allocation6 + $0x3b0] sm:$0xff]  ;;  %v15711_v63 = vpack.c.bf16 %v2319_v48, %v2318_v39  ;;  %v1965_v0 = vld [vmem:[#allocation6 + $0x3b8] sm:$0xff] }
 0x46b   : >> { %2166 = vmatmul.mubr.f32.gmra.mrb[74].mxu0 %v1471_v25  ;;  %v2334_v25 = vld [vmem:[#allocation6 + $0x6d0] sm:$0xff]  ;;  %v1969_v48 = vld [vmem:[#allocation6 + $0x3d8] sm:$0xff] }
 0x46c   : >> { %15584 = vmatpush3.bf16.msra.mxu1 %v15583_v40  ;;  %v1477_v49 = vpop.f32.mrb[36].mxu0  ;;  %15696 = vmatpush3.bf16.msra.mxu0 %v15695_v31  ;;  %v1961_v40 = vld [vmem:[#allocation6 + $0x398] sm:$0xff] }
 0x46d   : >> { %15586 = vmatprep.subr.bf16.mxu1 %v15585_v28  ;;  %v1479_v59 = vpop.f32.mrb[37].mxu0  ;;  %15698 = vmatprep.subr.bf16.mxu0 %v15697_v37  ;;  %v2335_v31 = vld [vmem:[#allocation6 + $0x6d8] sm:$0xff]  ;;  %v15595_v28 = vpack.c.bf16 %v1943_v16, %v1942_v15  ;;  %v15597_v34 = vpack.c.bf16 %v1961_v40, %v1960_v18  ;;  %v1944_v37 = vld [vmem:[#allocation6 + $0x310] sm:$0xff]  ;;  %v15605_v16 = vpack.c.bf16 %v1965_v0, %v1964_v41  ;;  %v1970_v0 = vld [vmem:[#allocation6 + $0x3e0] sm:$0xff] }
 0x46e   : >> { %2170 = vmatprep.mubr.f32.mxu0 %v1479_v59  ;;  %v15601_v59 = vpack.c.bf16 %v1963_v36, %v1962_v33  ;;  %v1948_v18 = vld [vmem:[#allocation6 + $0x330] sm:$0xff]  ;;  %v1950_v33 = vld [vmem:[#allocation6 + $0x340] sm:$0xff] }
 0x46f   : >> { %2171 = vmatmul.mubr.f32.gmra.mrb[76].mxu0 %v1477_v49  ;;  %v2336_v49 = vld [vmem:[#allocation6 + $0x6e0] sm:$0xff]  ;;  %v1968_v36 = vld [vmem:[#allocation6 + $0x3d0] sm:$0xff] }
 0x470   : >> { %15588 = vmatpush3.bf16.msra.mxu1 %v15587_v46  ;;  %v1483_v11 = vpop.f32.mrb[38].mxu0  ;;  %15700 = vmatpush3.bf16.msra.mxu0 %v15699_v52  ;;  %v15709_v46 = vpack.c.bf16 %v2335_v31, %v2334_v25  ;;  %v2337_v52 = vld [vmem:[#allocation6 + $0x6e8] sm:$0xff]  ;;  %v2322_v25 = vld [vmem:[#allocation6 + $0x670] sm:$0xff]  ;;  %v2323_v31 = vld [vmem:[#allocation6 + $0x678] sm:$0xff] }
 0x471   : >> { %15590 = vmatprep.subr.bf16.mxu1 %v15589_v53  ;;  %v1485_v19 = vpop.f32.mrb[39].mxu0  ;;  %15702 = vmatprep.subr.bf16.mxu0 %v15701_v60  ;;  %v15599_v53 = vpack.c.bf16 %v1945_v32, %v1944_v37  ;;  %v1946_v60 = vld [vmem:[#allocation6 + $0x320] sm:$0xff]  ;;  %v15719_v39 = vpack.c.bf16 %v2323_v31, %v2322_v25  ;;  %v1952_v41 = vld [vmem:[#allocation6 + $0x350] sm:$0xff]  ;;  %v1973_v31 = vld [vmem:[#allocation6 + $0x3f8] sm:$0xff] }
 0x472   : >> { %2175 = vmatprep.mubr.f32.mxu0 %v1485_v19  ;;  %v1949_v19 = vld [vmem:[#allocation6 + $0x338] sm:$0xff] }
 0x473   : >> { %2176 = vmatmul.mubr.f32.gmra.mrb[78].mxu0 %v1483_v11  ;;  %v2321_v11 = vld [vmem:[#allocation6 + $0x668] sm:$0xff] }
 0x474   : >> { %15592 = vmatpush3.bf16.msra.mxu1 %v15591_v10  ;;  %15704 = vmatpush3.bf16.msra.mxu0 %v15703_v12  ;;  %v18788_v29 = vpop.f32.mrb[40].mxu0  ;;  %v2320_v10 = vld [vmem:[#allocation6 + $0x660] sm:$0xff]  ;;  %v2339_v12 = vld [vmem:[#allocation6 + $0x6f8] sm:$0xff] }
 0x475   : >> { %15594 = vmatprep.subr.bf16.mxu1 %v15593_v14  ;;  %v18790_v44 = vpop.f32.mrb[41].mxu0  ;;  %15706 = vmatprep.subr.bf16.mxu0 %v15705_v20  ;;  %v15603_v14 = vpack.c.bf16 %v1947_v38, %v1946_v60  ;;  %v1966_v20 = vld [vmem:[#allocation6 + $0x3c0] sm:$0xff]  ;;  %v15715_v22 = vpack.c.bf16 %v2321_v11, %v2320_v10  ;;  %v15613_v38 = vpack.c.bf16 %v1969_v48, %v1968_v36  ;;  %v1971_v11 = vld [vmem:[#allocation6 + $0x3e8] sm:$0xff]  ;;  %v1956_v48 = vld [vmem:[#allocation6 + $0x370] sm:$0xff] }
 0x476   : >> { %v15609_v32 = vpack.c.bf16 %v1967_v23, %v1966_v20  ;;  %v1954_v20 = vld [vmem:[#allocation6 + $0x360] sm:$0xff]  ;;  %v1972_v23 = vld [vmem:[#allocation6 + $0x3f0] sm:$0xff] }
 0x477   : >> { %1917 = vmatmul.mubr.f32.vlgmr.msra.gmra.mrb[16].mxu1 %v18748_v27  ;;  %v15713_v27 = vpack.c.bf16 %v2337_v52, %v2336_v49  ;;  %v2552_v49 = vld [vmem:[#allocation6 + $0x800] sm:$0xff]  ;;  %v2553_v52 = vld [vmem:[#allocation6 + $0x808] sm:$0xff] }
 0x478   : >> { %15596 = vmatpush3.bf16.msra.mxu1 %v15595_v28  ;;  %1921 = vmatprep.mubr.f32.mxu1 %v18754_v35  ;;  %v18794_v55 = vpop.f32.mrb[42].mxu0  ;;  %v2338_v35 = vld [vmem:[#allocation6 + $0x6f0] sm:$0xff]  ;;  %v2569_v28 = vld [vmem:[#allocation6 + $0x888] sm:$0xff]  ;;  %v15755_v10 = vpack.c.bf16 %v2553_v52, %v2552_v49  ;;  %v2202_v49 = vld [vmem:[#allocation6 + $0x580] sm:$0xff] }
 0x479   : >> { %15598 = vmatprep.subr.bf16.mxu1 %v15597_v34  ;;  %15708 = vmatpush3.bf16.msra.mxu0 %v15707_v45  ;;  %v18796_v62 = vpop.f32.mrb[43].mxu0  ;;  %v15607_v34 = vpack.c.bf16 %v1949_v19, %v1948_v18  ;;  %v1951_v45 = vld [vmem:[#allocation6 + $0x348] sm:$0xff]  ;;  %v15617_v19 = vpack.c.bf16 %v1971_v11, %v1970_v0  ;;  %v2186_v11 = vld [vmem:[#allocation6 + $0x500] sm:$0xff] }
 0x47a   : >> { %15710 = vmatprep.subr.bf16.mxu0 %v15709_v46 }
 0x47b   : >> { %1922 = vmatmul.mubr.f32.gmra.mrb[18].mxu1 %v18752_v43  ;;  %v15717_v43 = vpack.c.bf16 %v2339_v12, %v2338_v35  ;;  %v2555_v12 = vld [vmem:[#allocation6 + $0x818] sm:$0xff] }
 0x47c   : >> { %15600 = vmatpush3.bf16.msra.mxu1 %v15599_v53  ;;  %1926 = vmatprep.mubr.f32.mxu1 %v18758_v54  ;;  %v18800_v15 = vpop.f32.mrb[44].mxu0  ;;  %v2568_v54 = vld [vmem:[#allocation6 + $0x880] sm:$0xff]  ;;  %v2571_v53 = vld [vmem:[#allocation6 + $0x898] sm:$0xff] }
 0x47d   : >> { %15602 = vmatprep.subr.bf16.mxu1 %v15601_v59  ;;  %15712 = vmatpush3.bf16.msra.mxu0 %v15711_v63  ;;  %v18802_v40 = vpop.f32.mrb[45].mxu0  ;;  %v15611_v59 = vpack.c.bf16 %v1951_v45, %v1950_v33  ;;  %v1953_v63 = vld [vmem:[#allocation6 + $0x358] sm:$0xff] }
 0x47e   : >> { %15714 = vmatprep.subr.bf16.mxu0 %v15713_v27  ;;  %v2575_v33 = vld [vmem:[#allocation6 + $0x8b8] sm:$0xff] }
 0x47f   : >> { %1927 = vmatmul.mubr.f32.gmra.mrb[20].mxu1 %v18756_v50  ;;  %v15753_v50 = vpack.c.bf16 %v2569_v28, %v2568_v54  ;;  %v2556_v28 = vld [vmem:[#allocation6 + $0x820] sm:$0xff] }
 0x480   : >> { %15604 = vmatpush3.bf16.msra.mxu1 %v15603_v14  ;;  %1931 = vmatprep.mubr.f32.mxu1 %v18762_v9  ;;  %v18806_v37 = vpop.f32.mrb[46].mxu0  ;;  %v2570_v9 = vld [vmem:[#allocation6 + $0x890] sm:$0xff]  ;;  %v2572_v14 = vld [vmem:[#allocation6 + $0x8a0] sm:$0xff] }
 0x481   : >> { %15606 = vmatprep.subr.bf16.mxu1 %v15605_v16  ;;  %15716 = vmatpush3.bf16.msra.mxu0 %v15715_v22  ;;  %v18808_v46 = vpop.f32.mrb[47].mxu0  ;;  %v15757_v35 = vpack.c.bf16 %v2571_v53, %v2570_v9  ;;  %v2573_v16 = vld [vmem:[#allocation6 + $0x8a8] sm:$0xff] }
 0x482   : >> { %15718 = vmatprep.subr.bf16.mxu0 %v15717_v43  ;;  %v1955_v22 = vld [vmem:[#allocation6 + $0x368] sm:$0xff]  ;;  %v15761_v54 = vpack.c.bf16 %v2573_v16, %v2572_v14  ;;  %v2205_v16 = vld [vmem:[#allocation6 + $0x598] sm:$0xff] }
 0x483   : >> { %1932 = vmatmul.mubr.f32.gmra.mrb[22].mxu1 %v18760_v61  ;;  %v2554_v61 = vld [vmem:[#allocation6 + $0x810] sm:$0xff]  ;;  %v15619_v45 = vpack.c.bf16 %v1955_v22, %v1954_v20  ;;  %v2203_v53 = vld [vmem:[#allocation6 + $0x588] sm:$0xff]  ;;  %v2579_v22 = vld [vmem:[#allocation6 + $0x8d8] sm:$0xff] }
 0x484   : >> { %15608 = vmatpush3.bf16.msra.mxu1 %v15607_v34  ;;  %2038 = vmatprep.mubr.f32.mxu1 %v18766_v17  ;;  %v1513_v60 = vpop.f32.mrb[48].mxu0  ;;  %v15615_v17 = vpack.c.bf16 %v1953_v63, %v1952_v41  ;;  %v15759_v25 = vpack.c.bf16 %v2555_v12, %v2554_v61  ;;  %v2557_v34 = vld [vmem:[#allocation6 + $0x828] sm:$0xff]  ;;  %v2576_v41 = vld [vmem:[#allocation6 + $0x8c0] sm:$0xff]  ;;  %v2204_v61 = vld [vmem:[#allocation6 + $0x590] sm:$0xff] }
 0x485   : >> { %15610 = vmatprep.subr.bf16.mxu1 %v15609_v32  ;;  %15720 = vmatpush3.bf16.msra.mxu0 %v15719_v39  ;;  %v1515_v27 = vpop.f32.mrb[49].mxu0  ;;  %v2574_v32 = vld [vmem:[#allocation6 + $0x8b0] sm:$0xff]  ;;  %v15621_v39 = vpack.c.bf16 %v1973_v31, %v1972_v23  ;;  %v15763_v9 = vpack.c.bf16 %v2557_v34, %v2556_v28  ;;  %v2577_v63 = vld [vmem:[#allocation6 + $0x8c8] sm:$0xff]  ;;  %v2206_v28 = vld [vmem:[#allocation6 + $0x5a0] sm:$0xff] }
 0x486   : >> { %2404 = vmatprep.mubr.f32.mxu0 %v1515_v27  ;;  %15754 = vmatprep.subr.bf16.mxu0 %v15753_v50  ;;  %v1957_v50 = vld [vmem:[#allocation6 + $0x378] sm:$0xff]  ;;  %v2578_v20 = vld [vmem:[#allocation6 + $0x8d0] sm:$0xff] }
 0x487   : >> { %v15623_v0 = vpack.c.bf16 %v1957_v50, %v1956_v48  ;;  %v2188_v31 = vld [vmem:[#allocation6 + $0x510] sm:$0xff]  ;;  %v2580_v48 = vld [vmem:[#allocation6 + $0x8e0] sm:$0xff]  ;;  %v2581_v50 = vld [vmem:[#allocation6 + $0x8e8] sm:$0xff] }
 0x488   : >> { %15612 = vmatpush3.bf16.msra.mxu1 %v15611_v59  ;;  %2405 = vmatmul.mubr.f32.vlgmr.msra.gmra.mrb[80].mxu0 %v1513_v60  ;;  %v1519_v18 = vpop.f32.mrb[50].mxu0  ;;  %v15765_v59 = vpack.c.bf16 %v2575_v33, %v2574_v32  ;;  %v2558_v60 = vld [vmem:[#allocation6 + $0x830] sm:$0xff]  ;;  %v2207_v33 = vld [vmem:[#allocation6 + $0x5a8] sm:$0xff] }
 0x489   : >> { %15614 = vmatprep.subr.bf16.mxu1 %v15613_v38  ;;  %15756 = vmatpush3.bf16.msra.mxu0 %v15755_v10  ;;  %v1521_v43 = vpop.f32.mrb[51].mxu0  ;;  %v2559_v38 = vld [vmem:[#allocation6 + $0x838] sm:$0xff]  ;;  %v15657_v10 = vpack.c.bf16 %v2203_v53, %v2202_v49  ;;  %v2190_v53 = vld [vmem:[#allocation6 + $0x520] sm:$0xff] }
 0x48a   : >> { %2409 = vmatprep.mubr.f32.mxu0 %v1521_v43  ;;  %15758 = vmatprep.subr.bf16.mxu0 %v15757_v35  ;;  %v2187_v35 = vld [vmem:[#allocation6 + $0x508] sm:$0xff]  ;;  %v15767_v14 = vpack.c.bf16 %v2559_v38, %v2558_v60  ;;  %v2208_v60 = vld [vmem:[#allocation6 + $0x5b0] sm:$0xff] }
 0x48b   : >> { %v15659_v23 = vpack.c.bf16 %v2187_v35, %v2186_v11 }
 0x48c   : >> { %15616 = vmatpush3.bf16.msra.mxu1 %v15615_v17  ;;  %2410 = vmatmul.mubr.f32.gmra.mrb[82].mxu0 %v1519_v18  ;;  %v1525_v36 = vpop.f32.mrb[52].mxu0  ;;  %v15769_v17 = vpack.c.bf16 %v2577_v63, %v2576_v41  ;;  %v2560_v18 = vld [vmem:[#allocation6 + $0x840] sm:$0xff]  ;;  %v2209_v63 = vld [vmem:[#allocation6 + $0x5b8] sm:$0xff] }
 0x48d   : >> { %15618 = vmatprep.subr.bf16.mxu1 %v15617_v19  ;;  %15760 = vmatpush3.bf16.msra.mxu0 %v15759_v25  ;;  %v1527_v52 = vpop.f32.mrb[53].mxu0  ;;  %v2561_v19 = vld [vmem:[#allocation6 + $0x848] sm:$0xff]  ;;  %v15661_v25 = vpack.c.bf16 %v2205_v16, %v2204_v61  ;;  %v15669_v61 = vpack.c.bf16 %v2209_v63, %v2208_v60  ;;  %v2210_v16 = vld [vmem:[#allocation6 + $0x5c0] sm:$0xff]  ;;  %v2216_v63 = vld [vmem:[#allocation6 + $0x5f0] sm:$0xff] }
 0x48e   : >> { %2414 = vmatprep.mubr.f32.mxu0 %v1527_v52  ;;  %15762 = vmatprep.subr.bf16.mxu0 %v15761_v54  ;;  %v2189_v54 = vld [vmem:[#allocation6 + $0x518] sm:$0xff]  ;;  %v15771_v32 = vpack.c.bf16 %v2561_v19, %v2560_v18  ;;  %v2211_v19 = vld [vmem:[#allocation6 + $0x5c8] sm:$0xff]  ;;  %v2198_v60 = vld [vmem:[#allocation6 + $0x560] sm:$0xff] }
 0x48f   : >> { %v15663_v49 = vpack.c.bf16 %v2189_v54, %v2188_v31  ;;  %v2194_v31 = vld [vmem:[#allocation6 + $0x540] sm:$0xff]  ;;  %v2195_v54 = vld [vmem:[#allocation6 + $0x548] sm:$0xff] }
 0x490   : >> { %15620 = vmatpush3.bf16.msra.mxu1 %v15619_v45  ;;  %2415 = vmatmul.mubr.f32.gmra.mrb[84].mxu0 %v1525_v36  ;;  %v1531_v27 = vpop.f32.mrb[54].mxu0  ;;  %v15773_v45 = vpack.c.bf16 %v2579_v22, %v2578_v20  ;;  %v2562_v36 = vld [vmem:[#allocation6 + $0x850] sm:$0xff]  ;;  %v2567_v22 = vld [vmem:[#allocation6 + $0x878] sm:$0xff] }
 0x491   : >> { %15622 = vmatprep.subr.bf16.mxu1 %v15621_v39  ;;  %15764 = vmatpush3.bf16.msra.mxu0 %v15763_v9  ;;  %v1533_v12 = vpop.f32.mrb[55].mxu0  ;;  %v2563_v39 = vld [vmem:[#allocation6 + $0x858] sm:$0xff]  ;;  %v15665_v9 = vpack.c.bf16 %v2207_v33, %v2206_v28  ;;  %v2566_v20 = vld [vmem:[#allocation6 + $0x870] sm:$0xff] }
 0x492   : >> { %2419 = vmatprep.mubr.f32.mxu0 %v1533_v12  ;;  %15766 = vmatprep.subr.bf16.mxu0 %v15765_v59  ;;  %v2191_v59 = vld [vmem:[#allocation6 + $0x528] sm:$0xff]  ;;  %v15775_v41 = vpack.c.bf16 %v2563_v39, %v2562_v36  ;;  %v2192_v12 = vld [vmem:[#allocation6 + $0x530] sm:$0xff] }
 0x493   : >> { %v15667_v11 = vpack.c.bf16 %v2191_v59, %v2190_v53  ;;  %v2212_v33 = vld [vmem:[#allocation6 + $0x5d0] sm:$0xff] }
 0x494   : >> { %15624 = vmatpush3.bf16.msra.mxu1 %v15623_v0  ;;  %2420 = vmatmul.mubr.f32.gmra.mrb[86].mxu0 %v1531_v27  ;;  %v18812_v43 = vpop.f32.mrb[56].mxu0  ;;  %v2564_v0 = vld [vmem:[#allocation6 + $0x860] sm:$0xff]  ;;  %v2565_v27 = vld [vmem:[#allocation6 + $0x868] sm:$0xff]  ;;  %v2196_v39 = vld [vmem:[#allocation6 + $0x550] sm:$0xff] }
 0x495   : >> { %15658 = vmatprep.subr.bf16.mxu1 %v15657_v10  ;;  %15768 = vmatpush3.bf16.msra.mxu0 %v15767_v14  ;;  %v18814_v34 = vpop.f32.mrb[57].mxu0  ;;  %v2583_v10 = vld [vmem:[#allocation6 + $0x8f8] sm:$0xff]  ;;  %v15779_v18 = vpack.c.bf16 %v2565_v27, %v2564_v0 }
 0x496   : >> { %15770 = vmatprep.subr.bf16.mxu0 %v15769_v17  ;;  %v2193_v14 = vld [vmem:[#allocation6 + $0x538] sm:$0xff] }
 0x497   : >> { %2039 = vmatmul.mubr.f32.vlgmr.msra.gmra.mrb[24].mxu1 %v18764_v13  ;;  %v15777_v13 = vpack.c.bf16 %v2581_v50, %v2580_v48  ;;  %v2197_v48 = vld [vmem:[#allocation6 + $0x558] sm:$0xff] }
 0x498   : >> { %2043 = vmatprep.mubr.f32.mxu1 %v18772_v26  ;;  %15660 = vmatpush3.bf16.msra.mxu1 %v15659_v23  ;;  %v18818_v52 = vpop.f32.mrb[58].mxu0  ;;  %v2582_v26 = vld [vmem:[#allocation6 + $0x8f0] sm:$0xff]  ;;  %v15679_v53 = vpack.c.bf16 %v2197_v48, %v2196_v39  ;;  %v2434_v39 = vld [vmem:[#allocation6 + $0x720] sm:$0xff]  ;;  %v2435_v48 = vld [vmem:[#allocation6 + $0x728] sm:$0xff] }
 0x499   : >> { %15662 = vmatprep.subr.bf16.mxu1 %v15661_v25  ;;  %15772 = vmatpush3.bf16.msra.mxu0 %v15771_v32  ;;  %v18820_v38 = vpop.f32.mrb[59].mxu0  ;;  %v15673_v25 = vpack.c.bf16 %v2211_v19, %v2210_v16  ;;  %v15783_v32 = vpack.c.bf16 %v2567_v22, %v2566_v20  ;;  %v2431_v20 = vld [vmem:[#allocation6 + $0x708] sm:$0xff] }
 0x49a   : >> { %15774 = vmatprep.subr.bf16.mxu0 %v15773_v45  ;;  %v2213_v45 = vld [vmem:[#allocation6 + $0x5d8] sm:$0xff] }
 0x49b   : >> { %2044 = vmatmul.mubr.f32.gmra.mrb[26].mxu1 %v18770_v21  ;;  %v15781_v21 = vpack.c.bf16 %v2583_v10, %v2582_v26  ;;  %v15677_v36 = vpack.c.bf16 %v2213_v45, %v2212_v33  ;;  %v2200_v10 = vld [vmem:[#allocation6 + $0x570] sm:$0xff]  ;;  %v2433_v33 = vld [vmem:[#allocation6 + $0x718] sm:$0xff]  ;;  %v2450_v45 = vld [vmem:[#allocation6 + $0x7a0] sm:$0xff] }
 0x49c   : >> { %2048 = vmatprep.mubr.f32.mxu1 %v18778_v42  ;;  %15664 = vmatpush3.bf16.msra.mxu1 %v15663_v49  ;;  %v18824_v35 = vpop.f32.mrb[60].mxu0  ;;  %v15671_v42 = vpack.c.bf16 %v2193_v14, %v2192_v12  ;;  %v2214_v49 = vld [vmem:[#allocation6 + $0x5e0] sm:$0xff]  ;;  %v2447_v14 = vld [vmem:[#allocation6 + $0x788] sm:$0xff] }
 0x49d   : >> { %15666 = vmatprep.subr.bf16.mxu1 %v15665_v9  ;;  %15776 = vmatpush3.bf16.msra.mxu0 %v15775_v41  ;;  %v18826_v17 = vpop.f32.mrb[61].mxu0  ;;  %v2215_v9 = vld [vmem:[#allocation6 + $0x5e8] sm:$0xff]  ;;  %v2446_v12 = vld [vmem:[#allocation6 + $0x780] sm:$0xff] }
 0x49e   : >> { %15778 = vmatprep.subr.bf16.mxu0 %v15777_v13  ;;  %v2199_v41 = vld [vmem:[#allocation6 + $0x568] sm:$0xff]  ;;  %v2217_v13 = vld [vmem:[#allocation6 + $0x5f8] sm:$0xff]  ;;  %v15721_v19 = vpack.c.bf16 %v2447_v14, %v2446_v12  ;;  %v2460_v14 = vld [vmem:[#allocation6 + $0x7f0] sm:$0xff] }
 0x49f   : >> { %2049 = vmatmul.mubr.f32.gmra.mrb[28].mxu1 %v18776_v30  ;;  %v15675_v30 = vpack.c.bf16 %v2195_v54, %v2194_v31  ;;  %v15683_v0 = vpack.c.bf16 %v2199_v41, %v2198_v60  ;;  %v15685_v26 = vpack.c.bf16 %v2217_v13, %v2216_v63  ;;  %v2456_v63 = vld [vmem:[#allocation6 + $0x7d0] sm:$0xff]  ;;  %v2443_v12 = vld [vmem:[#allocation6 + $0x768] sm:$0xff] }
 0x4a0   : >> { %2053 = vmatprep.mubr.f32.mxu1 %v18784_v51  ;;  %15668 = vmatpush3.bf16.msra.mxu1 %v15667_v11  ;;  %v18830_v23 = vpop.f32.mrb[62].mxu0  ;;  %v2201_v11 = vld [vmem:[#allocation6 + $0x578] sm:$0xff] }
 0x4a1   : >> { %15670 = vmatprep.subr.bf16.mxu1 %v15669_v61  ;;  %15780 = vmatpush3.bf16.msra.mxu0 %v15779_v18  ;;  %v18832_v28 = vpop.f32.mrb[63].mxu0  ;;  %v15687_v16 = vpack.c.bf16 %v2201_v11, %v2200_v10 }
 0x4a2   : >> { %15782 = vmatprep.subr.bf16.mxu0 %v15781_v21  ;;  %v2430_v21 = vld [vmem:[#allocation6 + $0x700] sm:$0xff] }
 0x4a3   : >> { %2054 = vmatmul.mubr.f32.gmra.mrb[30].mxu1 %v18782_v47  ;;  %v15681_v47 = vpack.c.bf16 %v2215_v9, %v2214_v49  ;;  %v15723_v31 = vpack.c.bf16 %v2431_v20, %v2430_v21  ;;  %v2453_v49 = vld [vmem:[#allocation6 + $0x7b8] sm:$0xff]  ;;  %v15731_v9 = vpack.c.bf16 %v2435_v48, %v2434_v39 }
 0x4a4   : >> { %15672 = vmatpush3.bf16.msra.mxu1 %v15671_v42  ;;  %2282 = vmatprep.mubr.f32.mxu1 %v18790_v44  ;;  %v1561_v51 = vpop.f32.mrb[64].mxu0  ;;  %v2448_v42 = vld [vmem:[#allocation6 + $0x790] sm:$0xff] }
 0x4a5   : >> { %15674 = vmatprep.subr.bf16.mxu1 %v15673_v25  ;;  %15784 = vmatpush3.bf16.msra.mxu0 %v15783_v32  ;;  %v1563_v50 = vpop.f32.mrb[65].mxu0  ;;  %v2449_v25 = vld [vmem:[#allocation6 + $0x798] sm:$0xff]  ;;  %v2432_v32 = vld [vmem:[#allocation6 + $0x710] sm:$0xff] }
 0x4a6   : >> { %2648 = vmatprep.mubr.f32.mxu0 %v1563_v50  ;;  %v15725_v54 = vpack.c.bf16 %v2449_v25, %v2448_v42  ;;  %v2452_v50 = vld [vmem:[#allocation6 + $0x7b0] sm:$0xff] }
 0x4a8   : >> { %15676 = vmatpush3.bf16.msra.mxu1 %v15675_v30  ;;  %2649 = vmatmul.mubr.f32.vlgmr.msra.gmra.mrb[88].mxu0 %v1561_v51  ;;  %v1567_v59 = vpop.f32.mrb[66].mxu0  ;;  %v2451_v30 = vld [vmem:[#allocation6 + $0x7a8] sm:$0xff]  ;;  %v15727_v51 = vpack.c.bf16 %v2433_v33, %v2432_v32 }
 0x4a9   : >> { %15678 = vmatprep.subr.bf16.mxu1 %v15677_v36  ;;  %v1569_v44 = vpop.f32.mrb[67].mxu0  ;;  %v15729_v36 = vpack.c.bf16 %v2451_v30, %v2450_v45 }
 0x4aa   : >> { %2653 = vmatprep.mubr.f32.mxu0 %v1569_v44  ;;  %v2438_v44 = vld [vmem:[#allocation6 + $0x740] sm:$0xff] }
 0x4ac   : >> { %15680 = vmatpush3.bf16.msra.mxu1 %v15679_v53  ;;  %2654 = vmatmul.mubr.f32.gmra.mrb[90].mxu0 %v1567_v59  ;;  %v1573_v27 = vpop.f32.mrb[68].mxu0  ;;  %v15733_v53 = vpack.c.bf16 %v2453_v49, %v2452_v50  ;;  %v2436_v59 = vld [vmem:[#allocation6 + $0x730] sm:$0xff] }
 0x4ad   : >> { %15682 = vmatprep.subr.bf16.mxu1 %v15681_v47  ;;  %v1575_v61 = vpop.f32.mrb[69].mxu0  ;;  %v2454_v47 = vld [vmem:[#allocation6 + $0x7c0] sm:$0xff] }
 0x4ae   : >> { %2658 = vmatprep.mubr.f32.mxu0 %v1575_v61  ;;  %v2442_v61 = vld [vmem:[#allocation6 + $0x760] sm:$0xff] }
 0x4b0   : >> { %15684 = vmatpush3.bf16.msra.mxu1 %v15683_v0  ;;  %2659 = vmatmul.mubr.f32.gmra.mrb[92].mxu0 %v1573_v27  ;;  %v1579_v18 = vpop.f32.mrb[70].mxu0  ;;  %v2440_v27 = vld [vmem:[#allocation6 + $0x750] sm:$0xff] }
 0x4b1   : >> { %15686 = vmatprep.subr.bf16.mxu1 %v15685_v26  ;;  %v1581_v22 = vpop.f32.mrb[71].mxu0  ;;  %v2458_v26 = vld [vmem:[#allocation6 + $0x7e0] sm:$0xff] }
 0x4b2   : >> { %2663 = vmatprep.mubr.f32.mxu0 %v1581_v22 }
 0x4b4   : >> { %15688 = vmatpush3.bf16.msra.mxu1 %v15687_v16  ;;  %2664 = vmatmul.mubr.f32.gmra.mrb[94].mxu0 %v1579_v18  ;;  %v2461_v16 = vld [vmem:[#allocation6 + $0x7f8] sm:$0xff] }
 0x4b5   : >> { %15722 = vmatprep.subr.bf16.mxu1 %v15721_v19  ;;  %v15749_v18 = vpack.c.bf16 %v2461_v16, %v2460_v14  ;;  %v2445_v19 = vld [vmem:[#allocation6 + $0x778] sm:$0xff] }
 0x4b7   : >> { %2283 = vmatmul.mubr.f32.vlgmr.msra.gmra.mrb[32].mxu1 %v18788_v29  ;;  %v2437_v29 = vld [vmem:[#allocation6 + $0x738] sm:$0xff] }
 0x4b8   : >> { %2287 = vmatprep.mubr.f32.mxu1 %v18796_v62  ;;  %15724 = vmatpush3.bf16.msra.mxu1 %v15723_v31  ;;  %v2455_v62 = vld [vmem:[#allocation6 + $0x7c8] sm:$0xff]  ;;  %v15735_v60 = vpack.c.bf16 %v2437_v29, %v2436_v59 }
 0x4b9   : >> { %15726 = vmatprep.subr.bf16.mxu1 %v15725_v54  ;;  %v15737_v41 = vpack.c.bf16 %v2455_v62, %v2454_v47 }
 0x4bb   : >> { %2288 = vmatmul.mubr.f32.gmra.mrb[34].mxu1 %v18794_v55  ;;  %v2439_v55 = vld [vmem:[#allocation6 + $0x748] sm:$0xff] }
 0x4bc   : >> { %2292 = vmatprep.mubr.f32.mxu1 %v18802_v40  ;;  %15728 = vmatpush3.bf16.msra.mxu1 %v15727_v51  ;;  %v2457_v40 = vld [vmem:[#allocation6 + $0x7d8] sm:$0xff]  ;;  %v15739_v13 = vpack.c.bf16 %v2439_v55, %v2438_v44 }
 0x4bd   : >> { %15730 = vmatprep.subr.bf16.mxu1 %v15729_v36  ;;  %v15741_v0 = vpack.c.bf16 %v2457_v40, %v2456_v63 }
 0x4bf   : >> { %2293 = vmatmul.mubr.f32.gmra.mrb[36].mxu1 %v18800_v15  ;;  %v2441_v15 = vld [vmem:[#allocation6 + $0x758] sm:$0xff] }
 0x4c0   : >> { %2297 = vmatprep.mubr.f32.mxu1 %v18808_v46  ;;  %15732 = vmatpush3.bf16.msra.mxu1 %v15731_v9  ;;  %v2459_v46 = vld [vmem:[#allocation6 + $0x7e8] sm:$0xff]  ;;  %v15743_v10 = vpack.c.bf16 %v2441_v15, %v2440_v27  ;;  %v2713_v15 = vld [vmem:[#allocation12] sm:$0xff] }
 0x4c1   : >> { %15734 = vmatprep.subr.bf16.mxu1 %v15733_v53  ;;  %v15745_v11 = vpack.c.bf16 %v2459_v46, %v2458_v26  ;;  %14309 = vmatprep.mubr.msk.f32.mxu0 %vm1194_vm8, %v2713_v15 }
 0x4c3   : >> { %2298 = vmatmul.mubr.f32.gmra.mrb[38].mxu1 %v18806_v37  ;;  %v15747_v37 = vpack.c.bf16 %v2443_v12, %v2442_v61 }
 0x4c4   : >> { %15736 = vmatpush3.bf16.msra.mxu1 %v15735_v60  ;;  %2526 = vmatprep.mubr.f32.mxu1 %v18814_v34  ;;  %v2444_v34 = vld [vmem:[#allocation6 + $0x770] sm:$0xff] }
 0x4c5   : >> { %15738 = vmatprep.subr.bf16.mxu1 %v15737_v41  ;;  %v15751_v21 = vpack.c.bf16 %v2445_v19, %v2444_v34 }
 0x4c8   : >> { %15740 = vmatpush3.bf16.msra.mxu1 %v15739_v13 }
 0x4c9   : >> { %15742 = vmatprep.subr.bf16.mxu1 %v15741_v0 }
 0x4cc   : >> { %15744 = vmatpush3.bf16.msra.mxu1 %v15743_v10 }
 0x4cd   : >> { %15746 = vmatprep.subr.bf16.mxu1 %v15745_v11 }
 0x4d0   : >> { %15748 = vmatpush3.bf16.msra.mxu1 %v15747_v37 }
 0x4d1   : >> { %15750 = vmatprep.subr.bf16.mxu1 %v15749_v18 }
 0x4d4   : >> { %15752 = vmatpush3.bf16.msra.mxu1 %v15751_v21 }
 0x4d7   : >> { %2527 = vmatmul.mubr.f32.vlgmr.msra.gmra.mrb[40].mxu1 %v18812_v43 }
 0x4d8   : >> { %2531 = vmatprep.mubr.f32.mxu1 %v18820_v38 }
 0x4db   : >> { %2532 = vmatmul.mubr.f32.gmra.mrb[42].mxu1 %v18818_v52 }
 0x4dc   : >> { %2536 = vmatprep.mubr.f32.mxu1 %v18826_v17 }
 0x4df   : >> { %2537 = vmatmul.mubr.f32.gmra.mrb[44].mxu1 %v18824_v35 }
 0x4e0   : >> { %2541 = vmatprep.mubr.f32.mxu1 %v18832_v28 }
 0x4e3   : >> { %2542 = vmatmul.mubr.f32.gmra.mrb[46].mxu1 %v18830_v23 }
 0x50a   : >> { %v13189_v20 = vpop.f32.mrb[0].mxu1 }
 0x50b   : >> { %v13190_v22 = vpop.f32.mrb[1].mxu1 }
 0x50c   : >> { %v13191_v42 = vadd.f32 %v13190_v22, %v13189_v20 }
 0x50e   : >> { %v13192_v25 = vpop.f32.mrb[2].mxu1 }
 0x50f   : >> { %v13193_v31 = vpop.f32.mrb[3].mxu1 }
 0x510   : >> { %v13194_v54 = vadd.f32 %v13193_v31, %v13192_v25 }
 0x512   : >> { %v13195_v32 = vpop.f32.mrb[4].mxu1 }
 0x513   : >> { %v13196_v43 = vpop.f32.mrb[5].mxu1 }
 0x514   : >> { %v13197_v33 = vadd.f32 %v13196_v43, %v13195_v32 }
 0x516   : >> { %v13198_v38 = vpop.f32.mrb[6].mxu1 }
 0x517   : >> { %v13199_v45 = vpop.f32.mrb[7].mxu1 }
 0x518   : >> { %v13200_v52 = vadd.f32 %v13199_v45, %v13198_v38 }
 0x52a   : >> { %v13233_v30 = vpop.f32.mrb[8].mxu1 }
 0x52b   : >> { %v13234_v17 = vpop.f32.mrb[9].mxu1 }
 0x52c   : >> { %v13235_v51 = vadd.f32 %v13234_v17, %v13233_v30 }
 0x52e   : >> { %v1801_v35 = vadd.f32 %v13235_v51, %v13191_v42  ;;  %v13236_v36 = vpop.f32.mrb[10].mxu1 }
 0x52f   : >> { %v13237_v28 = vpop.f32.mrb[11].mxu1 }
 0x530   : >> { %v13238_v39 = vadd.f32 %v13237_v28, %v13236_v36 }
 0x532   : >> { %v1806_v23 = vadd.f32 %v13238_v39, %v13194_v54  ;;  %v13239_v48 = vpop.f32.mrb[12].mxu1 }
 0x533   : >> { %v13240_v50 = vpop.f32.mrb[13].mxu1 }
 0x534   : >> { %v13241_v49 = vadd.f32 %v13240_v50, %v13239_v48 }
 0x536   : >> { %v1811_v9 = vadd.f32 %v13241_v49, %v13197_v33  ;;  %v13242_v53 = vpop.f32.mrb[14].mxu1 }
 0x537   : >> { %v13243_v59 = vpop.f32.mrb[15].mxu1 }
 0x538   : >> { %v13244_v29 = vadd.f32 %v13243_v59, %v13242_v53 }
 0x53a   : >> { %v1816_v47 = vadd.f32 %v13244_v29, %v13200_v52  ;;  %v13365_v62 = vpop.f32.mrb[72].mxu0 }
 0x53b   : >> { %v13366_v60 = vpop.f32.mrb[73].mxu0 }
 0x53c   : >> { %v13367_v41 = vadd.f32 %v13366_v60, %v13365_v62 }
 0x53e   : >> { %v13368_v44 = vpop.f32.mrb[74].mxu0 }
 0x53f   : >> { %v13369_v55 = vpop.f32.mrb[75].mxu0 }
 0x540   : >> { %v13370_v63 = vadd.f32 %v13369_v55, %v13368_v44 }
 0x542   : >> { %v13371_v40 = vpop.f32.mrb[76].mxu0 }
 0x543   : >> { %v13372_v13 = vpop.f32.mrb[77].mxu0 }
 0x544   : >> { %v13373_v0 = vadd.f32 %v13372_v13, %v13371_v40 }
 0x546   : >> { %v13374_v27 = vpop.f32.mrb[78].mxu0 }
 0x547   : >> { %v13375_v26 = vpop.f32.mrb[79].mxu0 }
 0x548   : >> { %v13376_v46 = vadd.f32 %v13375_v26, %v13374_v27 }
 0x54a   : >> { %v13277_v10 = vpop.f32.mrb[16].mxu1 }
 0x54b   : >> { %v13278_v11 = vpop.f32.mrb[17].mxu1 }
 0x54c   : >> { %v13279_v61 = vadd.f32 %v13278_v11, %v13277_v10 }
 0x54e   : >> { %v1937_v12 = vadd.f32 %v13279_v61, %v1801_v35  ;;  %v13280_v14 = vpop.f32.mrb[18].mxu1 }
 0x54f   : >> { %v13281_v16 = vpop.f32.mrb[19].mxu1 }
 0x550   : >> { %v13282_v37 = vadd.f32 %v13281_v16, %v13280_v14 }
 0x552   : >> { %v1938_v18 = vadd.f32 %v13282_v37, %v1806_v23  ;;  %v13283_v34 = vpop.f32.mrb[20].mxu1 }
 0x553   : >> { %v13284_v19 = vpop.f32.mrb[21].mxu1 }
 0x554   : >> { %v13285_v21 = vadd.f32 %v13284_v19, %v13283_v34 }
 0x556   : >> { %v1939_v20 = vadd.f32 %v13285_v21, %v1811_v9  ;;  %v13286_v22 = vpop.f32.mrb[22].mxu1 }
 0x557   : >> { %v13287_v42 = vpop.f32.mrb[23].mxu1 }
 0x558   : >> { %v13288_v25 = vadd.f32 %v13287_v42, %v13286_v22 }
 0x55a   : >> { %v1940_v31 = vadd.f32 %v13288_v25, %v1816_v47 }
 0x55b   : >> { %v13453_v54 = vpop.f32.mrb[80].mxu0 }
 0x55c   : >> { %v13454_v32 = vpop.f32.mrb[81].mxu0 }
 0x55d   : >> { %v13455_v43 = vadd.f32 %v13454_v32, %v13453_v54 }
 0x55f   : >> { %v13456_v33 = vpop.f32.mrb[82].mxu0 }
 0x560   : >> { %v13457_v38 = vpop.f32.mrb[83].mxu0 }
 0x561   : >> { %v13458_v45 = vadd.f32 %v13457_v38, %v13456_v33 }
 0x563   : >> { %v13459_v52 = vpop.f32.mrb[84].mxu0 }
 0x564   : >> { %v13460_v30 = vpop.f32.mrb[85].mxu0 }
 0x565   : >> { %v13461_v17 = vadd.f32 %v13460_v30, %v13459_v52 }
 0x567   : >> { %v13462_v51 = vpop.f32.mrb[86].mxu0 }
 0x568   : >> { %v13463_v35 = vpop.f32.mrb[87].mxu0 }
 0x569   : >> { %v13464_v36 = vadd.f32 %v13463_v35, %v13462_v51 }
 0x56a   : >> { %v13321_v28 = vpop.f32.mrb[24].mxu1 }
 0x56b   : >> { %v13322_v39 = vpop.f32.mrb[25].mxu1 }
 0x56c   : >> { %v13323_v23 = vadd.f32 %v13322_v39, %v13321_v28 }
 0x56e   : >> { %v2059_v48 = vadd.f32 %v13323_v23, %v1937_v12  ;;  %v13324_v50 = vpop.f32.mrb[26].mxu1  ;;  %v2741_v12 = vld [vmem:[#allocation12 + $0xe0] sm:$0xff] }
 0x56f   : >> { %v13325_v49 = vpop.f32.mrb[27].mxu1  ;;  %14351 = vmatprep.mubr.msk.f32.mxu1 %vm1194_vm8, %v2741_v12 }
 0x570   : >> { %v13326_v9 = vadd.f32 %v13325_v49, %v13324_v50  ;;  %v2181_v53 = vadd.f32 %v13367_v41, %v2059_v48 }
 0x572   : >> { %v2060_v59 = vadd.f32 %v13326_v9, %v1938_v18  ;;  %v13327_v29 = vpop.f32.mrb[28].mxu1 }
 0x573   : >> { %v13328_v47 = vpop.f32.mrb[29].mxu1 }
 0x574   : >> { %v13329_v62 = vadd.f32 %v13328_v47, %v13327_v29  ;;  %v2182_v60 = vadd.f32 %v13370_v63, %v2060_v59 }
 0x576   : >> { %v2061_v44 = vadd.f32 %v13329_v62, %v1939_v20  ;;  %v13330_v55 = vpop.f32.mrb[30].mxu1 }
 0x577   : >> { %v13331_v40 = vpop.f32.mrb[31].mxu1 }
 0x578   : >> { %v13332_v13 = vadd.f32 %v13331_v40, %v13330_v55  ;;  %v2183_v27 = vadd.f32 %v13373_v0, %v2061_v44 }
 0x57a   : >> { %v2062_v15 = vadd.f32 %v13332_v13, %v1940_v31 }
 0x57b   : >> { %v13541_v26 = vpop.f32.mrb[88].mxu0 }
 0x57c   : >> { %v2184_v10 = vadd.f32 %v13376_v46, %v2062_v15  ;;  %v13542_v11 = vpop.f32.mrb[89].mxu0  ;;  %v2685_v15 = vpop.permute.xlu1 %2684 }
 0x57d   : >> { %v13543_v61 = vadd.f32 %v13542_v11, %v13541_v26 }
 0x57f   : >> { %v13544_v14 = vpop.f32.mrb[90].mxu0 }
 0x580   : >> { %v13545_v41 = vpop.f32.mrb[91].mxu0 }
 0x581   : >> { %v13546_v16 = vadd.f32 %v13545_v41, %v13544_v14 }
 0x583   : >> { %v13547_v37 = vpop.f32.mrb[92].mxu0 }
 0x584   : >> { %v13548_v18 = vpop.f32.mrb[93].mxu0 }
 0x585   : >> { %v13549_v34 = vadd.f32 %v13548_v18, %v13547_v37 }
 0x587   : >> { %v13550_v63 = vpop.f32.mrb[94].mxu0 }
 0x588   : >> { %v13551_v19 = vpop.f32.mrb[95].mxu0 }
 0x589   : >> { %v13552_v21 = vadd.f32 %v13551_v19, %v13550_v63 }
 0x58a   : >> { %v13409_v20 = vpop.f32.mrb[32].mxu1 }
 0x58b   : >> { %v13410_v22 = vpop.f32.mrb[33].mxu1 }
 0x58c   : >> { %v13411_v0 = vadd.f32 %v13410_v22, %v13409_v20 }
 0x58e   : >> { %v2303_v42 = vadd.f32 %v13411_v0, %v2181_v53  ;;  %v13412_v25 = vpop.f32.mrb[34].mxu1 }
 0x58f   : >> { %v13413_v46 = vpop.f32.mrb[35].mxu1 }
 0x590   : >> { %v13414_v31 = vadd.f32 %v13413_v46, %v13412_v25  ;;  %v2425_v54 = vadd.f32 %v13455_v43, %v2303_v42  ;;  %v3112_v46 = vld [vmem:[#allocation11 + $0x48] sm:$0xff] }
 0x592   : >> { %v2304_v32 = vadd.f32 %v13414_v31, %v2182_v60  ;;  %v13415_v33 = vpop.f32.mrb[36].mxu1  ;;  %v2680_v60 = vpop.permute.xlu0 %2679 }
 0x593   : >> { %v13416_v38 = vpop.f32.mrb[37].mxu1 }
 0x594   : >> { %v13417_v52 = vadd.f32 %v13416_v38, %v13415_v33  ;;  %v2426_v30 = vadd.f32 %v13458_v45, %v2304_v32  ;;  %v3113_v38 = vld [vmem:[#allocation11 + $0x50] sm:$0xff] }
 0x596   : >> { %v2305_v51 = vadd.f32 %v13417_v52, %v2183_v27  ;;  %v13418_v35 = vpop.f32.mrb[38].mxu1  ;;  %v2714_v52 = vld [vmem:[#allocation12 + $0x8] sm:$0xff] }
 0x597   : >> { %v13419_v28 = vpop.f32.mrb[39].mxu1 }
 0x598   : >> { %v13420_v39 = vadd.f32 %v13419_v28, %v13418_v35  ;;  %v2427_v23 = vadd.f32 %v13461_v17, %v2305_v51  ;;  %v2715_v51 = vld [vmem:[#allocation12 + $0x10] sm:$0xff] }
 0x599   : >> { %v2743_v35 = vld [vmem:[#allocation12 + $0xf0] sm:$0xff] }
 0x59a   : >> { %v2306_v48 = vadd.f32 %v13420_v39, %v2184_v10  ;;  %v2716_v39 = vld [vmem:[#allocation12 + $0x18] sm:$0xff] }
 0x59c   : >> { %v2428_v50 = vadd.f32 %v13464_v36, %v2306_v48  ;;  %v2717_v48 = vld [vmem:[#allocation12 + $0x20] sm:$0xff] }
 0x5aa   : >> { %v13497_v49 = vpop.f32.mrb[40].mxu1 }
 0x5ab   : >> { %v13498_v9 = vpop.f32.mrb[41].mxu1 }
 0x5ac   : >> { %v13499_v59 = vadd.f32 %v13498_v9, %v13497_v49  ;;  %v2718_v49 = vld [vmem:[#allocation12 + $0x28] sm:$0xff] }
 0x5ad   : >> { %v2746_v9 = vld [vmem:[#allocation12 + $0x108] sm:$0xff] }
 0x5ae   : >> { %v2547_v53 = vadd.f32 %v13499_v59, %v2425_v54  ;;  %v13500_v29 = vpop.f32.mrb[42].mxu1  ;;  %v2719_v59 = vld [vmem:[#allocation12 + $0x30] sm:$0xff] }
 0x5af   : >> { %v13501_v47 = vpop.f32.mrb[43].mxu1 }
 0x5b0   : >> { %v2669_v62 = vadd.f32 %v13543_v61, %v2547_v53  ;;  %v13502_v43 = vadd.f32 %v13501_v47, %v13500_v29  ;;  %v2690_v61 = vpop.permute.xlu0 %2689  ;;  %v2747_v53 = vld [vmem:[#allocation12 + $0x110] sm:$0xff]  ;;  %v2720_v29 = vld [vmem:[#allocation12 + $0x38] sm:$0xff] }
 0x5b1   : >> { %v2748_v47 = vld [vmem:[#allocation12 + $0x118] sm:$0xff] }
 0x5b2   : >> { %v2697_v44 = vadd.f32 %v2680_v60, %v2669_v62  ;;  %v2548_v55 = vadd.f32 %v13502_v43, %v2426_v30  ;;  %v13503_v40 = vpop.f32.mrb[44].mxu1  ;;  %v2742_v30 = vld [vmem:[#allocation12 + $0xe8] sm:$0xff]  ;;  %v2721_v62 = vld [vmem:[#allocation12 + $0x40] sm:$0xff]  ;;  %v2723_v60 = vld [vmem:[#allocation12 + $0x50] sm:$0xff] }
 0x5b3   : >> { %v13504_v45 = vpop.f32.mrb[45].mxu1  ;;  %v2722_v43 = vld [vmem:[#allocation12 + $0x48] sm:$0xff] }
 0x5b4   : >> { %v2670_v13 = vadd.f32 %v13546_v16, %v2548_v55  ;;  %v13505_v27 = vadd.f32 %v13504_v45, %v13503_v40  ;;  %v2705_v26 = vmul.f32 0.1, %v2697_v44  ;;  %vm2701_vm9 = vcmp.ge.f32.partialorder %v2697_v44, 0.0  ;;  %v2695_v16 = vpop.permute.xlu1 %2694  ;;  %v2725_v55 = vld [vmem:[#allocation12 + $0x60] sm:$0xff]  ;;  %v2726_v40 = vld [vmem:[#allocation12 + $0x68] sm:$0xff]  ;;  %v2727_v45 = vld [vmem:[#allocation12 + $0x70] sm:$0xff] }
 0x5b6   : >> { %v2698_v17 = vadd.f32 %v2685_v15, %v2670_v13  ;;  %v2549_v10 = vadd.f32 %v13505_v27, %v2427_v23  ;;  %v13506_v36 = vpop.f32.mrb[46].mxu1  ;;  %v2709_v63 = vsel %vm2701_vm9, %v2697_v44, %v2705_v26  ;;  %v2744_v23 = vld [vmem:[#allocation12 + $0xf8] sm:$0xff]  ;;  %v2729_v27 = vld [vmem:[#allocation12 + $0x80] sm:$0xff]  ;;  %v2730_v15 = vld [vmem:[#allocation12 + $0x88] sm:$0xff] }
 0x5b7   : >> { %v13507_v11 = vpop.f32.mrb[47].mxu1  ;;  %v2724_v44 = vld [vmem:[#allocation12 + $0x58] sm:$0xff]  ;;  %v2731_v26 = vld [vmem:[#allocation12 + $0x90] sm:$0xff] }
 0x5b8   : >> { %v2706_v12 = vmul.f32 0.1, %v2698_v17  ;;  %v2671_v14 = vadd.f32 %v13549_v34, %v2549_v10  ;;  %v13508_v41 = vadd.f32 %v13507_v11, %v13506_v36  ;;  %vm2702_vm10 = vcmp.ge.f32.partialorder %v2698_v17, 0.0  ;;  %v3111_v34 = vld [vmem:[#allocation11 + $0x40] sm:$0xff]  ;;  %v2728_v13 = vld [vmem:[#allocation12 + $0x78] sm:$0xff]  ;;  %v2734_v36 = vld [vmem:[#allocation12 + $0xa8] sm:$0xff] }
 0x5b9   : >> { %v15793_v33 = vpack.c.bf16 %v3112_v46, %v3111_v34  ;;  %v2733_v10 = vld [vmem:[#allocation12 + $0xa0] sm:$0xff]  ;;  %v2735_v11 = vld [vmem:[#allocation12 + $0xb0] sm:$0xff]  ;;  %v15937_v34 = vpack.c.bf16 %v17807_v7, %v17811_v8  ;;  %v15941_v46 = vpack.c.bf16 %v17799_v5, %v17803_v6  ;;  %v4275_v8 = vld [vmem:[#allocation18 + $0x4a8] sm:$0xff] }
 0x5ba   : >> { %v2699_v37 = vadd.f32 %v2690_v61, %v2671_v14  ;;  %v2550_v18 = vadd.f32 %v13508_v41, %v2428_v50  ;;  %v2710_v19 = vsel %vm2702_vm10, %v2698_v17, %v2706_v12  ;;  %v2745_v50 = vld [vmem:[#allocation12 + $0x100] sm:$0xff]  ;;  %v2732_v17 = vld [vmem:[#allocation12 + $0x98] sm:$0xff]  ;;  %v2738_v41 = vld [vmem:[#allocation12 + $0xc8] sm:$0xff] }
 0x5bb   : >> { %v15785_v20 = vpack.c.bf16 %v2710_v19, %v2709_v63  ;;  %v2736_v12 = vld [vmem:[#allocation12 + $0xb8] sm:$0xff]  ;;  %v2737_v14 = vld [vmem:[#allocation12 + $0xc0] sm:$0xff]  ;;  %v2739_v61 = vld [vmem:[#allocation12 + $0xd0] sm:$0xff] }
 0x5bc   : >> { %v2672_v22 = vadd.f32 %v13552_v21, %v2550_v18  ;;  %v2707_v0 = vmul.f32 0.1, %v2699_v37  ;;  %vm2703_vm11 = vcmp.ge.f32.partialorder %v2699_v37, 0.0  ;;  %v3114_v21 = vld [vmem:[#allocation11 + $0x58] sm:$0xff]  ;;  %v3115_v18 = vld [vmem:[#allocation11 + $0x60] sm:$0xff]  ;;  %v3116_v63 = vld [vmem:[#allocation11 + $0x68] sm:$0xff] }
 0x5bd   : >> { %15786 = vmatprep.subr.bf16.mxu0 %v15785_v20  ;;  %16201 = vmatprep.subr.bf16.mxu1 %v15785_v20  ;;  %v15797_v28 = vpack.c.bf16 %v3114_v21, %v3113_v38  ;;  %v15801_v19 = vpack.c.bf16 %v3116_v63, %v3115_v18  ;;  %v4274_v7 = vld [vmem:[#allocation18 + $0x4a0] sm:$0xff]  ;;  %v4276_v5 = vld [vmem:[#allocation18 + $0x4b0] sm:$0xff]  ;;  %v4277_v6 = vld [vmem:[#allocation18 + $0x4b8] sm:$0xff] }
 0x5be   : >> { %v2700_v42 = vadd.f32 %v2695_v16, %v2672_v22  ;;  %15788 = vmatpush3.bf16.msra.mxu0 %v15785_v20  ;;  %16203 = vmatpush3.bf16.msra.mxu1 %v15785_v20  ;;  %v2711_v31 = vsel %vm2703_vm11, %v2699_v37, %v2707_v0  ;;  %v2740_v37 = vld [vmem:[#allocation12 + $0xd8] sm:$0xff]  ;;  %v3117_v20 = vld [vmem:[#allocation11 + $0x70] sm:$0xff]  ;;  %v3102_v0 = vld [vmem:[#allocation11] sm:$0xff] }
 0x5bf   : >> { %v3118_v22 = vld [vmem:[#allocation11 + $0x78] sm:$0xff]  ;;  %v4278_v38 = vld [vmem:[#allocation18 + $0x4c0] sm:$0xff]  ;;  %v3106_v63 = vld [vmem:[#allocation11 + $0x20] sm:$0xff] }
 0x5c0   : >> { %v2708_v25 = vmul.f32 0.1, %v2700_v42  ;;  %vm2704_vm12 = vcmp.ge.f32.partialorder %v2700_v42, 0.0  ;;  %v15805_v16 = vpack.c.bf16 %v3118_v22, %v3117_v20  ;;  %v4279_v21 = vld [vmem:[#allocation18 + $0x4c8] sm:$0xff]  ;;  %v4301_v20 = vld [vmem:[#allocation18 + $0x578] sm:$0xff] }
 0x5c2   : >> { %v2712_v54 = vsel %vm2704_vm12, %v2700_v42, %v2708_v25  ;;  %v3103_v42 = vld [vmem:[#allocation11 + $0x8] sm:$0xff] }
 0x5c3   : >> { %v15789_v32 = vpack.c.bf16 %v2712_v54, %v2711_v31  ;;  %v18887_v25 = vpack.c.bf16 %v3103_v42, %v3102_v0  ;;  %v4270_v31 = vld [vmem:[#allocation18 + $0x480] sm:$0xff]  ;;  %v4271_v54 = vld [vmem:[#allocation18 + $0x488] sm:$0xff] }
 0x5c4   : >> { %v4302_v0 = vld [vmem:[#allocation18 + $0x580] sm:$0xff] }
 0x5c5   : >> { %15790 = vmatprep.subr.bf16.mxu0 %v15789_v32  ;;  %16202 = vmatprep.subr.bf16.mxu1 %v15789_v32 }
 0x5c6   : >> { %15792 = vmatpush3.bf16.msra.mxu0 %v15789_v32  ;;  %16204 = vmatpush3.bf16.msra.mxu1 %v15789_v32  ;;  %v4272_v32 = vld [vmem:[#allocation18 + $0x490] sm:$0xff] }
 0x5c7   : >> { %15794 = vmatprep.subr.bf16.mxu0 %v15793_v33  ;;  %15938 = vmatprep.subr.bf16.mxu1 %v15937_v34 }
 0x5c9   : >> { %14310 = vmatmul.mubr.msk.f32.vlgmr.msra.gmra.mrb[96].mxu0 %vm1194_vm8, %v2714_v52  ;;  %14352 = vmatmul.mubr.msk.f32.vlgmr.msra.gmra.mrb[48].mxu1 %vm1194_vm8, %v2742_v30  ;;  %v4280_v52 = vld [vmem:[#allocation18 + $0x4d0] sm:$0xff]  ;;  %v4281_v30 = vld [vmem:[#allocation18 + $0x4d8] sm:$0xff] }
 0x5ca   : >> { %14312 = vmatprep.mubr.msk.f32.mxu0 %vm1194_vm8, %v2715_v51  ;;  %14354 = vmatprep.mubr.msk.f32.mxu1 %vm1194_vm8, %v2743_v35  ;;  %v4282_v51 = vld [vmem:[#allocation18 + $0x4e0] sm:$0xff]  ;;  %v4283_v35 = vld [vmem:[#allocation18 + $0x4e8] sm:$0xff] }
 0x5cb   : >> { %15796 = vmatpush3.bf16.msra.mxu0 %v15793_v33  ;;  %15940 = vmatpush3.bf16.msra.mxu1 %v15937_v34  ;;  %v4273_v33 = vld [vmem:[#allocation18 + $0x498] sm:$0xff] }
 0x5cc   : >> { %15798 = vmatprep.subr.bf16.mxu0 %v15797_v28  ;;  %15942 = vmatprep.subr.bf16.mxu1 %v15941_v46 }
 0x5cd   : >> { %14313 = vmatmul.mubr.msk.f32.gmra.mrb[98].mxu0 %vm1194_vm8, %v2716_v39  ;;  %14355 = vmatmul.mubr.msk.f32.gmra.mrb[50].mxu1 %vm1194_vm8, %v2744_v23  ;;  %v4285_v39 = vld [vmem:[#allocation18 + $0x4f8] sm:$0xff]  ;;  %v4286_v23 = vld [vmem:[#allocation18 + $0x500] sm:$0xff] }
 0x5ce   : >> { %14315 = vmatprep.mubr.msk.f32.mxu0 %vm1194_vm8, %v2717_v48  ;;  %14357 = vmatprep.mubr.msk.f32.mxu1 %vm1194_vm8, %v2745_v50  ;;  %v4287_v48 = vld [vmem:[#allocation18 + $0x508] sm:$0xff]  ;;  %v4288_v50 = vld [vmem:[#allocation18 + $0x510] sm:$0xff] }
 0x5cf   : >> { %15800 = vmatpush3.bf16.msra.mxu0 %v15797_v28  ;;  %15944 = vmatpush3.bf16.msra.mxu1 %v15941_v46  ;;  %v4284_v28 = vld [vmem:[#allocation18 + $0x4f0] sm:$0xff] }
 0x5d0   : >> { %15802 = vmatprep.subr.bf16.mxu0 %v15801_v19 }
 0x5d1   : >> { %14316 = vmatmul.mubr.msk.f32.gmra.mrb[100].mxu0 %vm1194_vm8, %v2718_v49  ;;  %14358 = vmatmul.mubr.msk.f32.gmra.mrb[52].mxu1 %vm1194_vm8, %v2746_v9  ;;  %v4289_v49 = vld [vmem:[#allocation18 + $0x518] sm:$0xff]  ;;  %v4290_v9 = vld [vmem:[#allocation18 + $0x520] sm:$0xff] }
 0x5d2   : >> { %14318 = vmatprep.mubr.msk.f32.mxu0 %vm1194_vm8, %v2719_v59  ;;  %14360 = vmatprep.mubr.msk.f32.mxu1 %vm1194_vm8, %v2747_v53  ;;  %v4291_v59 = vld [vmem:[#allocation18 + $0x528] sm:$0xff]  ;;  %v4292_v53 = vld [vmem:[#allocation18 + $0x530] sm:$0xff] }
 0x5d3   : >> { %15804 = vmatpush3.bf16.msra.mxu0 %v15801_v19  ;;  %v3107_v19 = vld [vmem:[#allocation11 + $0x28] sm:$0xff] }
 0x5d4   : >> { %15806 = vmatprep.subr.bf16.mxu0 %v15805_v16  ;;  %v15817_v34 = vpack.c.bf16 %v3107_v19, %v3106_v63 }
 0x5d5   : >> { %14319 = vmatmul.mubr.msk.f32.gmra.mrb[102].mxu0 %vm1194_vm8, %v2720_v29  ;;  %14361 = vmatmul.mubr.msk.f32.gmra.mrb[54].mxu1 %vm1194_vm8, %v2748_v47  ;;  %v4293_v29 = vld [vmem:[#allocation18 + $0x538] sm:$0xff]  ;;  %v4294_v47 = vld [vmem:[#allocation18 + $0x540] sm:$0xff] }
 0x5d6   : >> { %14321 = vmatprep.mubr.msk.f32.mxu0 %vm1194_vm8, %v2721_v62  ;;  %14569 = vmatprep.mubr.msk.f32.mxu1 %vm1194_vm8, %v4270_v31  ;;  %v4295_v62 = vld [vmem:[#allocation18 + $0x548] sm:$0xff]  ;;  %v3108_v31 = vld [vmem:[#allocation11 + $0x30] sm:$0xff] }
 0x5d7   : >> { %15808 = vmatpush3.bf16.msra.mxu0 %v15805_v16 }
 0x5d8   : >> { %15810 = vmatprep.subr.bf16.mxu0 %v18887_v25 }
 0x5d9   : >> { %14322 = vmatmul.mubr.msk.f32.gmra.mrb[104].mxu0 %vm1194_vm8, %v2722_v43  ;;  %14570 = vmatmul.mubr.msk.f32.vlgmr.msra.gmra.mrb[56].mxu1 %vm1194_vm8, %v4271_v54  ;;  %v3109_v54 = vld [vmem:[#allocation11 + $0x38] sm:$0xff] }
 0x5da   : >> { %14324 = vmatprep.mubr.msk.f32.mxu0 %vm1194_vm8, %v2723_v60  ;;  %14572 = vmatprep.mubr.msk.f32.mxu1 %vm1194_vm8, %v4272_v32  ;;  %v4303_v32 = vld [vmem:[#allocation18 + $0x588] sm:$0xff] }
 0x5dd   : >> { %14325 = vmatmul.mubr.msk.f32.gmra.mrb[106].mxu0 %vm1194_vm8, %v2724_v44  ;;  %14573 = vmatmul.mubr.msk.f32.gmra.mrb[58].mxu1 %vm1194_vm8, %v4273_v33  ;;  %v4296_v44 = vld [vmem:[#allocation18 + $0x550] sm:$0xff] }
 0x5de   : >> { %14327 = vmatprep.mubr.msk.f32.mxu0 %vm1194_vm8, %v2725_v55  ;;  %14575 = vmatprep.mubr.msk.f32.mxu1 %vm1194_vm8, %v4274_v7  ;;  %v4305_v7 = vld [vmem:[#allocation18 + $0x598] sm:$0xff] }
 0x5e1   : >> { %14328 = vmatmul.mubr.msk.f32.gmra.mrb[108].mxu0 %vm1194_vm8, %v2726_v40  ;;  %14576 = vmatmul.mubr.msk.f32.gmra.mrb[60].mxu1 %vm1194_vm8, %v4275_v8  ;;  %v15821_v8 = vpack.c.bf16 %v3109_v54, %v3108_v31 }
 0x5e2   : >> { %14330 = vmatprep.mubr.msk.f32.mxu0 %vm1194_vm8, %v2727_v45  ;;  %14578 = vmatprep.mubr.msk.f32.mxu1 %vm1194_vm8, %v4276_v5  ;;  %v4297_v45 = vld [vmem:[#allocation18 + $0x558] sm:$0xff] }
 0x5e5   : >> { %14331 = vmatmul.mubr.msk.f32.gmra.mrb[110].mxu0 %vm1194_vm8, %v2728_v13  ;;  %14579 = vmatmul.mubr.msk.f32.gmra.mrb[62].mxu1 %vm1194_vm8, %v4277_v6  ;;  %v4306_v6 = vld [vmem:[#allocation18 + $0x5a0] sm:$0xff] }
 0x5e6   : >> { %14333 = vmatprep.mubr.msk.f32.mxu0 %vm1194_vm8, %v2729_v27  ;;  %14581 = vmatprep.mubr.msk.f32.mxu1 %vm1194_vm8, %v4278_v38  ;;  %v3315_v38 = vld [vmem:[#allocation11 + $0x80] sm:$0xff] }
 0x5e9   : >> { %14334 = vmatmul.mubr.msk.f32.gmra.mrb[112].mxu0 %vm1194_vm8, %v2730_v15  ;;  %14582 = vmatmul.mubr.msk.f32.gmra.mrb[64].mxu1 %vm1194_vm8, %v4279_v21  ;;  %v4298_v15 = vld [vmem:[#allocation18 + $0x560] sm:$0xff]  ;;  %v3316_v21 = vld [vmem:[#allocation11 + $0x88] sm:$0xff] }
 0x5ea   : >> { %14336 = vmatprep.mubr.msk.f32.mxu0 %vm1194_vm8, %v2731_v26  ;;  %14584 = vmatprep.mubr.msk.f32.mxu1 %vm1194_vm8, %v4280_v52 }
 0x5ed   : >> { %14337 = vmatmul.mubr.msk.f32.gmra.mrb[114].mxu0 %vm1194_vm8, %v2732_v17  ;;  %14585 = vmatmul.mubr.msk.f32.gmra.mrb[66].mxu1 %vm1194_vm8, %v4281_v30  ;;  %v4307_v30 = vld [vmem:[#allocation18 + $0x5a8] sm:$0xff] }
 0x5ee   : >> { %14339 = vmatprep.mubr.msk.f32.mxu0 %vm1194_vm8, %v2733_v10  ;;  %14587 = vmatprep.mubr.msk.f32.mxu1 %vm1194_vm8, %v4282_v51  ;;  %v4299_v10 = vld [vmem:[#allocation18 + $0x568] sm:$0xff]  ;;  %v15825_v51 = vpack.c.bf16 %v3316_v21, %v3315_v38  ;;  %v3431_v21 = vld [vmem:[#allocation11 + $0xf0] sm:$0xff] }
 0x5f1   : >> { %14340 = vmatmul.mubr.msk.f32.gmra.mrb[116].mxu0 %vm1194_vm8, %v2734_v36  ;;  %14588 = vmatmul.mubr.msk.f32.gmra.mrb[68].mxu1 %vm1194_vm8, %v4283_v35  ;;  %v3104_v36 = vld [vmem:[#allocation11 + $0x10] sm:$0xff] }
 0x5f2   : >> { %14342 = vmatprep.mubr.msk.f32.mxu0 %vm1194_vm8, %v2735_v11  ;;  %14590 = vmatprep.mubr.msk.f32.mxu1 %vm1194_vm8, %v4284_v28  ;;  %v3105_v11 = vld [vmem:[#allocation11 + $0x18] sm:$0xff]  ;;  %v4308_v28 = vld [vmem:[#allocation18 + $0x5b0] sm:$0xff] }
 0x5f5   : >> { %14343 = vmatmul.mubr.msk.f32.gmra.mrb[118].mxu0 %vm1194_vm8, %v2736_v12  ;;  %14591 = vmatmul.mubr.msk.f32.gmra.mrb[70].mxu1 %vm1194_vm8, %v4285_v39  ;;  %v3317_v39 = vld [vmem:[#allocation11 + $0x90] sm:$0xff] }
 0x5f6   : >> { %14345 = vmatprep.mubr.msk.f32.mxu0 %vm1194_vm8, %v2737_v14  ;;  %14593 = vmatprep.mubr.msk.f32.mxu1 %vm1194_vm8, %v4286_v23  ;;  %v3318_v23 = vld [vmem:[#allocation11 + $0x98] sm:$0xff] }
 0x5f9   : >> { %14346 = vmatmul.mubr.msk.f32.gmra.mrb[120].mxu0 %vm1194_vm8, %v2738_v41  ;;  %14594 = vmatmul.mubr.msk.f32.gmra.mrb[72].mxu1 %vm1194_vm8, %v4287_v48  ;;  %v4300_v41 = vld [vmem:[#allocation18 + $0x570] sm:$0xff] }
 0x5fa   : >> { %14348 = vmatprep.mubr.msk.f32.mxu0 %vm1194_vm8, %v2739_v61  ;;  %14596 = vmatprep.mubr.msk.f32.mxu1 %vm1194_vm8, %v4288_v50  ;;  %v4309_v50 = vld [vmem:[#allocation18 + $0x5b8] sm:$0xff] }
 0x5fd   : >> { %14349 = vmatmul.mubr.msk.f32.gmra.mrb[122].mxu0 %vm1194_vm8, %v2740_v37  ;;  %14597 = vmatmul.mubr.msk.f32.gmra.mrb[74].mxu1 %vm1194_vm8, %v4289_v49  ;;  %v15813_v37 = vpack.c.bf16 %v3105_v11, %v3104_v36  ;;  %v15829_v49 = vpack.c.bf16 %v3318_v23, %v3317_v39  ;;  %v4322_v23 = vld [vmem:[#allocation18 + $0x620] sm:$0xff] }
 0x5fe   : >> { %14599 = vmatprep.mubr.msk.f32.mxu1 %vm1194_vm8, %v4290_v9 }
 0x601   : >> { %14600 = vmatmul.mubr.msk.f32.gmra.mrb[76].mxu1 %vm1194_vm8, %v4291_v59  ;;  %v3319_v59 = vld [vmem:[#allocation11 + $0xa0] sm:$0xff] }
 0x602   : >> { %14602 = vmatprep.mubr.msk.f32.mxu1 %vm1194_vm8, %v4292_v53  ;;  %v3320_v53 = vld [vmem:[#allocation11 + $0xa8] sm:$0xff] }
 0x605   : >> { %14603 = vmatmul.mubr.msk.f32.gmra.mrb[78].mxu1 %vm1194_vm8, %v4293_v29  ;;  %v4310_v29 = vld [vmem:[#allocation18 + $0x5c0] sm:$0xff] }
 0x606   : >> { %14605 = vmatprep.mubr.msk.f32.mxu1 %vm1194_vm8, %v4294_v47 }
 0x609   : >> { %14606 = vmatmul.mubr.msk.f32.gmra.mrb[80].mxu1 %vm1194_vm8, %v4295_v62  ;;  %v4311_v62 = vld [vmem:[#allocation18 + $0x5c8] sm:$0xff] }
 0x60a   : >> { %14608 = vmatprep.mubr.msk.f32.mxu1 %vm1194_vm8, %v4296_v44  ;;  %v15833_v44 = vpack.c.bf16 %v3320_v53, %v3319_v59 }
 0x60d   : >> { %14609 = vmatmul.mubr.msk.f32.gmra.mrb[82].mxu1 %vm1194_vm8, %v4297_v45  ;;  %v3321_v45 = vld [vmem:[#allocation11 + $0xb0] sm:$0xff] }
 0x60e   : >> { %14611 = vmatprep.mubr.msk.f32.mxu1 %vm1194_vm8, %v4298_v15  ;;  %v3322_v15 = vld [vmem:[#allocation11 + $0xb8] sm:$0xff] }
 0x60f   : >> { %v15837_v36 = vpack.c.bf16 %v3322_v15, %v3321_v45  ;;  %v4325_v45 = vld [vmem:[#allocation18 + $0x638] sm:$0xff] }
 0x611   : >> { %14612 = vmatmul.mubr.msk.f32.gmra.mrb[84].mxu1 %vm1194_vm8, %v4299_v10  ;;  %v4312_v10 = vld [vmem:[#allocation18 + $0x5d0] sm:$0xff] }
 0x612   : >> { %14614 = vmatprep.mubr.msk.f32.mxu1 %vm1194_vm8, %v4300_v41  ;;  %v3425_v41 = vld [vmem:[#allocation11 + $0xc0] sm:$0xff] }
 0x615   : >> { %14615 = vmatmul.mubr.msk.f32.gmra.mrb[86].mxu1 %vm1194_vm8, %v4301_v20  ;;  %v4316_v20 = vld [vmem:[#allocation18 + $0x5f0] sm:$0xff] }
 0x616   : >> { %14617 = vmatprep.mubr.msk.f32.mxu1 %vm1194_vm8, %v4302_v0  ;;  %v3428_v0 = vld [vmem:[#allocation11 + $0xd8] sm:$0xff] }
 0x619   : >> { %14618 = vmatmul.mubr.msk.f32.gmra.mrb[88].mxu1 %vm1194_vm8, %v4303_v32  ;;  %v3429_v32 = vld [vmem:[#allocation11 + $0xe0] sm:$0xff] }
 0x69c   : >> { %v18920_v43 = vpop.f32.mrb[96].mxu0  ;;  %v18922_v60 = vpop.f32.mrb[48].mxu1 }
 0x69d   : >> { %v2923_v55 = vpop.f32.mrb[97].mxu0  ;;  %v18924_v40 = vpop.f32.mrb[49].mxu1 }
 0x6a0   : >> { %v18928_v13 = vpop.f32.mrb[98].mxu0  ;;  %v18930_v27 = vpop.f32.mrb[50].mxu1 }
 0x6a1   : >> { %v18932_v26 = vpop.f32.mrb[99].mxu0  ;;  %v18934_v17 = vpop.f32.mrb[51].mxu1 }
 0x6a4   : >> { %v14317_v12 = vpop.f32.mrb[100].mxu0  ;;  %v18938_v14 = vpop.f32.mrb[52].mxu1 }
 0x6a5   : >> { %v2943_v61 = vpop.f32.mrb[101].mxu0  ;;  %v18940_v18 = vpop.f32.mrb[53].mxu1 }
 0x6a6   : >> { %14379 = vmatprep.mubr.msk.f32.mxu0 %vm3119_vm13, %v2943_v61  ;;  %v3426_v61 = vld [vmem:[#allocation11 + $0xc8] sm:$0xff] }
 0x6a7   : >> { %14380 = vmatmul.mubr.msk.f32.vlgmr.msra.gmra.mrb[124].mxu0 %vm3119_vm13, %v14317_v12  ;;  %v4314_v12 = vld [vmem:[#allocation18 + $0x5e0] sm:$0xff]  ;;  %v15841_v63 = vpack.c.bf16 %v3426_v61, %v3425_v41 }
 0x6a8   : >> { %15812 = vmatpush3.bf16.msra.mxu0 %v18887_v25  ;;  %v14320_v22 = vpop.f32.mrb[102].mxu0  ;;  %v18947_v16 = vpop.f32.mrb[54].mxu1  ;;  %v4304_v25 = vld [vmem:[#allocation18 + $0x590] sm:$0xff]  ;;  %v3541_v61 = vld [vmem:[#allocation11 + $0x130] sm:$0xff] }
 0x6a9   : >> { %v2953_v42 = vpop.f32.mrb[103].mxu0  ;;  %15814 = vmatprep.subr.bf16.mxu0 %v15813_v37  ;;  %v18949_v46 = vpop.f32.mrb[55].mxu1  ;;  %14620 = vmatprep.mubr.msk.f32.mxu1 %vm1194_vm8, %v4304_v25  ;;  %v3430_v25 = vld [vmem:[#allocation11 + $0xe8] sm:$0xff] }
 0x6aa   : >> { %14382 = vmatprep.mubr.msk.f32.mxu0 %vm3119_vm13, %v2953_v42  ;;  %14621 = vmatmul.mubr.msk.f32.gmra.mrb[90].mxu1 %vm1194_vm8, %v4305_v7  ;;  %v4318_v7 = vld [vmem:[#allocation18 + $0x600] sm:$0xff] }
 0x6ab   : >> { %14383 = vmatmul.mubr.msk.f32.gmra.mrb[126].mxu0 %vm3119_vm13, %v14320_v22  ;;  %14623 = vmatprep.mubr.msk.f32.mxu1 %vm1194_vm8, %v4306_v6  ;;  %v3427_v22 = vld [vmem:[#allocation11 + $0xd0] sm:$0xff]  ;;  %v15849_v6 = vpack.c.bf16 %v3430_v25, %v3429_v32  ;;  %v3648_v25 = vld [vmem:[#allocation11 + $0x158] sm:$0xff] }
 0x6ac   : >> { %15816 = vmatpush3.bf16.msra.mxu0 %v15813_v37  ;;  %14401 = vmatprep.mubr.msk.f32.mxu0 %vm3119_vm13, %v2923_v55  ;;  %v18956_v33 = vpop.f32.mrb[104].mxu0  ;;  %v4315_v37 = vld [vmem:[#allocation18 + $0x5e8] sm:$0xff]  ;;  %v15845_v31 = vpack.c.bf16 %v3428_v0, %v3427_v22  ;;  %v3645_v22 = vld [vmem:[#allocation11 + $0x140] sm:$0xff]  ;;  %v3646_v0 = vld [vmem:[#allocation11 + $0x148] sm:$0xff] }
 0x6ad   : >> { %15818 = vmatprep.subr.bf16.mxu0 %v15817_v34  ;;  %v2963_v5 = vpop.f32.mrb[105].mxu0  ;;  %v3647_v32 = vld [vmem:[#allocation11 + $0x150] sm:$0xff] }
 0x6ae   : >> { %14624 = vmatmul.mubr.msk.f32.gmra.mrb[92].mxu1 %vm1194_vm8, %v4307_v30  ;;  %v3432_v30 = vld [vmem:[#allocation11 + $0xf8] sm:$0xff] }
 0x6af   : >> { %14626 = vmatprep.mubr.msk.f32.mxu1 %vm1194_vm8, %v4308_v28  ;;  %v15853_v28 = vpack.c.bf16 %v3432_v30, %v3431_v21  ;;  %v4334_v21 = vld [vmem:[#allocation18 + $0x680] sm:$0xff]  ;;  %v4335_v30 = vld [vmem:[#allocation18 + $0x688] sm:$0xff] }
 0x6b0   : >> { %15820 = vmatpush3.bf16.msra.mxu0 %v15817_v34  ;;  %v18960_v52 = vpop.f32.mrb[106].mxu0  ;;  %v4317_v34 = vld [vmem:[#allocation18 + $0x5f8] sm:$0xff] }
 0x6b1   : >> { %15822 = vmatprep.subr.bf16.mxu0 %v15821_v8  ;;  %v18963_v35 = vpop.f32.mrb[107].mxu0 }
 0x6b2   : >> { %14627 = vmatmul.mubr.msk.f32.gmra.mrb[94].mxu1 %vm1194_vm8, %v4309_v50  ;;  %v3535_v50 = vld [vmem:[#allocation11 + $0x100] sm:$0xff] }
 0x6b3   : >> { %14629 = vmatprep.mubr.msk.f32.mxu1 %vm1194_vm8, %v4310_v29  ;;  %v4324_v29 = vld [vmem:[#allocation18 + $0x630] sm:$0xff] }
 0x6b4   : >> { %15824 = vmatpush3.bf16.msra.mxu0 %v15821_v8  ;;  %v18966_v48 = vpop.f32.mrb[108].mxu0 }
 0x6b5   : >> { %15826 = vmatprep.subr.bf16.mxu0 %v15825_v51  ;;  %v18969_v9 = vpop.f32.mrb[109].mxu0 }
 0x6b6   : >> { %14630 = vmatmul.mubr.msk.f32.gmra.mrb[96].mxu1 %vm1194_vm8, %v4311_v62  ;;  %v3537_v62 = vld [vmem:[#allocation11 + $0x110] sm:$0xff] }
 0x6b7   : >> { %14402 = vmatmul.mubr.msk.f32.vlgmr.msra.gmra.mrb[124].mxu0 %vm3119_vm13, %v18920_v43  ;;  %14632 = vmatprep.mubr.msk.f32.mxu1 %vm1194_vm8, %v4312_v10  ;;  %v3539_v10 = vld [vmem:[#allocation11 + $0x120] sm:$0xff] }
 0x6b8   : >> { %14404 = vmatprep.mubr.msk.f32.mxu0 %vm3119_vm13, %v18932_v26  ;;  %15828 = vmatpush3.bf16.msra.mxu0 %v15825_v51  ;;  %v18976_v47 = vpop.f32.mrb[110].mxu0  ;;  %v4313_v26 = vld [vmem:[#allocation18 + $0x5d8] sm:$0xff]  ;;  %v4320_v51 = vld [vmem:[#allocation18 + $0x610] sm:$0xff] }
 0x6b9   : >> { %15830 = vmatprep.subr.bf16.mxu0 %v15829_v49  ;;  %v18978_v55 = vpop.f32.mrb[111].mxu0 }
 0x6ba   : >> { %14633 = vmatmul.mubr.msk.f32.gmra.mrb[98].mxu1 %vm1194_vm8, %v4313_v26  ;;  %v3540_v26 = vld [vmem:[#allocation11 + $0x128] sm:$0xff] }
 0x6bb   : >> { %14405 = vmatmul.mubr.msk.f32.gmra.mrb[126].mxu0 %vm3119_vm13, %v18928_v13  ;;  %14635 = vmatprep.mubr.msk.f32.mxu1 %vm1194_vm8, %v4314_v12  ;;  %v4327_v12 = vld [vmem:[#allocation18 + $0x648] sm:$0xff]  ;;  %v15865_v41 = vpack.c.bf16 %v3540_v26, %v3539_v10  ;;  %v3760_v10 = vld [vmem:[#allocation11 + $0x1a8] sm:$0xff]  ;;  %v4342_v26 = vld [vmem:[#allocation18 + $0x6c0] sm:$0xff] }
 0x6bc   : >> { %15832 = vmatpush3.bf16.msra.mxu0 %v15829_v49  ;;  %14423 = vmatprep.mubr.msk.f32.mxu0 %vm3119_vm13, %v2963_v5  ;;  %v18985_v43 = vpop.f32.mrb[112].mxu0  ;;  %v4319_v5 = vld [vmem:[#allocation18 + $0x608] sm:$0xff]  ;;  %v3536_v49 = vld [vmem:[#allocation11 + $0x108] sm:$0xff] }
 0x6bd   : >> { %15834 = vmatprep.subr.bf16.mxu0 %v15833_v44  ;;  %v18987_v11 = vpop.f32.mrb[113].mxu0  ;;  %v15857_v59 = vpack.c.bf16 %v3536_v49, %v3535_v50  ;;  %v4338_v50 = vld [vmem:[#allocation18 + $0x6a0] sm:$0xff]  ;;  %v3755_v49 = vld [vmem:[#allocation11 + $0x180] sm:$0xff] }
 0x6be   : >> { %14636 = vmatmul.mubr.msk.f32.gmra.mrb[100].mxu1 %vm1194_vm8, %v4315_v37  ;;  %v3542_v37 = vld [vmem:[#allocation11 + $0x138] sm:$0xff] }
 0x6bf   : >> { %14638 = vmatprep.mubr.msk.f32.mxu1 %vm1194_vm8, %v4316_v20  ;;  %v4330_v20 = vld [vmem:[#allocation18 + $0x660] sm:$0xff] }
 0x6c0   : >> { %15836 = vmatpush3.bf16.msra.mxu0 %v15833_v44  ;;  %v18991_v13 = vpop.f32.mrb[114].mxu0  ;;  %v3538_v44 = vld [vmem:[#allocation11 + $0x118] sm:$0xff] }
 0x6c1   : >> { %15838 = vmatprep.subr.bf16.mxu0 %v15837_v36  ;;  %v18994_v19 = vpop.f32.mrb[115].mxu0  ;;  %v15861_v15 = vpack.c.bf16 %v3538_v44, %v3537_v62  ;;  %v3757_v62 = vld [vmem:[#allocation11 + $0x190] sm:$0xff]  ;;  %v3758_v44 = vld [vmem:[#allocation11 + $0x198] sm:$0xff] }
 0x6c2   : >> { %14639 = vmatmul.mubr.msk.f32.gmra.mrb[102].mxu1 %vm1194_vm8, %v4317_v34  ;;  %v15873_v34 = vpack.c.bf16 %v3646_v0, %v3645_v22  ;;  %v4348_v22 = vld [vmem:[#allocation18 + $0x6f0] sm:$0xff]  ;;  %v3867_v0 = vld [vmem:[#allocation11 + $0x1d0] sm:$0xff] }
 0x6c3   : >> { %14641 = vmatprep.mubr.msk.f32.mxu1 %vm1194_vm8, %v4318_v7  ;;  %v15877_v7 = vpack.c.bf16 %v3648_v25, %v3647_v32  ;;  %v3870_v32 = vld [vmem:[#allocation11 + $0x1e8] sm:$0xff]  ;;  %v4350_v25 = vld [vmem:[#allocation18 + $0x700] sm:$0xff] }
 0x6c4   : >> { %15840 = vmatpush3.bf16.msra.mxu0 %v15837_v36  ;;  %v18997_v42 = vpop.f32.mrb[116].mxu0  ;;  %v4326_v36 = vld [vmem:[#allocation18 + $0x640] sm:$0xff] }
 0x6c5   : >> { %15842 = vmatprep.subr.bf16.mxu0 %v15841_v63  ;;  %v19000_v54 = vpop.f32.mrb[117].mxu0 }
 0x6c6   : >> { %14642 = vmatmul.mubr.msk.f32.gmra.mrb[104].mxu1 %vm1194_vm8, %v4319_v5  ;;  %v3649_v5 = vld [vmem:[#allocation11 + $0x160] sm:$0xff] }
 0x6c7   : >> { %14424 = vmatmul.mubr.msk.f32.vlgmr.msra.gmra.mrb[124].mxu0 %vm3119_vm13, %v18956_v33  ;;  %14644 = vmatprep.mubr.msk.f32.mxu1 %vm1194_vm8, %v4320_v51 }
 0x6c8   : >> { %15844 = vmatpush3.bf16.msra.mxu0 %v15841_v63  ;;  %14426 = vmatprep.mubr.msk.f32.mxu0 %vm3119_vm13, %v18963_v35  ;;  %v19007_v8 = vpop.f32.mrb[118].mxu0  ;;  %v4321_v35 = vld [vmem:[#allocation18 + $0x618] sm:$0xff]  ;;  %v4328_v63 = vld [vmem:[#allocation18 + $0x650] sm:$0xff] }
 0x6c9   : >> { %15846 = vmatprep.subr.bf16.mxu0 %v15845_v31  ;;  %v19009_v38 = vpop.f32.mrb[119].mxu0 }
 0x6ca   : >> { %14645 = vmatmul.mubr.msk.f32.gmra.mrb[106].mxu1 %vm1194_vm8, %v4321_v35  ;;  %v3651_v35 = vld [vmem:[#allocation11 + $0x170] sm:$0xff] }
 0x6cb   : >> { %14427 = vmatmul.mubr.msk.f32.gmra.mrb[126].mxu0 %vm3119_vm13, %v18960_v52  ;;  %14647 = vmatprep.mubr.msk.f32.mxu1 %vm1194_vm8, %v4322_v23  ;;  %v4336_v23 = vld [vmem:[#allocation18 + $0x690] sm:$0xff] }
 0x6cc   : >> { %15848 = vmatpush3.bf16.msra.mxu0 %v15845_v31  ;;  %14445 = vmatprep.mubr.msk.f32.mxu0 %vm3119_vm13, %v18969_v9  ;;  %v19017_v33 = vpop.f32.mrb[120].mxu0  ;;  %v4323_v9 = vld [vmem:[#allocation18 + $0x628] sm:$0xff]  ;;  %v4332_v31 = vld [vmem:[#allocation18 + $0x670] sm:$0xff] }
 0x6cd   : >> { %15850 = vmatprep.subr.bf16.mxu0 %v15849_v6  ;;  %v19019_v39 = vpop.f32.mrb[121].mxu0 }
 0x6ce   : >> { %14648 = vmatmul.mubr.msk.f32.gmra.mrb[108].mxu1 %vm1194_vm8, %v4323_v9  ;;  %v3756_v9 = vld [vmem:[#allocation11 + $0x188] sm:$0xff] }
 0x6cf   : >> { %14650 = vmatprep.mubr.msk.f32.mxu1 %vm1194_vm8, %v4324_v29  ;;  %v4340_v29 = vld [vmem:[#allocation18 + $0x6b0] sm:$0xff] }
 0x6d0   : >> { %15852 = vmatpush3.bf16.msra.mxu0 %v15849_v6  ;;  %v19023_v52 = vpop.f32.mrb[122].mxu0  ;;  %v3650_v6 = vld [vmem:[#allocation11 + $0x168] sm:$0xff] }
 0x6d1   : >> { %15854 = vmatprep.subr.bf16.mxu0 %v15853_v28  ;;  %v19026_v53 = vpop.f32.mrb[123].mxu0  ;;  %v15881_v51 = vpack.c.bf16 %v3650_v6, %v3649_v5  ;;  %v3871_v5 = vld [vmem:[#allocation11 + $0x1f0] sm:$0xff]  ;;  %v3872_v6 = vld [vmem:[#allocation11 + $0x1f8] sm:$0xff] }
 0x6d2   : >> { %14651 = vmatmul.mubr.msk.f32.gmra.mrb[110].mxu1 %vm1194_vm8, %v4325_v45  ;;  %v15893_v45 = vpack.c.bf16 %v3758_v44, %v3757_v62  ;;  %v3981_v62 = vld [vmem:[#allocation11 + $0x230] sm:$0xff]  ;;  %v3982_v44 = vld [vmem:[#allocation11 + $0x238] sm:$0xff] }
 0x6d3   : >> { %14653 = vmatprep.mubr.msk.f32.mxu1 %vm1194_vm8, %v4326_v36  ;;  %v4343_v36 = vld [vmem:[#allocation18 + $0x6c8] sm:$0xff] }
 0x6d4   : >> { %15856 = vmatpush3.bf16.msra.mxu0 %v15853_v28  ;;  %v3652_v28 = vld [vmem:[#allocation11 + $0x178] sm:$0xff] }
 0x6d5   : >> { %15858 = vmatprep.subr.bf16.mxu0 %v15857_v59 }
 0x6d6   : >> { %14654 = vmatmul.mubr.msk.f32.gmra.mrb[112].mxu1 %vm1194_vm8, %v4327_v12 }
 0x6d7   : >> { %14446 = vmatmul.mubr.msk.f32.vlgmr.msra.gmra.mrb[124].mxu0 %vm3119_vm13, %v18966_v48  ;;  %v4329_v48 = vld [vmem:[#allocation18 + $0x658] sm:$0xff]  ;;  %14656 = vmatprep.mubr.msk.f32.mxu1 %vm1194_vm8, %v4328_v63  ;;  %v4346_v63 = vld [vmem:[#allocation18 + $0x6e0] sm:$0xff] }
 0x6d8   : >> { %15860 = vmatpush3.bf16.msra.mxu0 %v15857_v59  ;;  %14448 = vmatprep.mubr.msk.f32.mxu0 %vm3119_vm13, %v18978_v55  ;;  %v15869_v55 = vpack.c.bf16 %v3542_v37, %v3541_v61  ;;  %v15889_v59 = vpack.c.bf16 %v3756_v9, %v3755_v49  ;;  %v3762_v61 = vld [vmem:[#allocation11 + $0x1b8] sm:$0xff]  ;;  %v4344_v37 = vld [vmem:[#allocation18 + $0x6d0] sm:$0xff]  ;;  %v3980_v9 = vld [vmem:[#allocation11 + $0x228] sm:$0xff] }
 0x6d9   : >> { %15862 = vmatprep.subr.bf16.mxu0 %v15861_v15  ;;  %v3979_v49 = vld [vmem:[#allocation11 + $0x220] sm:$0xff] }
 0x6da   : >> { %14657 = vmatmul.mubr.msk.f32.gmra.mrb[114].mxu1 %vm1194_vm8, %v4329_v48  ;;  %v3865_v48 = vld [vmem:[#allocation11 + $0x1c0] sm:$0xff] }
 0x6db   : >> { %14449 = vmatmul.mubr.msk.f32.gmra.mrb[126].mxu0 %vm3119_vm13, %v18976_v47  ;;  %14659 = vmatprep.mubr.msk.f32.mxu1 %vm1194_vm8, %v4330_v20  ;;  %v4331_v47 = vld [vmem:[#allocation18 + $0x668] sm:$0xff] }
 0x6dc   : >> { %15864 = vmatpush3.bf16.msra.mxu0 %v15861_v15  ;;  %14467 = vmatprep.mubr.msk.f32.mxu0 %vm3119_vm13, %v18987_v11  ;;  %v4333_v11 = vld [vmem:[#allocation18 + $0x678] sm:$0xff]  ;;  %v3759_v15 = vld [vmem:[#allocation11 + $0x1a0] sm:$0xff] }
 0x6dd   : >> { %15866 = vmatprep.subr.bf16.mxu0 %v15865_v41  ;;  %v15897_v12 = vpack.c.bf16 %v3760_v10, %v3759_v15  ;;  %v4363_v15 = vld [vmem:[#allocation18 + $0x768] sm:$0xff]  ;;  %v4366_v10 = vld [vmem:[#allocation18 + $0x780] sm:$0xff] }
 0x6de   : >> { %14660 = vmatmul.mubr.msk.f32.gmra.mrb[116].mxu1 %vm1194_vm8, %v4331_v47  ;;  %v3868_v47 = vld [vmem:[#allocation11 + $0x1d8] sm:$0xff] }
 0x6df   : >> { %14662 = vmatprep.mubr.msk.f32.mxu1 %vm1194_vm8, %v4332_v31  ;;  %v3869_v31 = vld [vmem:[#allocation11 + $0x1e0] sm:$0xff] }
 0x6e0   : >> { %15868 = vmatpush3.bf16.msra.mxu0 %v15865_v41  ;;  %v3761_v41 = vld [vmem:[#allocation11 + $0x1b0] sm:$0xff] }
 0x6e1   : >> { %15870 = vmatprep.subr.bf16.mxu0 %v15869_v55 }
 0x6e2   : >> { %14663 = vmatmul.mubr.msk.f32.gmra.mrb[118].mxu1 %vm1194_vm8, %v4333_v11  ;;  %v4351_v11 = vld [vmem:[#allocation18 + $0x708] sm:$0xff] }
 0x6e3   : >> { %14665 = vmatprep.mubr.msk.f32.mxu1 %vm1194_vm8, %v4334_v21  ;;  %v4352_v21 = vld [vmem:[#allocation18 + $0x710] sm:$0xff] }
 0x6e4   : >> { %15872 = vmatpush3.bf16.msra.mxu0 %v15869_v55  ;;  %v3866_v55 = vld [vmem:[#allocation11 + $0x1c8] sm:$0xff] }
 0x6e5   : >> { %15874 = vmatprep.subr.bf16.mxu0 %v15873_v34  ;;  %v15905_v20 = vpack.c.bf16 %v3866_v55, %v3865_v48  ;;  %v4379_v48 = vld [vmem:[#allocation18 + $0x7e8] sm:$0xff]  ;;  %v4380_v55 = vld [vmem:[#allocation18 + $0x7f0] sm:$0xff] }
 0x6e6   : >> { %14666 = vmatmul.mubr.msk.f32.gmra.mrb[120].mxu1 %vm1194_vm8, %v4335_v30  ;;  %v4354_v30 = vld [vmem:[#allocation18 + $0x720] sm:$0xff] }
 0x6e7   : >> { %14468 = vmatmul.mubr.msk.f32.vlgmr.msra.gmra.mrb[124].mxu0 %vm3119_vm13, %v18985_v43  ;;  %v4337_v43 = vld [vmem:[#allocation18 + $0x698] sm:$0xff]  ;;  %14668 = vmatprep.mubr.msk.f32.mxu1 %vm1194_vm8, %v4336_v23  ;;  %v4356_v23 = vld [vmem:[#allocation18 + $0x730] sm:$0xff] }
 0x6e8   : >> { %15876 = vmatpush3.bf16.msra.mxu0 %v15873_v34  ;;  %14470 = vmatprep.mubr.msk.f32.mxu0 %vm3119_vm13, %v18994_v19  ;;  %v15885_v19 = vpack.c.bf16 %v3652_v28, %v3651_v35  ;;  %v15909_v34 = vpack.c.bf16 %v3868_v47, %v3867_v0  ;;  %v3976_v35 = vld [vmem:[#allocation11 + $0x208] sm:$0xff]  ;;  %v4384_v0 = vld [vmem:[#allocation18 + $0x810] sm:$0xff] }
 0x6e9   : >> { %15878 = vmatprep.subr.bf16.mxu0 %v15877_v7  ;;  %v4385_v47 = vld [vmem:[#allocation18 + $0x818] sm:$0xff] }
 0x6ea   : >> { %14669 = vmatmul.mubr.msk.f32.gmra.mrb[122].mxu1 %vm1194_vm8, %v4337_v43  ;;  %v3977_v43 = vld [vmem:[#allocation11 + $0x210] sm:$0xff] }
 0x6eb   : >> { %14471 = vmatmul.mubr.msk.f32.gmra.mrb[126].mxu0 %vm3119_vm13, %v18991_v13  ;;  %14671 = vmatprep.mubr.msk.f32.mxu1 %vm1194_vm8, %v4338_v50  ;;  %v4339_v13 = vld [vmem:[#allocation18 + $0x6a8] sm:$0xff] }
 0x6ec   : >> { %15880 = vmatpush3.bf16.msra.mxu0 %v15877_v7  ;;  %14489 = vmatprep.mubr.msk.f32.mxu0 %vm3119_vm13, %v19000_v54  ;;  %v4341_v54 = vld [vmem:[#allocation18 + $0x6b8] sm:$0xff]  ;;  %v15913_v7 = vpack.c.bf16 %v3870_v32, %v3869_v31  ;;  %v4388_v31 = vld [vmem:[#allocation18 + $0x830] sm:$0xff] }
 0x6ed   : >> { %15882 = vmatprep.subr.bf16.mxu0 %v15881_v51  ;;  %v4389_v32 = vld [vmem:[#allocation18 + $0x838] sm:$0xff] }
 0x6ee   : >> { %14672 = vmatmul.mubr.msk.f32.gmra.mrb[124].mxu1 %vm1194_vm8, %v4339_v13  ;;  %v4358_v13 = vld [vmem:[#allocation18 + $0x740] sm:$0xff] }
 0x6ef   : >> { %14674 = vmatprep.mubr.msk.f32.mxu1 %vm1194_vm8, %v4340_v29  ;;  %v15929_v29 = vpack.c.bf16 %v3980_v9, %v3979_v49  ;;  %v4408_v49 = vld [vmem:[#allocation18 + $0x8d0] sm:$0xff]  ;;  %v4409_v9 = vld [vmem:[#allocation18 + $0x8d8] sm:$0xff] }
 0x6f0   : >> { %15884 = vmatpush3.bf16.msra.mxu0 %v15881_v51  ;;  %v3975_v51 = vld [vmem:[#allocation11 + $0x200] sm:$0xff] }
 0x6f1   : >> { %15886 = vmatprep.subr.bf16.mxu0 %v15885_v19  ;;  %v15921_v28 = vpack.c.bf16 %v3976_v35, %v3975_v51  ;;  %v4399_v51 = vld [vmem:[#allocation18 + $0x888] sm:$0xff]  ;;  %v4400_v35 = vld [vmem:[#allocation18 + $0x890] sm:$0xff] }
 0x6f2   : >> { %14675 = vmatmul.mubr.msk.f32.gmra.mrb[126].mxu1 %vm1194_vm8, %v4341_v54  ;;  %v4360_v54 = vld [vmem:[#allocation18 + $0x750] sm:$0xff] }
 0x6f3   : >> { %14677 = vmatprep.mubr.msk.f32.mxu1 %vm1194_vm8, %v4342_v26  ;;  %v4367_v26 = vld [vmem:[#allocation18 + $0x788] sm:$0xff] }
 0x6f4   : >> { %15888 = vmatpush3.bf16.msra.mxu0 %v15885_v19  ;;  %v3978_v19 = vld [vmem:[#allocation11 + $0x218] sm:$0xff] }
 0x6f5   : >> { %15890 = vmatprep.subr.bf16.mxu0 %v15889_v59  ;;  %v15925_v50 = vpack.c.bf16 %v3978_v19, %v3977_v43  ;;  %v4404_v43 = vld [vmem:[#allocation18 + $0x8b0] sm:$0xff]  ;;  %v4405_v19 = vld [vmem:[#allocation18 + $0x8b8] sm:$0xff] }
 0x6f6   : >> { %14678 = vmatmul.mubr.msk.f32.gmra.mrb[128].mxu1 %vm1194_vm8, %v4343_v36  ;;  %v4368_v36 = vld [vmem:[#allocation18 + $0x790] sm:$0xff] }
 0x6f7   : >> { %14490 = vmatmul.mubr.msk.f32.vlgmr.msra.gmra.mrb[124].mxu0 %vm3119_vm13, %v18997_v42  ;;  %v4345_v42 = vld [vmem:[#allocation18 + $0x6d8] sm:$0xff]  ;;  %14680 = vmatprep.mubr.msk.f32.mxu1 %vm1194_vm8, %v4344_v37  ;;  %v4374_v37 = vld [vmem:[#allocation18 + $0x7c0] sm:$0xff] }
 0x6f8   : >> { %15892 = vmatpush3.bf16.msra.mxu0 %v15889_v59  ;;  %14492 = vmatprep.mubr.msk.f32.mxu0 %vm3119_vm13, %v19009_v38  ;;  %v15901_v38 = vpack.c.bf16 %v3762_v61, %v3761_v41  ;;  %v4359_v59 = vld [vmem:[#allocation18 + $0x748] sm:$0xff]  ;;  %v4370_v41 = vld [vmem:[#allocation18 + $0x7a0] sm:$0xff]  ;;  %v4372_v61 = vld [vmem:[#allocation18 + $0x7b0] sm:$0xff] }
 0x6f9   : >> { %15894 = vmatprep.subr.bf16.mxu0 %v15893_v45 }
 0x6fa   : >> { %14681 = vmatmul.mubr.msk.f32.gmra.mrb[130].mxu1 %vm1194_vm8, %v4345_v42  ;;  %v4376_v42 = vld [vmem:[#allocation18 + $0x7d0] sm:$0xff] }
 0x6fb   : >> { %14493 = vmatmul.mubr.msk.f32.gmra.mrb[126].mxu0 %vm3119_vm13, %v19007_v8  ;;  %14683 = vmatprep.mubr.msk.f32.mxu1 %vm1194_vm8, %v4346_v63  ;;  %v4347_v8 = vld [vmem:[#allocation18 + $0x6e8] sm:$0xff]  ;;  %v4378_v63 = vld [vmem:[#allocation18 + $0x7e0] sm:$0xff] }
 0x6fc   : >> { %15896 = vmatpush3.bf16.msra.mxu0 %v15893_v45  ;;  %14511 = vmatprep.mubr.msk.f32.mxu0 %vm3119_vm13, %v19019_v39  ;;  %v4349_v39 = vld [vmem:[#allocation18 + $0x6f8] sm:$0xff]  ;;  %v4362_v45 = vld [vmem:[#allocation18 + $0x760] sm:$0xff] }
 0x6fd   : >> { %15898 = vmatprep.subr.bf16.mxu0 %v15897_v12 }
 0x6fe   : >> { %14684 = vmatmul.mubr.msk.f32.gmra.mrb[132].mxu1 %vm1194_vm8, %v4347_v8  ;;  %v4381_v8 = vld [vmem:[#allocation18 + $0x7f8] sm:$0xff] }
 0x6ff   : >> { %14686 = vmatprep.mubr.msk.f32.mxu1 %vm1194_vm8, %v4348_v22  ;;  %v4383_v22 = vld [vmem:[#allocation18 + $0x808] sm:$0xff] }
 0x700   : >> { %15900 = vmatpush3.bf16.msra.mxu0 %v15897_v12  ;;  %v4369_v12 = vld [vmem:[#allocation18 + $0x798] sm:$0xff] }
 0x701   : >> { %15902 = vmatprep.subr.bf16.mxu0 %v15901_v38 }
 0x702   : >> { %14687 = vmatmul.mubr.msk.f32.gmra.mrb[134].mxu1 %vm1194_vm8, %v4349_v39  ;;  %v4386_v39 = vld [vmem:[#allocation18 + $0x820] sm:$0xff] }
 0x703   : >> { %14689 = vmatprep.mubr.msk.f32.mxu1 %vm1194_vm8, %v4350_v25  ;;  %v4390_v25 = vld [vmem:[#allocation18 + $0x840] sm:$0xff] }
 0x704   : >> { %15904 = vmatpush3.bf16.msra.mxu0 %v15901_v38  ;;  %v4377_v38 = vld [vmem:[#allocation18 + $0x7d8] sm:$0xff] }
 0x705   : >> { %15906 = vmatprep.subr.bf16.mxu0 %v15905_v20 }
 0x706   : >> { %14690 = vmatmul.mubr.msk.f32.gmra.mrb[136].mxu1 %vm1194_vm8, %v4351_v11  ;;  %v4391_v11 = vld [vmem:[#allocation18 + $0x848] sm:$0xff] }
 0x707   : >> { %14512 = vmatmul.mubr.msk.f32.vlgmr.msra.gmra.mrb[124].mxu0 %vm3119_vm13, %v19017_v33  ;;  %v4353_v33 = vld [vmem:[#allocation18 + $0x718] sm:$0xff]  ;;  %14692 = vmatprep.mubr.msk.f32.mxu1 %vm1194_vm8, %v4352_v21  ;;  %v4395_v21 = vld [vmem:[#allocation18 + $0x868] sm:$0xff] }
 0x708   : >> { %15908 = vmatpush3.bf16.msra.mxu0 %v15905_v20  ;;  %14514 = vmatprep.mubr.msk.f32.mxu0 %vm3119_vm13, %v19026_v53  ;;  %v15917_v53 = vpack.c.bf16 %v3872_v6, %v3871_v5  ;;  %v4382_v20 = vld [vmem:[#allocation18 + $0x800] sm:$0xff]  ;;  %v4393_v5 = vld [vmem:[#allocation18 + $0x858] sm:$0xff] }
 0x709   : >> { %15910 = vmatprep.subr.bf16.mxu0 %v15909_v34  ;;  %v4394_v6 = vld [vmem:[#allocation18 + $0x860] sm:$0xff] }
 0x70a   : >> { %14693 = vmatmul.mubr.msk.f32.gmra.mrb[138].mxu1 %vm1194_vm8, %v4353_v33  ;;  %v4396_v33 = vld [vmem:[#allocation18 + $0x870] sm:$0xff] }
 0x70b   : >> { %14515 = vmatmul.mubr.msk.f32.gmra.mrb[126].mxu0 %vm3119_vm13, %v19023_v52  ;;  %14695 = vmatprep.mubr.msk.f32.mxu1 %vm1194_vm8, %v4354_v30  ;;  %v4355_v52 = vld [vmem:[#allocation18 + $0x728] sm:$0xff]  ;;  %v4398_v30 = vld [vmem:[#allocation18 + $0x880] sm:$0xff] }
 0x70c   : >> { %15912 = vmatpush3.bf16.msra.mxu0 %v15909_v34  ;;  %14533 = vmatprep.mubr.msk.f32.mxu0 %vm3119_vm13, %v18924_v40  ;;  %v4357_v40 = vld [vmem:[#allocation18 + $0x738] sm:$0xff]  ;;  %v4387_v34 = vld [vmem:[#allocation18 + $0x828] sm:$0xff] }
 0x70d   : >> { %15914 = vmatprep.subr.bf16.mxu0 %v15913_v7 }
 0x70e   : >> { %14696 = vmatmul.mubr.msk.f32.gmra.mrb[140].mxu1 %vm1194_vm8, %v4355_v52  ;;  %v4401_v52 = vld [vmem:[#allocation18 + $0x898] sm:$0xff] }
 0x70f   : >> { %14698 = vmatprep.mubr.msk.f32.mxu1 %vm1194_vm8, %v4356_v23  ;;  %v4403_v23 = vld [vmem:[#allocation18 + $0x8a8] sm:$0xff] }
 0x710   : >> { %15916 = vmatpush3.bf16.msra.mxu0 %v15913_v7  ;;  %v4392_v7 = vld [vmem:[#allocation18 + $0x850] sm:$0xff] }
 0x711   : >> { %15918 = vmatprep.subr.bf16.mxu0 %v15917_v53 }
 0x712   : >> { %14699 = vmatmul.mubr.msk.f32.gmra.mrb[142].mxu1 %vm1194_vm8, %v4357_v40  ;;  %v4406_v40 = vld [vmem:[#allocation18 + $0x8c0] sm:$0xff] }
 0x713   : >> { %14701 = vmatprep.mubr.msk.f32.mxu1 %vm1194_vm8, %v4358_v13  ;;  %v4410_v13 = vld [vmem:[#allocation18 + $0x8e0] sm:$0xff] }
 0x714   : >> { %15920 = vmatpush3.bf16.msra.mxu0 %v15917_v53  ;;  %v4397_v53 = vld [vmem:[#allocation18 + $0x878] sm:$0xff] }
 0x715   : >> { %15922 = vmatprep.subr.bf16.mxu0 %v15921_v28 }
 0x716   : >> { %14702 = vmatmul.mubr.msk.f32.gmra.mrb[144].mxu1 %vm1194_vm8, %v4359_v59  ;;  %v4411_v59 = vld [vmem:[#allocation18 + $0x8e8] sm:$0xff] }
 0x717   : >> { %14534 = vmatmul.mubr.msk.f32.vlgmr.msra.gmra.mrb[124].mxu0 %vm3119_vm13, %v18922_v60  ;;  %v4361_v60 = vld [vmem:[#allocation18 + $0x758] sm:$0xff]  ;;  %14704 = vmatprep.mubr.msk.f32.mxu1 %vm1194_vm8, %v4360_v54  ;;  %v4096_v54 = vpop.permute.xlu1 %4095 }
 0x718   : >> { %15924 = vmatpush3.bf16.msra.mxu0 %v15921_v28  ;;  %14536 = vmatprep.mubr.msk.f32.mxu0 %vm3119_vm13, %v18934_v17  ;;  %v15933_v17 = vpack.c.bf16 %v3982_v44, %v3981_v62  ;;  %v4402_v28 = vld [vmem:[#allocation18 + $0x8a0] sm:$0xff]  ;;  %v4413_v62 = vld [vmem:[#allocation18 + $0x8f8] sm:$0xff] }
 0x719   : >> { %15926 = vmatprep.subr.bf16.mxu0 %v15925_v50  ;;  %v4125_v44 = vld [vmem:[#allocation17 + $0x480] sm:$0xff] }
 0x71a   : >> { %14705 = vmatmul.mubr.msk.f32.gmra.mrb[146].mxu1 %vm1194_vm8, %v4361_v60  ;;  %v4091_v60 = vpop.permute.xlu0 %4090 }
 0x71b   : >> { %14537 = vmatmul.mubr.msk.f32.gmra.mrb[126].mxu0 %vm3119_vm13, %v18930_v27  ;;  %14707 = vmatprep.mubr.msk.f32.mxu1 %vm1194_vm8, %v4362_v45  ;;  %v4364_v27 = vld [vmem:[#allocation18 + $0x770] sm:$0xff] }
 0x71c   : >> { %15928 = vmatpush3.bf16.msra.mxu0 %v15925_v50  ;;  %14555 = vmatprep.mubr.msk.f32.mxu0 %vm3119_vm13, %v18940_v18  ;;  %v4365_v18 = vld [vmem:[#allocation18 + $0x778] sm:$0xff]  ;;  %v4407_v50 = vld [vmem:[#allocation18 + $0x8c8] sm:$0xff] }
 0x71d   : >> { %15930 = vmatprep.subr.bf16.mxu0 %v15929_v29 }
 0x71e   : >> { %14708 = vmatmul.mubr.msk.f32.gmra.mrb[148].mxu1 %vm1194_vm8, %v4363_v15 }
 0x71f   : >> { %14710 = vmatprep.mubr.msk.f32.mxu1 %vm1194_vm8, %v4364_v27 }
 0x720   : >> { %15932 = vmatpush3.bf16.msra.mxu0 %v15929_v29  ;;  %v4412_v29 = vld [vmem:[#allocation18 + $0x8f0] sm:$0xff] }
 0x721   : >> { %15934 = vmatprep.subr.bf16.mxu0 %v15933_v17 }
 0x722   : >> { %14711 = vmatmul.mubr.msk.f32.gmra.mrb[150].mxu1 %vm1194_vm8, %v4365_v18 }
 0x723   : >> { %14713 = vmatprep.mubr.msk.f32.mxu1 %vm1194_vm8, %v4366_v10  ;;  %v4106_v10 = vpop.permute.xlu1 %4105 }
 0x724   : >> { %15936 = vmatpush3.bf16.msra.mxu0 %v15933_v17 }
 0x726   : >> { %14714 = vmatmul.mubr.msk.f32.gmra.mrb[152].mxu1 %vm1194_vm8, %v4367_v26 }
 0x727   : >> { %14556 = vmatmul.mubr.msk.f32.vlgmr.msra.gmra.mrb[124].mxu0 %vm3119_vm13, %v18938_v14  ;;  %14716 = vmatprep.mubr.msk.f32.mxu1 %vm1194_vm8, %v4368_v36  ;;  %v4371_v14 = vld [vmem:[#allocation18 + $0x7a8] sm:$0xff] }
 0x728   : >> { %14558 = vmatprep.mubr.msk.f32.mxu0 %vm3119_vm13, %v18949_v46  ;;  %v4373_v46 = vld [vmem:[#allocation18 + $0x7b8] sm:$0xff] }
 0x72a   : >> { %14717 = vmatmul.mubr.msk.f32.gmra.mrb[154].mxu1 %vm1194_vm8, %v4369_v12  ;;  %v4101_v12 = vpop.permute.xlu0 %4100 }
 0x72b   : >> { %14559 = vmatmul.mubr.msk.f32.gmra.mrb[126].mxu0 %vm3119_vm13, %v18947_v16  ;;  %14719 = vmatprep.mubr.msk.f32.mxu1 %vm1194_vm8, %v4370_v41  ;;  %v4375_v16 = vld [vmem:[#allocation18 + $0x7c8] sm:$0xff] }
 0x72e   : >> { %14720 = vmatmul.mubr.msk.f32.gmra.mrb[156].mxu1 %vm1194_vm8, %v4371_v14 }
 0x72f   : >> { %14722 = vmatprep.mubr.msk.f32.mxu1 %vm1194_vm8, %v4372_v61 }
 0x732   : >> { %14723 = vmatmul.mubr.msk.f32.gmra.mrb[158].mxu1 %vm1194_vm8, %v4373_v46 }
 0x733   : >> { %14725 = vmatprep.mubr.msk.f32.mxu1 %vm1194_vm8, %v4374_v37 }
 0x736   : >> { %14726 = vmatmul.mubr.msk.f32.gmra.mrb[160].mxu1 %vm1194_vm8, %v4375_v16 }
 0x737   : >> { %14728 = vmatprep.mubr.msk.f32.mxu1 %vm1194_vm8, %v4376_v42 }
 0x73a   : >> { %14729 = vmatmul.mubr.msk.f32.gmra.mrb[162].mxu1 %vm1194_vm8, %v4377_v38 }
 0x73b   : >> { %14731 = vmatprep.mubr.msk.f32.mxu1 %vm1194_vm8, %v4378_v63 }
 0x73e   : >> { %14732 = vmatmul.mubr.msk.f32.gmra.mrb[164].mxu1 %vm1194_vm8, %v4379_v48 }
 0x73f   : >> { %14734 = vmatprep.mubr.msk.f32.mxu1 %vm1194_vm8, %v4380_v55 }
 0x742   : >> { %14735 = vmatmul.mubr.msk.f32.gmra.mrb[166].mxu1 %vm1194_vm8, %v4381_v8  ;;  %v4126_v8 = vld [vmem:[#allocation17 + $0x488] sm:$0xff] }
 0x743   : >> { %14737 = vmatprep.mubr.msk.f32.mxu1 %vm1194_vm8, %v4382_v20  ;;  %v4127_v20 = vld [vmem:[#allocation17 + $0x490] sm:$0xff] }
 0x746   : >> { %14738 = vmatmul.mubr.msk.f32.gmra.mrb[168].mxu1 %vm1194_vm8, %v4383_v22  ;;  %v4128_v22 = vld [vmem:[#allocation17 + $0x498] sm:$0xff] }
 0x747   : >> { %14740 = vmatprep.mubr.msk.f32.mxu1 %vm1194_vm8, %v4384_v0  ;;  %v4129_v0 = vld [vmem:[#allocation17 + $0x4a0] sm:$0xff] }
 0x74a   : >> { %14741 = vmatmul.mubr.msk.f32.gmra.mrb[170].mxu1 %vm1194_vm8, %v4385_v47  ;;  %v4130_v47 = vld [vmem:[#allocation17 + $0x4a8] sm:$0xff] }
 0x74b   : >> { %14743 = vmatprep.mubr.msk.f32.mxu1 %vm1194_vm8, %v4386_v39  ;;  %v4131_v39 = vld [vmem:[#allocation17 + $0x4b0] sm:$0xff] }
 0x74e   : >> { %14744 = vmatmul.mubr.msk.f32.gmra.mrb[172].mxu1 %vm1194_vm8, %v4387_v34  ;;  %v4132_v34 = vld [vmem:[#allocation17 + $0x4b8] sm:$0xff] }
 0x74f   : >> { %14746 = vmatprep.mubr.msk.f32.mxu1 %vm1194_vm8, %v4388_v31  ;;  %v4133_v31 = vld [vmem:[#allocation17 + $0x4c0] sm:$0xff] }
 0x752   : >> { %14747 = vmatmul.mubr.msk.f32.gmra.mrb[174].mxu1 %vm1194_vm8, %v4389_v32  ;;  %v4134_v32 = vld [vmem:[#allocation17 + $0x4c8] sm:$0xff] }
 0x753   : >> { %14749 = vmatprep.mubr.msk.f32.mxu1 %vm1194_vm8, %v4390_v25  ;;  %v4135_v25 = vld [vmem:[#allocation17 + $0x4d0] sm:$0xff] }
 0x756   : >> { %14750 = vmatmul.mubr.msk.f32.gmra.mrb[176].mxu1 %vm1194_vm8, %v4391_v11  ;;  %v4136_v11 = vld [vmem:[#allocation17 + $0x4d8] sm:$0xff] }
 0x757   : >> { %14752 = vmatprep.mubr.msk.f32.mxu1 %vm1194_vm8, %v4392_v7  ;;  %v4137_v7 = vld [vmem:[#allocation17 + $0x4e0] sm:$0xff] }
 0x75a   : >> { %14753 = vmatmul.mubr.msk.f32.gmra.mrb[178].mxu1 %vm1194_vm8, %v4393_v5  ;;  %v4138_v5 = vld [vmem:[#allocation17 + $0x4e8] sm:$0xff] }
 0x75b   : >> { %14755 = vmatprep.mubr.msk.f32.mxu1 %vm1194_vm8, %v4394_v6  ;;  %v4139_v6 = vld [vmem:[#allocation17 + $0x4f0] sm:$0xff] }
 0x75e   : >> { %14756 = vmatmul.mubr.msk.f32.gmra.mrb[180].mxu1 %vm1194_vm8, %v4395_v21  ;;  %v4140_v21 = vld [vmem:[#allocation17 + $0x4f8] sm:$0xff] }
 0x75f   : >> { %14758 = vmatprep.mubr.msk.f32.mxu1 %vm1194_vm8, %v4396_v33  ;;  %v4141_v33 = vld [vmem:[#allocation17 + $0x500] sm:$0xff] }
 0x762   : >> { %14759 = vmatmul.mubr.msk.f32.gmra.mrb[182].mxu1 %vm1194_vm8, %v4397_v53  ;;  %v4142_v53 = vld [vmem:[#allocation17 + $0x508] sm:$0xff] }
 0x763   : >> { %14761 = vmatprep.mubr.msk.f32.mxu1 %vm1194_vm8, %v4398_v30  ;;  %v4143_v30 = vld [vmem:[#allocation17 + $0x510] sm:$0xff] }
 0x766   : >> { %14762 = vmatmul.mubr.msk.f32.gmra.mrb[184].mxu1 %vm1194_vm8, %v4399_v51  ;;  %v4144_v51 = vld [vmem:[#allocation17 + $0x518] sm:$0xff] }
 0x767   : >> { %14764 = vmatprep.mubr.msk.f32.mxu1 %vm1194_vm8, %v4400_v35  ;;  %v4145_v35 = vld [vmem:[#allocation17 + $0x520] sm:$0xff] }
 0x76a   : >> { %14765 = vmatmul.mubr.msk.f32.gmra.mrb[186].mxu1 %vm1194_vm8, %v4401_v52  ;;  %v4146_v52 = vld [vmem:[#allocation17 + $0x528] sm:$0xff] }
 0x76b   : >> { %14767 = vmatprep.mubr.msk.f32.mxu1 %vm1194_vm8, %v4402_v28  ;;  %v4147_v28 = vld [vmem:[#allocation17 + $0x530] sm:$0xff] }
 0x76e   : >> { %14768 = vmatmul.mubr.msk.f32.gmra.mrb[188].mxu1 %vm1194_vm8, %v4403_v23  ;;  %v4148_v23 = vld [vmem:[#allocation17 + $0x538] sm:$0xff] }
 0x76f   : >> { %14770 = vmatprep.mubr.msk.f32.mxu1 %vm1194_vm8, %v4404_v43  ;;  %v4149_v43 = vld [vmem:[#allocation17 + $0x540] sm:$0xff] }
 0x772   : >> { %14771 = vmatmul.mubr.msk.f32.gmra.mrb[190].mxu1 %vm1194_vm8, %v4405_v19  ;;  %v4150_v19 = vld [vmem:[#allocation17 + $0x548] sm:$0xff] }
 0x773   : >> { %14773 = vmatprep.mubr.msk.f32.mxu1 %vm1194_vm8, %v4406_v40  ;;  %v4151_v40 = vld [vmem:[#allocation17 + $0x550] sm:$0xff] }
 0x776   : >> { %14774 = vmatmul.mubr.msk.f32.gmra.mrb[192].mxu1 %vm1194_vm8, %v4407_v50  ;;  %v4152_v50 = vld [vmem:[#allocation17 + $0x558] sm:$0xff] }
 0x777   : >> { %14776 = vmatprep.mubr.msk.f32.mxu1 %vm1194_vm8, %v4408_v49  ;;  %v4153_v49 = vld [vmem:[#allocation17 + $0x560] sm:$0xff] }
 0x77a   : >> { %14777 = vmatmul.mubr.msk.f32.gmra.mrb[194].mxu1 %vm1194_vm8, %v4409_v9  ;;  %v4154_v9 = vld [vmem:[#allocation17 + $0x568] sm:$0xff] }
 0x77b   : >> { %14779 = vmatprep.mubr.msk.f32.mxu1 %vm1194_vm8, %v4410_v13  ;;  %v4155_v13 = vld [vmem:[#allocation17 + $0x570] sm:$0xff] }
 0x77e   : >> { %14780 = vmatmul.mubr.msk.f32.gmra.mrb[196].mxu1 %vm1194_vm8, %v4411_v59  ;;  %v4156_v59 = vld [vmem:[#allocation17 + $0x578] sm:$0xff] }
 0x77f   : >> { %14782 = vmatprep.mubr.msk.f32.mxu1 %vm1194_vm8, %v4412_v29  ;;  %v4157_v29 = vld [vmem:[#allocation17 + $0x580] sm:$0xff] }
 0x782   : >> { %14783 = vmatmul.mubr.msk.f32.gmra.mrb[198].mxu1 %vm1194_vm8, %v4413_v62  ;;  %v4158_v62 = vld [vmem:[#allocation17 + $0x588] sm:$0xff] }
 0x783   : >> { %14793 = vmatprep.mubr.msk.f32.mxu1 %vm1194_vm8, %v4125_v44  ;;  %v4159_v44 = vld [vmem:[#allocation17 + $0x590] sm:$0xff] }
 0x7fa   : >> { %v14557_v17 = vpop.f32.mrb[124].mxu0 }
 0x7fb   : >> { %v4109_v45 = vadd.f32 %v14557_v17, %v4096_v54  ;;  %v4061_v15 = vpop.f32.mrb[125].mxu0  ;;  %v4160_v54 = vld [vmem:[#allocation17 + $0x598] sm:$0xff]  ;;  %v4162_v17 = vld [vmem:[#allocation17 + $0x5a8] sm:$0xff] }
 0x7fc   : >> { %v4108_v27 = vadd.f32 %v4091_v60, %v4061_v15  ;;  %v4161_v60 = vld [vmem:[#allocation17 + $0x5a0] sm:$0xff]  ;;  %v4164_v15 = vld [vmem:[#allocation17 + $0x5b8] sm:$0xff] }
 0x7fd   : >> { %vm4113_vm14 = vcmp.ge.f32.partialorder %v4109_v45, 0.0  ;;  %v4117_v18 = vmul.f32 0.1, %v4109_v45 }
 0x7fe   : >> { %vm4112_vm15 = vcmp.ge.f32.partialorder %v4108_v27, 0.0  ;;  %v4116_v26 = vmul.f32 0.1, %v4108_v27  ;;  %v14560_v36 = vpop.f32.mrb[126].mxu0 }
 0x7ff   : >> { %v4111_v41 = vadd.f32 %v14560_v36, %v4106_v10  ;;  %v4071_v14 = vpop.f32.mrb[127].mxu0  ;;  %v4121_v61 = vsel %vm4113_vm14, %v4109_v45, %v4117_v18  ;;  %v4163_v45 = vld [vmem:[#allocation17 + $0x5b0] sm:$0xff]  ;;  %v4166_v18 = vld [vmem:[#allocation17 + $0x5c8] sm:$0xff]  ;;  %v4169_v36 = vld [vmem:[#allocation17 + $0x5e0] sm:$0xff] }
 0x800   : >> { %v4110_v46 = vadd.f32 %v4101_v12, %v4071_v14  ;;  %v4120_v37 = vsel %vm4112_vm15, %v4108_v27, %v4116_v26  ;;  %v4165_v27 = vld [vmem:[#allocation17 + $0x5c0] sm:$0xff]  ;;  %v4167_v10 = vld [vmem:[#allocation17 + $0x5d0] sm:$0xff]  ;;  %v4168_v26 = vld [vmem:[#allocation17 + $0x5d8] sm:$0xff] }
 0x801   : >> { %vm4115_vm0 = vcmp.ge.f32.partialorder %v4111_v41, 0.0  ;;  %v4119_v16 = vmul.f32 0.1, %v4111_v41  ;;  %v15945_v42 = vpack.c.bf16 %v4121_v61, %v4120_v37  ;;  %v4170_v12 = vld [vmem:[#allocation17 + $0x5e8] sm:$0xff]  ;;  %v4172_v14 = vld [vmem:[#allocation17 + $0x5f8] sm:$0xff]  ;;  %v4173_v61 = vld [vmem:[#allocation17 + $0x600] sm:$0xff] }
 0x802   : >> { %vm4114_vm1 = vcmp.ge.f32.partialorder %v4110_v46, 0.0  ;;  %v4118_v38 = vmul.f32 0.1, %v4110_v46  ;;  %v4175_v37 = vld [vmem:[#allocation17 + $0x610] sm:$0xff] }
 0x803   : >> { %15946 = vmatprep.subr.bf16.mxu1 %v15945_v42  ;;  %v4123_v63 = vsel %vm4115_vm0, %v4111_v41, %v4119_v16  ;;  %v4171_v41 = vld [vmem:[#allocation17 + $0x5f0] sm:$0xff]  ;;  %v4176_v16 = vld [vmem:[#allocation17 + $0x618] sm:$0xff]  ;;  %vm12082_vm0 = vcmp.lt.s32.totalorder %v1076_v56, 256 }
 0x804   : >> { %15948 = vmatpush3.bf16.msra.mxu1 %v15945_v42  ;;  %v4122_v48 = vsel %vm4114_vm1, %v4110_v46, %v4118_v38  ;;  %v4174_v46 = vld [vmem:[#allocation17 + $0x608] sm:$0xff]  ;;  %v4177_v42 = vld [vmem:[#allocation17 + $0x620] sm:$0xff] }
 0x805   : >> { %v15949_v55 = vpack.c.bf16 %v4123_v63, %v4122_v48  ;;  %v4178_v38 = vld [vmem:[#allocation17 + $0x628] sm:$0xff]  ;;  %v4179_v63 = vld [vmem:[#allocation17 + $0x630] sm:$0xff]  ;;  %v4180_v48 = vld [vmem:[#allocation17 + $0x638] sm:$0xff] }
 0x807   : >> { %15950 = vmatprep.subr.bf16.mxu1 %v15949_v55 }
 0x808   : >> { %15952 = vmatpush3.bf16.msra.mxu1 %v15949_v55  ;;  %v4181_v55 = vld [vmem:[#allocation17 + $0x640] sm:$0xff] }
 0x80b   : >> { %14794 = vmatmul.mubr.msk.f32.vlgmr.msra.gmra.mrb[56].mxu1 %vm1194_vm8, %v4126_v8  ;;  %v4182_v8 = vld [vmem:[#allocation17 + $0x648] sm:$0xff] }
 0x80c   : >> { %14796 = vmatprep.mubr.msk.f32.mxu1 %vm1194_vm8, %v4127_v20  ;;  %v4183_v20 = vld [vmem:[#allocation17 + $0x650] sm:$0xff] }
 0x80f   : >> { %14797 = vmatmul.mubr.msk.f32.gmra.mrb[58].mxu1 %vm1194_vm8, %v4128_v22  ;;  %v6851_v22 = vld [vmem:[#allocation15 + $0x10] sm:$0xff] }
 0x810   : >> { %14799 = vmatprep.mubr.msk.f32.mxu1 %vm1194_vm8, %v4129_v0  ;;  %v6852_v0 = vld [vmem:[#allocation15 + $0x18] sm:$0xff] }
 0x813   : >> { %14800 = vmatmul.mubr.msk.f32.gmra.mrb[60].mxu1 %vm1194_vm8, %v4130_v47  ;;  %v15953_v47 = vpack.c.bf16 %v6852_v0, %v6851_v22 }
 0x814   : >> { %14802 = vmatprep.mubr.msk.f32.mxu1 %vm1194_vm8, %v4131_v39  ;;  %v4184_v39 = vld [vmem:[#allocation17 + $0x658] sm:$0xff] }
 0x815   : >> { %15954 = vmatprep.subr.bf16.mxu0 %v15953_v47 }
 0x816   : >> { %15956 = vmatpush3.bf16.msra.mxu0 %v15953_v47  ;;  %v4234_v47 = vld [vmem:[#allocation17 + $0x7e8] sm:$0xff] }
 0x817   : >> { %14803 = vmatmul.mubr.msk.f32.gmra.mrb[62].mxu1 %vm1194_vm8, %v4132_v34  ;;  %v4185_v34 = vld [vmem:[#allocation17 + $0x660] sm:$0xff] }
 0x818   : >> { %14805 = vmatprep.mubr.msk.f32.mxu1 %vm1194_vm8, %v4133_v31  ;;  %v4186_v31 = vld [vmem:[#allocation17 + $0x668] sm:$0xff] }
 0x81b   : >> { %14806 = vmatmul.mubr.msk.f32.gmra.mrb[64].mxu1 %vm1194_vm8, %v4134_v32  ;;  %v4187_v32 = vld [vmem:[#allocation17 + $0x670] sm:$0xff] }
 0x81c   : >> { %14808 = vmatprep.mubr.msk.f32.mxu1 %vm1194_vm8, %v4135_v25  ;;  %v4188_v25 = vld [vmem:[#allocation17 + $0x678] sm:$0xff] }
 0x81f   : >> { %14809 = vmatmul.mubr.msk.f32.gmra.mrb[66].mxu1 %vm1194_vm8, %v4136_v11  ;;  %v4189_v11 = vld [vmem:[#allocation17 + $0x680] sm:$0xff] }
 0x820   : >> { %14811 = vmatprep.mubr.msk.f32.mxu1 %vm1194_vm8, %v4137_v7  ;;  %v4190_v7 = vld [vmem:[#allocation17 + $0x688] sm:$0xff] }
 0x823   : >> { %14812 = vmatmul.mubr.msk.f32.gmra.mrb[68].mxu1 %vm1194_vm8, %v4138_v5  ;;  %v4191_v5 = vld [vmem:[#allocation17 + $0x690] sm:$0xff] }
 0x824   : >> { %14814 = vmatprep.mubr.msk.f32.mxu1 %vm1194_vm8, %v4139_v6  ;;  %v4192_v6 = vld [vmem:[#allocation17 + $0x698] sm:$0xff] }
 0x827   : >> { %14815 = vmatmul.mubr.msk.f32.gmra.mrb[70].mxu1 %vm1194_vm8, %v4140_v21  ;;  %v4193_v21 = vld [vmem:[#allocation17 + $0x6a0] sm:$0xff] }
 0x828   : >> { %14817 = vmatprep.mubr.msk.f32.mxu1 %vm1194_vm8, %v4141_v33  ;;  %v4194_v33 = vld [vmem:[#allocation17 + $0x6a8] sm:$0xff] }
 0x82b   : >> { %14818 = vmatmul.mubr.msk.f32.gmra.mrb[72].mxu1 %vm1194_vm8, %v4142_v53  ;;  %v4195_v53 = vld [vmem:[#allocation17 + $0x6b0] sm:$0xff] }
 0x82c   : >> { %14820 = vmatprep.mubr.msk.f32.mxu1 %vm1194_vm8, %v4143_v30  ;;  %v4196_v30 = vld [vmem:[#allocation17 + $0x6b8] sm:$0xff] }
 0x82f   : >> { %14821 = vmatmul.mubr.msk.f32.gmra.mrb[74].mxu1 %vm1194_vm8, %v4144_v51  ;;  %v4197_v51 = vld [vmem:[#allocation17 + $0x6c0] sm:$0xff] }
 0x830   : >> { %14823 = vmatprep.mubr.msk.f32.mxu1 %vm1194_vm8, %v4145_v35  ;;  %v4198_v35 = vld [vmem:[#allocation17 + $0x6c8] sm:$0xff] }
 0x833   : >> { %14824 = vmatmul.mubr.msk.f32.gmra.mrb[76].mxu1 %vm1194_vm8, %v4146_v52  ;;  %v4199_v52 = vld [vmem:[#allocation17 + $0x6d0] sm:$0xff] }
 0x834   : >> { %14826 = vmatprep.mubr.msk.f32.mxu1 %vm1194_vm8, %v4147_v28  ;;  %v6848_v28 = vld [vmem:[#allocation15] sm:$0xff] }
 0x837   : >> { %14827 = vmatmul.mubr.msk.f32.gmra.mrb[78].mxu1 %vm1194_vm8, %v4148_v23  ;;  %v6849_v23 = vld [vmem:[#allocation15 + $0x8] sm:$0xff] }
 0x838   : >> { %14829 = vmatprep.mubr.msk.f32.mxu1 %vm1194_vm8, %v4149_v43  ;;  %v19239_v43 = vpack.c.bf16 %v6849_v23, %v6848_v28  ;;  %v4243_v28 = vld [vmem:[#allocation17 + $0x830] sm:$0xff] }
 0x83a   : >> { %15958 = vmatprep.subr.bf16.mxu0 %v19239_v43 }
 0x83b   : >> { %14830 = vmatmul.mubr.msk.f32.gmra.mrb[80].mxu1 %vm1194_vm8, %v4150_v19  ;;  %v4200_v19 = vld [vmem:[#allocation17 + $0x6d8] sm:$0xff] }
 0x83c   : >> { %14832 = vmatprep.mubr.msk.f32.mxu1 %vm1194_vm8, %v4151_v40  ;;  %v4201_v40 = vld [vmem:[#allocation17 + $0x6e0] sm:$0xff] }
 0x83f   : >> { %14833 = vmatmul.mubr.msk.f32.gmra.mrb[82].mxu1 %vm1194_vm8, %v4152_v50  ;;  %v4202_v50 = vld [vmem:[#allocation17 + $0x6e8] sm:$0xff] }
 0x840   : >> { %14835 = vmatprep.mubr.msk.f32.mxu1 %vm1194_vm8, %v4153_v49  ;;  %v4203_v49 = vld [vmem:[#allocation17 + $0x6f0] sm:$0xff] }
 0x843   : >> { %14836 = vmatmul.mubr.msk.f32.gmra.mrb[84].mxu1 %vm1194_vm8, %v4154_v9  ;;  %v4204_v9 = vld [vmem:[#allocation17 + $0x6f8] sm:$0xff] }
 0x844   : >> { %14838 = vmatprep.mubr.msk.f32.mxu1 %vm1194_vm8, %v4155_v13  ;;  %v4205_v13 = vld [vmem:[#allocation17 + $0x700] sm:$0xff] }
 0x847   : >> { %14839 = vmatmul.mubr.msk.f32.gmra.mrb[86].mxu1 %vm1194_vm8, %v4156_v59  ;;  %v4206_v59 = vld [vmem:[#allocation17 + $0x708] sm:$0xff] }
 0x848   : >> { %14841 = vmatprep.mubr.msk.f32.mxu1 %vm1194_vm8, %v4157_v29  ;;  %v4207_v29 = vld [vmem:[#allocation17 + $0x710] sm:$0xff] }
 0x84b   : >> { %14842 = vmatmul.mubr.msk.f32.gmra.mrb[88].mxu1 %vm1194_vm8, %v4158_v62  ;;  %v4208_v62 = vld [vmem:[#allocation17 + $0x718] sm:$0xff] }
 0x84c   : >> { %14844 = vmatprep.mubr.msk.f32.mxu1 %vm1194_vm8, %v4159_v44  ;;  %v4209_v44 = vld [vmem:[#allocation17 + $0x720] sm:$0xff] }
 0x84f   : >> { %14845 = vmatmul.mubr.msk.f32.gmra.mrb[90].mxu1 %vm1194_vm8, %v4160_v54  ;;  %v4210_v54 = vld [vmem:[#allocation17 + $0x728] sm:$0xff] }
 0x850   : >> { %14847 = vmatprep.mubr.msk.f32.mxu1 %vm1194_vm8, %v4161_v60  ;;  %v4211_v60 = vld [vmem:[#allocation17 + $0x730] sm:$0xff] }
 0x853   : >> { %14848 = vmatmul.mubr.msk.f32.gmra.mrb[92].mxu1 %vm1194_vm8, %v4162_v17  ;;  %v4212_v17 = vld [vmem:[#allocation17 + $0x738] sm:$0xff] }
 0x854   : >> { %14850 = vmatprep.mubr.msk.f32.mxu1 %vm1194_vm8, %v4163_v45  ;;  %v4213_v45 = vld [vmem:[#allocation17 + $0x740] sm:$0xff] }
 0x857   : >> { %14851 = vmatmul.mubr.msk.f32.gmra.mrb[94].mxu1 %vm1194_vm8, %v4164_v15  ;;  %v4214_v15 = vld [vmem:[#allocation17 + $0x748] sm:$0xff] }
 0x858   : >> { %14853 = vmatprep.mubr.msk.f32.mxu1 %vm1194_vm8, %v4165_v27  ;;  %v4215_v27 = vld [vmem:[#allocation17 + $0x750] sm:$0xff] }
 0x85b   : >> { %14854 = vmatmul.mubr.msk.f32.gmra.mrb[96].mxu1 %vm1194_vm8, %v4166_v18  ;;  %v4216_v18 = vld [vmem:[#allocation17 + $0x758] sm:$0xff] }
 0x85c   : >> { %14856 = vmatprep.mubr.msk.f32.mxu1 %vm1194_vm8, %v4167_v10  ;;  %v4217_v10 = vld [vmem:[#allocation17 + $0x760] sm:$0xff] }
 0x85f   : >> { %14857 = vmatmul.mubr.msk.f32.gmra.mrb[98].mxu1 %vm1194_vm8, %v4168_v26  ;;  %v4218_v26 = vld [vmem:[#allocation17 + $0x768] sm:$0xff] }
 0x860   : >> { %14859 = vmatprep.mubr.msk.f32.mxu1 %vm1194_vm8, %v4169_v36  ;;  %v4219_v36 = vld [vmem:[#allocation17 + $0x770] sm:$0xff] }
 0x863   : >> { %14860 = vmatmul.mubr.msk.f32.gmra.mrb[100].mxu1 %vm1194_vm8, %v4170_v12  ;;  %v4220_v12 = vld [vmem:[#allocation17 + $0x778] sm:$0xff] }
 0x864   : >> { %14862 = vmatprep.mubr.msk.f32.mxu1 %vm1194_vm8, %v4171_v41  ;;  %v4221_v41 = vld [vmem:[#allocation17 + $0x780] sm:$0xff] }
 0x867   : >> { %14863 = vmatmul.mubr.msk.f32.gmra.mrb[102].mxu1 %vm1194_vm8, %v4172_v14  ;;  %v4222_v14 = vld [vmem:[#allocation17 + $0x788] sm:$0xff] }
 0x868   : >> { %14865 = vmatprep.mubr.msk.f32.mxu1 %vm1194_vm8, %v4173_v61  ;;  %v4223_v61 = vld [vmem:[#allocation17 + $0x790] sm:$0xff] }
 0x86b   : >> { %14866 = vmatmul.mubr.msk.f32.gmra.mrb[104].mxu1 %vm1194_vm8, %v4174_v46  ;;  %v4224_v46 = vld [vmem:[#allocation17 + $0x798] sm:$0xff] }
 0x86c   : >> { %14868 = vmatprep.mubr.msk.f32.mxu1 %vm1194_vm8, %v4175_v37  ;;  %v4225_v37 = vld [vmem:[#allocation17 + $0x7a0] sm:$0xff] }
 0x86f   : >> { %14869 = vmatmul.mubr.msk.f32.gmra.mrb[106].mxu1 %vm1194_vm8, %v4176_v16  ;;  %v4226_v16 = vld [vmem:[#allocation17 + $0x7a8] sm:$0xff] }
 0x870   : >> { %14871 = vmatprep.mubr.msk.f32.mxu1 %vm1194_vm8, %v4177_v42  ;;  %v4227_v42 = vld [vmem:[#allocation17 + $0x7b0] sm:$0xff] }
 0x873   : >> { %14872 = vmatmul.mubr.msk.f32.gmra.mrb[108].mxu1 %vm1194_vm8, %v4178_v38  ;;  %v4228_v38 = vld [vmem:[#allocation17 + $0x7b8] sm:$0xff] }
 0x874   : >> { %14874 = vmatprep.mubr.msk.f32.mxu1 %vm1194_vm8, %v4179_v63  ;;  %v4229_v63 = vld [vmem:[#allocation17 + $0x7c0] sm:$0xff] }
 0x877   : >> { %14875 = vmatmul.mubr.msk.f32.gmra.mrb[110].mxu1 %vm1194_vm8, %v4180_v48  ;;  %v4230_v48 = vld [vmem:[#allocation17 + $0x7c8] sm:$0xff] }
 0x878   : >> { %14877 = vmatprep.mubr.msk.f32.mxu1 %vm1194_vm8, %v4181_v55  ;;  %v4231_v55 = vld [vmem:[#allocation17 + $0x7d0] sm:$0xff] }
 0x87b   : >> { %14878 = vmatmul.mubr.msk.f32.gmra.mrb[112].mxu1 %vm1194_vm8, %v4182_v8  ;;  %v4232_v8 = vld [vmem:[#allocation17 + $0x7d8] sm:$0xff] }
 0x87c   : >> { %14880 = vmatprep.mubr.msk.f32.mxu1 %vm1194_vm8, %v4183_v20  ;;  %v4233_v20 = vld [vmem:[#allocation17 + $0x7e0] sm:$0xff] }
 0x87f   : >> { %14881 = vmatmul.mubr.msk.f32.gmra.mrb[114].mxu1 %vm1194_vm8, %v4184_v39  ;;  %v4235_v39 = vld [vmem:[#allocation17 + $0x7f0] sm:$0xff] }
 0x880   : >> { %14883 = vmatprep.mubr.msk.f32.mxu1 %vm1194_vm8, %v4185_v34 }
 0x883   : >> { %14884 = vmatmul.mubr.msk.f32.gmra.mrb[116].mxu1 %vm1194_vm8, %v4186_v31 }
 0x884   : >> { %14886 = vmatprep.mubr.msk.f32.mxu1 %vm1194_vm8, %v4187_v32  ;;  %v4236_v32 = vld [vmem:[#allocation17 + $0x7f8] sm:$0xff] }
 0x887   : >> { %14887 = vmatmul.mubr.msk.f32.gmra.mrb[118].mxu1 %vm1194_vm8, %v4188_v25  ;;  %v4237_v25 = vld [vmem:[#allocation17 + $0x800] sm:$0xff] }
 0x888   : >> { %14889 = vmatprep.mubr.msk.f32.mxu1 %vm1194_vm8, %v4189_v11 }
 0x88b   : >> { %14890 = vmatmul.mubr.msk.f32.gmra.mrb[120].mxu1 %vm1194_vm8, %v4190_v7 }
 0x88c   : >> { %14892 = vmatprep.mubr.msk.f32.mxu1 %vm1194_vm8, %v4191_v5  ;;  %v4238_v5 = vld [vmem:[#allocation17 + $0x808] sm:$0xff] }
 0x88f   : >> { %14893 = vmatmul.mubr.msk.f32.gmra.mrb[122].mxu1 %vm1194_vm8, %v4192_v6  ;;  %v4239_v6 = vld [vmem:[#allocation17 + $0x810] sm:$0xff] }
 0x890   : >> { %14895 = vmatprep.mubr.msk.f32.mxu1 %vm1194_vm8, %v4193_v21 }
 0x893   : >> { %14896 = vmatmul.mubr.msk.f32.gmra.mrb[124].mxu1 %vm1194_vm8, %v4194_v33 }
 0x894   : >> { %14898 = vmatprep.mubr.msk.f32.mxu1 %vm1194_vm8, %v4195_v53  ;;  %v4240_v53 = vld [vmem:[#allocation17 + $0x818] sm:$0xff] }
 0x897   : >> { %14899 = vmatmul.mubr.msk.f32.gmra.mrb[126].mxu1 %vm1194_vm8, %v4196_v30  ;;  %v4241_v30 = vld [vmem:[#allocation17 + $0x820] sm:$0xff] }
 0x898   : >> { %14901 = vmatprep.mubr.msk.f32.mxu1 %vm1194_vm8, %v4197_v51 }
 0x89b   : >> { %14902 = vmatmul.mubr.msk.f32.gmra.mrb[128].mxu1 %vm1194_vm8, %v4198_v35 }
 0x89c   : >> { %14904 = vmatprep.mubr.msk.f32.mxu1 %vm1194_vm8, %v4199_v52  ;;  %v4242_v52 = vld [vmem:[#allocation17 + $0x828] sm:$0xff] }
 0x89f   : >> { %14905 = vmatmul.mubr.msk.f32.gmra.mrb[130].mxu1 %vm1194_vm8, %v4200_v19 }
 0x8a0   : >> { %14907 = vmatprep.mubr.msk.f32.mxu1 %vm1194_vm8, %v4201_v40  ;;  %v4244_v40 = vld [vmem:[#allocation17 + $0x838] sm:$0xff] }
 0x8a3   : >> { %14908 = vmatmul.mubr.msk.f32.gmra.mrb[132].mxu1 %vm1194_vm8, %v4202_v50  ;;  %v4245_v50 = vld [vmem:[#allocation17 + $0x840] sm:$0xff] }
 0x8a4   : >> { %14910 = vmatprep.mubr.msk.f32.mxu1 %vm1194_vm8, %v4203_v49 }
 0x8a7   : >> { %14911 = vmatmul.mubr.msk.f32.gmra.mrb[134].mxu1 %vm1194_vm8, %v4204_v9 }
 0x8a8   : >> { %14913 = vmatprep.mubr.msk.f32.mxu1 %vm1194_vm8, %v4205_v13  ;;  %v4246_v13 = vld [vmem:[#allocation17 + $0x848] sm:$0xff] }
 0x8ab   : >> { %14914 = vmatmul.mubr.msk.f32.gmra.mrb[136].mxu1 %vm1194_vm8, %v4206_v59  ;;  %v4247_v59 = vld [vmem:[#allocation17 + $0x850] sm:$0xff] }
 0x8ac   : >> { %14916 = vmatprep.mubr.msk.f32.mxu1 %vm1194_vm8, %v4207_v29 }
 0x8af   : >> { %14917 = vmatmul.mubr.msk.f32.gmra.mrb[138].mxu1 %vm1194_vm8, %v4208_v62 }
 0x8b0   : >> { %14919 = vmatprep.mubr.msk.f32.mxu1 %vm1194_vm8, %v4209_v44  ;;  %v4248_v44 = vld [vmem:[#allocation17 + $0x858] sm:$0xff] }
 0x8b3   : >> { %14920 = vmatmul.mubr.msk.f32.gmra.mrb[140].mxu1 %vm1194_vm8, %v4210_v54  ;;  %v7241_v54 = vld [vmem:[#allocation15 + $0x20] sm:$0xff] }
 0x8b4   : >> { %14922 = vmatprep.mubr.msk.f32.mxu1 %vm1194_vm8, %v4211_v60  ;;  %v7242_v60 = vld [vmem:[#allocation15 + $0x28] sm:$0xff] }
 0x8b7   : >> { %14923 = vmatmul.mubr.msk.f32.gmra.mrb[142].mxu1 %vm1194_vm8, %v4212_v17  ;;  %v4249_v17 = vld [vmem:[#allocation17 + $0x860] sm:$0xff] }
 0x8b8   : >> { %14925 = vmatprep.mubr.msk.f32.mxu1 %vm1194_vm8, %v4213_v45 }
 0x8bb   : >> { %14926 = vmatmul.mubr.msk.f32.gmra.mrb[144].mxu1 %vm1194_vm8, %v4214_v15 }
 0x8bc   : >> { %14928 = vmatprep.mubr.msk.f32.mxu1 %vm1194_vm8, %v4215_v27  ;;  %v19324_v27 = vpack.c.bf16 %v7242_v60, %v7241_v54  ;;  %v4266_v60 = vld [vmem:[#allocation17 + $0x8e8] sm:$0xff] }
 0x8bf   : >> { %14929 = vmatmul.mubr.msk.f32.gmra.mrb[146].mxu1 %vm1194_vm8, %v4216_v18  ;;  %v4250_v18 = vld [vmem:[#allocation17 + $0x868] sm:$0xff] }
 0x8c0   : >> { %14931 = vmatprep.mubr.msk.f32.mxu1 %vm1194_vm8, %v4217_v10  ;;  %v4251_v10 = vld [vmem:[#allocation17 + $0x870] sm:$0xff] }
 0x8c3   : >> { %14932 = vmatmul.mubr.msk.f32.gmra.mrb[148].mxu1 %vm1194_vm8, %v4218_v26 }
 0x8c4   : >> { %14934 = vmatprep.mubr.msk.f32.mxu1 %vm1194_vm8, %v4219_v36 }
 0x8c7   : >> { %14935 = vmatmul.mubr.msk.f32.gmra.mrb[150].mxu1 %vm1194_vm8, %v4220_v12  ;;  %v4252_v12 = vld [vmem:[#allocation17 + $0x878] sm:$0xff] }
 0x8c8   : >> { %14937 = vmatprep.mubr.msk.f32.mxu1 %vm1194_vm8, %v4221_v41  ;;  %v4253_v41 = vld [vmem:[#allocation17 + $0x880] sm:$0xff] }
 0x8cb   : >> { %14938 = vmatmul.mubr.msk.f32.gmra.mrb[152].mxu1 %vm1194_vm8, %v4222_v14 }
 0x8cc   : >> { %14940 = vmatprep.mubr.msk.f32.mxu1 %vm1194_vm8, %v4223_v61 }
 0x8cf   : >> { %14941 = vmatmul.mubr.msk.f32.gmra.mrb[154].mxu1 %vm1194_vm8, %v4224_v46  ;;  %v4255_v46 = vld [vmem:[#allocation17 + $0x890] sm:$0xff] }
 0x8d0   : >> { %14943 = vmatprep.mubr.msk.f32.mxu1 %vm1194_vm8, %v4225_v37 }
 0x8d3   : >> { %14944 = vmatmul.mubr.msk.f32.gmra.mrb[156].mxu1 %vm1194_vm8, %v4226_v16 }
 0x8d4   : >> { %14946 = vmatprep.mubr.msk.f32.mxu1 %vm1194_vm8, %v4227_v42  ;;  %v4256_v42 = vld [vmem:[#allocation17 + $0x898] sm:$0xff] }
 0x8d7   : >> { %14947 = vmatmul.mubr.msk.f32.gmra.mrb[158].mxu1 %vm1194_vm8, %v4228_v38  ;;  %v4257_v38 = vld [vmem:[#allocation17 + $0x8a0] sm:$0xff] }
 0x8d8   : >> { %14949 = vmatprep.mubr.msk.f32.mxu1 %vm1194_vm8, %v4229_v63 }
 0x8db   : >> { %14950 = vmatmul.mubr.msk.f32.gmra.mrb[160].mxu1 %vm1194_vm8, %v4230_v48 }
 0x8dc   : >> { %14952 = vmatprep.mubr.msk.f32.mxu1 %vm1194_vm8, %v4231_v55  ;;  %v4258_v55 = vld [vmem:[#allocation17 + $0x8a8] sm:$0xff] }
 0x8de   : >> { %v19275_v22 = vpop.f32.mrb[56].mxu1 }
 0x8df   : >> { %v19277_v0 = vpop.f32.mrb[57].mxu1  ;;  %14953 = vmatmul.mubr.msk.f32.gmra.mrb[162].mxu1 %vm1194_vm8, %v4232_v8  ;;  %v4259_v8 = vld [vmem:[#allocation17 + $0x8b0] sm:$0xff] }
 0x8e0   : >> { %14955 = vmatprep.mubr.msk.f32.mxu1 %vm1194_vm8, %v4233_v20 }
 0x8e2   : >> { %v19281_v34 = vpop.f32.mrb[58].mxu1 }
 0x8e3   : >> { %v19283_v31 = vpop.f32.mrb[59].mxu1  ;;  %14956 = vmatmul.mubr.msk.f32.gmra.mrb[164].mxu1 %vm1194_vm8, %v4234_v47 }
 0x8e4   : >> { %14958 = vmatprep.mubr.msk.f32.mxu1 %vm1194_vm8, %v4235_v39  ;;  %v4260_v39 = vld [vmem:[#allocation17 + $0x8b8] sm:$0xff] }
 0x8e6   : >> { %v19287_v11 = vpop.f32.mrb[60].mxu1 }
 0x8e7   : >> { %v19289_v7 = vpop.f32.mrb[61].mxu1  ;;  %14959 = vmatmul.mubr.msk.f32.gmra.mrb[166].mxu1 %vm1194_vm8, %v4236_v32  ;;  %v4261_v32 = vld [vmem:[#allocation17 + $0x8c0] sm:$0xff] }
 0x8e8   : >> { %14961 = vmatprep.mubr.msk.f32.mxu1 %vm1194_vm8, %v4237_v25 }
 0x8ea   : >> { %v19293_v21 = vpop.f32.mrb[62].mxu1 }
 0x8eb   : >> { %v19295_v33 = vpop.f32.mrb[63].mxu1  ;;  %14962 = vmatmul.mubr.msk.f32.gmra.mrb[168].mxu1 %vm1194_vm8, %v4238_v5 }
 0x8ec   : >> { %14964 = vmatprep.mubr.msk.f32.mxu1 %vm1194_vm8, %v4239_v6  ;;  %v4262_v6 = vld [vmem:[#allocation17 + $0x8c8] sm:$0xff] }
 0x8ee   : >> { %v19299_v51 = vpop.f32.mrb[64].mxu1 }
 0x8ef   : >> { %v19301_v35 = vpop.f32.mrb[65].mxu1  ;;  %14965 = vmatmul.mubr.msk.f32.gmra.mrb[170].mxu1 %vm1194_vm8, %v4240_v53  ;;  %v4263_v53 = vld [vmem:[#allocation17 + $0x8d0] sm:$0xff] }
 0x8f0   : >> { %14967 = vmatprep.mubr.msk.f32.mxu1 %vm1194_vm8, %v4241_v30 }
 0x8f2   : >> { %v19305_v23 = vpop.f32.mrb[66].mxu1 }
 0x8f3   : >> { %v19307_v19 = vpop.f32.mrb[67].mxu1  ;;  %14968 = vmatmul.mubr.msk.f32.gmra.mrb[172].mxu1 %vm1194_vm8, %v4242_v52 }
 0x8f4   : >> { %14970 = vmatprep.mubr.msk.f32.mxu1 %vm1194_vm8, %v4243_v28  ;;  %v4264_v28 = vld [vmem:[#allocation17 + $0x8d8] sm:$0xff] }
 0x8f6   : >> { %v19311_v49 = vpop.f32.mrb[68].mxu1 }
 0x8f7   : >> { %v19313_v9 = vpop.f32.mrb[69].mxu1  ;;  %14971 = vmatmul.mubr.msk.f32.gmra.mrb[174].mxu1 %vm1194_vm8, %v4244_v40  ;;  %v7453_v40 = vld [vmem:[#allocation15 + $0x30] sm:$0xff] }
 0x8f8   : >> { %14973 = vmatprep.mubr.msk.f32.mxu1 %vm1194_vm8, %v4245_v50  ;;  %v7454_v50 = vld [vmem:[#allocation15 + $0x38] sm:$0xff] }
 0x8f9   : >> { %v15965_v54 = vpack.c.bf16 %v7454_v50, %v7453_v40 }
 0x8fa   : >> { %v19317_v29 = vpop.f32.mrb[70].mxu1 }
 0x8fb   : >> { %v19319_v62 = vpop.f32.mrb[71].mxu1  ;;  %14974 = vmatmul.mubr.msk.f32.gmra.mrb[176].mxu1 %vm1194_vm8, %v4246_v13  ;;  %v4265_v13 = vld [vmem:[#allocation17 + $0x8e0] sm:$0xff] }
 0x8fc   : >> { %14976 = vmatprep.mubr.msk.f32.mxu1 %vm1194_vm8, %v4247_v59 }
 0x8fe   : >> { %v14819_v45 = vpop.f32.mrb[72].mxu1 }
 0x8ff   : >> { %v6209_v15 = vpop.f32.mrb[73].mxu1  ;;  %14977 = vmatmul.mubr.msk.f32.gmra.mrb[178].mxu1 %vm1194_vm8, %v4248_v44 }
 0x900   : >> { %15013 = vmatprep.mubr.msk.f32.mxu0 %vm6853_vm2, %v6209_v15  ;;  %14979 = vmatprep.mubr.msk.f32.mxu1 %vm1194_vm8, %v4249_v17  ;;  %v4267_v17 = vld [vmem:[#allocation17 + $0x8f0] sm:$0xff] }
 0x901   : >> { %15014 = vmatmul.mubr.msk.f32.vlgmr.msra.gmra.mrb[128].mxu0 %vm6853_vm2, %v14819_v45 }
 0x902   : >> { %v14822_v26 = vpop.f32.mrb[74].mxu1  ;;  %15960 = vmatpush3.bf16.msra.mxu0 %v19239_v43  ;;  %v4254_v43 = vld [vmem:[#allocation17 + $0x888] sm:$0xff] }
 0x903   : >> { %v6219_v36 = vpop.f32.mrb[75].mxu1  ;;  %14980 = vmatmul.mubr.msk.f32.gmra.mrb[180].mxu1 %vm1194_vm8, %v4250_v18  ;;  %15962 = vmatprep.subr.bf16.mxu0 %v19324_v27 }
 0x904   : >> { %15016 = vmatprep.mubr.msk.f32.mxu0 %vm6853_vm2, %v6219_v36  ;;  %14982 = vmatprep.mubr.msk.f32.mxu1 %vm1194_vm8, %v4251_v10  ;;  %v7666_v36 = vld [vmem:[#allocation15 + $0x48] sm:$0xff] }
 0x905   : >> { %15017 = vmatmul.mubr.msk.f32.gmra.mrb[130].mxu0 %vm6853_vm2, %v14822_v26  ;;  %v7665_v26 = vld [vmem:[#allocation15 + $0x40] sm:$0xff] }
 0x906   : >> { %v14825_v14 = vpop.f32.mrb[76].mxu1 }
 0x907   : >> { %v6229_v61 = vpop.f32.mrb[77].mxu1  ;;  %14983 = vmatmul.mubr.msk.f32.gmra.mrb[182].mxu1 %vm1194_vm8, %v4252_v12  ;;  %v15969_v12 = vpack.c.bf16 %v7666_v36, %v7665_v26  ;;  %v8301_v36 = vld [vmem:[#allocation15 + $0x70] sm:$0xff] }
 0x908   : >> { %15019 = vmatprep.mubr.msk.f32.mxu0 %vm6853_vm2, %v6229_v61  ;;  %14985 = vmatprep.mubr.msk.f32.mxu1 %vm1194_vm8, %v4253_v41 }
 0x909   : >> { %15020 = vmatmul.mubr.msk.f32.gmra.mrb[132].mxu0 %vm6853_vm2, %v14825_v14 }
 0x90a   : >> { %v14828_v37 = vpop.f32.mrb[78].mxu1 }
 0x90b   : >> { %v6239_v16 = vpop.f32.mrb[79].mxu1  ;;  %14986 = vmatmul.mubr.msk.f32.gmra.mrb[184].mxu1 %vm1194_vm8, %v4254_v43 }
 0x90c   : >> { %15022 = vmatprep.mubr.msk.f32.mxu0 %vm6853_vm2, %v6239_v16  ;;  %14988 = vmatprep.mubr.msk.f32.mxu1 %vm1194_vm8, %v4255_v46 }
 0x90d   : >> { %15023 = vmatmul.mubr.msk.f32.gmra.mrb[134].mxu0 %vm6853_vm2, %v14828_v37 }
 0x90e   : >> { %v14831_v63 = vpop.f32.mrb[80].mxu1 }
 0x90f   : >> { %v6249_v48 = vpop.f32.mrb[81].mxu1  ;;  %14989 = vmatmul.mubr.msk.f32.gmra.mrb[186].mxu1 %vm1194_vm8, %v4256_v42 }
 0x910   : >> { %15025 = vmatprep.mubr.msk.f32.mxu0 %vm6853_vm2, %v6249_v48  ;;  %14991 = vmatprep.mubr.msk.f32.mxu1 %vm1194_vm8, %v4257_v38  ;;  %v7877_v48 = vld [vmem:[#allocation15 + $0x50] sm:$0xff] }
 0x911   : >> { %15026 = vmatmul.mubr.msk.f32.gmra.mrb[136].mxu0 %vm6853_vm2, %v14831_v63 }
 0x912   : >> { %v14834_v20 = vpop.f32.mrb[82].mxu1 }
 0x913   : >> { %v6259_v47 = vpop.f32.mrb[83].mxu1  ;;  %14992 = vmatmul.mubr.msk.f32.gmra.mrb[188].mxu1 %vm1194_vm8, %v4258_v55  ;;  %v7878_v55 = vld [vmem:[#allocation15 + $0x58] sm:$0xff] }
 0x914   : >> { %15028 = vmatprep.mubr.msk.f32.mxu0 %vm6853_vm2, %v6259_v47  ;;  %14994 = vmatprep.mubr.msk.f32.mxu1 %vm1194_vm8, %v4259_v8  ;;  %v15973_v47 = vpack.c.bf16 %v7878_v55, %v7877_v48  ;;  %v8513_v55 = vld [vmem:[#allocation15 + $0x80] sm:$0xff] }
 0x915   : >> { %15029 = vmatmul.mubr.msk.f32.gmra.mrb[138].mxu0 %vm6853_vm2, %v14834_v20 }
 0x916   : >> { %v14837_v25 = vpop.f32.mrb[84].mxu1 }
 0x917   : >> { %v6269_v5 = vpop.f32.mrb[85].mxu1  ;;  %14995 = vmatmul.mubr.msk.f32.gmra.mrb[190].mxu1 %vm1194_vm8, %v4260_v39 }
 0x918   : >> { %15031 = vmatprep.mubr.msk.f32.mxu0 %vm6853_vm2, %v6269_v5  ;;  %14997 = vmatprep.mubr.msk.f32.mxu1 %vm1194_vm8, %v4261_v32 }
 0x919   : >> { %15032 = vmatmul.mubr.msk.f32.gmra.mrb[140].mxu0 %vm6853_vm2, %v14837_v25 }
 0x91a   : >> { %v14840_v30 = vpop.f32.mrb[86].mxu1 }
 0x91b   : >> { %v6279_v52 = vpop.f32.mrb[87].mxu1  ;;  %14998 = vmatmul.mubr.msk.f32.gmra.mrb[192].mxu1 %vm1194_vm8, %v4262_v6 }
 0x91c   : >> { %15034 = vmatprep.mubr.msk.f32.mxu0 %vm6853_vm2, %v6279_v52  ;;  %15000 = vmatprep.mubr.msk.f32.mxu1 %vm1194_vm8, %v4263_v53 }
 0x91d   : >> { %15035 = vmatmul.mubr.msk.f32.gmra.mrb[142].mxu0 %vm6853_vm2, %v14840_v30 }
 0x91e   : >> { %v14843_v59 = vpop.f32.mrb[88].mxu1  ;;  %15041 = vmatprep.mubr.msk.f32.mxu0 %vm6853_vm2, %v19277_v0  ;;  %v4268_v0 = vld [vmem:[#allocation17 + $0x8f8] sm:$0xff] }
 0x91f   : >> { %v6289_v44 = vpop.f32.mrb[89].mxu1  ;;  %15001 = vmatmul.mubr.msk.f32.gmra.mrb[194].mxu1 %vm1194_vm8, %v4264_v28 }
 0x920   : >> { %15003 = vmatprep.mubr.msk.f32.mxu1 %vm1194_vm8, %v4265_v13 }
 0x921   : >> { %15042 = vmatmul.mubr.msk.f32.vlgmr.msra.gmra.mrb[128].mxu0 %vm6853_vm2, %v19275_v22 }
 0x922   : >> { %v14846_v45 = vpop.f32.mrb[90].mxu1  ;;  %15044 = vmatprep.mubr.msk.f32.mxu0 %vm6853_vm2, %v19283_v31  ;;  %15964 = vmatpush3.bf16.msra.mxu0 %v19324_v27 }
 0x923   : >> { %v6299_v15 = vpop.f32.mrb[91].mxu1  ;;  %15004 = vmatmul.mubr.msk.f32.gmra.mrb[196].mxu1 %vm1194_vm8, %v4266_v60  ;;  %15966 = vmatprep.subr.bf16.mxu0 %v15965_v54  ;;  %v8090_v60 = vld [vmem:[#allocation15 + $0x68] sm:$0xff] }
 0x924   : >> { %15006 = vmatprep.mubr.msk.f32.mxu1 %vm1194_vm8, %v4267_v17 }
 0x925   : >> { %15045 = vmatmul.mubr.msk.f32.gmra.mrb[130].mxu0 %vm6853_vm2, %v19281_v34 }
 0x926   : >> { %v14849_v18 = vpop.f32.mrb[92].mxu1  ;;  %15047 = vmatprep.mubr.msk.f32.mxu0 %vm6853_vm2, %v19289_v7 }
 0x927   : >> { %v6309_v22 = vpop.f32.mrb[93].mxu1  ;;  %15007 = vmatmul.mubr.msk.f32.gmra.mrb[198].mxu1 %vm1194_vm8, %v4268_v0 }
 0x928   : >> { %10912 = vmatprep.mubr.f32.mxu1 %v17846_v24 }
 0x929   : >> { %15048 = vmatmul.mubr.msk.f32.gmra.mrb[132].mxu0 %vm6853_vm2, %v19287_v11 }
 0x92a   : >> { %v14852_v31 = vpop.f32.mrb[94].mxu1  ;;  %15050 = vmatprep.mubr.msk.f32.mxu0 %vm6853_vm2, %v19295_v33 }
 0x92b   : >> { %v6319_v27 = vpop.f32.mrb[95].mxu1 }
 0x92d   : >> { %15051 = vmatmul.mubr.msk.f32.gmra.mrb[134].mxu0 %vm6853_vm2, %v19293_v21 }
 0x92e   : >> { %v14855_v34 = vpop.f32.mrb[96].mxu1  ;;  %15053 = vmatprep.mubr.msk.f32.mxu0 %vm6853_vm2, %v19301_v35 }
 0x92f   : >> { %v6329_v7 = vpop.f32.mrb[97].mxu1 }
 0x931   : >> { %15054 = vmatmul.mubr.msk.f32.gmra.mrb[136].mxu0 %vm6853_vm2, %v19299_v51 }
 0x932   : >> { %v14858_v10 = vpop.f32.mrb[98].mxu1  ;;  %15056 = vmatprep.mubr.msk.f32.mxu0 %vm6853_vm2, %v19307_v19 }
 0x933   : >> { %v6339_v11 = vpop.f32.mrb[99].mxu1 }
 0x935   : >> { %15057 = vmatmul.mubr.msk.f32.gmra.mrb[138].mxu0 %vm6853_vm2, %v19305_v23 }
 0x936   : >> { %v14861_v33 = vpop.f32.mrb[100].mxu1  ;;  %15059 = vmatprep.mubr.msk.f32.mxu0 %vm6853_vm2, %v19313_v9 }
 0x937   : >> { %v6349_v21 = vpop.f32.mrb[101].mxu1 }
 0x939   : >> { %15060 = vmatmul.mubr.msk.f32.gmra.mrb[140].mxu0 %vm6853_vm2, %v19311_v49 }
 0x93a   : >> { %v14864_v35 = vpop.f32.mrb[102].mxu1  ;;  %15062 = vmatprep.mubr.msk.f32.mxu0 %vm6853_vm2, %v19319_v62 }
 0x93b   : >> { %v6359_v51 = vpop.f32.mrb[103].mxu1 }
 0x93d   : >> { %15063 = vmatmul.mubr.msk.f32.gmra.mrb[142].mxu0 %vm6853_vm2, %v19317_v29 }
 0x93e   : >> { %v14867_v19 = vpop.f32.mrb[104].mxu1  ;;  %15069 = vmatprep.mubr.msk.f32.mxu0 %vm6853_vm2, %v6289_v44 }
 0x93f   : >> { %v6369_v23 = vpop.f32.mrb[105].mxu1 }
 0x941   : >> { %15070 = vmatmul.mubr.msk.f32.vlgmr.msra.gmra.mrb[128].mxu0 %vm6853_vm2, %v14843_v59 }
 0x942   : >> { %v14870_v9 = vpop.f32.mrb[106].mxu1  ;;  %15072 = vmatprep.mubr.msk.f32.mxu0 %vm6853_vm2, %v6299_v15  ;;  %15968 = vmatpush3.bf16.msra.mxu0 %v15965_v54  ;;  %v8089_v54 = vld [vmem:[#allocation15 + $0x60] sm:$0xff] }
 0x943   : >> { %v6379_v49 = vpop.f32.mrb[107].mxu1  ;;  %15970 = vmatprep.subr.bf16.mxu0 %v15969_v12  ;;  %v15977_v15 = vpack.c.bf16 %v8090_v60, %v8089_v54 }
 0x945   : >> { %15073 = vmatmul.mubr.msk.f32.gmra.mrb[130].mxu0 %vm6853_vm2, %v14846_v45 }
 0x946   : >> { %v14873_v62 = vpop.f32.mrb[108].mxu1  ;;  %15075 = vmatprep.mubr.msk.f32.mxu0 %vm6853_vm2, %v6309_v22 }
 0x947   : >> { %v6389_v41 = vpop.f32.mrb[109].mxu1 }
 0x949   : >> { %15076 = vmatmul.mubr.msk.f32.gmra.mrb[132].mxu0 %vm6853_vm2, %v14849_v18 }
 0x94a   : >> { %v14876_v29 = vpop.f32.mrb[110].mxu1  ;;  %15078 = vmatprep.mubr.msk.f32.mxu0 %vm6853_vm2, %v6319_v27 }
 0x94b   : >> { %v6399_v14 = vpop.f32.mrb[111].mxu1 }
 0x94d   : >> { %15079 = vmatmul.mubr.msk.f32.gmra.mrb[134].mxu0 %vm6853_vm2, %v14852_v31 }
 0x94e   : >> { %v14879_v61 = vpop.f32.mrb[112].mxu1  ;;  %15081 = vmatprep.mubr.msk.f32.mxu0 %vm6853_vm2, %v6329_v7 }
 0x94f   : >> { %v6409_v43 = vpop.f32.mrb[113].mxu1 }
 0x951   : >> { %15082 = vmatmul.mubr.msk.f32.gmra.mrb[136].mxu0 %vm6853_vm2, %v14855_v34 }
 0x952   : >> { %v14882_v46 = vpop.f32.mrb[114].mxu1  ;;  %15084 = vmatprep.mubr.msk.f32.mxu0 %vm6853_vm2, %v6339_v11 }
 0x953   : >> { %v6419_v37 = vpop.f32.mrb[115].mxu1 }
 0x955   : >> { %15085 = vmatmul.mubr.msk.f32.gmra.mrb[138].mxu0 %vm6853_vm2, %v14858_v10 }
 0x956   : >> { %v14885_v16 = vpop.f32.mrb[116].mxu1  ;;  %15087 = vmatprep.mubr.msk.f32.mxu0 %vm6853_vm2, %v6349_v21 }
 0x957   : >> { %v6429_v42 = vpop.f32.mrb[117].mxu1 }
 0x959   : >> { %15088 = vmatmul.mubr.msk.f32.gmra.mrb[140].mxu0 %vm6853_vm2, %v14861_v33 }
 0x95a   : >> { %v14888_v38 = vpop.f32.mrb[118].mxu1  ;;  %15090 = vmatprep.mubr.msk.f32.mxu0 %vm6853_vm2, %v6359_v51 }
 0x95b   : >> { %v6439_v63 = vpop.f32.mrb[119].mxu1 }
 0x95d   : >> { %15091 = vmatmul.mubr.msk.f32.gmra.mrb[142].mxu0 %vm6853_vm2, %v14864_v35 }
 0x95e   : >> { %v14891_v8 = vpop.f32.mrb[120].mxu1  ;;  %15097 = vmatprep.mubr.msk.f32.mxu0 %vm6853_vm2, %v6369_v23 }
 0x95f   : >> { %v6449_v20 = vpop.f32.mrb[121].mxu1 }
 0x961   : >> { %15098 = vmatmul.mubr.msk.f32.vlgmr.msra.gmra.mrb[128].mxu0 %vm6853_vm2, %v14867_v19  ;;  %v8302_v19 = vld [vmem:[#allocation15 + $0x78] sm:$0xff] }
 0x962   : >> { %v14894_v39 = vpop.f32.mrb[122].mxu1  ;;  %15100 = vmatprep.mubr.msk.f32.mxu0 %vm6853_vm2, %v6379_v49  ;;  %15972 = vmatpush3.bf16.msra.mxu0 %v15969_v12 }
 0x963   : >> { %v6459_v32 = vpop.f32.mrb[123].mxu1  ;;  %15974 = vmatprep.subr.bf16.mxu0 %v15973_v47 }
 0x965   : >> { %15101 = vmatmul.mubr.msk.f32.gmra.mrb[130].mxu0 %vm6853_vm2, %v14870_v9  ;;  %v15981_v9 = vpack.c.bf16 %v8302_v19, %v8301_v36  ;;  %v8744_v36 = vpop.permute.xlu0 %8743 }
 0x966   : >> { %v14897_v25 = vpop.f32.mrb[124].mxu1  ;;  %15103 = vmatprep.mubr.msk.f32.mxu0 %vm6853_vm2, %v6389_v41 }
 0x967   : >> { %v6469_v5 = vpop.f32.mrb[125].mxu1 }
 0x969   : >> { %15104 = vmatmul.mubr.msk.f32.gmra.mrb[132].mxu0 %vm6853_vm2, %v14873_v62 }
 0x96a   : >> { %v14900_v6 = vpop.f32.mrb[126].mxu1  ;;  %15106 = vmatprep.mubr.msk.f32.mxu0 %vm6853_vm2, %v6399_v14 }
 0x96b   : >> { %v6479_v53 = vpop.f32.mrb[127].mxu1 }
 0x96d   : >> { %15107 = vmatmul.mubr.msk.f32.gmra.mrb[134].mxu0 %vm6853_vm2, %v14876_v29 }
 0x96e   : >> { %v14903_v30 = vpop.f32.mrb[128].mxu1  ;;  %15109 = vmatprep.mubr.msk.f32.mxu0 %vm6853_vm2, %v6409_v43 }
 0x96f   : >> { %v6489_v52 = vpop.f32.mrb[129].mxu1 }
 0x971   : >> { %15110 = vmatmul.mubr.msk.f32.gmra.mrb[136].mxu0 %vm6853_vm2, %v14879_v61 }
 0x972   : >> { %v14906_v28 = vpop.f32.mrb[130].mxu1  ;;  %15112 = vmatprep.mubr.msk.f32.mxu0 %vm6853_vm2, %v6419_v37 }
 0x973   : >> { %v6499_v40 = vpop.f32.mrb[131].mxu1 }
 0x975   : >> { %15113 = vmatmul.mubr.msk.f32.gmra.mrb[138].mxu0 %vm6853_vm2, %v14882_v46 }
 0x976   : >> { %v14909_v50 = vpop.f32.mrb[132].mxu1  ;;  %15115 = vmatprep.mubr.msk.f32.mxu0 %vm6853_vm2, %v6429_v42 }
 0x977   : >> { %v6509_v13 = vpop.f32.mrb[133].mxu1 }
 0x979   : >> { %15116 = vmatmul.mubr.msk.f32.gmra.mrb[140].mxu0 %vm6853_vm2, %v14885_v16 }
 0x97a   : >> { %v14912_v59 = vpop.f32.mrb[134].mxu1  ;;  %15118 = vmatprep.mubr.msk.f32.mxu0 %vm6853_vm2, %v6439_v63 }
 0x97b   : >> { %v6519_v44 = vpop.f32.mrb[135].mxu1 }
 0x97d   : >> { %15119 = vmatmul.mubr.msk.f32.gmra.mrb[142].mxu0 %vm6853_vm2, %v14888_v38 }
 0x97e   : >> { %v14915_v17 = vpop.f32.mrb[136].mxu1  ;;  %15125 = vmatprep.mubr.msk.f32.mxu0 %vm6853_vm2, %v6449_v20 }
 0x97f   : >> { %v6529_v45 = vpop.f32.mrb[137].mxu1 }
 0x981   : >> { %15126 = vmatmul.mubr.msk.f32.vlgmr.msra.gmra.mrb[128].mxu0 %vm6853_vm2, %v14891_v8  ;;  %v8514_v8 = vld [vmem:[#allocation15 + $0x88] sm:$0xff] }
 0x982   : >> { %v14918_v0 = vpop.f32.mrb[138].mxu1  ;;  %15128 = vmatprep.mubr.msk.f32.mxu0 %vm6853_vm2, %v6459_v32  ;;  %15976 = vmatpush3.bf16.msra.mxu0 %v15973_v47 }
 0x983   : >> { %v6539_v18 = vpop.f32.mrb[139].mxu1  ;;  %15978 = vmatprep.subr.bf16.mxu0 %v15977_v15 }
 0x985   : >> { %15129 = vmatmul.mubr.msk.f32.gmra.mrb[130].mxu0 %vm6853_vm2, %v14894_v39  ;;  %v15985_v39 = vpack.c.bf16 %v8514_v8, %v8513_v55 }
 0x986   : >> { %v14921_v22 = vpop.f32.mrb[140].mxu1  ;;  %15131 = vmatprep.mubr.msk.f32.mxu0 %vm6853_vm2, %v6469_v5 }
 0x987   : >> { %v6549_v31 = vpop.f32.mrb[141].mxu1 }
 0x989   : >> { %15132 = vmatmul.mubr.msk.f32.gmra.mrb[132].mxu0 %vm6853_vm2, %v14897_v25 }
 0x98a   : >> { %v14924_v27 = vpop.f32.mrb[142].mxu1  ;;  %15134 = vmatprep.mubr.msk.f32.mxu0 %vm6853_vm2, %v6479_v53 }
 0x98b   : >> { %v6559_v34 = vpop.f32.mrb[143].mxu1 }
 0x98d   : >> { %15135 = vmatmul.mubr.msk.f32.gmra.mrb[134].mxu0 %vm6853_vm2, %v14900_v6 }
 0x98e   : >> { %v14927_v7 = vpop.f32.mrb[144].mxu1  ;;  %15137 = vmatprep.mubr.msk.f32.mxu0 %vm6853_vm2, %v6489_v52 }
 0x98f   : >> { %v6569_v10 = vpop.f32.mrb[145].mxu1 }
 0x991   : >> { %15138 = vmatmul.mubr.msk.f32.gmra.mrb[136].mxu0 %vm6853_vm2, %v14903_v30 }
 0x992   : >> { %v14930_v11 = vpop.f32.mrb[146].mxu1  ;;  %15140 = vmatprep.mubr.msk.f32.mxu0 %vm6853_vm2, %v6499_v40 }
 0x993   : >> { %v6579_v33 = vpop.f32.mrb[147].mxu1 }
 0x995   : >> { %15141 = vmatmul.mubr.msk.f32.gmra.mrb[138].mxu0 %vm6853_vm2, %v14906_v28 }
 0x996   : >> { %v14933_v21 = vpop.f32.mrb[148].mxu1  ;;  %15143 = vmatprep.mubr.msk.f32.mxu0 %vm6853_vm2, %v6509_v13 }
 0x997   : >> { %v6589_v35 = vpop.f32.mrb[149].mxu1 }
 0x999   : >> { %15144 = vmatmul.mubr.msk.f32.gmra.mrb[140].mxu0 %vm6853_vm2, %v14909_v50 }
 0x99a   : >> { %v14936_v51 = vpop.f32.mrb[150].mxu1  ;;  %15146 = vmatprep.mubr.msk.f32.mxu0 %vm6853_vm2, %v6519_v44 }
 0x99b   : >> { %v6599_v26 = vpop.f32.mrb[151].mxu1 }
 0x99d   : >> { %15147 = vmatmul.mubr.msk.f32.gmra.mrb[142].mxu0 %vm6853_vm2, %v14912_v59 }
 0x99e   : >> { %v14939_v23 = vpop.f32.mrb[152].mxu1  ;;  %15153 = vmatprep.mubr.msk.f32.mxu0 %vm6853_vm2, %v6529_v45 }
 0x99f   : >> { %v6609_v12 = vpop.f32.mrb[153].mxu1 }
 0x9a1   : >> { %15154 = vmatmul.mubr.msk.f32.vlgmr.msra.gmra.mrb[128].mxu0 %vm6853_vm2, %v14915_v17 }
 0x9a2   : >> { %v14942_v49 = vpop.f32.mrb[154].mxu1  ;;  %15156 = vmatprep.mubr.msk.f32.mxu0 %vm6853_vm2, %v6539_v18  ;;  %15980 = vmatpush3.bf16.msra.mxu0 %v15977_v15 }
 0x9a3   : >> { %v6619_v62 = vpop.f32.mrb[155].mxu1  ;;  %15982 = vmatprep.subr.bf16.mxu0 %v15981_v9 }
 0x9a5   : >> { %15157 = vmatmul.mubr.msk.f32.gmra.mrb[130].mxu0 %vm6853_vm2, %v14918_v0 }
 0x9a6   : >> { %v14945_v41 = vpop.f32.mrb[156].mxu1  ;;  %15159 = vmatprep.mubr.msk.f32.mxu0 %vm6853_vm2, %v6549_v31 }
 0x9a7   : >> { %v6629_v29 = vpop.f32.mrb[157].mxu1 }
 0x9a9   : >> { %15160 = vmatmul.mubr.msk.f32.gmra.mrb[132].mxu0 %vm6853_vm2, %v14921_v22 }
 0x9aa   : >> { %v14948_v14 = vpop.f32.mrb[158].mxu1  ;;  %15162 = vmatprep.mubr.msk.f32.mxu0 %vm6853_vm2, %v6559_v34 }
 0x9ab   : >> { %v6639_v61 = vpop.f32.mrb[159].mxu1 }
 0x9ad   : >> { %15163 = vmatmul.mubr.msk.f32.gmra.mrb[134].mxu0 %vm6853_vm2, %v14924_v27 }
 0x9ae   : >> { %v14951_v43 = vpop.f32.mrb[160].mxu1  ;;  %15165 = vmatprep.mubr.msk.f32.mxu0 %vm6853_vm2, %v6569_v10 }
 0x9af   : >> { %v6649_v46 = vpop.f32.mrb[161].mxu1 }
 0x9b1   : >> { %15166 = vmatmul.mubr.msk.f32.gmra.mrb[136].mxu0 %vm6853_vm2, %v14927_v7 }
 0x9b2   : >> { %v14954_v37 = vpop.f32.mrb[162].mxu1  ;;  %15168 = vmatprep.mubr.msk.f32.mxu0 %vm6853_vm2, %v6579_v33 }
 0x9b3   : >> { %v6659_v16 = vpop.f32.mrb[163].mxu1 }
 0x9b5   : >> { %15169 = vmatmul.mubr.msk.f32.gmra.mrb[138].mxu0 %vm6853_vm2, %v14930_v11 }
 0x9b6   : >> { %v14957_v42 = vpop.f32.mrb[164].mxu1  ;;  %15171 = vmatprep.mubr.msk.f32.mxu0 %vm6853_vm2, %v6589_v35 }
 0x9b7   : >> { %v6669_v38 = vpop.f32.mrb[165].mxu1 }
 0x9b9   : >> { %15172 = vmatmul.mubr.msk.f32.gmra.mrb[140].mxu0 %vm6853_vm2, %v14933_v21 }
 0x9ba   : >> { %v14960_v63 = vpop.f32.mrb[166].mxu1  ;;  %15174 = vmatprep.mubr.msk.f32.mxu0 %vm6853_vm2, %v6599_v26  ;;  %v8749_v26 = vpop.permute.xlu1 %8748 }
 0x9bb   : >> { %v6679_v48 = vpop.f32.mrb[167].mxu1 }
 0x9bd   : >> { %15175 = vmatmul.mubr.msk.f32.gmra.mrb[142].mxu0 %vm6853_vm2, %v14936_v51  ;;  %v8933_v51 = vld [vmem:[#allocation24] sm:$0xff] }
 0x9be   : >> { %v14963_v20 = vpop.f32.mrb[168].mxu1  ;;  %15181 = vmatprep.mubr.msk.f32.mxu0 %vm6853_vm2, %v6609_v12  ;;  %v8769_v19 = vpop.permute.xlu1 %8768 }
 0x9bf   : >> { %v6689_v47 = vpop.f32.mrb[169].mxu1 }
 0x9c1   : >> { %15182 = vmatmul.mubr.msk.f32.vlgmr.msra.gmra.mrb[128].mxu0 %vm6853_vm2, %v14939_v23  ;;  %v8764_v23 = vpop.permute.xlu0 %8763 }
 0x9c2   : >> { %v14966_v32 = vpop.f32.mrb[170].mxu1  ;;  %15184 = vmatprep.mubr.msk.f32.mxu0 %vm6853_vm2, %v6619_v62  ;;  %15984 = vmatpush3.bf16.msra.mxu0 %v15981_v9  ;;  %v8759_v12 = vpop.permute.xlu1 %8758 }
 0x9c3   : >> { %v6699_v25 = vpop.f32.mrb[171].mxu1  ;;  %15986 = vmatprep.subr.bf16.mxu0 %v15985_v39 }
 0x9c5   : >> { %15185 = vmatmul.mubr.msk.f32.gmra.mrb[130].mxu0 %vm6853_vm2, %v14942_v49  ;;  %v8754_v9 = vpop.permute.xlu0 %8753 }
 0x9c6   : >> { %v14969_v5 = vpop.f32.mrb[172].mxu1  ;;  %15187 = vmatprep.mubr.msk.f32.mxu0 %vm6853_vm2, %v6629_v29  ;;  %v8779_v29 = vpop.permute.xlu1 %8778 }
 0x9c7   : >> { %v6709_v6 = vpop.f32.mrb[173].mxu1 }
 0x9c9   : >> { %15188 = vmatmul.mubr.msk.f32.gmra.mrb[132].mxu0 %vm6853_vm2, %v14945_v41 }
 0x9ca   : >> { %v14972_v53 = vpop.f32.mrb[174].mxu1  ;;  %15190 = vmatprep.mubr.msk.f32.mxu0 %vm6853_vm2, %v6639_v61  ;;  %v8774_v61 = vpop.permute.xlu0 %8773 }
 0x9cb   : >> { %v6719_v30 = vpop.f32.mrb[175].mxu1 }
 0x9cd   : >> { %15191 = vmatmul.mubr.msk.f32.gmra.mrb[134].mxu0 %vm6853_vm2, %v14948_v14 }
 0x9ce   : >> { %v14975_v52 = vpop.f32.mrb[176].mxu1  ;;  %15193 = vmatprep.mubr.msk.f32.mxu0 %vm6853_vm2, %v6649_v46  ;;  %v8784_v8 = vpop.permute.xlu0 %8783 }
 0x9cf   : >> { %v6729_v28 = vpop.f32.mrb[177].mxu1 }
 0x9d1   : >> { %15194 = vmatmul.mubr.msk.f32.gmra.mrb[136].mxu0 %vm6853_vm2, %v14951_v43 }
 0x9d2   : >> { %v14978_v40 = vpop.f32.mrb[178].mxu1  ;;  %15196 = vmatprep.mubr.msk.f32.mxu0 %vm6853_vm2, %v6659_v16 }
 0x9d3   : >> { %v6739_v50 = vpop.f32.mrb[179].mxu1 }
 0x9d5   : >> { %15197 = vmatmul.mubr.msk.f32.gmra.mrb[138].mxu0 %vm6853_vm2, %v14954_v37 }
 0x9d6   : >> { %v14981_v13 = vpop.f32.mrb[180].mxu1  ;;  %15199 = vmatprep.mubr.msk.f32.mxu0 %vm6853_vm2, %v6669_v38 }
 0x9d7   : >> { %v6749_v59 = vpop.f32.mrb[181].mxu1 }
 0x9d9   : >> { %15200 = vmatmul.mubr.msk.f32.gmra.mrb[140].mxu0 %vm6853_vm2, %v14957_v42 }
 0x9da   : >> { %v14984_v44 = vpop.f32.mrb[182].mxu1  ;;  %15202 = vmatprep.mubr.msk.f32.mxu0 %vm6853_vm2, %v6679_v48 }
 0x9db   : >> { %v6759_v54 = vpop.f32.mrb[183].mxu1 }
 0x9dd   : >> { %15203 = vmatmul.mubr.msk.f32.gmra.mrb[142].mxu0 %vm6853_vm2, %v14960_v63  ;;  %v8789_v63 = vpop.permute.xlu1 %8788 }
 0x9de   : >> { %v14987_v60 = vpop.f32.mrb[184].mxu1  ;;  %15209 = vmatprep.mubr.msk.f32.mxu0 %vm6853_vm2, %v6689_v47 }
 0x9df   : >> { %v6769_v17 = vpop.f32.mrb[185].mxu1 }
 0x9e1   : >> { %15210 = vmatmul.mubr.msk.f32.vlgmr.msra.gmra.mrb[128].mxu0 %vm6853_vm2, %v14963_v20 }
 0x9e2   : >> { %v14990_v45 = vpop.f32.mrb[186].mxu1  ;;  %15212 = vmatprep.mubr.msk.f32.mxu0 %vm6853_vm2, %v6699_v25  ;;  %15988 = vmatpush3.bf16.msra.mxu0 %v15985_v39 }
 0x9e3   : >> { %v6779_v15 = vpop.f32.mrb[187].mxu1 }
 0x9e5   : >> { %15213 = vmatmul.mubr.msk.f32.gmra.mrb[130].mxu0 %vm6853_vm2, %v14966_v32 }
 0x9e6   : >> { %v14993_v0 = vpop.f32.mrb[188].mxu1  ;;  %15215 = vmatprep.mubr.msk.f32.mxu0 %vm6853_vm2, %v6709_v6 }
 0x9e7   : >> { %v6789_v18 = vpop.f32.mrb[189].mxu1 }
 0x9e9   : >> { %15216 = vmatmul.mubr.msk.f32.gmra.mrb[132].mxu0 %vm6853_vm2, %v14969_v5 }
 0x9ea   : >> { %v14996_v22 = vpop.f32.mrb[190].mxu1  ;;  %15218 = vmatprep.mubr.msk.f32.mxu0 %vm6853_vm2, %v6719_v30 }
 0x9eb   : >> { %v6799_v31 = vpop.f32.mrb[191].mxu1 }
 0x9ed   : >> { %15219 = vmatmul.mubr.msk.f32.gmra.mrb[134].mxu0 %vm6853_vm2, %v14972_v53 }
 0x9ee   : >> { %v14999_v27 = vpop.f32.mrb[192].mxu1  ;;  %15221 = vmatprep.mubr.msk.f32.mxu0 %vm6853_vm2, %v6729_v28 }
 0x9ef   : >> { %v6809_v34 = vpop.f32.mrb[193].mxu1 }
 0x9f1   : >> { %15222 = vmatmul.mubr.msk.f32.gmra.mrb[136].mxu0 %vm6853_vm2, %v14975_v52  ;;  %v8809_v52 = vpop.permute.xlu1 %8808 }
 0x9f2   : >> { %v15002_v7 = vpop.f32.mrb[194].mxu1  ;;  %15224 = vmatprep.mubr.msk.f32.mxu0 %vm6853_vm2, %v6739_v50  ;;  %v8804_v50 = vpop.permute.xlu0 %8803 }
 0x9f3   : >> { %v6819_v10 = vpop.f32.mrb[195].mxu1 }
 0x9f5   : >> { %15225 = vmatmul.mubr.msk.f32.gmra.mrb[138].mxu0 %vm6853_vm2, %v14978_v40 }
 0x9f6   : >> { %v15005_v11 = vpop.f32.mrb[196].mxu1  ;;  %15227 = vmatprep.mubr.msk.f32.mxu0 %vm6853_vm2, %v6749_v59 }
 0x9f7   : >> { %v6829_v33 = vpop.f32.mrb[197].mxu1 }
 0x9f9   : >> { %15228 = vmatmul.mubr.msk.f32.gmra.mrb[140].mxu0 %vm6853_vm2, %v14981_v13 }
 0x9fa   : >> { %v15008_v21 = vpop.f32.mrb[198].mxu1  ;;  %15230 = vmatprep.mubr.msk.f32.mxu0 %vm6853_vm2, %v6759_v54 }
 0x9fb   : >> { %v6839_v35 = vpop.f32.mrb[199].mxu1 }
 0x9fd   : >> { %15231 = vmatmul.mubr.msk.f32.gmra.mrb[142].mxu0 %vm6853_vm2, %v14984_v44 }
 0x9fe   : >> { %15237 = vmatprep.mubr.msk.f32.mxu0 %vm6853_vm2, %v6769_v17 }
 0xa01   : >> { %15238 = vmatmul.mubr.msk.f32.vlgmr.msra.gmra.mrb[128].mxu0 %vm6853_vm2, %v14987_v60 }
 0xa02   : >> { %15240 = vmatprep.mubr.msk.f32.mxu0 %vm6853_vm2, %v6779_v15 }
 0xa05   : >> { %15241 = vmatmul.mubr.msk.f32.gmra.mrb[130].mxu0 %vm6853_vm2, %v14990_v45 }
 0xa06   : >> { %15243 = vmatprep.mubr.msk.f32.mxu0 %vm6853_vm2, %v6789_v18 }
 0xa09   : >> { %15244 = vmatmul.mubr.msk.f32.gmra.mrb[132].mxu0 %vm6853_vm2, %v14993_v0 }
 0xa0a   : >> { %15246 = vmatprep.mubr.msk.f32.mxu0 %vm6853_vm2, %v6799_v31  ;;  %v8799_v31 = vpop.permute.xlu1 %8798 }
 0xa0d   : >> { %15247 = vmatmul.mubr.msk.f32.gmra.mrb[134].mxu0 %vm6853_vm2, %v14996_v22 }
 0xa0e   : >> { %15249 = vmatprep.mubr.msk.f32.mxu0 %vm6853_vm2, %v6809_v34 }
 0xa11   : >> { %15250 = vmatmul.mubr.msk.f32.gmra.mrb[136].mxu0 %vm6853_vm2, %v14999_v27 }
 0xa12   : >> { %15252 = vmatprep.mubr.msk.f32.mxu0 %vm6853_vm2, %v6819_v10  ;;  %v8794_v10 = vpop.permute.xlu0 %8793 }
 0xa15   : >> { %15253 = vmatmul.mubr.msk.f32.gmra.mrb[138].mxu0 %vm6853_vm2, %v15002_v7 }
 0xa16   : >> { %15255 = vmatprep.mubr.msk.f32.mxu0 %vm6853_vm2, %v6829_v33 }
 0xa19   : >> { %15256 = vmatmul.mubr.msk.f32.gmra.mrb[140].mxu0 %vm6853_vm2, %v15005_v11 }
 0xa1a   : >> { %15258 = vmatprep.mubr.msk.f32.mxu0 %vm6853_vm2, %v6839_v35 }
 0xa1d   : >> { %15259 = vmatmul.mubr.msk.f32.gmra.mrb[142].mxu0 %vm6853_vm2, %v15008_v21 }
 0xa1e   : >> { %15269 = vmatprep.mubr.msk.f32.mxu0 %vm1194_vm8, %v8933_v51 }
 0xad4   : >> { %v15239_v49 = vpop.f32.mrb[128].mxu0 }
 0xad5   : >> { %v8822_v62 = vadd.f32 %v15239_v49, %v8749_v26  ;;  %v8629_v41 = vpop.f32.mrb[129].mxu0 }
 0xad6   : >> { %v8821_v14 = vadd.f32 %v8744_v36, %v8629_v41 }
 0xad7   : >> { %v12994_v43 = vmul.f32 -1.442695, %v8822_v62 }
 0xad8   : >> { %v12993_v46 = vmul.f32 -1.442695, %v8821_v14  ;;  %v15242_v37 = vpop.f32.mrb[130].mxu0  ;;  %v8819_v14 = vpop.permute.xlu1 %8818 }
 0xad9   : >> { %16951 = vpow2.f32 %v12994_v43  ;;  %v8824_v16 = vadd.f32 %v15242_v37, %v8759_v12  ;;  %v8639_v42 = vpop.f32.mrb[131].mxu0 }
 0xada   : >> { %16953 = vpow2.f32 %v12993_v46  ;;  %v8823_v48 = vadd.f32 %v8754_v9, %v8639_v42 }
 0xadb   : >> { %v12996_v38 = vmul.f32 -1.442695, %v8824_v16 }
 0xadc   : >> { %v15245_v55 = vpop.f32.mrb[132].mxu0  ;;  %v12995_v25 = vmul.f32 -1.442695, %v8823_v48 }
 0xadd   : >> { %16955 = vpow2.f32 %v12996_v38  ;;  %v8826_v20 = vadd.f32 %v15245_v55, %v8769_v19  ;;  %v8649_v47 = vpop.f32.mrb[133].mxu0  ;;  %v8814_v38 = vpop.permute.xlu0 %8813 }
 0xade   : >> { %v8825_v39 = vadd.f32 %v8764_v23, %v8649_v47 }
 0xadf   : >> { %v12998_v32 = vmul.f32 -1.442695, %v8826_v20 }
 0xae0   : >> { %v12997_v5 = vmul.f32 -1.442695, %v8825_v39  ;;  %v15248_v6 = vpop.f32.mrb[134].mxu0 }
 0xae1   : >> { %16957 = vpow2.f32 %v12998_v32  ;;  %v8828_v53 = vadd.f32 %v15248_v6, %v8779_v29  ;;  %v8659_v30 = vpop.f32.mrb[135].mxu0 }
 0xae2   : >> { %16959 = vpow2.f32 %v12997_v5  ;;  %v8827_v28 = vadd.f32 %v8774_v61, %v8659_v30 }
 0xae3   : >> { %v16952_v40 = vpop.eup %16951  ;;  %v13000_v13 = vmul.f32 -1.442695, %v8828_v53  ;;  %16961 = vpow2.f32 %v12995_v25 }
 0xae4   : >> { %v16954_v59 = vpop.eup %16953  ;;  %v8850_v44 = vadd.f32 1.0, %v16952_v40  ;;  %v12999_v54 = vmul.f32 -1.442695, %v8827_v28  ;;  %v15251_v60 = vpop.f32.mrb[136].mxu0 }
 0xae5   : >> { %v8849_v17 = vadd.f32 1.0, %v16954_v59  ;;  %16963 = vpow2.f32 %v13000_v13  ;;  %v8830_v45 = vadd.f32 %v15251_v60, %v8789_v63  ;;  %v8669_v15 = vpop.f32.mrb[137].mxu0 }
 0xae6   : >> { %v8829_v0 = vadd.f32 %v8784_v8, %v8669_v15  ;;  %16965 = vrcp.f32 %v8850_v44 }
 0xae7   : >> { %v16956_v18 = vpop.eup %16955  ;;  %v13002_v22 = vmul.f32 -1.442695, %v8830_v45  ;;  %16967 = vpow2.f32 %v12999_v54 }
 0xae8   : >> { %v8852_v27 = vadd.f32 1.0, %v16956_v18  ;;  %v13001_v34 = vmul.f32 -1.442695, %v8829_v0  ;;  %v15254_v7 = vpop.f32.mrb[138].mxu0  ;;  %16969 = vrcp.f32 %v8849_v17 }
 0xae9   : >> { %v8832_v11 = vadd.f32 %v15254_v7, %v8799_v31  ;;  %v8679_v33 = vpop.f32.mrb[139].mxu0  ;;  %16971 = vpow2.f32 %v13002_v22 }
 0xaea   : >> { %v8831_v21 = vadd.f32 %v8794_v10, %v8679_v33  ;;  %16973 = vrcp.f32 %v8852_v27 }
 0xaeb   : >> { %v16958_v35 = vpop.eup %16957  ;;  %v13004_v51 = vmul.f32 -1.442695, %v8832_v11  ;;  %16975 = vpow2.f32 %v13001_v34 }
 0xaec   : >> { %v16960_v26 = vpop.eup %16959  ;;  %v8874_v36 = vadd.f32 1.0, %v16958_v35  ;;  %v13003_v19 = vmul.f32 -1.442695, %v8831_v21  ;;  %v15257_v23 = vpop.f32.mrb[140].mxu0 }
 0xaed   : >> { %v8873_v12 = vadd.f32 1.0, %v16960_v26  ;;  %16977 = vpow2.f32 %v13004_v51  ;;  %v8834_v9 = vadd.f32 %v15257_v23, %v8809_v52  ;;  %v8689_v49 = vpop.f32.mrb[141].mxu0  ;;  %v16962_v62 = vpop.eup %16961  ;;  %v8934_v23 = vld [vmem:[#allocation24 + $0x8] sm:$0xff] }
 0xaee   : >> { %16979 = vrcp.f32 %v8874_v36  ;;  %v8833_v29 = vadd.f32 %v8804_v50, %v8689_v49  ;;  %v8851_v63 = vadd.f32 1.0, %v16962_v62  ;;  %v9058_v49 = vld [vmem:[#allocation29] sm:$0xff]  ;;  %v8949_v62 = vpop.permute.xlu1 %8948 }
 0xaef   : >> { %v16964_v41 = vpop.eup %16963  ;;  %16981 = vrcp.f32 %v8873_v12  ;;  %v8935_v12 = vld [vmem:[#allocation24 + $0x10] sm:$0xff] }
 0xaf0   : >> { %v8876_v61 = vadd.f32 1.0, %v16964_v41  ;;  %16983 = vpow2.f32 %v13003_v19  ;;  %v15260_v43 = vpop.f32.mrb[142].mxu0  ;;  %v16966_v46 = vpop.eup %16965 }
 0xaf1   : >> { %16985 = vtanh.f32 %v8834_v9  ;;  %v8836_v37 = vadd.f32 %v15260_v43, %v8819_v14  ;;  %v8699_v16 = vpop.f32.mrb[143].mxu0  ;;  %v16968_v42 = vpop.eup %16967  ;;  %v8936_v9 = vld [vmem:[#allocation24 + $0x18] sm:$0xff] }
 0xaf2   : >> { %16987 = vrcp.f32 %v8876_v61  ;;  %v16970_v48 = vpop.eup %16969  ;;  %v8875_v55 = vadd.f32 1.0, %v16968_v42  ;;  %v8835_v8 = vadd.f32 %v8814_v38, %v8699_v16  ;;  %v8944_v41 = vpop.permute.xlu0 %8943 }
 0xaf3   : >> { %16989 = vtanh.f32 %v8833_v29  ;;  %v16972_v20 = vpop.eup %16971 }
 0xaf4   : >> { %16991 = vtanh.f32 %v8836_v37  ;;  %v16974_v47 = vpop.eup %16973  ;;  %v8898_v30 = vadd.f32 1.0, %v16972_v20  ;;  %v9059_v20 = vld [vmem:[#allocation29 + $0x8] sm:$0xff] }
 0xaf5   : >> { %16993 = vrcp.f32 %v8875_v55  ;;  %v16976_v39 = vpop.eup %16975 }
 0xaf6   : >> { %16995 = vrcp.f32 %v8851_v63  ;;  %v8897_v28 = vadd.f32 1.0, %v16976_v39  ;;  %v8954_v42 = vpop.permute.xlu0 %8953  ;;  %v9061_v39 = vld [vmem:[#allocation29 + $0x18] sm:$0xff] }
 0xaf7   : >> { %v16978_v32 = vpop.eup %16977  ;;  %16997 = vtanh.f32 %v8835_v8 }
 0xaf8   : >> { %v16980_v25 = vpop.eup %16979  ;;  %v8900_v54 = vadd.f32 1.0, %v16978_v32  ;;  %16999 = vrcp.f32 %v8898_v30  ;;  %v9062_v32 = vld [vmem:[#allocation29 + $0x20] sm:$0xff]  ;;  %v9065_v30 = vld [vmem:[#allocation29 + $0x38] sm:$0xff] }
 0xaf9   : >> { %v16982_v5 = vpop.eup %16981  ;;  %v8914_v53 = vmul.f32 %v17791_v3, %v16980_v25  ;;  %17001 = vrcp.f32 %v8897_v28  ;;  %v9063_v25 = vld [vmem:[#allocation29 + $0x28] sm:$0xff] }
 0xafa   : >> { %v16984_v6 = vpop.eup %16983  ;;  %v8913_v50 = vmul.f32 %v17795_v4, %v16982_v5  ;;  %v9067_v28 = vld [vmem:[#allocation29 + $0x48] sm:$0xff] }
 0xafb   : >> { %v16986_v52 = vpop.eup %16985  ;;  %v8899_v31 = vadd.f32 1.0, %v16984_v6 }
 0xafc   : >> { %v16988_v40 = vpop.eup %16987  ;;  %v8918_v13 = vmul.f32 %v16986_v52, %v16966_v46  ;;  %v8959_v46 = vpop.permute.xlu1 %8958  ;;  %v9066_v52 = vld [vmem:[#allocation29 + $0x40] sm:$0xff] }
 0xafd   : >> { %v16990_v59 = vpop.eup %16989  ;;  %v8916_v44 = vmul.f32 %v17783_v1, %v16988_v40  ;;  %v9068_v40 = vld [vmem:[#allocation29 + $0x50] sm:$0xff] }
 0xafe   : >> { %v16992_v60 = vpop.eup %16991  ;;  %v19514_v3 = vadd.f32 %v8918_v13, %v8914_v53   ;;  %v8917_v17 = vmul.f32 %v16990_v59, %v16970_v48  ;;  %v9064_v53 = vld [vmem:[#allocation29 + $0x30] sm:$0xff]  ;;  %v9070_v13 = vld [vmem:[#allocation29 + $0x60] sm:$0xff]  ;;  %v9071_v59 = vld [vmem:[#allocation29 + $0x68] sm:$0xff] }
 0xaff   : >> { %v16994_v45 = vpop.eup %16993  ;;  %v8920_v15 = vmul.f32 %v16992_v60, %v16974_v47  ;;  %v9060_v47 = vld [vmem:[#allocation29 + $0x10] sm:$0xff]  ;;  %v9074_v60 = vld [vmem:[#allocation29 + $0x80] sm:$0xff] }
 0xb00   : >> { %v16996_v0 = vpop.eup %16995  ;;  %v8915_v18 = vmul.f32 %v17787_v2, %v16994_v45  ;;  %17003 = vtanh.f32 %v19514_v3  ;;  %v19518_v4 = vadd.f32 %v8917_v17, %v8913_v50   ;;  %v9069_v50 = vld [vmem:[#allocation29 + $0x58] sm:$0xff]  ;;  %v9075_v17 = vld [vmem:[#allocation29 + $0x88] sm:$0xff]  ;;  %v9076_v45 = vld [vmem:[#allocation29 + $0x90] sm:$0xff] }
 0xb01   : >> { %v16998_v22 = vpop.eup %16997  ;;  %17005 = vrcp.f32 %v8900_v54  ;;  %v19520_v1 = vadd.f32 %v8920_v15, %v8916_v44   ;;  %v9072_v44 = vld [vmem:[#allocation29 + $0x70] sm:$0xff]  ;;  %v9073_v54 = vld [vmem:[#allocation29 + $0x78] sm:$0xff] }
 0xb02   : >> { %17007 = vtanh.f32 %v19518_v4  ;;  %v8919_v27 = vmul.f32 %v16998_v22, %v16996_v0  ;;  %v17000_v34 = vpop.eup %16999  ;;  %v9077_v15 = vld [vmem:[#allocation29 + $0x98] sm:$0xff]  ;;  %v9078_v0 = vld [vmem:[#allocation29 + $0xa0] sm:$0xff]  ;;  %v9080_v22 = vld [vmem:[#allocation29 + $0xb0] sm:$0xff] }
 0xb03   : >> { %17009 = vtanh.f32 %v19520_v1  ;;  %v17002_v7 = vpop.eup %17001 }
 0xb04   : >> { %v19524_v2 = vadd.f32 %v8919_v27, %v8915_v18   ;;  %17011 = vrcp.f32 %v8899_v31  ;;  %v9079_v18 = vld [vmem:[#allocation29 + $0xa8] sm:$0xff]  ;;  %v9081_v31 = vld [vmem:[#allocation29 + $0xb8] sm:$0xff]  ;;  %v9082_v27 = vld [vmem:[#allocation29 + $0xc0] sm:$0xff] }
 0xb06   : >> { %17013 = vtanh.f32 %v19524_v2 }
 0xb0a   : >> { %v17004_v10 = vpop.eup %17003 }
 0xb0b   : >> { %v17006_v11 = vpop.eup %17005  ;;  %v19527_v33 = vmul.f32 %v17004_v10, %v17000_v34   ;;  %v9083_v34 = vld [vmem:[#allocation29 + $0xc8] sm:$0xff]  ;;  %v9085_v10 = vld [vmem:[#allocation29 + $0xd8] sm:$0xff] }
 0xb0c   : >> { %v17008_v21 = vpop.eup %17007 }
 0xb0d   : >> { %v17010_v35 = vpop.eup %17009  ;;  %v19529_v8 = vmul.f32 %v17008_v21, %v17002_v7   ;;  %v9084_v7 = vld [vmem:[#allocation29 + $0xd0] sm:$0xff]  ;;  %v9087_v21 = vld [vmem:[#allocation29 + $0xe8] sm:$0xff] }
 0xb0e   : >> { %v19531_v5 = vmul.f32 %v17010_v35, %v17006_v11   ;;  %v17012_v51 = vpop.eup %17011  ;;  %v9086_v11 = vld [vmem:[#allocation29 + $0xe0] sm:$0xff]  ;;  %v9088_v35 = vld [vmem:[#allocation29 + $0xf0] sm:$0xff] }
 0xb0f   : >> { %v15989_v26 = vpack.c.bf16 %v19527_v33, %v19529_v8 }
 0xb10   : >> { %v17014_v36 = vpop.eup %17013 }
 0xb11   : >> { %15990 = vmatprep.subr.bf16.mxu0 %v15989_v26  ;;  %v19535_v6 = vmul.f32 %v17014_v36, %v17012_v51   ;;  %v9089_v51 = vld [vmem:[#allocation29 + $0xf8] sm:$0xff]  ;;  %v9091_v36 = vld [vmem:[#allocation29 + $0x108] sm:$0xff] }
 0xb12   : >> { %15992 = vmatpush3.bf16.msra.mxu0 %v15989_v26  ;;  %v9090_v26 = vld [vmem:[#allocation29 + $0x100] sm:$0xff] }
 0xb13   : >> { %v15993_v19 = vpack.c.bf16 %v19531_v5, %v19535_v6 }
 0xb15   : >> { %15994 = vmatprep.subr.bf16.mxu0 %v15993_v19 }
 0xb16   : >> { %15996 = vmatpush3.bf16.msra.mxu0 %v15993_v19  ;;  %v9092_v19 = vld [vmem:[#allocation29 + $0x110] sm:$0xff] }
 0xb19   : >> { %15270 = vmatmul.mubr.msk.f32.vlgmr.msra.gmra.mrb[144].mxu0 %vm1194_vm8, %v8934_v23  ;;  %v9093_v23 = vld [vmem:[#allocation29 + $0x118] sm:$0xff] }
 0xb1a   : >> { %15272 = vmatprep.mubr.msk.f32.mxu0 %vm1194_vm8, %v8935_v12  ;;  %v9450_v12 = vld [vmem:[#allocation27 + $0x10] sm:$0xff] }
 0xb1d   : >> { %15273 = vmatmul.mubr.msk.f32.gmra.mrb[146].mxu0 %vm1194_vm8, %v8936_v9  ;;  %v9451_v9 = vld [vmem:[#allocation27 + $0x18] sm:$0xff] }
 0xb1e   : >> { %15283 = vmatprep.mubr.msk.f32.mxu0 %vm1194_vm8, %v9058_v49  ;;  %v16005_v49 = vpack.c.bf16 %v9451_v9, %v9450_v12  ;;  %v10271_v12 = vld [vmem:[#allocation27 + $0x80] sm:$0xff]  ;;  %v10272_v9 = vld [vmem:[#allocation27 + $0x88] sm:$0xff] }
 0xbec   : >> { %v15271_v29 = vpop.f32.mrb[144].mxu0 }
 0xbed   : >> { %v9045_v14 = vadd.f32 %v15271_v29, %v8949_v62  ;;  %v9039_v61 = vpop.f32.mrb[145].mxu0  ;;  %v9447_v62 = vld [vmem:[#allocation27] sm:$0xff] }
 0xbee   : >> { %v9040_v43 = vadd.f32 %v9039_v61, %v8944_v41  ;;  %v9448_v41 = vld [vmem:[#allocation27 + $0x8] sm:$0xff] }
 0xbef   : >> { %v16009_v29 = vpack.c.bf16 %v9448_v41, %v9447_v62  ;;  %v16037_v41 = vpack.c.bf16 %v10272_v9, %v10271_v12  ;;  %v10415_v12 = vld [vmem:[#allocation33 + $0x8] sm:$0xff]  ;;  %v10416_v9 = vld [vmem:[#allocation33 + $0x10] sm:$0xff] }
 0xbf0   : >> { %v15997_v37 = vpack.c.bf16 %v9045_v14, %v9040_v43  ;;  %v15274_v16 = vpop.f32.mrb[146].mxu0 }
 0xbf1   : >> { %v9055_v38 = vadd.f32 %v15274_v16, %v8959_v46  ;;  %v9049_v63 = vpop.f32.mrb[147].mxu0  ;;  %v9648_v16 = vld [vmem:[#allocation27 + $0x28] sm:$0xff] }
 0xbf2   : >> { %v9050_v48 = vadd.f32 %v9049_v63, %v8954_v42  ;;  %15998 = vmatprep.subr.bf16.mxu0 %v15997_v37 }
 0xbf3   : >> { %16000 = vmatpush3.bf16.msra.mxu0 %v15997_v37  ;;  %v9647_v37 = vld [vmem:[#allocation27 + $0x20] sm:$0xff] }
 0xbf4   : >> { %v16001_v55 = vpack.c.bf16 %v9055_v38, %v9050_v48  ;;  %v16013_v63 = vpack.c.bf16 %v9648_v16, %v9647_v37  ;;  %v10414_v16 = vld [vmem:[#allocation33] sm:$0xff] }
 0xbf6   : >> { %16002 = vmatprep.subr.bf16.mxu0 %v16001_v55 }
 0xbf7   : >> { %16004 = vmatpush3.bf16.msra.mxu0 %v16001_v55 }
 0xbf8   : >> { %16006 = vmatprep.subr.bf16.mxu0 %v16005_v49 }
 0xbfa   : >> { %15284 = vmatmul.mubr.msk.f32.vlgmr.msra.gmra.mrb[148].mxu0 %vm1194_vm8, %v9059_v20  ;;  %v9751_v20 = vld [vmem:[#allocation27 + $0x30] sm:$0xff] }
 0xbfb   : >> { %15286 = vmatprep.mubr.msk.f32.mxu0 %vm1194_vm8, %v9060_v47  ;;  %16008 = vmatpush3.bf16.msra.mxu0 %v16005_v49  ;;  %v9752_v47 = vld [vmem:[#allocation27 + $0x38] sm:$0xff] }
 0xbfc   : >> { %16010 = vmatprep.subr.bf16.mxu0 %v16009_v29 }
 0xbfe   : >> { %15287 = vmatmul.mubr.msk.f32.gmra.mrb[150].mxu0 %vm1194_vm8, %v9061_v39 }
 0xbff   : >> { %15289 = vmatprep.mubr.msk.f32.mxu0 %vm1194_vm8, %v9062_v32 }
 0xc02   : >> { %15290 = vmatmul.mubr.msk.f32.gmra.mrb[152].mxu0 %vm1194_vm8, %v9063_v25  ;;  %v16017_v25 = vpack.c.bf16 %v9752_v47, %v9751_v20  ;;  %v10825_v20 = vld [vmem:[#allocation32 + $0xa8] sm:$0xff]  ;;  %v10827_v47 = vld [vmem:[#allocation32 + $0xb8] sm:$0xff] }
 0xc03   : >> { %15292 = vmatprep.mubr.msk.f32.mxu0 %vm1194_vm8, %v9064_v53 }
 0xc06   : >> { %15293 = vmatmul.mubr.msk.f32.gmra.mrb[154].mxu0 %vm1194_vm8, %v9065_v30 }
 0xc07   : >> { %15295 = vmatprep.mubr.msk.f32.mxu0 %vm1194_vm8, %v9066_v52  ;;  %v9855_v52 = vld [vmem:[#allocation27 + $0x40] sm:$0xff] }
 0xc0a   : >> { %15296 = vmatmul.mubr.msk.f32.gmra.mrb[156].mxu0 %vm1194_vm8, %v9067_v28  ;;  %v9856_v28 = vld [vmem:[#allocation27 + $0x48] sm:$0xff] }
 0xc0b   : >> { %15298 = vmatprep.mubr.msk.f32.mxu0 %vm1194_vm8, %v9068_v40 }
 0xc0e   : >> { %15299 = vmatmul.mubr.msk.f32.gmra.mrb[158].mxu0 %vm1194_vm8, %v9069_v50 }
 0xc0f   : >> { %15301 = vmatprep.mubr.msk.f32.mxu0 %vm1194_vm8, %v9070_v13  ;;  %v16021_v13 = vpack.c.bf16 %v9856_v28, %v9855_v52  ;;  %v10831_v52 = vld [vmem:[#allocation32 + $0xd8] sm:$0xff] }
 0xc12   : >> { %15302 = vmatmul.mubr.msk.f32.gmra.mrb[160].mxu0 %vm1194_vm8, %v9071_v59 }
 0xc13   : >> { %15304 = vmatprep.mubr.msk.f32.mxu0 %vm1194_vm8, %v9072_v44 }
 0xc16   : >> { %15305 = vmatmul.mubr.msk.f32.gmra.mrb[162].mxu0 %vm1194_vm8, %v9073_v54  ;;  %v9959_v54 = vld [vmem:[#allocation27 + $0x50] sm:$0xff] }
 0xc17   : >> { %15307 = vmatprep.mubr.msk.f32.mxu0 %vm1194_vm8, %v9074_v60  ;;  %v9960_v60 = vld [vmem:[#allocation27 + $0x58] sm:$0xff] }
 0xc1a   : >> { %15308 = vmatmul.mubr.msk.f32.gmra.mrb[164].mxu0 %vm1194_vm8, %v9075_v17 }
 0xc1b   : >> { %15310 = vmatprep.mubr.msk.f32.mxu0 %vm1194_vm8, %v9076_v45 }
 0xc1e   : >> { %15311 = vmatmul.mubr.msk.f32.gmra.mrb[166].mxu0 %vm1194_vm8, %v9077_v15  ;;  %v16025_v15 = vpack.c.bf16 %v9960_v60, %v9959_v54  ;;  %v10381_v54 = vpop.permute.xlu0 %10380 }
 0xc1f   : >> { %15313 = vmatprep.mubr.msk.f32.mxu0 %vm1194_vm8, %v9078_v0 }
 0xc22   : >> { %15314 = vmatmul.mubr.msk.f32.gmra.mrb[168].mxu0 %vm1194_vm8, %v9079_v18 }
 0xc23   : >> { %15316 = vmatprep.mubr.msk.f32.mxu0 %vm1194_vm8, %v9080_v22  ;;  %v10063_v22 = vld [vmem:[#allocation27 + $0x60] sm:$0xff] }
 0xc26   : >> { %15317 = vmatmul.mubr.msk.f32.gmra.mrb[170].mxu0 %vm1194_vm8, %v9081_v31  ;;  %v10064_v31 = vld [vmem:[#allocation27 + $0x68] sm:$0xff] }
 0xc27   : >> { %15319 = vmatprep.mubr.msk.f32.mxu0 %vm1194_vm8, %v9082_v27 }
 0xc2a   : >> { %15320 = vmatmul.mubr.msk.f32.gmra.mrb[172].mxu0 %vm1194_vm8, %v9083_v34 }
 0xc2b   : >> { %15322 = vmatprep.mubr.msk.f32.mxu0 %vm1194_vm8, %v9084_v7  ;;  %v16029_v7 = vpack.c.bf16 %v10064_v31, %v10063_v22 }
 0xc2e   : >> { %15323 = vmatmul.mubr.msk.f32.gmra.mrb[174].mxu0 %vm1194_vm8, %v9085_v10 }
 0xc2f   : >> { %15325 = vmatprep.mubr.msk.f32.mxu0 %vm1194_vm8, %v9086_v11 }
 0xc32   : >> { %15326 = vmatmul.mubr.msk.f32.gmra.mrb[176].mxu0 %vm1194_vm8, %v9087_v21  ;;  %v10167_v21 = vld [vmem:[#allocation27 + $0x70] sm:$0xff] }
 0xc33   : >> { %15328 = vmatprep.mubr.msk.f32.mxu0 %vm1194_vm8, %v9088_v35  ;;  %v10168_v35 = vld [vmem:[#allocation27 + $0x78] sm:$0xff] }
 0xc36   : >> { %15329 = vmatmul.mubr.msk.f32.gmra.mrb[178].mxu0 %vm1194_vm8, %v9089_v51 }
 0xc37   : >> { %15331 = vmatprep.mubr.msk.f32.mxu0 %vm1194_vm8, %v9090_v26 }
 0xc3a   : >> { %15332 = vmatmul.mubr.msk.f32.gmra.mrb[180].mxu0 %vm1194_vm8, %v9091_v36  ;;  %v16033_v36 = vpack.c.bf16 %v10168_v35, %v10167_v21 }
 0xc3b   : >> { %15334 = vmatprep.mubr.msk.f32.mxu0 %vm1194_vm8, %v9092_v19 }
 0xc3e   : >> { %15335 = vmatmul.mubr.msk.f32.gmra.mrb[182].mxu0 %vm1194_vm8, %v9093_v23 }
 0xccd   : >> { %v15285_v14 = vpop.f32.mrb[148].mxu0 }
 0xcce   : >> { %v9268_v61 = vpop.f32.mrb[149].mxu0 }
 0xcd1   : >> { %v15288_v43 = vpop.f32.mrb[150].mxu0 }
 0xcd2   : >> { %v9278_v46 = vpop.f32.mrb[151].mxu0 }
 0xcd5   : >> { %v15291_v42 = vpop.f32.mrb[152].mxu0 }
 0xcd6   : >> { %v9288_v38 = vpop.f32.mrb[153].mxu0 }
 0xcd7   : >> { %15341 = vmatprep.mubr.msk.f32.mxu0 %vm6853_vm2, %v9288_v38  ;;  %v10823_v38 = vld [vmem:[#allocation32 + $0x98] sm:$0xff] }
 0xcd8   : >> { %15342 = vmatmul.mubr.msk.f32.vlgmr.msra.gmra.mrb[184].mxu0 %vm6853_vm2, %v15291_v42  ;;  %v10821_v42 = vld [vmem:[#allocation32 + $0x88] sm:$0xff] }
 0xcd9   : >> { %v15294_v48 = vpop.f32.mrb[154].mxu0  ;;  %16012 = vmatpush3.bf16.msra.mxu0 %v16009_v29 }
 0xcda   : >> { %v9298_v55 = vpop.f32.mrb[155].mxu0  ;;  %16014 = vmatprep.subr.bf16.mxu0 %v16013_v63 }
 0xcdb   : >> { %15344 = vmatprep.mubr.msk.f32.mxu0 %vm6853_vm2, %v9298_v55  ;;  %v10822_v55 = vld [vmem:[#allocation32 + $0x90] sm:$0xff] }
 0xcdc   : >> { %15345 = vmatmul.mubr.msk.f32.gmra.mrb[186].mxu0 %vm6853_vm2, %v15294_v48  ;;  %v16049_v48 = vpack.c.bf16 %v10823_v38, %v10821_v42  ;;  %v10427_v42 = vld [vmem:[#allocation33 + $0x68] sm:$0xff]  ;;  %v10428_v38 = vld [vmem:[#allocation33 + $0x70] sm:$0xff] }
 0xcdd   : >> { %15351 = vmatprep.mubr.msk.f32.mxu0 %vm6853_vm2, %v9268_v61  ;;  %v15297_v39 = vpop.f32.mrb[156].mxu0 }
 0xcde   : >> { %v9308_v32 = vpop.f32.mrb[157].mxu0  ;;  %16050 = vmatprep.subr.bf16.mxu1 %v16049_v48  ;;  %v10430_v48 = vld [vmem:[#allocation33 + $0x80] sm:$0xff] }
 0xce0   : >> { %15352 = vmatmul.mubr.msk.f32.vlgmr.msra.gmra.mrb[184].mxu0 %vm6853_vm2, %v15285_v14 }
 0xce1   : >> { %15354 = vmatprep.mubr.msk.f32.mxu0 %vm6853_vm2, %v9278_v46  ;;  %16016 = vmatpush3.bf16.msra.mxu0 %v16013_v63  ;;  %v15300_v53 = vpop.f32.mrb[158].mxu0  ;;  %v10820_v63 = vld [vmem:[#allocation32 + $0x80] sm:$0xff] }
 0xce2   : >> { %v9318_v30 = vpop.f32.mrb[159].mxu0  ;;  %16018 = vmatprep.subr.bf16.mxu0 %v16017_v25 }
 0xce4   : >> { %15355 = vmatmul.mubr.msk.f32.gmra.mrb[186].mxu0 %vm6853_vm2, %v15288_v43 }
 0xce5   : >> { %15361 = vmatprep.mubr.msk.f32.mxu0 %vm6853_vm2, %v9308_v32  ;;  %v15303_v40 = vpop.f32.mrb[160].mxu0  ;;  %v16053_v32 = vpack.c.bf16 %v10827_v47, %v10825_v20  ;;  %v10432_v20 = vld [vmem:[#allocation33 + $0x90] sm:$0xff]  ;;  %v10433_v47 = vld [vmem:[#allocation33 + $0x98] sm:$0xff] }
 0xce6   : >> { %v9328_v50 = vpop.f32.mrb[161].mxu0 }
 0xce8   : >> { %15362 = vmatmul.mubr.msk.f32.vlgmr.msra.gmra.mrb[184].mxu0 %vm6853_vm2, %v15297_v39  ;;  %v16051_v39 = vpack.c.bf16 %v10822_v55, %v10820_v63  ;;  %v10429_v63 = vld [vmem:[#allocation33 + $0x78] sm:$0xff]  ;;  %v10431_v55 = vld [vmem:[#allocation33 + $0x88] sm:$0xff] }
 0xce9   : >> { %15364 = vmatprep.mubr.msk.f32.mxu0 %vm6853_vm2, %v9318_v30  ;;  %16020 = vmatpush3.bf16.msra.mxu0 %v16017_v25  ;;  %v15306_v59 = vpop.f32.mrb[162].mxu0  ;;  %v10824_v25 = vld [vmem:[#allocation32 + $0xa0] sm:$0xff]  ;;  %v10829_v30 = vld [vmem:[#allocation32 + $0xc8] sm:$0xff] }
 0xcea   : >> { %v9338_v44 = vpop.f32.mrb[163].mxu0  ;;  %16022 = vmatprep.subr.bf16.mxu0 %v16021_v13  ;;  %16052 = vmatpush1.bf16.msra.mxu1 %v16051_v39  ;;  %v10434_v39 = vld [vmem:[#allocation33 + $0xa0] sm:$0xff] }
 0xceb   : >> { %16054 = vmatprep.subr.bf16.mxu1 %v16053_v32  ;;  %v10435_v32 = vld [vmem:[#allocation33 + $0xa8] sm:$0xff] }
 0xcec   : >> { %15365 = vmatmul.mubr.msk.f32.gmra.mrb[186].mxu0 %vm6853_vm2, %v15300_v53  ;;  %v10826_v53 = vld [vmem:[#allocation32 + $0xb0] sm:$0xff] }
 0xced   : >> { %15371 = vmatprep.mubr.msk.f32.mxu0 %vm6853_vm2, %v9328_v50  ;;  %v15309_v17 = vpop.f32.mrb[164].mxu0  ;;  %v16055_v28 = vpack.c.bf16 %v10826_v53, %v10824_v25  ;;  %v10828_v50 = vld [vmem:[#allocation32 + $0xc0] sm:$0xff]  ;;  %v10436_v25 = vld [vmem:[#allocation33 + $0xb0] sm:$0xff]  ;;  %v10437_v53 = vld [vmem:[#allocation33 + $0xb8] sm:$0xff] }
 0xcee   : >> { %v9348_v45 = vpop.f32.mrb[165].mxu0 }
 0xcef   : >> { %16056 = vmatpush1.bf16.msra.mxu1 %v16055_v28  ;;  %v10440_v28 = vld [vmem:[#allocation33 + $0xd0] sm:$0xff] }
 0xcf0   : >> { %15372 = vmatmul.mubr.msk.f32.vlgmr.msra.gmra.mrb[184].mxu0 %vm6853_vm2, %v15303_v40  ;;  %v16057_v40 = vpack.c.bf16 %v10831_v52, %v10829_v30  ;;  %v10438_v30 = vld [vmem:[#allocation33 + $0xc0] sm:$0xff]  ;;  %v10439_v52 = vld [vmem:[#allocation33 + $0xc8] sm:$0xff] }
 0xcf1   : >> { %15374 = vmatprep.mubr.msk.f32.mxu0 %vm6853_vm2, %v9338_v44  ;;  %16024 = vmatpush3.bf16.msra.mxu0 %v16021_v13  ;;  %v15312_v0 = vpop.f32.mrb[166].mxu0  ;;  %v10830_v13 = vld [vmem:[#allocation32 + $0xd0] sm:$0xff]  ;;  %v10386_v44 = vpop.permute.xlu1 %10385 }
 0xcf2   : >> { %v9358_v18 = vpop.f32.mrb[167].mxu0  ;;  %16026 = vmatprep.subr.bf16.mxu0 %v16025_v15  ;;  %16058 = vmatprep.subr.bf16.mxu1 %v16057_v40  ;;  %v10441_v40 = vld [vmem:[#allocation33 + $0xd8] sm:$0xff] }
 0xcf4   : >> { %15375 = vmatmul.mubr.msk.f32.gmra.mrb[186].mxu0 %vm6853_vm2, %v15306_v59  ;;  %v16059_v59 = vpack.c.bf16 %v10830_v13, %v10828_v50  ;;  %v10442_v50 = vld [vmem:[#allocation33 + $0xe0] sm:$0xff]  ;;  %v10443_v13 = vld [vmem:[#allocation33 + $0xe8] sm:$0xff] }
 0xcf5   : >> { %15381 = vmatprep.mubr.msk.f32.mxu0 %vm6853_vm2, %v9348_v45  ;;  %v15315_v27 = vpop.f32.mrb[168].mxu0 }
 0xcf6   : >> { %v9368_v34 = vpop.f32.mrb[169].mxu0  ;;  %16060 = vmatpush1.bf16.msra.mxu1 %v16059_v59  ;;  %v10444_v59 = vld [vmem:[#allocation33 + $0xf0] sm:$0xff] }
 0xcf8   : >> { %15382 = vmatmul.mubr.msk.f32.vlgmr.msra.gmra.mrb[184].mxu0 %vm6853_vm2, %v15309_v17 }
 0xcf9   : >> { %15384 = vmatprep.mubr.msk.f32.mxu0 %vm6853_vm2, %v9358_v18  ;;  %16028 = vmatpush3.bf16.msra.mxu0 %v16025_v15  ;;  %v15318_v10 = vpop.f32.mrb[170].mxu0  ;;  %v10396_v18 = vpop.permute.xlu1 %10395 }
 0xcfa   : >> { %v9378_v11 = vpop.f32.mrb[171].mxu0  ;;  %16030 = vmatprep.subr.bf16.mxu0 %v16029_v7 }
 0xcfc   : >> { %15385 = vmatmul.mubr.msk.f32.gmra.mrb[186].mxu0 %vm6853_vm2, %v15312_v0 }
 0xcfd   : >> { %15391 = vmatprep.mubr.msk.f32.mxu0 %vm6853_vm2, %v9368_v34  ;;  %v15321_v51 = vpop.f32.mrb[172].mxu0 }
 0xcfe   : >> { %v9388_v26 = vpop.f32.mrb[173].mxu0 }
 0xd00   : >> { %15392 = vmatmul.mubr.msk.f32.vlgmr.msra.gmra.mrb[184].mxu0 %vm6853_vm2, %v15315_v27  ;;  %v10391_v27 = vpop.permute.xlu0 %10390 }
 0xd01   : >> { %15394 = vmatprep.mubr.msk.f32.mxu0 %vm6853_vm2, %v9378_v11  ;;  %16032 = vmatpush3.bf16.msra.mxu0 %v16029_v7  ;;  %v15324_v19 = vpop.f32.mrb[174].mxu0 }
 0xd02   : >> { %v9398_v23 = vpop.f32.mrb[175].mxu0  ;;  %16034 = vmatprep.subr.bf16.mxu0 %v16033_v36 }
 0xd04   : >> { %15395 = vmatmul.mubr.msk.f32.gmra.mrb[186].mxu0 %vm6853_vm2, %v15318_v10 }
 0xd05   : >> { %15401 = vmatprep.mubr.msk.f32.mxu0 %vm6853_vm2, %v9388_v26  ;;  %v15327_v49 = vpop.f32.mrb[176].mxu0 }
 0xd06   : >> { %v9408_v62 = vpop.f32.mrb[177].mxu0 }
 0xd08   : >> { %15402 = vmatmul.mubr.msk.f32.vlgmr.msra.gmra.mrb[184].mxu0 %vm6853_vm2, %v15321_v51 }
 0xd09   : >> { %15404 = vmatprep.mubr.msk.f32.mxu0 %vm6853_vm2, %v9398_v23  ;;  %16036 = vmatpush3.bf16.msra.mxu0 %v16033_v36  ;;  %v15330_v29 = vpop.f32.mrb[178].mxu0 }
 0xd0a   : >> { %v9418_v14 = vpop.f32.mrb[179].mxu0  ;;  %16038 = vmatprep.subr.bf16.mxu0 %v16037_v41 }
 0xd0c   : >> { %15405 = vmatmul.mubr.msk.f32.gmra.mrb[186].mxu0 %vm6853_vm2, %v15324_v19 }
 0xd0d   : >> { %15411 = vmatprep.mubr.msk.f32.mxu0 %vm6853_vm2, %v9408_v62  ;;  %v15333_v61 = vpop.f32.mrb[180].mxu0  ;;  %v10418_v62 = vld [vmem:[#allocation33 + $0x20] sm:$0xff] }
 0xd0e   : >> { %v9428_v43 = vpop.f32.mrb[181].mxu0 }
 0xd10   : >> { %15412 = vmatmul.mubr.msk.f32.vlgmr.msra.gmra.mrb[184].mxu0 %vm6853_vm2, %v15327_v49  ;;  %v10417_v49 = vld [vmem:[#allocation33 + $0x18] sm:$0xff] }
 0xd11   : >> { %15414 = vmatprep.mubr.msk.f32.mxu0 %vm6853_vm2, %v9418_v14  ;;  %16040 = vmatpush3.bf16.msra.mxu0 %v16037_v41  ;;  %v15336_v46 = vpop.f32.mrb[182].mxu0  ;;  %v10419_v41 = vld [vmem:[#allocation33 + $0x28] sm:$0xff]  ;;  %v10421_v14 = vld [vmem:[#allocation33 + $0x38] sm:$0xff] }
 0xd12   : >> { %v9438_v37 = vpop.f32.mrb[183].mxu0 }
 0xd14   : >> { %15415 = vmatmul.mubr.msk.f32.gmra.mrb[186].mxu0 %vm6853_vm2, %v15330_v29  ;;  %v10420_v29 = vld [vmem:[#allocation33 + $0x30] sm:$0xff] }
 0xd15   : >> { %15421 = vmatprep.mubr.msk.f32.mxu0 %vm6853_vm2, %v9428_v43  ;;  %v10423_v43 = vld [vmem:[#allocation33 + $0x48] sm:$0xff] }
 0xd18   : >> { %15422 = vmatmul.mubr.msk.f32.vlgmr.msra.gmra.mrb[184].mxu0 %vm6853_vm2, %v15333_v61  ;;  %v10422_v61 = vld [vmem:[#allocation33 + $0x40] sm:$0xff] }
 0xd19   : >> { %15424 = vmatprep.mubr.msk.f32.mxu0 %vm6853_vm2, %v9438_v37  ;;  %v10425_v37 = vld [vmem:[#allocation33 + $0x58] sm:$0xff] }
 0xd1c   : >> { %15425 = vmatmul.mubr.msk.f32.gmra.mrb[186].mxu0 %vm6853_vm2, %v15336_v46  ;;  %v10424_v46 = vld [vmem:[#allocation33 + $0x50] sm:$0xff] }
 0xd1d   : >> { %15435 = vmatprep.mubr.msk.f32.mxu0 %vm1194_vm8, %v10414_v16  ;;  %v10426_v16 = vld [vmem:[#allocation33 + $0x60] sm:$0xff] }
 0xdeb   : >> { %v15423_v60 = vpop.f32.mrb[184].mxu0 }
 0xdec   : >> { %v10399_v17 = vadd.f32 %v15423_v60, %v10386_v44  ;;  %v10351_v45 = vpop.f32.mrb[185].mxu0  ;;  %v10445_v44 = vld [vmem:[#allocation33 + $0xf8] sm:$0xff]  ;;  %v10447_v60 = vld [vmem:[#allocation33 + $0x108] sm:$0xff] }
 0xded   : >> { %v10398_v15 = vadd.f32 %v10381_v54, %v10351_v45  ;;  %v10446_v54 = vld [vmem:[#allocation33 + $0x100] sm:$0xff]  ;;  %v10449_v45 = vld [vmem:[#allocation33 + $0x118] sm:$0xff] }
 0xdee   : >> { %vm10403_vm3 = vcmp.ge.f32.partialorder %v10399_v17, 0.0  ;;  %v10407_v0 = vmul.f32 0.1, %v10399_v17 }
 0xdef   : >> { %vm10402_vm4 = vcmp.ge.f32.partialorder %v10398_v15, 0.0  ;;  %v10406_v22 = vmul.f32 0.1, %v10398_v15  ;;  %v15426_v31 = vpop.f32.mrb[186].mxu0 }
 0xdf0   : >> { %v10401_v34 = vadd.f32 %v15426_v31, %v10396_v18  ;;  %v10361_v7 = vpop.f32.mrb[187].mxu0  ;;  %v10411_v10 = vsel %vm10403_vm3, %v10399_v17, %v10407_v0  ;;  %v10448_v17 = vld [vmem:[#allocation33 + $0x110] sm:$0xff]  ;;  %v10835_v0 = vld [vmem:[#allocation32 + $0xf8] sm:$0xff] }
 0xdf1   : >> { %v10400_v11 = vadd.f32 %v10391_v27, %v10361_v7  ;;  %v10410_v21 = vsel %vm10402_vm4, %v10398_v15, %v10406_v22  ;;  %v10833_v15 = vld [vmem:[#allocation32 + $0xe8] sm:$0xff]  ;;  %v10832_v22 = vld [vmem:[#allocation32 + $0xe0] sm:$0xff]  ;;  %v10834_v31 = vld [vmem:[#allocation32 + $0xf0] sm:$0xff] }
 0xdf2   : >> { %vm10405_vm5 = vcmp.ge.f32.partialorder %v10401_v34, 0.0  ;;  %v10409_v35 = vmul.f32 0.1, %v10401_v34  ;;  %v16041_v51 = vpack.c.bf16 %v10411_v10, %v10410_v21  ;;  %v16061_v18 = vpack.c.bf16 %v10835_v0, %v10833_v15  ;;  %v10806_v7 = vld [vmem:[#allocation32 + $0x18] sm:$0xff]  ;;  %v11045_v15 = vld [vmem:[#allocation32 + $0x130] sm:$0xff] }
 0xdf3   : >> { %vm10404_vm6 = vcmp.ge.f32.partialorder %v10400_v11, 0.0  ;;  %v10408_v26 = vmul.f32 0.1, %v10400_v11  ;;  %v16063_v27 = vpack.c.bf16 %v10834_v31, %v10832_v22  ;;  %v11050_v22 = vld [vmem:[#allocation32 + $0x158] sm:$0xff] }
 0xdf4   : >> { %16042 = vmatprep.subr.bf16.mxu0 %v16041_v51  ;;  %v10413_v36 = vsel %vm10405_vm5, %v10401_v34, %v10409_v35  ;;  %16062 = vmatprep.subr.bf16.mxu1 %v16061_v18  ;;  %v10804_v34 = vld [vmem:[#allocation32 + $0x8] sm:$0xff] }
 0xdf5   : >> { %16044 = vmatpush3.bf16.msra.mxu0 %v16041_v51  ;;  %v10412_v19 = vsel %vm10404_vm6, %v10400_v11, %v10408_v26  ;;  %16064 = vmatpush1.bf16.msra.mxu1 %v16063_v27  ;;  %v16065_v10 = vpack.c.bf16 %v10806_v7, %v10804_v34  ;;  %v10803_v51 = vld [vmem:[#allocation32] sm:$0xff]  ;;  %v10805_v26 = vld [vmem:[#allocation32 + $0x10] sm:$0xff]  ;;  %v11048_v18 = vld [vmem:[#allocation32 + $0x148] sm:$0xff] }
 0xdf6   : >> { %v16045_v23 = vpack.c.bf16 %v10413_v36, %v10412_v19  ;;  %v10808_v19 = vld [vmem:[#allocation32 + $0x28] sm:$0xff]  ;;  %v16089_v34 = vpack.c.bf16 %v11050_v22, %v11048_v18  ;;  %v11047_v7 = vld [vmem:[#allocation32 + $0x140] sm:$0xff]  ;;  %v11294_v22 = vld [vmem:[#allocation32 + $0x218] sm:$0xff] }
 0xdf7   : >> { %16066 = vmatprep.subr.bf16.mxu1 %v16065_v10  ;;  %v11049_v10 = vld [vmem:[#allocation32 + $0x150] sm:$0xff]  ;;  %v11292_v18 = vld [vmem:[#allocation32 + $0x208] sm:$0xff] }
 0xdf8   : >> { %16046 = vmatprep.subr.bf16.mxu0 %v16045_v23 }
 0xdf9   : >> { %16048 = vmatpush3.bf16.msra.mxu0 %v16045_v23  ;;  %v10810_v23 = vld [vmem:[#allocation32 + $0x38] sm:$0xff] }
 0xdfc   : >> { %15436 = vmatmul.mubr.msk.f32.vlgmr.msra.gmra.mrb[188].mxu0 %vm1194_vm8, %v10415_v12  ;;  %v16067_v12 = vpack.c.bf16 %v10805_v26, %v10803_v51  ;;  %v11052_v26 = vld [vmem:[#allocation32 + $0x168] sm:$0xff] }
 0xdfd   : >> { %15438 = vmatprep.mubr.msk.f32.mxu0 %vm1194_vm8, %v10416_v9 }
 0xe00   : >> { %15439 = vmatmul.mubr.msk.f32.gmra.mrb[190].mxu0 %vm1194_vm8, %v10417_v49  ;;  %v16069_v49 = vpack.c.bf16 %v10810_v23, %v10808_v19  ;;  %v11054_v19 = vld [vmem:[#allocation32 + $0x178] sm:$0xff] }
 0xe01   : >> { %15441 = vmatprep.mubr.msk.f32.mxu0 %vm1194_vm8, %v10418_v62  ;;  %v10807_v62 = vld [vmem:[#allocation32 + $0x20] sm:$0xff] }
 0xe04   : >> { %15442 = vmatmul.mubr.msk.f32.gmra.mrb[192].mxu0 %vm1194_vm8, %v10419_v41  ;;  %v10809_v41 = vld [vmem:[#allocation32 + $0x30] sm:$0xff] }
 0xe05   : >> { %15444 = vmatprep.mubr.msk.f32.mxu0 %vm1194_vm8, %v10420_v29 }
 0xe08   : >> { %15445 = vmatmul.mubr.msk.f32.gmra.mrb[194].mxu0 %vm1194_vm8, %v10421_v14  ;;  %v10812_v14 = vld [vmem:[#allocation32 + $0x48] sm:$0xff] }
 0xe09   : >> { %15447 = vmatprep.mubr.msk.f32.mxu0 %vm1194_vm8, %v10422_v61  ;;  %v10814_v61 = vld [vmem:[#allocation32 + $0x58] sm:$0xff] }
 0xe0c   : >> { %15448 = vmatmul.mubr.msk.f32.gmra.mrb[196].mxu0 %vm1194_vm8, %v10423_v43  ;;  %v16071_v43 = vpack.c.bf16 %v10809_v41, %v10807_v62  ;;  %v11166_v41 = vld [vmem:[#allocation32 + $0x188] sm:$0xff] }
 0xe0d   : >> { %15450 = vmatprep.mubr.msk.f32.mxu0 %vm1194_vm8, %v10424_v46 }
 0xe10   : >> { %15451 = vmatmul.mubr.msk.f32.gmra.mrb[198].mxu0 %vm1194_vm8, %v10425_v37  ;;  %v16073_v37 = vpack.c.bf16 %v10814_v61, %v10812_v14 }
 0xe11   : >> { %15453 = vmatprep.mubr.msk.f32.mxu0 %vm1194_vm8, %v10426_v16  ;;  %v10811_v16 = vld [vmem:[#allocation32 + $0x40] sm:$0xff] }
 0xe14   : >> { %15454 = vmatmul.mubr.msk.f32.gmra.mrb[200].mxu0 %vm1194_vm8, %v10427_v42  ;;  %v10813_v42 = vld [vmem:[#allocation32 + $0x50] sm:$0xff] }
 0xe15   : >> { %15456 = vmatprep.mubr.msk.f32.mxu0 %vm1194_vm8, %v10428_v38 }
 0xe18   : >> { %15457 = vmatmul.mubr.msk.f32.gmra.mrb[202].mxu0 %vm1194_vm8, %v10429_v63  ;;  %v10816_v63 = vld [vmem:[#allocation32 + $0x68] sm:$0xff] }
 0xe19   : >> { %15459 = vmatprep.mubr.msk.f32.mxu0 %vm1194_vm8, %v10430_v48  ;;  %v10818_v48 = vld [vmem:[#allocation32 + $0x78] sm:$0xff] }
 0xe1c   : >> { %15460 = vmatmul.mubr.msk.f32.gmra.mrb[204].mxu0 %vm1194_vm8, %v10431_v55  ;;  %v16075_v55 = vpack.c.bf16 %v10813_v42, %v10811_v16  ;;  %v11170_v16 = vld [vmem:[#allocation32 + $0x1a8] sm:$0xff]  ;;  %v11172_v42 = vld [vmem:[#allocation32 + $0x1b8] sm:$0xff] }
 0xe1d   : >> { %15462 = vmatprep.mubr.msk.f32.mxu0 %vm1194_vm8, %v10432_v20  ;;  %v16077_v20 = vpack.c.bf16 %v10818_v48, %v10816_v63  ;;  %v16101_v63 = vpack.c.bf16 %v11172_v42, %v11170_v16  ;;  %v11169_v48 = vld [vmem:[#allocation32 + $0x1a0] sm:$0xff]  ;;  %v11301_v42 = vld [vmem:[#allocation32 + $0x250] sm:$0xff] }
 0xe1e   : >> { %v11299_v16 = vld [vmem:[#allocation32 + $0x240] sm:$0xff] }
 0xe20   : >> { %15463 = vmatmul.mubr.msk.f32.gmra.mrb[206].mxu0 %vm1194_vm8, %v10433_v47  ;;  %v10815_v47 = vld [vmem:[#allocation32 + $0x60] sm:$0xff] }
 0xe21   : >> { %15465 = vmatprep.mubr.msk.f32.mxu0 %vm1194_vm8, %v10434_v39  ;;  %v10817_v39 = vld [vmem:[#allocation32 + $0x70] sm:$0xff] }
 0xe24   : >> { %15466 = vmatmul.mubr.msk.f32.gmra.mrb[208].mxu0 %vm1194_vm8, %v10435_v32 }
 0xe25   : >> { %15468 = vmatprep.mubr.msk.f32.mxu0 %vm1194_vm8, %v10436_v25  ;;  %v11040_v25 = vld [vmem:[#allocation32 + $0x108] sm:$0xff] }
 0xe28   : >> { %15469 = vmatmul.mubr.msk.f32.gmra.mrb[210].mxu0 %vm1194_vm8, %v10437_v53  ;;  %v11042_v53 = vld [vmem:[#allocation32 + $0x118] sm:$0xff] }
 0xe29   : >> { %15471 = vmatprep.mubr.msk.f32.mxu0 %vm1194_vm8, %v10438_v30 }
 0xe2c   : >> { %15472 = vmatmul.mubr.msk.f32.gmra.mrb[212].mxu0 %vm1194_vm8, %v10439_v52  ;;  %v16079_v52 = vpack.c.bf16 %v10817_v39, %v10815_v47  ;;  %v11174_v47 = vld [vmem:[#allocation32 + $0x1c8] sm:$0xff]  ;;  %v11176_v39 = vld [vmem:[#allocation32 + $0x1d8] sm:$0xff] }
 0xe2d   : >> { %15474 = vmatprep.mubr.msk.f32.mxu0 %vm1194_vm8, %v10440_v28  ;;  %v16081_v28 = vpack.c.bf16 %v11042_v53, %v11040_v25  ;;  %v16105_v53 = vpack.c.bf16 %v11176_v39, %v11174_v47  ;;  %v11303_v39 = vld [vmem:[#allocation32 + $0x260] sm:$0xff] }
 0xe30   : >> { %15475 = vmatmul.mubr.msk.f32.gmra.mrb[214].mxu0 %vm1194_vm8, %v10441_v40  ;;  %v11039_v40 = vld [vmem:[#allocation32 + $0x100] sm:$0xff] }
 0xe31   : >> { %15477 = vmatprep.mubr.msk.f32.mxu0 %vm1194_vm8, %v10442_v50  ;;  %v11041_v50 = vld [vmem:[#allocation32 + $0x110] sm:$0xff] }
 0xe34   : >> { %15478 = vmatmul.mubr.msk.f32.gmra.mrb[216].mxu0 %vm1194_vm8, %v10443_v13 }
 0xe35   : >> { %15480 = vmatprep.mubr.msk.f32.mxu0 %vm1194_vm8, %v10444_v59  ;;  %v11044_v59 = vld [vmem:[#allocation32 + $0x128] sm:$0xff] }
 0xe38   : >> { %15481 = vmatmul.mubr.msk.f32.gmra.mrb[218].mxu0 %vm1194_vm8, %v10445_v44  ;;  %v11046_v44 = vld [vmem:[#allocation32 + $0x138] sm:$0xff] }
 0xe39   : >> { %15483 = vmatprep.mubr.msk.f32.mxu0 %vm1194_vm8, %v10446_v54 }
 0xe3c   : >> { %15484 = vmatmul.mubr.msk.f32.gmra.mrb[220].mxu0 %vm1194_vm8, %v10447_v60  ;;  %v16083_v60 = vpack.c.bf16 %v11041_v50, %v11039_v40  ;;  %v11178_v50 = vld [vmem:[#allocation32 + $0x1e8] sm:$0xff] }
 0xe3d   : >> { %15486 = vmatprep.mubr.msk.f32.mxu0 %vm1194_vm8, %v10448_v17  ;;  %v16085_v17 = vpack.c.bf16 %v11046_v44, %v11044_v59  ;;  %v11180_v59 = vld [vmem:[#allocation32 + $0x1f8] sm:$0xff] }
 0xe40   : >> { %15487 = vmatmul.mubr.msk.f32.gmra.mrb[222].mxu0 %vm1194_vm8, %v10449_v45  ;;  %v11043_v45 = vld [vmem:[#allocation32 + $0x120] sm:$0xff] }
 0xe41   : >> { %12054 = vmatprep.mubr.f32.mxu0 %v17846_v24  ;;  %v16087_v27 = vpack.c.bf16 %v11045_v15, %v11043_v45  ;;  %v11179_v45 = vld [vmem:[#allocation32 + $0x1f0] sm:$0xff] }
 0xecf   : >> { %v19651_v11 = vpop.f32.mrb[188].mxu0 }
 0xed0   : >> { %v19653_v21 = vpop.f32.mrb[189].mxu0 }
 0xed3   : >> { %v19655_v35 = vpop.f32.mrb[190].mxu0 }
 0xed4   : >> { %v19657_v36 = vpop.f32.mrb[191].mxu0 }
 0xed7   : >> { %v15443_v9 = vpop.f32.mrb[192].mxu0 }
 0xed8   : >> { %v10644_v29 = vpop.f32.mrb[193].mxu0 }
 0xed9   : >> { %13117 = vmatmul.mubr.msk.f32.vlgmr.msra.gmra.mrb[200].mxu1 %vm3119_vm13, %v10644_v29  ;;  %v11168_v29 = vld [vmem:[#allocation32 + $0x198] sm:$0xff] }
 0xeda   : >> { %16068 = vmatpush1.bf16.msra.mxu1 %v16067_v12  ;;  %10918 = vmatprep.mubr.f32.mxu1 %v17846_v24  ;;  %v16093_v12 = vpack.c.bf16 %v11054_v19, %v11052_v26  ;;  %v16097_v61 = vpack.c.bf16 %v11168_v29, %v11166_v41  ;;  %v11296_v19 = vld [vmem:[#allocation32 + $0x228] sm:$0xff]  ;;  %v11297_v41 = vld [vmem:[#allocation32 + $0x230] sm:$0xff] }
 0xedb   : >> { %16070 = vmatprep.subr.bf16.mxu1 %v16069_v49  ;;  %v15446_v46 = vpop.f32.mrb[194].mxu0  ;;  %v11053_v49 = vld [vmem:[#allocation32 + $0x170] sm:$0xff] }
 0xedc   : >> { %v10654_v38 = vpop.f32.mrb[195].mxu0 }
 0xedd   : >> { %13118 = vmatmul.mubr.msk.f32.gmra.mrb[202].mxu1 %vm3119_vm13, %v15443_v9  ;;  %v11051_v9 = vld [vmem:[#allocation32 + $0x160] sm:$0xff] }
 0xede   : >> { %16072 = vmatpush1.bf16.msra.mxu1 %v16071_v43  ;;  %10924 = vmatprep.mubr.f32.mxu1 %v17846_v24  ;;  %v11165_v43 = vld [vmem:[#allocation32 + $0x180] sm:$0xff] }
 0xedf   : >> { %16074 = vmatprep.subr.bf16.mxu1 %v16073_v37  ;;  %v19663_v32 = vpop.f32.mrb[196].mxu0 }
 0xee0   : >> { %v19665_v30 = vpop.f32.mrb[197].mxu0 }
 0xee1   : >> { %13119 = vmatmul.mubr.msk.f32.gmra.mrb[204].mxu1 %vm3119_vm13, %v10654_v38 }
 0xee2   : >> { %16076 = vmatpush1.bf16.msra.mxu1 %v16075_v55  ;;  %10930 = vmatprep.mubr.f32.mxu1 %v17846_v24  ;;  %v11171_v55 = vld [vmem:[#allocation32 + $0x1b0] sm:$0xff] }
 0xee3   : >> { %16078 = vmatprep.subr.bf16.mxu1 %v16077_v20  ;;  %v19669_v13 = vpop.f32.mrb[198].mxu0 }
 0xee4   : >> { %v19671_v54 = vpop.f32.mrb[199].mxu0 }
 0xee5   : >> { %13120 = vmatmul.mubr.msk.f32.gmra.mrb[206].mxu1 %vm3119_vm13, %v15446_v46  ;;  %v11167_v46 = vld [vmem:[#allocation32 + $0x190] sm:$0xff] }
 0xee6   : >> { %16080 = vmatpush1.bf16.msra.mxu1 %v16079_v52  ;;  %11013 = vmatprep.mubr.f32.mxu1 %v17846_v24  ;;  %v11173_v52 = vld [vmem:[#allocation32 + $0x1c0] sm:$0xff] }
 0xee7   : >> { %16082 = vmatprep.subr.bf16.mxu1 %v16081_v28  ;;  %v19675_v0 = vpop.f32.mrb[200].mxu0  ;;  %v11175_v28 = vld [vmem:[#allocation32 + $0x1d0] sm:$0xff] }
 0xee8   : >> { %v19677_v31 = vpop.f32.mrb[201].mxu0 }
 0xee9   : >> { %13121 = vmatmul.mubr.msk.f32.vlgmr.msra.gmra.mrb[200].mxu1 %vm3119_vm13, %v19653_v21  ;;  %v16091_v21 = vpack.c.bf16 %v11049_v10, %v11047_v7  ;;  %v11291_v7 = vld [vmem:[#allocation32 + $0x200] sm:$0xff]  ;;  %v11293_v10 = vld [vmem:[#allocation32 + $0x210] sm:$0xff] }
 0xeea   : >> { %16084 = vmatpush1.bf16.msra.mxu1 %v16083_v60  ;;  %11019 = vmatprep.mubr.f32.mxu1 %v17846_v24  ;;  %v16109_v60 = vpack.c.bf16 %v11180_v59, %v11178_v50 }
 0xeeb   : >> { %16086 = vmatprep.subr.bf16.mxu1 %v16085_v17  ;;  %v19682_v51 = vpop.f32.mrb[202].mxu0  ;;  %v11177_v17 = vld [vmem:[#allocation32 + $0x1e0] sm:$0xff] }
 0xeec   : >> { %v19684_v23 = vpop.f32.mrb[203].mxu0 }
 0xeed   : >> { %13122 = vmatmul.mubr.msk.f32.gmra.mrb[202].mxu1 %vm3119_vm13, %v19651_v11  ;;  %v16095_v11 = vpack.c.bf16 %v11053_v49, %v11051_v9  ;;  %v11295_v49 = vld [vmem:[#allocation32 + $0x220] sm:$0xff] }
 0xeee   : >> { %16088 = vmatpush1.bf16.msra.mxu1 %v16087_v27  ;;  %11025 = vmatprep.mubr.f32.mxu1 %v17846_v24 }
 0xeef   : >> { %16090 = vmatprep.subr.bf16.mxu1 %v16089_v34  ;;  %v19689_v62 = vpop.f32.mrb[204].mxu0  ;;  %v16113_v34 = vpack.c.bf16 %v11294_v22, %v11292_v18  ;;  %v11424_v18 = vld [vmem:[#allocation32 + $0x2b8] sm:$0xff] }
 0xef0   : >> { %v19691_v14 = vpop.f32.mrb[205].mxu0 }
 0xef1   : >> { %13123 = vmatmul.mubr.msk.f32.gmra.mrb[204].mxu1 %vm3119_vm13, %v19657_v36  ;;  %v16099_v36 = vpack.c.bf16 %v11167_v46, %v11165_v43 }
 0xef2   : >> { %16092 = vmatpush1.bf16.msra.mxu1 %v16091_v21  ;;  %11031 = vmatprep.mubr.f32.mxu1 %v17846_v24  ;;  %v11298_v21 = vld [vmem:[#allocation32 + $0x238] sm:$0xff] }
 0xef3   : >> { %16094 = vmatprep.subr.bf16.mxu1 %v16093_v12  ;;  %v19696_v37 = vpop.f32.mrb[206].mxu0  ;;  %v16117_v9 = vpack.c.bf16 %v11298_v21, %v11296_v19  ;;  %v11428_v19 = vld [vmem:[#allocation32 + $0x2d8] sm:$0xff] }
 0xef4   : >> { %v19698_v38 = vpop.f32.mrb[207].mxu0 }
 0xef5   : >> { %13124 = vmatmul.mubr.msk.f32.gmra.mrb[206].mxu1 %vm3119_vm13, %v19655_v35  ;;  %v16103_v35 = vpack.c.bf16 %v11171_v55, %v11169_v48  ;;  %v11306_v48 = vld [vmem:[#allocation32 + $0x278] sm:$0xff] }
 0xef6   : >> { %16096 = vmatpush1.bf16.msra.mxu1 %v16095_v11  ;;  %11131 = vmatprep.mubr.f32.mxu1 %v17846_v24  ;;  %v11300_v11 = vld [vmem:[#allocation32 + $0x248] sm:$0xff] }
 0xef7   : >> { %16098 = vmatprep.subr.bf16.mxu1 %v16097_v61  ;;  %v19703_v20 = vpop.f32.mrb[208].mxu0  ;;  %v11302_v61 = vld [vmem:[#allocation32 + $0x258] sm:$0xff] }
 0xef8   : >> { %v19705_v25 = vpop.f32.mrb[209].mxu0  ;;  %v16121_v46 = vpack.c.bf16 %v11302_v61, %v11300_v11 }
 0xef9   : >> { %13125 = vmatmul.mubr.msk.f32.vlgmr.msra.gmra.mrb[200].mxu1 %vm3119_vm13, %v19665_v30  ;;  %v16107_v30 = vpack.c.bf16 %v11175_v28, %v11173_v52  ;;  %v11418_v52 = vld [vmem:[#allocation32 + $0x288] sm:$0xff]  ;;  %v11420_v28 = vld [vmem:[#allocation32 + $0x298] sm:$0xff] }
 0xefa   : >> { %16100 = vmatpush1.bf16.msra.mxu1 %v16099_v36  ;;  %11137 = vmatprep.mubr.f32.mxu1 %v17846_v24  ;;  %v16129_v59 = vpack.c.bf16 %v11420_v28, %v11418_v52  ;;  %v11549_v52 = vld [vmem:[#allocation32 + $0x330] sm:$0xff]  ;;  %v11552_v28 = vld [vmem:[#allocation32 + $0x348] sm:$0xff] }
 0xefb   : >> { %16102 = vmatprep.subr.bf16.mxu1 %v16101_v63  ;;  %v19710_v40 = vpop.f32.mrb[210].mxu0  ;;  %v11304_v63 = vld [vmem:[#allocation32 + $0x268] sm:$0xff] }
 0xefc   : >> { %v19712_v44 = vpop.f32.mrb[211].mxu0  ;;  %v16125_v47 = vpack.c.bf16 %v11306_v48, %v11304_v63  ;;  %v11545_v48 = vld [vmem:[#allocation32 + $0x310] sm:$0xff] }
 0xefd   : >> { %13126 = vmatmul.mubr.msk.f32.gmra.mrb[202].mxu1 %vm3119_vm13, %v19663_v32  ;;  %v16111_v32 = vpack.c.bf16 %v11179_v45, %v11177_v17  ;;  %v11422_v45 = vld [vmem:[#allocation32 + $0x2a8] sm:$0xff] }
 0xefe   : >> { %16104 = vmatpush1.bf16.msra.mxu1 %v16103_v35  ;;  %11143 = vmatprep.mubr.f32.mxu1 %v17846_v24  ;;  %v11305_v35 = vld [vmem:[#allocation32 + $0x270] sm:$0xff] }
 0xeff   : >> { %16106 = vmatprep.subr.bf16.mxu1 %v16105_v53  ;;  %v19717_v15 = vpop.f32.mrb[212].mxu0 }
 0xf00   : >> { %v19719_v27 = vpop.f32.mrb[213].mxu0 }
 0xf01   : >> { %13127 = vmatmul.mubr.msk.f32.gmra.mrb[204].mxu1 %vm3119_vm13, %v19671_v54  ;;  %v16115_v54 = vpack.c.bf16 %v11293_v10, %v11291_v7  ;;  %v11423_v7 = vld [vmem:[#allocation32 + $0x2b0] sm:$0xff]  ;;  %v11426_v10 = vld [vmem:[#allocation32 + $0x2c8] sm:$0xff] }
 0xf02   : >> { %16108 = vmatpush1.bf16.msra.mxu1 %v16107_v30  ;;  %11149 = vmatprep.mubr.f32.mxu1 %v17846_v24  ;;  %v11417_v30 = vld [vmem:[#allocation32 + $0x280] sm:$0xff] }
 0xf03   : >> { %16110 = vmatprep.subr.bf16.mxu1 %v16109_v60  ;;  %v19724_v26 = vpop.f32.mrb[214].mxu0  ;;  %v11419_v60 = vld [vmem:[#allocation32 + $0x290] sm:$0xff] }
 0xf04   : >> { %v19726_v12 = vpop.f32.mrb[215].mxu0 }
 0xf05   : >> { %13128 = vmatmul.mubr.msk.f32.gmra.mrb[206].mxu1 %vm3119_vm13, %v19669_v13  ;;  %v16119_v13 = vpack.c.bf16 %v11297_v41, %v11295_v49  ;;  %v11430_v49 = vld [vmem:[#allocation32 + $0x2e8] sm:$0xff]  ;;  %v11432_v41 = vld [vmem:[#allocation32 + $0x2f8] sm:$0xff] }
 0xf06   : >> { %16112 = vmatpush1.bf16.msra.mxu1 %v16111_v32  ;;  %11257 = vmatprep.mubr.f32.mxu1 %v17846_v24  ;;  %v16133_v32 = vpack.c.bf16 %v11424_v18, %v11422_v45  ;;  %v16141_v61 = vpack.c.bf16 %v11432_v41, %v11430_v49  ;;  %v11556_v45 = vld [vmem:[#allocation32 + $0x368] sm:$0xff]  ;;  %v11558_v18 = vld [vmem:[#allocation32 + $0x378] sm:$0xff] }
 0xf07   : >> { %16114 = vmatprep.subr.bf16.mxu1 %v16113_v34  ;;  %v19731_v29 = vpop.f32.mrb[216].mxu0  ;;  %v11421_v34 = vld [vmem:[#allocation32 + $0x2a0] sm:$0xff] }
 0xf08   : >> { %v19733_v43 = vpop.f32.mrb[217].mxu0  ;;  %v16135_v21 = vpack.c.bf16 %v11423_v7, %v11421_v34  ;;  %v11557_v34 = vld [vmem:[#allocation32 + $0x370] sm:$0xff]  ;;  %v11670_v7 = vld [vmem:[#allocation32 + $0x388] sm:$0xff] }
 0xf09   : >> { %13129 = vmatmul.mubr.msk.f32.vlgmr.msra.gmra.mrb[200].mxu1 %vm3119_vm13, %v19677_v31  ;;  %v16123_v31 = vpack.c.bf16 %v11301_v42, %v11299_v16  ;;  %v11546_v16 = vld [vmem:[#allocation32 + $0x318] sm:$0xff] }
 0xf0a   : >> { %16116 = vmatpush1.bf16.msra.mxu1 %v16115_v54  ;;  %11263 = vmatprep.mubr.f32.mxu1 %v17846_v24  ;;  %v16137_v54 = vpack.c.bf16 %v11428_v19, %v11426_v10  ;;  %v11672_v10 = vld [vmem:[#allocation32 + $0x398] sm:$0xff] }
 0xf0b   : >> { %16118 = vmatprep.subr.bf16.mxu1 %v16117_v9  ;;  %v19738_v36 = vpop.f32.mrb[218].mxu0  ;;  %v11427_v9 = vld [vmem:[#allocation32 + $0x2d0] sm:$0xff] }
 0xf0c   : >> { %v19740_v55 = vpop.f32.mrb[219].mxu0 }
 0xf0d   : >> { %13130 = vmatmul.mubr.msk.f32.gmra.mrb[202].mxu1 %vm3119_vm13, %v19675_v0  ;;  %v16127_v0 = vpack.c.bf16 %v11305_v35, %v11303_v39 }
 0xf0e   : >> { %16120 = vmatpush1.bf16.msra.mxu1 %v16119_v13  ;;  %11269 = vmatprep.mubr.f32.mxu1 %v17846_v24  ;;  %v11431_v13 = vld [vmem:[#allocation32 + $0x2f0] sm:$0xff] }
 0xf0f   : >> { %16122 = vmatprep.subr.bf16.mxu1 %v16121_v46  ;;  %v19745_v53 = vpop.f32.mrb[220].mxu0  ;;  %v11544_v46 = vld [vmem:[#allocation32 + $0x308] sm:$0xff] }
 0xf10   : >> { %v19747_v50 = vpop.f32.mrb[221].mxu0  ;;  %v16145_v63 = vpack.c.bf16 %v11546_v16, %v11544_v46  ;;  %v11679_v16 = vld [vmem:[#allocation32 + $0x3d0] sm:$0xff] }
 0xf11   : >> { %13131 = vmatmul.mubr.msk.f32.gmra.mrb[204].mxu1 %vm3119_vm13, %v19684_v23  ;;  %v16131_v23 = vpack.c.bf16 %v11419_v60, %v11417_v30  ;;  %v11553_v60 = vld [vmem:[#allocation32 + $0x350] sm:$0xff] }
 0xf12   : >> { %16124 = vmatpush1.bf16.msra.mxu1 %v16123_v31  ;;  %11275 = vmatprep.mubr.f32.mxu1 %v17846_v24  ;;  %v11548_v31 = vld [vmem:[#allocation32 + $0x328] sm:$0xff] }
 0xf13   : >> { %16126 = vmatprep.subr.bf16.mxu1 %v16125_v47  ;;  %v19752_v17 = vpop.f32.mrb[222].mxu0  ;;  %v11550_v47 = vld [vmem:[#allocation32 + $0x338] sm:$0xff] }
 0xf14   : >> { %v19754_v22 = vpop.f32.mrb[223].mxu0  ;;  %v16149_v35 = vpack.c.bf16 %v11550_v47, %v11548_v31  ;;  %v11683_v31 = vld [vmem:[#allocation32 + $0x3f0] sm:$0xff]  ;;  %v11796_v47 = vld [vmem:[#allocation32 + $0x408] sm:$0xff] }
 0xf15   : >> { %13132 = vmatmul.mubr.msk.f32.gmra.mrb[206].mxu1 %vm3119_vm13, %v19682_v51  ;;  %v11425_v51 = vld [vmem:[#allocation32 + $0x2c0] sm:$0xff] }
 0xf16   : >> { %16128 = vmatpush1.bf16.msra.mxu1 %v16127_v0  ;;  %11383 = vmatprep.mubr.f32.mxu1 %v17846_v24  ;;  %v16139_v11 = vpack.c.bf16 %v11427_v9, %v11425_v51  ;;  %v11554_v0 = vld [vmem:[#allocation32 + $0x358] sm:$0xff]  ;;  %v11674_v51 = vld [vmem:[#allocation32 + $0x3a8] sm:$0xff] }
 0xf17   : >> { %16130 = vmatprep.subr.bf16.mxu1 %v16129_v59  ;;  %v16153_v30 = vpack.c.bf16 %v11554_v0, %v11552_v28  ;;  %v11676_v9 = vld [vmem:[#allocation32 + $0x3b8] sm:$0xff]  ;;  %v11800_v28 = vld [vmem:[#allocation32 + $0x428] sm:$0xff] }
 0xf18   : >> { %v16165_v41 = vpack.c.bf16 %v11676_v9, %v11674_v51  ;;  %v11802_v0 = vld [vmem:[#allocation32 + $0x438] sm:$0xff] }
 0xf19   : >> { %13133 = vmatmul.mubr.msk.f32.vlgmr.msra.gmra.mrb[200].mxu1 %vm3119_vm13, %v19691_v14  ;;  %v11429_v14 = vld [vmem:[#allocation32 + $0x2e0] sm:$0xff] }
 0xf1a   : >> { %16132 = vmatpush1.bf16.msra.mxu1 %v16131_v23  ;;  %11389 = vmatprep.mubr.f32.mxu1 %v17846_v24  ;;  %v16143_v42 = vpack.c.bf16 %v11431_v13, %v11429_v14  ;;  %v11680_v14 = vld [vmem:[#allocation32 + $0x3d8] sm:$0xff] }
 0xf1b   : >> { %16134 = vmatprep.subr.bf16.mxu1 %v16133_v32  ;;  %v16157_v32 = vpack.c.bf16 %v11558_v18, %v11556_v45  ;;  %v11806_v45 = vld [vmem:[#allocation32 + $0x458] sm:$0xff] }
 0xf1d   : >> { %13134 = vmatmul.mubr.msk.f32.gmra.mrb[202].mxu1 %vm3119_vm13, %v19689_v62  ;;  %v11543_v62 = vld [vmem:[#allocation32 + $0x300] sm:$0xff] }
 0xf1e   : >> { %16136 = vmatpush1.bf16.msra.mxu1 %v16135_v21  ;;  %11395 = vmatprep.mubr.f32.mxu1 %v17846_v24  ;;  %v16147_v39 = vpack.c.bf16 %v11545_v48, %v11543_v62  ;;  %v16161_v21 = vpack.c.bf16 %v11672_v10, %v11670_v7 }
 0xf1f   : >> { %16138 = vmatprep.subr.bf16.mxu1 %v16137_v54  ;;  %v11671_v54 = vld [vmem:[#allocation32 + $0x390] sm:$0xff] }
 0xf21   : >> { %13135 = vmatmul.mubr.msk.f32.gmra.mrb[204].mxu1 %vm3119_vm13, %v19698_v38  ;;  %v11547_v38 = vld [vmem:[#allocation32 + $0x320] sm:$0xff] }
 0xf22   : >> { %16140 = vmatpush1.bf16.msra.mxu1 %v16139_v11  ;;  %11401 = vmatprep.mubr.f32.mxu1 %v17846_v24  ;;  %v16151_v59 = vpack.c.bf16 %v11549_v52, %v11547_v38  ;;  %v11675_v11 = vld [vmem:[#allocation32 + $0x3b0] sm:$0xff] }
 0xf23   : >> { %16142 = vmatprep.subr.bf16.mxu1 %v16141_v61  ;;  %v11678_v61 = vld [vmem:[#allocation32 + $0x3c8] sm:$0xff]  ;;  %v11797_v52 = vld [vmem:[#allocation32 + $0x410] sm:$0xff] }
 0xf24   : >> { %v16169_v46 = vpack.c.bf16 %v11680_v14, %v11678_v61 }
 0xf25   : >> { %13136 = vmatmul.mubr.msk.f32.gmra.mrb[206].mxu1 %vm3119_vm13, %v19696_v37  ;;  %v11551_v37 = vld [vmem:[#allocation32 + $0x340] sm:$0xff] }
 0xf26   : >> { %16144 = vmatpush1.bf16.msra.mxu1 %v16143_v42  ;;  %11509 = vmatprep.mubr.f32.mxu1 %v17846_v24  ;;  %v16155_v23 = vpack.c.bf16 %v11553_v60, %v11551_v37  ;;  %v11682_v42 = vld [vmem:[#allocation32 + $0x3e8] sm:$0xff]  ;;  %v11801_v37 = vld [vmem:[#allocation32 + $0x430] sm:$0xff] }
 0xf27   : >> { %16146 = vmatprep.subr.bf16.mxu1 %v16145_v63  ;;  %v11684_v63 = vld [vmem:[#allocation32 + $0x3f8] sm:$0xff]  ;;  %v11804_v60 = vld [vmem:[#allocation32 + $0x448] sm:$0xff] }
 0xf28   : >> { %v16173_v48 = vpack.c.bf16 %v11684_v63, %v11682_v42 }
 0xf29   : >> { %13137 = vmatmul.mubr.msk.f32.vlgmr.msra.gmra.mrb[200].mxu1 %vm3119_vm13, %v19705_v25  ;;  %v11555_v25 = vld [vmem:[#allocation32 + $0x360] sm:$0xff] }
 0xf2a   : >> { %16148 = vmatpush1.bf16.msra.mxu1 %v16147_v39  ;;  %11515 = vmatprep.mubr.f32.mxu1 %v17846_v24  ;;  %v16159_v19 = vpack.c.bf16 %v11557_v34, %v11555_v25  ;;  %v11798_v39 = vld [vmem:[#allocation32 + $0x418] sm:$0xff]  ;;  %v11808_v25 = vld [vmem:[#allocation32 + $0x468] sm:$0xff] }
 0xf2b   : >> { %16150 = vmatprep.subr.bf16.mxu1 %v16149_v35  ;;  %v16177_v38 = vpack.c.bf16 %v11798_v39, %v11796_v47  ;;  %v11810_v34 = vld [vmem:[#allocation32 + $0x478] sm:$0xff] }
 0xf2c   : >> { %v16189_v10 = vpack.c.bf16 %v11810_v34, %v11808_v25 }
 0xf2d   : >> { %13138 = vmatmul.mubr.msk.f32.gmra.mrb[202].mxu1 %vm3119_vm13, %v19703_v20  ;;  %v11669_v20 = vld [vmem:[#allocation32 + $0x380] sm:$0xff] }
 0xf2e   : >> { %16152 = vmatpush1.bf16.msra.mxu1 %v16151_v59  ;;  %11521 = vmatprep.mubr.f32.mxu1 %v17846_v24  ;;  %v16163_v49 = vpack.c.bf16 %v11671_v54, %v11669_v20  ;;  %v11932_v54 = vpop.permute.xlu1 %11931 }
 0xf2f   : >> { %16154 = vmatprep.subr.bf16.mxu1 %v16153_v30  ;;  %v16181_v30 = vpack.c.bf16 %v11802_v0, %v11800_v28 }
 0xf31   : >> { %13139 = vmatmul.mubr.msk.f32.gmra.mrb[204].mxu1 %vm3119_vm13, %v19712_v44  ;;  %v11673_v44 = vld [vmem:[#allocation32 + $0x3a0] sm:$0xff] }
 0xf32   : >> { %16156 = vmatpush1.bf16.msra.mxu1 %v16155_v23  ;;  %11527 = vmatprep.mubr.f32.mxu1 %v17846_v24  ;;  %v16167_v13 = vpack.c.bf16 %v11675_v11, %v11673_v44  ;;  %v16185_v23 = vpack.c.bf16 %v11806_v45, %v11804_v60  ;;  %v11976_v60 = vld [vmem:[#allocation36] sm:$0x1]  ;;  %v17847_v45 = vmov 1966171168  }
 0xf33   : >> { %16158 = vmatprep.subr.bf16.mxu1 %v16157_v32  ;;  %v11805_v32 = vld [vmem:[#allocation32 + $0x450] sm:$0xff] }
 0xf35   : >> { %13140 = vmatmul.mubr.msk.f32.gmra.mrb[206].mxu1 %vm3119_vm13, %v19710_v40  ;;  %v11677_v40 = vld [vmem:[#allocation32 + $0x3c0] sm:$0xff] }
 0xf36   : >> { %16160 = vmatpush1.bf16.msra.mxu1 %v16159_v19  ;;  %11635 = vmatprep.mubr.f32.mxu1 %v17846_v24  ;;  %v16171_v62 = vpack.c.bf16 %v11679_v16, %v11677_v40  ;;  %v11809_v19 = vld [vmem:[#allocation32 + $0x470] sm:$0xff] }
 0xf37   : >> { %16162 = vmatprep.subr.bf16.mxu1 %v16161_v21 }
 0xf39   : >> { %13141 = vmatmul.mubr.msk.f32.vlgmr.msra.gmra.mrb[200].mxu1 %vm3119_vm13, %v19719_v27  ;;  %v11681_v27 = vld [vmem:[#allocation32 + $0x3e0] sm:$0xff] }
 0xf3a   : >> { %16164 = vmatpush1.bf16.msra.mxu1 %v16163_v49  ;;  %11641 = vmatprep.mubr.f32.mxu1 %v17846_v24  ;;  %v16175_v35 = vpack.c.bf16 %v11683_v31, %v11681_v27 }
 0xf3b   : >> { %16166 = vmatprep.subr.bf16.mxu1 %v16165_v41 }
 0xf3d   : >> { %13142 = vmatmul.mubr.msk.f32.gmra.mrb[202].mxu1 %vm3119_vm13, %v19717_v15  ;;  %v11795_v15 = vld [vmem:[#allocation32 + $0x400] sm:$0xff] }
 0xf3e   : >> { %16168 = vmatpush1.bf16.msra.mxu1 %v16167_v13  ;;  %11647 = vmatprep.mubr.f32.mxu1 %v17846_v24  ;;  %v16179_v59 = vpack.c.bf16 %v11797_v52, %v11795_v15 }
 0xf3f   : >> { %16170 = vmatprep.subr.bf16.mxu1 %v16169_v46 }
 0xf41   : >> { %13143 = vmatmul.mubr.msk.f32.gmra.mrb[204].mxu1 %vm3119_vm13, %v19726_v12  ;;  %v11799_v12 = vld [vmem:[#allocation32 + $0x420] sm:$0xff] }
 0xf42   : >> { %16172 = vmatpush1.bf16.msra.mxu1 %v16171_v62  ;;  %11653 = vmatprep.mubr.f32.mxu1 %v17846_v24  ;;  %v16183_v18 = vpack.c.bf16 %v11801_v37, %v11799_v12 }
 0xf43   : >> { %16174 = vmatprep.subr.bf16.mxu1 %v16173_v48  ;;  %v11942_v48 = vpop.permute.xlu1 %11941 }
 0xf45   : >> { %13144 = vmatmul.mubr.msk.f32.gmra.mrb[206].mxu1 %vm3119_vm13, %v19724_v26  ;;  %v11803_v26 = vld [vmem:[#allocation32 + $0x440] sm:$0xff] }
 0xf46   : >> { %16176 = vmatpush1.bf16.msra.mxu1 %v16175_v35  ;;  %11761 = vmatprep.mubr.f32.mxu1 %v17846_v24  ;;  %v16187_v7 = vpack.c.bf16 %v11805_v32, %v11803_v26 }
 0xf47   : >> { %16178 = vmatprep.subr.bf16.mxu1 %v16177_v38 }
 0xf49   : >> { %13145 = vmatmul.mubr.msk.f32.vlgmr.msra.gmra.mrb[200].mxu1 %vm3119_vm13, %v19733_v43  ;;  %v11807_v43 = vld [vmem:[#allocation32 + $0x460] sm:$0xff] }
 0xf4a   : >> { %16180 = vmatpush1.bf16.msra.mxu1 %v16179_v59  ;;  %11767 = vmatprep.mubr.f32.mxu1 %v17846_v24  ;;  %v16191_v21 = vpack.c.bf16 %v11809_v19, %v11807_v43 }
 0xf4b   : >> { %16182 = vmatprep.subr.bf16.mxu1 %v16181_v30 }
 0xf4d   : >> { %13146 = vmatmul.mubr.msk.f32.gmra.mrb[202].mxu1 %vm3119_vm13, %v19731_v29  ;;  %v11927_v29 = vpop.permute.xlu0 %11926 }
 0xf4e   : >> { %16184 = vmatpush1.bf16.msra.mxu1 %v16183_v18  ;;  %11773 = vmatprep.mubr.f32.mxu1 %v17846_v24  ;;  %v12065_v18 = vunpack.c.l.s4 %v17847_v45 }
 0xf4f   : >> { %16186 = vmatprep.subr.bf16.mxu1 %v16185_v23 }
 0xf50   : >> { %v12066_v26 = vunpack.c.0.s8 %v12065_v18 }
 0xf51   : >> { %13147 = vmatmul.mubr.msk.f32.gmra.mrb[204].mxu1 %vm3119_vm13, %v19740_v55 }
 0xf52   : >> { %16188 = vmatpush1.bf16.msra.mxu1 %v16187_v7  ;;  %11779 = vmatprep.mubr.f32.mxu1 %v17846_v24  ;;  %v12069_v43 = vsub.s32 %v12066_v26, %v18654_v57 }
 0xf53   : >> { %16190 = vmatprep.subr.bf16.mxu1 %v16189_v10 }
 0xf55   : >> { %13148 = vmatmul.mubr.msk.f32.gmra.mrb[206].mxu1 %vm3119_vm13, %v19738_v36 }
 0xf56   : >> { %16192 = vmatpush1.bf16.msra.mxu1 %v16191_v21  ;;  %11887 = vmatprep.mubr.f32.mxu1 %v17846_v24 }
 0xf59   : >> { %13149 = vmatmul.mubr.msk.f32.vlgmr.msra.gmra.mrb[200].mxu1 %vm3119_vm13, %v19747_v50 }
 0xf5a   : >> { %11893 = vmatprep.mubr.f32.mxu1 %v17846_v24 }
 0xf5d   : >> { %13150 = vmatmul.mubr.msk.f32.gmra.mrb[202].mxu1 %vm3119_vm13, %v19745_v53 }
 0xf5e   : >> { %11899 = vmatprep.mubr.f32.mxu1 %v17846_v24 }
 0xf61   : >> { %13151 = vmatmul.mubr.msk.f32.gmra.mrb[204].mxu1 %vm3119_vm13, %v19754_v22 }
 0xf62   : >> { %11905 = vmatprep.mubr.f32.mxu1 %v17846_v24  ;;  %v11937_v24 = vpop.permute.xlu0 %11936 }
 0xf65   : >> { %13152 = vmatmul.mubr.msk.f32.gmra.mrb[206].mxu1 %vm3119_vm13, %v19752_v17 }
 0xf66   : >> { %v11981_v23 = vpop.permute.xlu0 %11980 }
 0xf67   : >> { %v11986_v32 = vrot.slane %v11981_v23, %v1078_v58 }
0x102c   : >> { %v11889_v36 = vpop.f32.mrb[200].mxu1 }
0x102d   : >> { %v11944_v55 = vadd.f32 %v11927_v29, %v11889_v36  ;;  %v11891_v20 = vpop.f32.mrb[201].mxu1 }
0x102e   : >> { %v11945_v50 = vadd.f32 %v11927_v29, %v11891_v20 }
0x102f   : >> { %v11960_v9 = vmul.f32 0.1, %v11944_v55  ;;  %vm11952_vm7 = vcmp.ge.f32.partialorder %v11944_v55, 0.0 }
0x1030   : >> { %v11895_v51 = vpop.f32.mrb[202].mxu1  ;;  %v11961_v41 = vmul.f32 0.1, %v11945_v50  ;;  %vm11953_vm9 = vcmp.ge.f32.partialorder %v11945_v50, 0.0 }
0x1031   : >> { %v11946_v49 = vadd.f32 %v11932_v54, %v11895_v51  ;;  %v11897_v53 = vpop.f32.mrb[203].mxu1  ;;  %v11968_v61 = vsel %vm11952_vm7, %v11944_v55, %v11960_v9 }
0x1032   : >> { %v11947_v44 = vadd.f32 %v11932_v54, %v11897_v53  ;;  %v11969_v42 = vsel %vm11953_vm9, %v11945_v50, %v11961_v41 }
0x1033   : >> { %vm11954_vm10 = vcmp.ge.f32.partialorder %v11946_v49, 0.0  ;;  %v11962_v22 = vmul.f32 0.1, %v11946_v49 }
0x1034   : >> { %vm11955_vm11 = vcmp.ge.f32.partialorder %v11947_v44, 0.0  ;;  %v11963_v11 = vmul.f32 0.1, %v11947_v44  ;;  %v11901_v17 = vpop.f32.mrb[204].mxu1 }
0x1035   : >> { %v11970_v14 = vsel %vm11954_vm10, %v11946_v49, %v11962_v22  ;;  %v11948_v13 = vadd.f32 %v11937_v24, %v11901_v17  ;;  %v11903_v46 = vpop.f32.mrb[205].mxu1 }
0x1036   : >> { %v16195_v40 = vpack.c.bf16 %v11970_v14, %v11968_v61  ;;  %v11949_v16 = vadd.f32 %v11937_v24, %v11903_v46  ;;  %v11971_v63 = vsel %vm11955_vm11, %v11947_v44, %v11963_v11 }
0x1037   : >> { %v16193_v62 = vpack.c.bf16 %v11971_v63, %v11969_v42  ;;  %v11964_v31 = vmul.f32 0.1, %v11948_v13  ;;  %vm11956_vm12 = vcmp.ge.f32.partialorder %v11948_v13, 0.0 }
0x1038   : >> { %v11907_v27 = vpop.f32.mrb[206].mxu1  ;;  %v11965_v35 = vmul.f32 0.1, %v11949_v16  ;;  %vm11957_vm13 = vcmp.ge.f32.partialorder %v11949_v16, 0.0 }
0x1039   : >> { %v11950_v47 = vadd.f32 %v11942_v48, %v11907_v27  ;;  %v11909_v39 = vpop.f32.mrb[207].mxu1  ;;  %16194 = vmatprep.subr.bf16.mxu0 %v16193_v62  ;;  %v11972_v28 = vsel %vm11956_vm12, %v11948_v13, %v11964_v31 }
0x103a   : >> { %v11951_v38 = vadd.f32 %v11942_v48, %v11909_v39  ;;  %16196 = vmatpush1.bf16.msra.mxu0 %v16195_v40  ;;  %v11973_v30 = vsel %vm11957_vm13, %v11949_v16, %v11965_v35 }
0x103b   : >> { %vm11958_vm14 = vcmp.ge.f32.partialorder %v11950_v47, 0.0  ;;  %v11966_v15 = vmul.f32 0.1, %v11950_v47 }
0x103c   : >> { %vm11959_vm15 = vcmp.ge.f32.partialorder %v11951_v38, 0.0  ;;  %v11967_v52 = vmul.f32 0.1, %v11951_v38 }
0x103d   : >> { %v11974_v0 = vsel %vm11958_vm14, %v11950_v47, %v11966_v15 }
0x103e   : >> { %v16199_v59 = vpack.c.bf16 %v11974_v0, %v11972_v28  ;;  %v11975_v12 = vsel %vm11959_vm15, %v11951_v38, %v11967_v52 }
0x103f   : >> { %v16197_v37 = vpack.c.bf16 %v11975_v12, %v11973_v30 }
0x1041   : >> { %16198 = vmatprep.subr.bf16.mxu0 %v16197_v37 }
0x1042   : >> { %16200 = vmatpush1.bf16.msra.mxu0 %v16199_v59 }
0x1045   : >> { %13153 = vmatmul.mubr.msk.f32.vlgmr.msra.gmra.mrb[224].mxu0 %vm1194_vm8, %v11976_v60 }
0x1118   : >> { %v12056_v25 = vpop.f32.mrb[224].mxu0 }
0x1119   : >> { %v12057_v34 = vadd.f32 %v12056_v25, %v11986_v32  ;;  %v12058_v7 = vpop.f32.mrb[225].mxu0 }
0x111a   : >> { %v12059_v10 = vadd.f32 %v12058_v7, %v11986_v32  ;;  %v20037_v7 = vmov %v19527_v33 }
0x111c   : >> { %v12063_v19 = vcombine.low %v12057_v34, %v12059_v10  ;;  %1038 = sbr.rel (!%p1036_p12) target bundleno = 695 (0x2b7), region = 293 }
0x111e   : >> { %v12070_v21 = vrot.slane %v12063_v19, %v12069_v43 }
0x1120   : >> { %v12077_v29 = vrot.slane %v12070_v21, %v12069_v43 }
0x1122   : >> { %12084 = vst.msk [vmem:[%s12079_s4] sm:$0x3] %vm12082_vm0, %v12077_v29  ;;  %s17633_s4 = scalar_lea.vmem (%p1036_p12), %s19860_s25, 608 }
0x1123   : > { %p17634_p1 = scmp.ne.s32.totalorder %s19860_s25, %s17633_s4  ;;  %p17641_p6 = scmp.lt.s32.totalorder %s17639_s7, %s17633_s4 }
0x1125   : > { %p17635_p0 = pnand %p17634_p1, %p20041_p13  ;;  %p17642_p10 = por %p17641_p6, %p17640_p8 }
0x1127   : > { %p17636_p2 = pneg %p17635_p0 }
0x1129   : > { %p17643_p11 = pnand %p17642_p10, %p17636_p2 }
0x112b   : > { %17646 = shalt.err (!%p17643_p11)
}
0x112c   : > { %s17647_s11 = scalar_lea.hbm %s19858_s6, 608  ;;  %s17651_s0 = scalar_lea.hbm %s20040_s21, 1216 }
0x112d   : > { %p17648_p3 = scmp.ne.s32.totalorder %s19858_s6, %s17647_s11  ;;  %p17652_p7 = scmp.lt.u32.totalorder %s19858_s6, %s20040_s21 }
0x112e   : > { %p17653_p4 = scmp.lt.u32.totalorder %s17651_s0, %s17647_s11  ;;  %p17655_p1 = scmp.lt.u32.totalorder %s17647_s11, %s19858_s6 }
0x112f   : > { %p17649_p5 = pnand %p17648_p3, %p20041_p13 }
0x1130   : > { %p17654_p12 = por %p17653_p4, %p17652_p7 }
0x1131   : > { %p17650_p9 = pneg %p17649_p5 }
0x1132   : > { %p17656_p0 = por %p17655_p1, %p17654_p12 }
0x1134   : > { %p17657_p2 = pnand %p17656_p0, %p17650_p9 }
0x1136   : > { %17660 = shalt.err (!%p17657_p2)
}
0x1137   : > { %s17849_s4 = smov 32   ;;  %s17850_s12 = smov 2  }
0x1138   : > { %16695 = dma.vmem_to_hbm [thread:$0]  (%p20041_p13), %s19860_s25, 608, %s19858_s6, %s12086_s28, %s17849_s4, %s17849_s4, %s17850_s12  }
0x1139 PF: > { %s20042_s7 = sld [smem:[#allocation52_spill]]  ;;  %s20043_s8 = sld [smem:[#allocation55_spill]] }
0x113a   : > { %p20044_p8 = scmp.ne.s32.totalorder %s20008_s1, 0 }
0x113f   : > { %s12114_s22 = sand.u32 1, %s20042_s7   ;;  %p20045_p6 = scmp.ge.s32.totalorder %s20043_s8, 2 }
0x1140   : > { %s12115_s11 = scalar_lea.sflag [#allocation5], %s12114_s22 }
0x1141   : > { %p16766_p10 = pnand %p20045_p6, %p20044_p8 }
0x1143   : > { %17762 = dma.done.wait (!%p16766_p10), %s12115_s11, 608  }
0x1144   : > { %17764 = vsyncadd (!%p16766_p10), %s12115_s11, 4294966688  ;;  %s20046_s24 = sld [smem:[#allocation53_spill]]  ;;  %s20047_s25 = sld [smem:[#allocation54_spill]] }
0x1145   : > { %p49_p11 = scmp.ge.s32.totalorder %s18477_s5, 4   ;;  %s20048_s22 = smov %s18489_s20 }
0x1147   :  { %51 = sbr.rel (!%p49_p11) target bundleno = 33 (0x21), region = 304 }
0x114e   :  { %12120 = vsyncpa [#allocation4], 1 }
0x114f   :  { %12122 = vsyncpa [#allocation4 + $0x1], 1 }
0x1150   :  { %12123 = vsyncpa [#allocation7], 1 }
0x1151   :  { %12124 = vsyncpa [#allocation10], 1 }
0x1152   :  { %12125 = vsyncpa [#allocation13], 1 }
0x1153   :  { %12126 = vsyncpa [#allocation16], 1 }
0x1154   :  { %12127 = vsyncpa [#allocation19], 1 }
0x1155   :  { %12128 = vsyncpa [#allocation22], 1 }
0x1156   :  { %12129 = vsyncpa [#allocation25], 1 }
0x1157   :  { %12130 = vsyncpa [#allocation28], 1 }
0x1158   :  { %12131 = vsyncpa [#allocation31], 1 }
0x1159   :  { %12132 = vsyncpa [#allocation34], 1 }
0x115a   :  { %12133 = vsyncpa [#allocation37], 1 }
0x115b   :  { %12134 = vsyncpa [#allocation5], 1 }
0x115c   :  { %12136 = vsyncpa [#allocation5 + $0x1], 1 }

</bundles_post_ra>
